<compile_context>
chip_gen: v7x
topology: tpu7x:2x2x1
jax: 0.10.0
libtpu: 0.0.40
codegen_flags: <defaults>
</compile_context>

<pallas_src>
import functools

import jax
import jax.numpy as jnp
import numpy as np
from jax import lax
from jax.experimental import pallas as pl
from jax.experimental.pallas import tpu as pltpu

# ---- problem sizes (small, consistent with the module) ----
V = 100            # vocab size
E = 64             # embedding_dim
H = E // 2         # LSTM hidden per direction (32)
T = 8              # sequence length
B = 4              # batch
C = 10             # category_num (len(aspect2idx))
P = 3              # polarity_num (len(sentiment2idx))
HID = 32           # hidden width of the per-category MLP heads
THRESHOLD = 0.4

G4 = 4 * H         # 128 (one vreg lane width)
NH1 = 2 * C * HID  # 640 (packed head hidden width)
NL = C + C * P     # 40  (packed head logits: C category + C*P sentiment)
FP_W = 128         # padded f32 output slab width
INT_W = 128        # padded i32 output slab width

_PREC = jax.lax.Precision.HIGHEST


# ------------------------------------------------------------------
# Fused kernel: gather + BiLSTM + mean-pool + heads + decisions
# ------------------------------------------------------------------
def fused_kernel(threshold, tok_ref, emb_ref, wih_ref, bih_ref,
                 whhf_ref, whhb_ref, w1_ref, b1_ref, w2_ref, b2_ref,
                 fp_ref, ip_ref):
    f32 = jnp.float32

    # ---- embedding gather as a one-hot matmul (exact selection, MXU) ----
    tok = tok_ref[...]                                          # [T*B, 1] int32 (time-major)
    iota = lax.broadcasted_iota(jnp.int32, (T * B, V), 1)       # [T*B, V]
    onehot = jnp.where(iota == tok, 1.0, 0.0).astype(f32)       # [T*B, V]
    x = jnp.dot(onehot, emb_ref[...],
                preferred_element_type=f32, precision=_PREC)    # [T*B, E]

    # ---- hoisted input projection for BOTH directions, biases folded in ----
    gx = jnp.dot(x, wih_ref[...],
                 preferred_element_type=f32, precision=_PREC) + bih_ref[...]  # [T*B, 8H]

    whh_f = whhf_ref[...]                                       # [H, 4H]
    whh_b = whhb_ref[...]                                       # [H, 4H]

    def cell(gin, h, c, whh):
        gates = gin + jnp.dot(h, whh,
                              preferred_element_type=f32, precision=_PREC)   # [B, 4H]
        sig = jax.nn.sigmoid(gates)          # one full-vreg EUP pass
        th = jnp.tanh(gates)                 # one full-vreg EUP pass
        i = sig[:, 0:H]
        f = sig[:, H:2 * H]
        g = th[:, 2 * H:3 * H]
        o = sig[:, 3 * H:4 * H]
        c_new = f * c + i * g
        h_new = o * jnp.tanh(c_new)
        return h_new, c_new

    zeros = jnp.zeros((B, H), f32)
    h_f = zeros; c_f = zeros; acc_f = zeros
    h_b = zeros; c_b = zeros; acc_b = zeros

    # Statically unrolled; fwd/bwd interleaved so the two serial chains overlap.
    for t in range(T):
        gf = gx[t * B:(t + 1) * B, 0:G4]                  # forward gates input @ time t
        gb = gx[(T - 1 - t) * B:(T - t) * B, G4:2 * G4]   # backward gates input @ time T-1-t
        h_f, c_f = cell(gf, h_f, c_f, whh_f)
        h_b, c_b = cell(gb, h_b, c_b, whh_b)
        acc_f = acc_f + h_f
        acc_b = acc_b + h_b

    pooled = jnp.concatenate([acc_f, acc_b], axis=1) * (1.0 / T)  # [B, 2H]
    # Dropout(0.5) is identity at inference.

    # ---- all 2*C heads as two lane-dense matmuls ----
    h1 = jnp.maximum(
        jnp.dot(pooled, w1_ref[...],
                preferred_element_type=f32, precision=_PREC) + b1_ref[...], 0.0)   # [B, 640]
    logits = jnp.dot(h1, w2_ref[...],
                     preferred_element_type=f32, precision=_PREC) + b2_ref[...]    # [B, 40]

    cat = logits[:, 0:C]              # [B, C]  category logits
    s0 = logits[:, C:2 * C]           # sentiment logits, polarity-major layout
    s1 = logits[:, 2 * C:3 * C]
    s2 = logits[:, 3 * C:4 * C]

    # ---- decision glue: sigmoid / threshold / argmax over P=3 (elementwise only) ----
    hit = jax.nn.sigmoid(cat) >= threshold
    pred_cat = jnp.where(hit, 1, 0).astype(jnp.int32)
    am01 = jnp.where(s1 > s0, 1, 0)                    # first-max tie-breaking (== argmax)
    mx01 = jnp.maximum(s0, s1)
    sent_arg = jnp.where(s2 > mx01, 2, am01)
    pred_sent = jnp.where(hit, sent_arg, -1).astype(jnp.int32)

    # ---- lane-dense output slabs, single full stores ----
    fp_ref[...] = jnp.concatenate(
        [pooled, logits, jnp.zeros((B, FP_W - 2 * H - NL), f32)], axis=1)
    ip_ref[...] = jnp.concatenate(
        [pred_cat, pred_sent, jnp.zeros((B, INT_W - 2 * C), jnp.int32)], axis=1)


def _fused_call(threshold):
    vmem = lambda: pl.BlockSpec(memory_space=pltpu.MemorySpace.VMEM)
    return pl.pallas_call(
        functools.partial(fused_kernel, threshold),
        out_shape=(jax.ShapeDtypeStruct((B, FP_W), jnp.float32),
                   jax.ShapeDtypeStruct((B, INT_W), jnp.int32)),
        in_specs=[vmem() for _ in range(10)],
        out_specs=(vmem(), vmem()),
    )


# ------------------------------------------------------------------
# Host-side weight repacking (layout plumbing, done once)
# ------------------------------------------------------------------
def prepare_params(p):
    """Repack PyTorch-layout params into the fused-kernel layout."""
    wih_fb = jnp.concatenate([p["wih_f"].T, p["wih_b"].T], axis=1)       # [E, 8H]
    bih_fb = jnp.concatenate([p["b_f"], p["b_b"]], axis=1)               # [1, 8H]
    whh_f_t = p["whh_f"].T                                               # [H, 4H]
    whh_b_t = p["whh_b"].T                                               # [H, 4H]

    # Heads first layer: columns [c*HID:(c+1)*HID] = w1c[c].T ;
    #                    columns [C*HID + c*HID : ...] = w1s[c].T
    w1c_t = jnp.transpose(p["w1c"], (2, 0, 1)).reshape(E, C * HID)
    w1s_t = jnp.transpose(p["w1s"], (2, 0, 1)).reshape(E, C * HID)
    w1_heads = jnp.concatenate([w1c_t, w1s_t], axis=1)                   # [E, 640]
    b1_heads = jnp.concatenate([p["b1c"].reshape(1, C * HID),
                                p["b1s"].reshape(1, C * HID)], axis=1)   # [1, 640]

    # Heads second layer: block-diagonal [2*C*HID, C + C*P]
    #   output col c           -> category logit c
    #   output col C + p*C + c -> sentiment logit (category c, polarity p)
    w2c = np.asarray(p["w2c"]); b2c = np.asarray(p["b2c"])
    w2s = np.asarray(p["w2s"]); b2s = np.asarray(p["b2s"])
    w2 = np.zeros((NH1, NL), np.float32)
    b2 = np.zeros((1, NL), np.float32)
    for c in range(C):
        w2[c * HID:(c + 1) * HID, c] = w2c[c, 0, :]
        b2[0, c] = b2c[c, 0, 0]
        for pp in range(P):
            col = C + pp * C + c
            w2[C * HID + c * HID:C * HID + (c + 1) * HID, col] = w2s[c, pp, :]
            b2[0, col] = b2s[c, 0, pp]

    return {
        "embedding": p["embedding"],
        "wih_fb": wih_fb, "bih_fb": bih_fb,
        "whh_f_t": whh_f_t, "whh_b_t": whh_b_t,
        "w1_heads": w1_heads, "b1_heads": b1_heads,
        "w2_heads": jnp.asarray(w2), "b2_heads": jnp.asarray(b2),
    }


# ------------------------------------------------------------------
# Full forward (tiny wrapper around the single fused kernel)
# ------------------------------------------------------------------
def lstm_base_forward(tokens, kparams, threshold=THRESHOLD):
    # time-major flat token ids (row t*B + b) so x_t is a contiguous row block
    tok_tb = jnp.transpose(tokens).reshape(T * B, 1).astype(jnp.int32)

    fp, ip = _fused_call(threshold)(
        tok_tb, kparams["embedding"], kparams["wih_fb"], kparams["bih_fb"],
        kparams["whh_f_t"], kparams["whh_b_t"],
        kparams["w1_heads"], kparams["b1_heads"],
        kparams["w2_heads"], kparams["b2_heads"])

    pooled = fp[:, 0:2 * H]                              # [B, 2H]
    cat_logits = fp[:, 2 * H:2 * H + C]                  # [B, C]
    sent_logits_pm = fp[:, 2 * H + C:2 * H + 4 * C]      # [B, 3C] (polarity-major)
    out = {"pred_category": ip[:, 0:C],                  # [B, C] int32
           "pred_sentiment": ip[:, C:2 * C]}             # [B, C] int32
    return out, pooled, cat_logits, sent_logits_pm


# ------------------------------------------------------------------
# Pure-JAX reference (PyTorch-layout params) for correctness check
# ------------------------------------------------------------------
def lstm_dir_ref(x_bte, wih, whh, b):
    h = jnp.zeros((B, H), jnp.float32)
    c = jnp.zeros((B, H), jnp.float32)
    hs = []
    for t in range(T):
        gates = x_bte[:, t] @ wih.T + h @ whh.T + b
        i = jax.nn.sigmoid(gates[:, :H])
        f = jax.nn.sigmoid(gates[:, H:2 * H])
        g = jnp.tanh(gates[:, 2 * H:3 * H])
        o = jax.nn.sigmoid(gates[:, 3 * H:])
        c = f * c + i * g
        h = o * jnp.tanh(c)
        hs.append(h)
    return jnp.stack(hs, axis=1)                         # [B, T, H]


def reference(tokens, params):
    emb = params["embedding"][tokens]                    # [B, T, E]
    hf = lstm_dir_ref(emb, params["wih_f"], params["whh_f"], params["b_f"])
    hb = lstm_dir_ref(emb[:, ::-1], params["wih_b"], params["whh_b"], params["b_b"])
    pooled = jnp.concatenate([hf.mean(axis=1), hb.mean(axis=1)], axis=-1)  # [B, 2H]
    cat_l, sent_l = [], []
    for i in range(C):
        hc = jnp.maximum(pooled @ params["w1c"][i].T + params["b1c"][i], 0.0)
        cat_l.append(hc @ params["w2c"][i].T + params["b2c"][i])
        hs = jnp.maximum(pooled @ params["w1s"][i].T + params["b1s"][i], 0.0)
        sent_l.append(hs @ params["w2s"][i].T + params["b2s"][i])
    return pooled, jnp.stack(cat_l), jnp.stack(sent_l)   # [B,2H], [C,B,1], [C,B,P]


# ------------------------------------------------------------------
def init_params(key):
    ks = jax.random.split(key, 16)
    s = 0.1
    return {
        "embedding": jax.random.normal(ks[0], (V, E), jnp.float32) * s,
        "wih_f": jax.random.normal(ks[1], (4 * H, E), jnp.float32) * s,
        "whh_f": jax.random.normal(ks[2], (4 * H, H), jnp.float32) * s,
        "b_f":   jax.random.normal(ks[3], (1, 4 * H), jnp.float32) * s,
        "wih_b": jax.random.normal(ks[4], (4 * H, E), jnp.float32) * s,
        "whh_b": jax.random.normal(ks[5], (4 * H, H), jnp.float32) * s,
        "b_b":   jax.random.normal(ks[6], (1, 4 * H), jnp.float32) * s,
        "w1c": jax.random.normal(ks[7], (C, HID, E), jnp.float32) * s,
        "b1c": jax.random.normal(ks[8], (C, 1, HID), jnp.float32) * s,
        "w2c": jax.random.normal(ks[9], (C, 1, HID), jnp.float32) * s,
        "b2c": jax.random.normal(ks[10], (C, 1, 1), jnp.float32) * s,
        "w1s": jax.random.normal(ks[11], (C, HID, E), jnp.float32) * s,
        "b1s": jax.random.normal(ks[12], (C, 1, HID), jnp.float32) * s,
        "w2s": jax.random.normal(ks[13], (C, P, HID), jnp.float32) * s,
        "b2s": jax.random.normal(ks[14], (C, 1, P), jnp.float32) * s,
    }


if __name__ == "__main__":
    # Keep wrapper/reference matmuls at full f32 precision so the correctness
    # check is comparing like against like (kernel dots use Precision.HIGHEST).
    jax.config.update("jax_default_matmul_precision", "highest")

    key = jax.random.PRNGKey(0)
    k_tok, k_par = jax.random.split(key)
    tokens = jax.random.randint(k_tok, (B, T), 0, V, dtype=jnp.int32)
    # labels / mask are accepted by the torch forward but do not affect the
    # returned output dict; unused here.
    params = init_params(k_par)
    kparams = prepare_params(params)

    fwd = jax.jit(lstm_base_forward)
    out, pooled, cat_logits, sent_pm = fwd(tokens, kparams)
    jax.block_until_ready((out, pooled, cat_logits, sent_pm))

    # ---- correctness checks against the pure-JAX reference ----
    pooled_ref, cat_ref, sent_ref = reference(tokens, params)
    np.testing.assert_allclose(np.asarray(pooled), np.asarray(pooled_ref),
                               rtol=1e-3, atol=1e-3)
    np.testing.assert_allclose(np.asarray(cat_logits.T), np.asarray(cat_ref[:, :, 0]),
                               rtol=1e-3, atol=1e-3)
    # kernel sentiment layout is [B, P*C] polarity-major -> reshape to [C, B, P]
    sent_k = jnp.transpose(sent_pm.reshape(B, P, C), (2, 0, 1))
    np.testing.assert_allclose(np.asarray(sent_k), np.asarray(sent_ref),
                               rtol=1e-3, atol=1e-3)

    # prediction glue check (sigmoid/threshold + argmax) vs reference
    cat_prob_ref = jax.nn.sigmoid(cat_ref[:, :, 0])                 # [C, B]
    hit_ref = cat_prob_ref >= THRESHOLD
    sent_arg_ref = jnp.argmax(sent_ref, axis=-1)                    # [C, B]
    pred_cat_ref = jnp.transpose(hit_ref.astype(jnp.int32))         # [B, C]
    pred_sent_ref = jnp.transpose(
        jnp.where(hit_ref, sent_arg_ref, -1).astype(jnp.int32))     # [B, C]
    np.testing.assert_array_equal(np.asarray(out["pred_category"]),
                                  np.asarray(pred_cat_ref))
    np.testing.assert_array_equal(np.asarray(out["pred_sentiment"]),
                                  np.asarray(pred_sent_ref))

    assert out["pred_category"].shape == (B, C)
    assert out["pred_sentiment"].shape == (B, C)
    print("KERNEL_OK")
</pallas_src>

<mosaic_0001>
module attributes {stable_mosaic.version = 11 : i64} {
  func.func @fused_kernel(%arg0: memref<32x1xi32, #tpu.memory_space<vmem>>, %arg1: memref<100x64xf32, #tpu.memory_space<vmem>>, %arg2: memref<64x256xf32, #tpu.memory_space<vmem>>, %arg3: memref<1x256xf32, #tpu.memory_space<vmem>>, %arg4: memref<32x128xf32, #tpu.memory_space<vmem>>, %arg5: memref<32x128xf32, #tpu.memory_space<vmem>>, %arg6: memref<64x640xf32, #tpu.memory_space<vmem>>, %arg7: memref<1x640xf32, #tpu.memory_space<vmem>>, %arg8: memref<640x40xf32, #tpu.memory_space<vmem>>, %arg9: memref<1x40xf32, #tpu.memory_space<vmem>>, %arg10: memref<4x128xf32, #tpu.memory_space<vmem>>, %arg11: memref<4x128xi32, #tpu.memory_space<vmem>>) attributes {dimension_semantics = [], scalar_prefetch = 0 : i64, scratch_operands = 0 : i64, tpu.core_type = #tpu.core_type<tc>} {
    %c0 = arith.constant 0 : index
    %c0_0 = arith.constant 0 : index
    %0 = vector.load %arg0[%c0, %c0_0] : memref<32x1xi32, #tpu.memory_space<vmem>>, vector<32x1xi32>
    %1 = tpu.iota {dimensions = array<i32: 1>} : vector<32x100xi32>
    %2 = vector.broadcast %0 : vector<32x1xi32> to vector<32x100xi32>
    %3 = arith.cmpi eq, %1, %2 : vector<32x100xi32>
    %cst = arith.constant 1.000000e+00 : f32
    %cst_1 = arith.constant 0.000000e+00 : f32
    %4 = vector.broadcast %cst : f32 to vector<32x100xf32>
    %5 = vector.broadcast %cst_1 : f32 to vector<32x100xf32>
    %6 = arith.select %3, %4, %5 : vector<32x100xi1>, vector<32x100xf32>
    %c0_2 = arith.constant 0 : index
    %c0_3 = arith.constant 0 : index
    %7 = vector.load %arg1[%c0_2, %c0_3] : memref<100x64xf32, #tpu.memory_space<vmem>>, vector<100x64xf32>
    %cst_4 = arith.constant dense<0.000000e+00> : vector<32x64xf32>
    %8 = tpu.matmul %6, %7, %cst_4 {dimension_numbers = #tpu.dot_dimension_numbers<[1], [0], [0], [1], [0, 0, 1, 1], [], []>, precision = #tpu.contract_precision<fp32>} : vector<32x100xf32>, vector<100x64xf32>, vector<32x64xf32> -> vector<32x64xf32>
    %c0_5 = arith.constant 0 : index
    %c0_6 = arith.constant 0 : index
    %9 = vector.load %arg2[%c0_5, %c0_6] : memref<64x256xf32, #tpu.memory_space<vmem>>, vector<64x256xf32>
    %cst_7 = arith.constant dense<0.000000e+00> : vector<32x256xf32>
    %10 = tpu.matmul %8, %9, %cst_7 {dimension_numbers = #tpu.dot_dimension_numbers<[1], [0], [0], [1], [0, 0, 1, 1], [], []>, precision = #tpu.contract_precision<fp32>} : vector<32x64xf32>, vector<64x256xf32>, vector<32x256xf32> -> vector<32x256xf32>
    %c0_8 = arith.constant 0 : index
    %c0_9 = arith.constant 0 : index
    %11 = vector.load %arg3[%c0_8, %c0_9] : memref<1x256xf32, #tpu.memory_space<vmem>>, vector<1x256xf32>
    %12 = vector.broadcast %11 : vector<1x256xf32> to vector<32x256xf32>
    %13 = arith.addf %10, %12 : vector<32x256xf32>
    %c0_10 = arith.constant 0 : index
    %c0_11 = arith.constant 0 : index
    %14 = vector.load %arg4[%c0_10, %c0_11] : memref<32x128xf32, #tpu.memory_space<vmem>>, vector<32x128xf32>
    %c0_12 = arith.constant 0 : index
    %c0_13 = arith.constant 0 : index
    %15 = vector.load %arg5[%c0_12, %c0_13] : memref<32x128xf32, #tpu.memory_space<vmem>>, vector<32x128xf32>
    %cst_14 = arith.constant 0.000000e+00 : f32
    %16 = vector.broadcast %cst_14 : f32 to vector<4x32xf32>
    %17 = vector.extract_strided_slice %13 {offsets = [0, 0], sizes = [4, 128], strides = [1, 1]} : vector<32x256xf32> to vector<4x128xf32>
    %18 = vector.extract_strided_slice %13 {offsets = [28, 128], sizes = [4, 128], strides = [1, 1]} : vector<32x256xf32> to vector<4x128xf32>
    %cst_15 = arith.constant dense<0.000000e+00> : vector<4x128xf32>
    %19 = tpu.matmul %16, %14, %cst_15 {dimension_numbers = #tpu.dot_dimension_numbers<[1], [0], [0], [1], [0, 0, 1, 1], [], []>, precision = #tpu.contract_precision<fp32>} : vector<4x32xf32>, vector<32x128xf32>, vector<4x128xf32> -> vector<4x128xf32>
    %20 = arith.addf %17, %19 : vector<4x128xf32>
    %21 = arith.negf %20 : vector<4x128xf32>
    %22 = math.exp %21 : vector<4x128xf32>
    %cst_16 = arith.constant 1.000000e+00 : f32
    %23 = vector.broadcast %cst_16 : f32 to vector<4x128xf32>
    %24 = arith.addf %23, %22 : vector<4x128xf32>
    %25 = arith.divf %23, %24 : vector<4x128xf32>
    %26 = math.tanh %20 : vector<4x128xf32>
    %27 = vector.extract_strided_slice %25 {offsets = [0, 0], sizes = [4, 32], strides = [1, 1]} : vector<4x128xf32> to vector<4x32xf32>
    %28 = vector.extract_strided_slice %25 {offsets = [0, 32], sizes = [4, 32], strides = [1, 1]} : vector<4x128xf32> to vector<4x32xf32>
    %29 = vector.extract_strided_slice %26 {offsets = [0, 64], sizes = [4, 32], strides = [1, 1]} : vector<4x128xf32> to vector<4x32xf32>
    %30 = vector.extract_strided_slice %25 {offsets = [0, 96], sizes = [4, 32], strides = [1, 1]} : vector<4x128xf32> to vector<4x32xf32>
    %31 = arith.mulf %28, %16 : vector<4x32xf32>
    %32 = arith.mulf %27, %29 : vector<4x32xf32>
    %33 = arith.addf %31, %32 : vector<4x32xf32>
    %34 = math.tanh %33 : vector<4x32xf32>
    %35 = arith.mulf %30, %34 : vector<4x32xf32>
    %cst_17 = arith.constant dense<0.000000e+00> : vector<4x128xf32>
    %36 = tpu.matmul %16, %15, %cst_17 {dimension_numbers = #tpu.dot_dimension_numbers<[1], [0], [0], [1], [0, 0, 1, 1], [], []>, precision = #tpu.contract_precision<fp32>} : vector<4x32xf32>, vector<32x128xf32>, vector<4x128xf32> -> vector<4x128xf32>
    %37 = arith.addf %18, %36 : vector<4x128xf32>
    %38 = arith.negf %37 : vector<4x128xf32>
    %39 = math.exp %38 : vector<4x128xf32>
    %cst_18 = arith.constant 1.000000e+00 : f32
    %40 = vector.broadcast %cst_18 : f32 to vector<4x128xf32>
    %41 = arith.addf %40, %39 : vector<4x128xf32>
    %42 = arith.divf %40, %41 : vector<4x128xf32>
    %43 = math.tanh %37 : vector<4x128xf32>
    %44 = vector.extract_strided_slice %42 {offsets = [0, 0], sizes = [4, 32], strides = [1, 1]} : vector<4x128xf32> to vector<4x32xf32>
    %45 = vector.extract_strided_slice %42 {offsets = [0, 32], sizes = [4, 32], strides = [1, 1]} : vector<4x128xf32> to vector<4x32xf32>
    %46 = vector.extract_strided_slice %43 {offsets = [0, 64], sizes = [4, 32], strides = [1, 1]} : vector<4x128xf32> to vector<4x32xf32>
    %47 = vector.extract_strided_slice %42 {offsets = [0, 96], sizes = [4, 32], strides = [1, 1]} : vector<4x128xf32> to vector<4x32xf32>
    %48 = arith.mulf %45, %16 : vector<4x32xf32>
    %49 = arith.mulf %44, %46 : vector<4x32xf32>
    %50 = arith.addf %48, %49 : vector<4x32xf32>
    %51 = math.tanh %50 : vector<4x32xf32>
    %52 = arith.mulf %47, %51 : vector<4x32xf32>
    %53 = arith.addf %16, %35 : vector<4x32xf32>
    %54 = arith.addf %16, %52 : vector<4x32xf32>
    %55 = vector.extract_strided_slice %13 {offsets = [4, 0], sizes = [4, 128], strides = [1, 1]} : vector<32x256xf32> to vector<4x128xf32>
    %56 = vector.extract_strided_slice %13 {offsets = [24, 128], sizes = [4, 128], strides = [1, 1]} : vector<32x256xf32> to vector<4x128xf32>
    %cst_19 = arith.constant dense<0.000000e+00> : vector<4x128xf32>
    %57 = tpu.matmul %35, %14, %cst_19 {dimension_numbers = #tpu.dot_dimension_numbers<[1], [0], [0], [1], [0, 0, 1, 1], [], []>, precision = #tpu.contract_precision<fp32>} : vector<4x32xf32>, vector<32x128xf32>, vector<4x128xf32> -> vector<4x128xf32>
    %58 = arith.addf %55, %57 : vector<4x128xf32>
    %59 = arith.negf %58 : vector<4x128xf32>
    %60 = math.exp %59 : vector<4x128xf32>
    %cst_20 = arith.constant 1.000000e+00 : f32
    %61 = vector.broadcast %cst_20 : f32 to vector<4x128xf32>
    %62 = arith.addf %61, %60 : vector<4x128xf32>
    %63 = arith.divf %61, %62 : vector<4x128xf32>
    %64 = math.tanh %58 : vector<4x128xf32>
    %65 = vector.extract_strided_slice %63 {offsets = [0, 0], sizes = [4, 32], strides = [1, 1]} : vector<4x128xf32> to vector<4x32xf32>
    %66 = vector.extract_strided_slice %63 {offsets = [0, 32], sizes = [4, 32], strides = [1, 1]} : vector<4x128xf32> to vector<4x32xf32>
    %67 = vector.extract_strided_slice %64 {offsets = [0, 64], sizes = [4, 32], strides = [1, 1]} : vector<4x128xf32> to vector<4x32xf32>
    %68 = vector.extract_strided_slice %63 {offsets = [0, 96], sizes = [4, 32], strides = [1, 1]} : vector<4x128xf32> to vector<4x32xf32>
    %69 = arith.mulf %66, %33 : vector<4x32xf32>
    %70 = arith.mulf %65, %67 : vector<4x32xf32>
    %71 = arith.addf %69, %70 : vector<4x32xf32>
    %72 = math.tanh %71 : vector<4x32xf32>
    %73 = arith.mulf %68, %72 : vector<4x32xf32>
    %cst_21 = arith.constant dense<0.000000e+00> : vector<4x128xf32>
    %74 = tpu.matmul %52, %15, %cst_21 {dimension_numbers = #tpu.dot_dimension_numbers<[1], [0], [0], [1], [0, 0, 1, 1], [], []>, precision = #tpu.contract_precision<fp32>} : vector<4x32xf32>, vector<32x128xf32>, vector<4x128xf32> -> vector<4x128xf32>
    %75 = arith.addf %56, %74 : vector<4x128xf32>
    %76 = arith.negf %75 : vector<4x128xf32>
    %77 = math.exp %76 : vector<4x128xf32>
    %cst_22 = arith.constant 1.000000e+00 : f32
    %78 = vector.broadcast %cst_22 : f32 to vector<4x128xf32>
    %79 = arith.addf %78, %77 : vector<4x128xf32>
    %80 = arith.divf %78, %79 : vector<4x128xf32>
    %81 = math.tanh %75 : vector<4x128xf32>
    %82 = vector.extract_strided_slice %80 {offsets = [0, 0], sizes = [4, 32], strides = [1, 1]} : vector<4x128xf32> to vector<4x32xf32>
    %83 = vector.extract_strided_slice %80 {offsets = [0, 32], sizes = [4, 32], strides = [1, 1]} : vector<4x128xf32> to vector<4x32xf32>
    %84 = vector.extract_strided_slice %81 {offsets = [0, 64], sizes = [4, 32], strides = [1, 1]} : vector<4x128xf32> to vector<4x32xf32>
    %85 = vector.extract_strided_slice %80 {offsets = [0, 96], sizes = [4, 32], strides = [1, 1]} : vector<4x128xf32> to vector<4x32xf32>
    %86 = arith.mulf %83, %50 : vector<4x32xf32>
    %87 = arith.mulf %82, %84 : vector<4x32xf32>
    %88 = arith.addf %86, %87 : vector<4x32xf32>
    %89 = math.tanh %88 : vector<4x32xf32>
    %90 = arith.mulf %85, %89 : vector<4x32xf32>
    %91 = arith.addf %53, %73 : vector<4x32xf32>
    %92 = arith.addf %54, %90 : vector<4x32xf32>
    %93 = vector.extract_strided_slice %13 {offsets = [8, 0], sizes = [4, 128], strides = [1, 1]} : vector<32x256xf32> to vector<4x128xf32>
    %94 = vector.extract_strided_slice %13 {offsets = [20, 128], sizes = [4, 128], strides = [1, 1]} : vector<32x256xf32> to vector<4x128xf32>
    %cst_23 = arith.constant dense<0.000000e+00> : vector<4x128xf32>
    %95 = tpu.matmul %73, %14, %cst_23 {dimension_numbers = #tpu.dot_dimension_numbers<[1], [0], [0], [1], [0, 0, 1, 1], [], []>, precision = #tpu.contract_precision<fp32>} : vector<4x32xf32>, vector<32x128xf32>, vector<4x128xf32> -> vector<4x128xf32>
    %96 = arith.addf %93, %95 : vector<4x128xf32>
    %97 = arith.negf %96 : vector<4x128xf32>
    %98 = math.exp %97 : vector<4x128xf32>
    %cst_24 = arith.constant 1.000000e+00 : f32
    %99 = vector.broadcast %cst_24 : f32 to vector<4x128xf32>
    %100 = arith.addf %99, %98 : vector<4x128xf32>
    %101 = arith.divf %99, %100 : vector<4x128xf32>
    %102 = math.tanh %96 : vector<4x128xf32>
    %103 = vector.extract_strided_slice %101 {offsets = [0, 0], sizes = [4, 32], strides = [1, 1]} : vector<4x128xf32> to vector<4x32xf32>
    %104 = vector.extract_strided_slice %101 {offsets = [0, 32], sizes = [4, 32], strides = [1, 1]} : vector<4x128xf32> to vector<4x32xf32>
    %105 = vector.extract_strided_slice %102 {offsets = [0, 64], sizes = [4, 32], strides = [1, 1]} : vector<4x128xf32> to vector<4x32xf32>
    %106 = vector.extract_strided_slice %101 {offsets = [0, 96], sizes = [4, 32], strides = [1, 1]} : vector<4x128xf32> to vector<4x32xf32>
    %107 = arith.mulf %104, %71 : vector<4x32xf32>
    %108 = arith.mulf %103, %105 : vector<4x32xf32>
    %109 = arith.addf %107, %108 : vector<4x32xf32>
    %110 = math.tanh %109 : vector<4x32xf32>
    %111 = arith.mulf %106, %110 : vector<4x32xf32>
    %cst_25 = arith.constant dense<0.000000e+00> : vector<4x128xf32>
    %112 = tpu.matmul %90, %15, %cst_25 {dimension_numbers = #tpu.dot_dimension_numbers<[1], [0], [0], [1], [0, 0, 1, 1], [], []>, precision = #tpu.contract_precision<fp32>} : vector<4x32xf32>, vector<32x128xf32>, vector<4x128xf32> -> vector<4x128xf32>
    %113 = arith.addf %94, %112 : vector<4x128xf32>
    %114 = arith.negf %113 : vector<4x128xf32>
    %115 = math.exp %114 : vector<4x128xf32>
    %cst_26 = arith.constant 1.000000e+00 : f32
    %116 = vector.broadcast %cst_26 : f32 to vector<4x128xf32>
    %117 = arith.addf %116, %115 : vector<4x128xf32>
    %118 = arith.divf %116, %117 : vector<4x128xf32>
    %119 = math.tanh %113 : vector<4x128xf32>
    %120 = vector.extract_strided_slice %118 {offsets = [0, 0], sizes = [4, 32], strides = [1, 1]} : vector<4x128xf32> to vector<4x32xf32>
    %121 = vector.extract_strided_slice %118 {offsets = [0, 32], sizes = [4, 32], strides = [1, 1]} : vector<4x128xf32> to vector<4x32xf32>
    %122 = vector.extract_strided_slice %119 {offsets = [0, 64], sizes = [4, 32], strides = [1, 1]} : vector<4x128xf32> to vector<4x32xf32>
    %123 = vector.extract_strided_slice %118 {offsets = [0, 96], sizes = [4, 32], strides = [1, 1]} : vector<4x128xf32> to vector<4x32xf32>
    %124 = arith.mulf %121, %88 : vector<4x32xf32>
    %125 = arith.mulf %120, %122 : vector<4x32xf32>
    %126 = arith.addf %124, %125 : vector<4x32xf32>
    %127 = math.tanh %126 : vector<4x32xf32>
    %128 = arith.mulf %123, %127 : vector<4x32xf32>
    %129 = arith.addf %91, %111 : vector<4x32xf32>
    %130 = arith.addf %92, %128 : vector<4x32xf32>
    %131 = vector.extract_strided_slice %13 {offsets = [12, 0], sizes = [4, 128], strides = [1, 1]} : vector<32x256xf32> to vector<4x128xf32>
    %132 = vector.extract_strided_slice %13 {offsets = [16, 128], sizes = [4, 128], strides = [1, 1]} : vector<32x256xf32> to vector<4x128xf32>
    %cst_27 = arith.constant dense<0.000000e+00> : vector<4x128xf32>
    %133 = tpu.matmul %111, %14, %cst_27 {dimension_numbers = #tpu.dot_dimension_numbers<[1], [0], [0], [1], [0, 0, 1, 1], [], []>, precision = #tpu.contract_precision<fp32>} : vector<4x32xf32>, vector<32x128xf32>, vector<4x128xf32> -> vector<4x128xf32>
    %134 = arith.addf %131, %133 : vector<4x128xf32>
    %135 = arith.negf %134 : vector<4x128xf32>
    %136 = math.exp %135 : vector<4x128xf32>
    %cst_28 = arith.constant 1.000000e+00 : f32
    %137 = vector.broadcast %cst_28 : f32 to vector<4x128xf32>
    %138 = arith.addf %137, %136 : vector<4x128xf32>
    %139 = arith.divf %137, %138 : vector<4x128xf32>
    %140 = math.tanh %134 : vector<4x128xf32>
    %141 = vector.extract_strided_slice %139 {offsets = [0, 0], sizes = [4, 32], strides = [1, 1]} : vector<4x128xf32> to vector<4x32xf32>
    %142 = vector.extract_strided_slice %139 {offsets = [0, 32], sizes = [4, 32], strides = [1, 1]} : vector<4x128xf32> to vector<4x32xf32>
    %143 = vector.extract_strided_slice %140 {offsets = [0, 64], sizes = [4, 32], strides = [1, 1]} : vector<4x128xf32> to vector<4x32xf32>
    %144 = vector.extract_strided_slice %139 {offsets = [0, 96], sizes = [4, 32], strides = [1, 1]} : vector<4x128xf32> to vector<4x32xf32>
    %145 = arith.mulf %142, %109 : vector<4x32xf32>
    %146 = arith.mulf %141, %143 : vector<4x32xf32>
    %147 = arith.addf %145, %146 : vector<4x32xf32>
    %148 = math.tanh %147 : vector<4x32xf32>
    %149 = arith.mulf %144, %148 : vector<4x32xf32>
    %cst_29 = arith.constant dense<0.000000e+00> : vector<4x128xf32>
    %150 = tpu.matmul %128, %15, %cst_29 {dimension_numbers = #tpu.dot_dimension_numbers<[1], [0], [0], [1], [0, 0, 1, 1], [], []>, precision = #tpu.contract_precision<fp32>} : vector<4x32xf32>, vector<32x128xf32>, vector<4x128xf32> -> vector<4x128xf32>
    %151 = arith.addf %132, %150 : vector<4x128xf32>
    %152 = arith.negf %151 : vector<4x128xf32>
    %153 = math.exp %152 : vector<4x128xf32>
    %cst_30 = arith.constant 1.000000e+00 : f32
    %154 = vector.broadcast %cst_30 : f32 to vector<4x128xf32>
    %155 = arith.addf %154, %153 : vector<4x128xf32>
    %156 = arith.divf %154, %155 : vector<4x128xf32>
    %157 = math.tanh %151 : vector<4x128xf32>
    %158 = vector.extract_strided_slice %156 {offsets = [0, 0], sizes = [4, 32], strides = [1, 1]} : vector<4x128xf32> to vector<4x32xf32>
    %159 = vector.extract_strided_slice %156 {offsets = [0, 32], sizes = [4, 32], strides = [1, 1]} : vector<4x128xf32> to vector<4x32xf32>
    %160 = vector.extract_strided_slice %157 {offsets = [0, 64], sizes = [4, 32], strides = [1, 1]} : vector<4x128xf32> to vector<4x32xf32>
    %161 = vector.extract_strided_slice %156 {offsets = [0, 96], sizes = [4, 32], strides = [1, 1]} : vector<4x128xf32> to vector<4x32xf32>
    %162 = arith.mulf %159, %126 : vector<4x32xf32>
    %163 = arith.mulf %158, %160 : vector<4x32xf32>
    %164 = arith.addf %162, %163 : vector<4x32xf32>
    %165 = math.tanh %164 : vector<4x32xf32>
    %166 = arith.mulf %161, %165 : vector<4x32xf32>
    %167 = arith.addf %129, %149 : vector<4x32xf32>
    %168 = arith.addf %130, %166 : vector<4x32xf32>
    %169 = vector.extract_strided_slice %13 {offsets = [16, 0], sizes = [4, 128], strides = [1, 1]} : vector<32x256xf32> to vector<4x128xf32>
    %170 = vector.extract_strided_slice %13 {offsets = [12, 128], sizes = [4, 128], strides = [1, 1]} : vector<32x256xf32> to vector<4x128xf32>
    %cst_31 = arith.constant dense<0.000000e+00> : vector<4x128xf32>
    %171 = tpu.matmul %149, %14, %cst_31 {dimension_numbers = #tpu.dot_dimension_numbers<[1], [0], [0], [1], [0, 0, 1, 1], [], []>, precision = #tpu.contract_precision<fp32>} : vector<4x32xf32>, vector<32x128xf32>, vector<4x128xf32> -> vector<4x128xf32>
    %172 = arith.addf %169, %171 : vector<4x128xf32>
    %173 = arith.negf %172 : vector<4x128xf32>
    %174 = math.exp %173 : vector<4x128xf32>
    %cst_32 = arith.constant 1.000000e+00 : f32
    %175 = vector.broadcast %cst_32 : f32 to vector<4x128xf32>
    %176 = arith.addf %175, %174 : vector<4x128xf32>
    %177 = arith.divf %175, %176 : vector<4x128xf32>
    %178 = math.tanh %172 : vector<4x128xf32>
    %179 = vector.extract_strided_slice %177 {offsets = [0, 0], sizes = [4, 32], strides = [1, 1]} : vector<4x128xf32> to vector<4x32xf32>
    %180 = vector.extract_strided_slice %177 {offsets = [0, 32], sizes = [4, 32], strides = [1, 1]} : vector<4x128xf32> to vector<4x32xf32>
    %181 = vector.extract_strided_slice %178 {offsets = [0, 64], sizes = [4, 32], strides = [1, 1]} : vector<4x128xf32> to vector<4x32xf32>
    %182 = vector.extract_strided_slice %177 {offsets = [0, 96], sizes = [4, 32], strides = [1, 1]} : vector<4x128xf32> to vector<4x32xf32>
    %183 = arith.mulf %180, %147 : vector<4x32xf32>
    %184 = arith.mulf %179, %181 : vector<4x32xf32>
    %185 = arith.addf %183, %184 : vector<4x32xf32>
    %186 = math.tanh %185 : vector<4x32xf32>
    %187 = arith.mulf %182, %186 : vector<4x32xf32>
    %cst_33 = arith.constant dense<0.000000e+00> : vector<4x128xf32>
    %188 = tpu.matmul %166, %15, %cst_33 {dimension_numbers = #tpu.dot_dimension_numbers<[1], [0], [0], [1], [0, 0, 1, 1], [], []>, precision = #tpu.contract_precision<fp32>} : vector<4x32xf32>, vector<32x128xf32>, vector<4x128xf32> -> vector<4x128xf32>
    %189 = arith.addf %170, %188 : vector<4x128xf32>
    %190 = arith.negf %189 : vector<4x128xf32>
    %191 = math.exp %190 : vector<4x128xf32>
    %cst_34 = arith.constant 1.000000e+00 : f32
    %192 = vector.broadcast %cst_34 : f32 to vector<4x128xf32>
    %193 = arith.addf %192, %191 : vector<4x128xf32>
    %194 = arith.divf %192, %193 : vector<4x128xf32>
    %195 = math.tanh %189 : vector<4x128xf32>
    %196 = vector.extract_strided_slice %194 {offsets = [0, 0], sizes = [4, 32], strides = [1, 1]} : vector<4x128xf32> to vector<4x32xf32>
    %197 = vector.extract_strided_slice %194 {offsets = [0, 32], sizes = [4, 32], strides = [1, 1]} : vector<4x128xf32> to vector<4x32xf32>
    %198 = vector.extract_strided_slice %195 {offsets = [0, 64], sizes = [4, 32], strides = [1, 1]} : vector<4x128xf32> to vector<4x32xf32>
    %199 = vector.extract_strided_slice %194 {offsets = [0, 96], sizes = [4, 32], strides = [1, 1]} : vector<4x128xf32> to vector<4x32xf32>
    %200 = arith.mulf %197, %164 : vector<4x32xf32>
    %201 = arith.mulf %196, %198 : vector<4x32xf32>
    %202 = arith.addf %200, %201 : vector<4x32xf32>
    %203 = math.tanh %202 : vector<4x32xf32>
    %204 = arith.mulf %199, %203 : vector<4x32xf32>
    %205 = arith.addf %167, %187 : vector<4x32xf32>
    %206 = arith.addf %168, %204 : vector<4x32xf32>
    %207 = vector.extract_strided_slice %13 {offsets = [20, 0], sizes = [4, 128], strides = [1, 1]} : vector<32x256xf32> to vector<4x128xf32>
    %208 = vector.extract_strided_slice %13 {offsets = [8, 128], sizes = [4, 128], strides = [1, 1]} : vector<32x256xf32> to vector<4x128xf32>
    %cst_35 = arith.constant dense<0.000000e+00> : vector<4x128xf32>
    %209 = tpu.matmul %187, %14, %cst_35 {dimension_numbers = #tpu.dot_dimension_numbers<[1], [0], [0], [1], [0, 0, 1, 1], [], []>, precision = #tpu.contract_precision<fp32>} : vector<4x32xf32>, vector<32x128xf32>, vector<4x128xf32> -> vector<4x128xf32>
    %210 = arith.addf %207, %209 : vector<4x128xf32>
    %211 = arith.negf %210 : vector<4x128xf32>
    %212 = math.exp %211 : vector<4x128xf32>
    %cst_36 = arith.constant 1.000000e+00 : f32
    %213 = vector.broadcast %cst_36 : f32 to vector<4x128xf32>
    %214 = arith.addf %213, %212 : vector<4x128xf32>
    %215 = arith.divf %213, %214 : vector<4x128xf32>
    %216 = math.tanh %210 : vector<4x128xf32>
    %217 = vector.extract_strided_slice %215 {offsets = [0, 0], sizes = [4, 32], strides = [1, 1]} : vector<4x128xf32> to vector<4x32xf32>
    %218 = vector.extract_strided_slice %215 {offsets = [0, 32], sizes = [4, 32], strides = [1, 1]} : vector<4x128xf32> to vector<4x32xf32>
    %219 = vector.extract_strided_slice %216 {offsets = [0, 64], sizes = [4, 32], strides = [1, 1]} : vector<4x128xf32> to vector<4x32xf32>
    %220 = vector.extract_strided_slice %215 {offsets = [0, 96], sizes = [4, 32], strides = [1, 1]} : vector<4x128xf32> to vector<4x32xf32>
    %221 = arith.mulf %218, %185 : vector<4x32xf32>
    %222 = arith.mulf %217, %219 : vector<4x32xf32>
    %223 = arith.addf %221, %222 : vector<4x32xf32>
    %224 = math.tanh %223 : vector<4x32xf32>
    %225 = arith.mulf %220, %224 : vector<4x32xf32>
    %cst_37 = arith.constant dense<0.000000e+00> : vector<4x128xf32>
    %226 = tpu.matmul %204, %15, %cst_37 {dimension_numbers = #tpu.dot_dimension_numbers<[1], [0], [0], [1], [0, 0, 1, 1], [], []>, precision = #tpu.contract_precision<fp32>} : vector<4x32xf32>, vector<32x128xf32>, vector<4x128xf32> -> vector<4x128xf32>
    %227 = arith.addf %208, %226 : vector<4x128xf32>
    %228 = arith.negf %227 : vector<4x128xf32>
    %229 = math.exp %228 : vector<4x128xf32>
    %cst_38 = arith.constant 1.000000e+00 : f32
    %230 = vector.broadcast %cst_38 : f32 to vector<4x128xf32>
    %231 = arith.addf %230, %229 : vector<4x128xf32>
    %232 = arith.divf %230, %231 : vector<4x128xf32>
    %233 = math.tanh %227 : vector<4x128xf32>
    %234 = vector.extract_strided_slice %232 {offsets = [0, 0], sizes = [4, 32], strides = [1, 1]} : vector<4x128xf32> to vector<4x32xf32>
    %235 = vector.extract_strided_slice %232 {offsets = [0, 32], sizes = [4, 32], strides = [1, 1]} : vector<4x128xf32> to vector<4x32xf32>
    %236 = vector.extract_strided_slice %233 {offsets = [0, 64], sizes = [4, 32], strides = [1, 1]} : vector<4x128xf32> to vector<4x32xf32>
    %237 = vector.extract_strided_slice %232 {offsets = [0, 96], sizes = [4, 32], strides = [1, 1]} : vector<4x128xf32> to vector<4x32xf32>
    %238 = arith.mulf %235, %202 : vector<4x32xf32>
    %239 = arith.mulf %234, %236 : vector<4x32xf32>
    %240 = arith.addf %238, %239 : vector<4x32xf32>
    %241 = math.tanh %240 : vector<4x32xf32>
    %242 = arith.mulf %237, %241 : vector<4x32xf32>
    %243 = arith.addf %205, %225 : vector<4x32xf32>
    %244 = arith.addf %206, %242 : vector<4x32xf32>
    %245 = vector.extract_strided_slice %13 {offsets = [24, 0], sizes = [4, 128], strides = [1, 1]} : vector<32x256xf32> to vector<4x128xf32>
    %246 = vector.extract_strided_slice %13 {offsets = [4, 128], sizes = [4, 128], strides = [1, 1]} : vector<32x256xf32> to vector<4x128xf32>
    %cst_39 = arith.constant dense<0.000000e+00> : vector<4x128xf32>
    %247 = tpu.matmul %225, %14, %cst_39 {dimension_numbers = #tpu.dot_dimension_numbers<[1], [0], [0], [1], [0, 0, 1, 1], [], []>, precision = #tpu.contract_precision<fp32>} : vector<4x32xf32>, vector<32x128xf32>, vector<4x128xf32> -> vector<4x128xf32>
    %248 = arith.addf %245, %247 : vector<4x128xf32>
    %249 = arith.negf %248 : vector<4x128xf32>
    %250 = math.exp %249 : vector<4x128xf32>
    %cst_40 = arith.constant 1.000000e+00 : f32
    %251 = vector.broadcast %cst_40 : f32 to vector<4x128xf32>
    %252 = arith.addf %251, %250 : vector<4x128xf32>
    %253 = arith.divf %251, %252 : vector<4x128xf32>
    %254 = math.tanh %248 : vector<4x128xf32>
    %255 = vector.extract_strided_slice %253 {offsets = [0, 0], sizes = [4, 32], strides = [1, 1]} : vector<4x128xf32> to vector<4x32xf32>
    %256 = vector.extract_strided_slice %253 {offsets = [0, 32], sizes = [4, 32], strides = [1, 1]} : vector<4x128xf32> to vector<4x32xf32>
    %257 = vector.extract_strided_slice %254 {offsets = [0, 64], sizes = [4, 32], strides = [1, 1]} : vector<4x128xf32> to vector<4x32xf32>
    %258 = vector.extract_strided_slice %253 {offsets = [0, 96], sizes = [4, 32], strides = [1, 1]} : vector<4x128xf32> to vector<4x32xf32>
    %259 = arith.mulf %256, %223 : vector<4x32xf32>
    %260 = arith.mulf %255, %257 : vector<4x32xf32>
    %261 = arith.addf %259, %260 : vector<4x32xf32>
    %262 = math.tanh %261 : vector<4x32xf32>
    %263 = arith.mulf %258, %262 : vector<4x32xf32>
    %cst_41 = arith.constant dense<0.000000e+00> : vector<4x128xf32>
    %264 = tpu.matmul %242, %15, %cst_41 {dimension_numbers = #tpu.dot_dimension_numbers<[1], [0], [0], [1], [0, 0, 1, 1], [], []>, precision = #tpu.contract_precision<fp32>} : vector<4x32xf32>, vector<32x128xf32>, vector<4x128xf32> -> vector<4x128xf32>
    %265 = arith.addf %246, %264 : vector<4x128xf32>
    %266 = arith.negf %265 : vector<4x128xf32>
    %267 = math.exp %266 : vector<4x128xf32>
    %cst_42 = arith.constant 1.000000e+00 : f32
    %268 = vector.broadcast %cst_42 : f32 to vector<4x128xf32>
    %269 = arith.addf %268, %267 : vector<4x128xf32>
    %270 = arith.divf %268, %269 : vector<4x128xf32>
    %271 = math.tanh %265 : vector<4x128xf32>
    %272 = vector.extract_strided_slice %270 {offsets = [0, 0], sizes = [4, 32], strides = [1, 1]} : vector<4x128xf32> to vector<4x32xf32>
    %273 = vector.extract_strided_slice %270 {offsets = [0, 32], sizes = [4, 32], strides = [1, 1]} : vector<4x128xf32> to vector<4x32xf32>
    %274 = vector.extract_strided_slice %271 {offsets = [0, 64], sizes = [4, 32], strides = [1, 1]} : vector<4x128xf32> to vector<4x32xf32>
    %275 = vector.extract_strided_slice %270 {offsets = [0, 96], sizes = [4, 32], strides = [1, 1]} : vector<4x128xf32> to vector<4x32xf32>
    %276 = arith.mulf %273, %240 : vector<4x32xf32>
    %277 = arith.mulf %272, %274 : vector<4x32xf32>
    %278 = arith.addf %276, %277 : vector<4x32xf32>
    %279 = math.tanh %278 : vector<4x32xf32>
    %280 = arith.mulf %275, %279 : vector<4x32xf32>
    %281 = arith.addf %243, %263 : vector<4x32xf32>
    %282 = arith.addf %244, %280 : vector<4x32xf32>
    %283 = vector.extract_strided_slice %13 {offsets = [28, 0], sizes = [4, 128], strides = [1, 1]} : vector<32x256xf32> to vector<4x128xf32>
    %284 = vector.extract_strided_slice %13 {offsets = [0, 128], sizes = [4, 128], strides = [1, 1]} : vector<32x256xf32> to vector<4x128xf32>
    %cst_43 = arith.constant dense<0.000000e+00> : vector<4x128xf32>
    %285 = tpu.matmul %263, %14, %cst_43 {dimension_numbers = #tpu.dot_dimension_numbers<[1], [0], [0], [1], [0, 0, 1, 1], [], []>, precision = #tpu.contract_precision<fp32>} : vector<4x32xf32>, vector<32x128xf32>, vector<4x128xf32> -> vector<4x128xf32>
    %286 = arith.addf %283, %285 : vector<4x128xf32>
    %287 = arith.negf %286 : vector<4x128xf32>
    %288 = math.exp %287 : vector<4x128xf32>
    %cst_44 = arith.constant 1.000000e+00 : f32
    %289 = vector.broadcast %cst_44 : f32 to vector<4x128xf32>
    %290 = arith.addf %289, %288 : vector<4x128xf32>
    %291 = arith.divf %289, %290 : vector<4x128xf32>
    %292 = math.tanh %286 : vector<4x128xf32>
    %293 = vector.extract_strided_slice %291 {offsets = [0, 0], sizes = [4, 32], strides = [1, 1]} : vector<4x128xf32> to vector<4x32xf32>
    %294 = vector.extract_strided_slice %291 {offsets = [0, 32], sizes = [4, 32], strides = [1, 1]} : vector<4x128xf32> to vector<4x32xf32>
    %295 = vector.extract_strided_slice %292 {offsets = [0, 64], sizes = [4, 32], strides = [1, 1]} : vector<4x128xf32> to vector<4x32xf32>
    %296 = vector.extract_strided_slice %291 {offsets = [0, 96], sizes = [4, 32], strides = [1, 1]} : vector<4x128xf32> to vector<4x32xf32>
    %297 = arith.mulf %294, %261 : vector<4x32xf32>
    %298 = arith.mulf %293, %295 : vector<4x32xf32>
    %299 = arith.addf %297, %298 : vector<4x32xf32>
    %300 = math.tanh %299 : vector<4x32xf32>
    %301 = arith.mulf %296, %300 : vector<4x32xf32>
    %cst_45 = arith.constant dense<0.000000e+00> : vector<4x128xf32>
    %302 = tpu.matmul %280, %15, %cst_45 {dimension_numbers = #tpu.dot_dimension_numbers<[1], [0], [0], [1], [0, 0, 1, 1], [], []>, precision = #tpu.contract_precision<fp32>} : vector<4x32xf32>, vector<32x128xf32>, vector<4x128xf32> -> vector<4x128xf32>
    %303 = arith.addf %284, %302 : vector<4x128xf32>
    %304 = arith.negf %303 : vector<4x128xf32>
    %305 = math.exp %304 : vector<4x128xf32>
    %cst_46 = arith.constant 1.000000e+00 : f32
    %306 = vector.broadcast %cst_46 : f32 to vector<4x128xf32>
    %307 = arith.addf %306, %305 : vector<4x128xf32>
    %308 = arith.divf %306, %307 : vector<4x128xf32>
    %309 = math.tanh %303 : vector<4x128xf32>
    %310 = vector.extract_strided_slice %308 {offsets = [0, 0], sizes = [4, 32], strides = [1, 1]} : vector<4x128xf32> to vector<4x32xf32>
    %311 = vector.extract_strided_slice %308 {offsets = [0, 32], sizes = [4, 32], strides = [1, 1]} : vector<4x128xf32> to vector<4x32xf32>
    %312 = vector.extract_strided_slice %309 {offsets = [0, 64], sizes = [4, 32], strides = [1, 1]} : vector<4x128xf32> to vector<4x32xf32>
    %313 = vector.extract_strided_slice %308 {offsets = [0, 96], sizes = [4, 32], strides = [1, 1]} : vector<4x128xf32> to vector<4x32xf32>
    %314 = arith.mulf %311, %278 : vector<4x32xf32>
    %315 = arith.mulf %310, %312 : vector<4x32xf32>
    %316 = arith.addf %314, %315 : vector<4x32xf32>
    %317 = math.tanh %316 : vector<4x32xf32>
    %318 = arith.mulf %313, %317 : vector<4x32xf32>
    %319 = arith.addf %281, %301 : vector<4x32xf32>
    %320 = arith.addf %282, %318 : vector<4x32xf32>
    %321 = tpu.concatenate %319, %320 in 1 : vector<4x32xf32>, vector<4x32xf32> -> vector<4x64xf32>
    %cst_47 = arith.constant 1.250000e-01 : f32
    %322 = vector.broadcast %cst_47 : f32 to vector<4x64xf32>
    %323 = arith.mulf %321, %322 : vector<4x64xf32>
    %c0_48 = arith.constant 0 : index
    %c0_49 = arith.constant 0 : index
    %324 = vector.load %arg6[%c0_48, %c0_49] : memref<64x640xf32, #tpu.memory_space<vmem>>, vector<64x640xf32>
    %cst_50 = arith.constant dense<0.000000e+00> : vector<4x640xf32>
    %325 = tpu.matmul %323, %324, %cst_50 {dimension_numbers = #tpu.dot_dimension_numbers<[1], [0], [0], [1], [0, 0, 1, 1], [], []>, precision = #tpu.contract_precision<fp32>} : vector<4x64xf32>, vector<64x640xf32>, vector<4x640xf32> -> vector<4x640xf32>
    %c0_51 = arith.constant 0 : index
    %c0_52 = arith.constant 0 : index
    %326 = vector.load %arg7[%c0_51, %c0_52] : memref<1x640xf32, #tpu.memory_space<vmem>>, vector<1x640xf32>
    %327 = vector.broadcast %326 : vector<1x640xf32> to vector<4x640xf32>
    %328 = arith.addf %325, %327 : vector<4x640xf32>
    %cst_53 = arith.constant 0.000000e+00 : f32
    %329 = vector.broadcast %cst_53 : f32 to vector<4x640xf32>
    %330 = arith.maximumf %328, %329 : vector<4x640xf32>
    %c0_54 = arith.constant 0 : index
    %c0_55 = arith.constant 0 : index
    %331 = vector.load %arg8[%c0_54, %c0_55] : memref<640x40xf32, #tpu.memory_space<vmem>>, vector<640x40xf32>
    %cst_56 = arith.constant dense<0.000000e+00> : vector<4x40xf32>
    %332 = tpu.matmul %330, %331, %cst_56 {dimension_numbers = #tpu.dot_dimension_numbers<[1], [0], [0], [1], [0, 0, 1, 1], [], []>, precision = #tpu.contract_precision<fp32>} : vector<4x640xf32>, vector<640x40xf32>, vector<4x40xf32> -> vector<4x40xf32>
    %c0_57 = arith.constant 0 : index
    %c0_58 = arith.constant 0 : index
    %333 = vector.load %arg9[%c0_57, %c0_58] : memref<1x40xf32, #tpu.memory_space<vmem>>, vector<1x40xf32>
    %334 = vector.broadcast %333 : vector<1x40xf32> to vector<4x40xf32>
    %335 = arith.addf %332, %334 : vector<4x40xf32>
    %336 = vector.extract_strided_slice %335 {offsets = [0, 0], sizes = [4, 10], strides = [1, 1]} : vector<4x40xf32> to vector<4x10xf32>
    %337 = vector.extract_strided_slice %335 {offsets = [0, 10], sizes = [4, 10], strides = [1, 1]} : vector<4x40xf32> to vector<4x10xf32>
    %338 = vector.extract_strided_slice %335 {offsets = [0, 20], sizes = [4, 10], strides = [1, 1]} : vector<4x40xf32> to vector<4x10xf32>
    %339 = vector.extract_strided_slice %335 {offsets = [0, 30], sizes = [4, 10], strides = [1, 1]} : vector<4x40xf32> to vector<4x10xf32>
    %340 = arith.negf %336 : vector<4x10xf32>
    %341 = math.exp %340 : vector<4x10xf32>
    %cst_59 = arith.constant 1.000000e+00 : f32
    %342 = vector.broadcast %cst_59 : f32 to vector<4x10xf32>
    %343 = arith.addf %342, %341 : vector<4x10xf32>
    %344 = arith.divf %342, %343 : vector<4x10xf32>
    %cst_60 = arith.constant 4.000000e-01 : f32
    %345 = vector.broadcast %cst_60 : f32 to vector<4x10xf32>
    %346 = arith.cmpf oge, %344, %345 : vector<4x10xf32>
    %c1_i32 = arith.constant 1 : i32
    %c0_i32 = arith.constant 0 : i32
    %347 = vector.broadcast %c1_i32 : i32 to vector<4x10xi32>
    %348 = vector.broadcast %c0_i32 : i32 to vector<4x10xi32>
    %349 = arith.select %346, %347, %348 : vector<4x10xi1>, vector<4x10xi32>
    %350 = arith.cmpf ogt, %338, %337 : vector<4x10xf32>
    %c1_i32_61 = arith.constant 1 : i32
    %c0_i32_62 = arith.constant 0 : i32
    %351 = vector.broadcast %c1_i32_61 : i32 to vector<4x10xi32>
    %352 = vector.broadcast %c0_i32_62 : i32 to vector<4x10xi32>
    %353 = arith.select %350, %351, %352 : vector<4x10xi1>, vector<4x10xi32>
    %354 = arith.maximumf %337, %338 : vector<4x10xf32>
    %355 = arith.cmpf ogt, %339, %354 : vector<4x10xf32>
    %c2_i32 = arith.constant 2 : i32
    %356 = vector.broadcast %c2_i32 : i32 to vector<4x10xi32>
    %357 = arith.select %355, %356, %353 : vector<4x10xi1>, vector<4x10xi32>
    %c-1_i32 = arith.constant -1 : i32
    %358 = vector.broadcast %c-1_i32 : i32 to vector<4x10xi32>
    %359 = arith.select %346, %357, %358 : vector<4x10xi1>, vector<4x10xi32>
    %cst_63 = arith.constant 0.000000e+00 : f32
    %360 = vector.broadcast %cst_63 : f32 to vector<4x24xf32>
    %361 = tpu.concatenate %323, %335, %360 in 1 : vector<4x64xf32>, vector<4x40xf32>, vector<4x24xf32> -> vector<4x128xf32>
    %c0_64 = arith.constant 0 : index
    %c0_65 = arith.constant 0 : index
    %362 = vector.load %arg10[%c0_64, %c0_65] : memref<4x128xf32, #tpu.memory_space<vmem>>, vector<4x128xf32>
    tpu.vector_store %arg10[%c0_64, %c0_65], %361 {strides = array<i32>} : memref<4x128xf32, #tpu.memory_space<vmem>>, vector<4x128xf32>,
    %c0_i32_66 = arith.constant 0 : i32
    %363 = vector.broadcast %c0_i32_66 : i32 to vector<4x108xi32>
    %364 = tpu.concatenate %349, %359, %363 in 1 : vector<4x10xi32>, vector<4x10xi32>, vector<4x108xi32> -> vector<4x128xi32>
    %c0_67 = arith.constant 0 : index
    %c0_68 = arith.constant 0 : index
    %365 = vector.load %arg11[%c0_67, %c0_68] : memref<4x128xi32, #tpu.memory_space<vmem>>, vector<4x128xi32>
    tpu.vector_store %arg11[%c0_67, %c0_68], %364 {strides = array<i32>} : memref<4x128xi32, #tpu.memory_space<vmem>>, vector<4x128xi32>,
    return
  }
}

</mosaic_0001>

<bundles_post_ra>
// kernel: lstm_base_forward.1
= control target key start
LH: loop header
LB: loop body
LE: loop exit
PB: predicated region body
PF: predicated region fallthrough
CT: control target
= control target key end

     0   :  { %v23430_v0 = vmov 0   ;;  %v23433_v12 = vmov 0.0   ;;  %vm89_vm0 = vcmask 1043456   ;;  %vm76_vm1 = vcmask 818176   ;;  %s19136_s15 = smov 32   ;;  %s19138_s30 = smov 118   ;;  %s23418_s0 = inlined_call_operand.vmem [shape: s32[32,1], index: 0, kind: input, shape index: {}]   ;;  %s23419_s1 = inlined_call_operand.vmem [shape: f32[100,64], index: 1, kind: input, shape index: {}]   ;;  %s23420_s2 = inlined_call_operand.vmem [shape: f32[64,256], index: 2, kind: input, shape index: {}]   ;;  %s23421_s4 = inlined_call_operand.vmem [shape: f32[32,128], index: 4, kind: input, shape index: {}]   ;;  %s23422_s5 = inlined_call_operand.vmem [shape: f32[32,128], index: 5, kind: input, shape index: {}]   ;;  %s23423_s3 = inlined_call_operand.vmem [shape: f32[1,256], index: 3, kind: input, shape index: {}]   ;;  %s23424_s6 = inlined_call_operand.vmem [shape: f32[64,640], index: 6, kind: input, shape index: {}]   ;;  %s23425_s8 = inlined_call_operand.vmem [shape: f32[640,40], index: 8, kind: input, shape index: {}]   ;;  %s23426_s7 = inlined_call_operand.vmem [shape: f32[1,640], index: 7, kind: input, shape index: {}]   ;;  %s23427_s9 = inlined_call_operand.vmem [shape: f32[1,40], index: 9, kind: input, shape index: {}]   ;;  %s23428_s10 = inlined_call_operand.vmem [shape: f32[4,128], index: 10, kind: output, shape index: {0}]   ;;  %s23429_s11 = inlined_call_operand.vmem [shape: s32[4,128], index: 11, kind: output, shape index: {1}]  }
   0x1   :  { %18997 = vset.pattern.permute.xlu0 %v23430_v0  ;;  %v37_v1 = vld [vmem:[%s23418_s0] sm:$0xff]  ;;  %18998 = vset.pattern.permute.xlu1 %v23430_v0  ;;  %v39_v2 = vld [vmem:[%s23418_s0 + $0x10] sm:$0xff]  ;;  %v38_v3 = vld [vmem:[%s23418_s0 + $0x8] sm:$0xff]  ;;  %vm19134_vm6 = vmmov 0   ;;  %vm852_vm7 = vcmask 523264   ;;  %vm1667_vm8 = vcmask 261120  }
   0x2   :  { %44 = vperm.xlu0 %18997, %v37_v1   ;;  %50 = vperm.xlu1 %18998, %v39_v2   ;;  %v40_v4 = vld [vmem:[%s23418_s0 + $0x18] sm:$0xff]  ;;  %v63_v5 = vld [vmem:[%s23419_s1] sm:$0xff]  ;;  %v64_v6 = vld [vmem:[%s23419_s1 + $0x8] sm:$0xff]  ;;  %s19140_s12 = smov 98   ;;  %vm14407_vm11 = vcmask 850944   ;;  %vm14412_vm13 = vcmask 80896  }
   0x3   :  { %v94_v7 = vand.u32 4294901760, %v63_v5  ;;  %v97_v8 = vand.u32 4294901760, %v64_v6  ;;  %v65_v9 = vld [vmem:[%s23419_s1 + $0x10] sm:$0xff]  ;;  %v66_v10 = vld [vmem:[%s23419_s1 + $0x18] sm:$0xff]  ;;  %v67_v11 = vld [vmem:[%s23419_s1 + $0x20] sm:$0xff]  ;;  %945 = vmatprep.mubr.f32.mxu1 %v23433_v12  ;;  %vm14414_vm14 = vcmask 162816  }
   0x4   :  { %v100_v13 = vand.u32 4294901760, %v65_v9  ;;  %v103_v14 = vand.u32 4294901760, %v66_v10  ;;  %v68_v15 = vld [vmem:[%s23419_s1 + $0x28] sm:$0xff]  ;;  %v106_v17 = vand.u32 4294901760, %v67_v11  ;;  %v69_v20 = vld [vmem:[%s23419_s1 + $0x30] sm:$0xff]  ;;  %v70_v21 = vld [vmem:[%s23419_s1 + $0x38] sm:$0xff] }
   0x5   :  { %v19234_v16 = vpack.c.bf16 %v97_v8, %v94_v7  ;;  %v109_v18 = vand.u32 4294901760, %v68_v15  ;;  %v112_v23 = vand.u32 4294901760, %v69_v20  ;;  %v115_v24 = vand.u32 4294901760, %v70_v21  ;;  %v71_v25 = vld [vmem:[%s23419_s1 + $0x40] sm:$0xff]  ;;  %v72_v26 = vld [vmem:[%s23419_s1 + $0x48] sm:$0xff]  ;;  %v73_v27 = vld [vmem:[%s23419_s1 + $0x50] sm:$0xff] }
   0x6   :  { %47 = vperm.xlu0 %18997, %v38_v3   ;;  %53 = vperm.xlu1 %18998, %v40_v4   ;;  %v19236_v19 = vpack.c.bf16 %v103_v14, %v100_v13  ;;  %v19258_v28 = vsub.f32 %v65_v9, %v100_v13  ;;  %v19260_v29 = vsub.f32 %v66_v10, %v103_v14  ;;  %v118_v30 = vand.u32 4294901760, %v71_v25  ;;  %v74_v35 = vld [vmem:[%s23419_s1 + $0x58] sm:$0xff]  ;;  %v75_v51 = vld [vmem:[%s23419_s1 + $0x60] sm:$0xf]  ;;  %s19139_s1 = smov 20  }
   0x7   :  { %17186 = vmatprep.subr.bf16.mxu0 %v19234_v16  ;;  %v19247_v22 = vpack.c.bf16 %v109_v18, %v106_v17  ;;  %v121_v31 = vand.u32 4294901760, %v72_v26  ;;  %v19263_v32 = vsub.f32 %v63_v5, %v94_v7  ;;  %v19265_v33 = vsub.f32 %v64_v6, %v97_v8 }
   0x8   :  { %17188 = vmatpush3.bf16.msra.mxu0 %v19234_v16  ;;  %v19268_v34 = vpack.c.bf16 %v115_v24, %v112_v23  ;;  %v228_v36 = vand.u32 4294901760, %v19258_v28  ;;  %v235_v37 = vand.u32 4294901760, %v19260_v29  ;;  %v124_v38 = vand.u32 4294901760, %v73_v27 }
   0x9   :  { %17190 = vmatprep.subr.bf16.mxu0 %v19236_v19  ;;  %v19281_v41 = vsub.f32 %v67_v11, %v106_v17  ;;  %v19283_v42 = vsub.f32 %v68_v15, %v109_v18  ;;  %v19286_v43 = vpack.c.bf16 %v121_v31, %v118_v30  ;;  %v127_v44 = vand.u32 4294901760, %v74_v35 }
   0xa   :  { %v229_v39 = vsub.f32 %v19258_v28, %v228_v36  ;;  %v236_v40 = vsub.f32 %v19260_v29, %v235_v37  ;;  %v214_v45 = vand.u32 4294901760, %v19263_v32  ;;  %v221_v46 = vand.u32 4294901760, %v19265_v33 }
   0xb   :  { %v242_v49 = vand.u32 4294901760, %v19281_v41  ;;  %v249_v50 = vand.u32 4294901760, %v19283_v42  ;;  %v19304_v55 = vsub.f32 %v69_v20, %v112_v23  ;;  %v19313_v58 = vsub.f32 %v70_v21, %v115_v24 }
   0xc   :  { %17192 = vmatpush3.bf16.msra.mxu0 %v19236_v19  ;;  %v230_v47 = vand.u32 4294901760, %v229_v39  ;;  %v237_v48 = vand.u32 4294901760, %v236_v40  ;;  %v215_v56 = vsub.f32 %v19263_v32, %v214_v45  ;;  %v222_v57 = vsub.f32 %v19265_v33, %v221_v46 }
   0xd   :  { %17194 = vmatprep.subr.bf16.mxu0 %v19247_v22  ;;  %v243_v53 = vsub.f32 %v19281_v41, %v242_v49  ;;  %v250_v54 = vsub.f32 %v19283_v42, %v249_v50  ;;  %v19316_v59 = vpack.c.bf16 %v127_v44, %v124_v38  ;;  %v256_v62 = vand.u32 4294901760, %v19304_v55 }
   0xe   :  { %v19296_v52 = vpack.c.bf16 %v237_v48, %v230_v47  ;;  %v19319_v63 = vsel %vm89_vm0, %v75_v51, 0  ;;  %v23439_v1 = vand.u32 4294901760, %v19313_v58  ;;  %v19327_v4 = vsub.f32 %v71_v25, %v118_v30 }
   0xf   :  { %v244_v60 = vand.u32 4294901760, %v243_v53  ;;  %v251_v61 = vand.u32 4294901760, %v250_v54  ;;  %v257_v3 = vsub.f32 %v19304_v55, %v256_v62  ;;  %v19329_v5 = vsub.f32 %v72_v26, %v121_v31 }
  0x10   :  { %17196 = vmatpush3.bf16.msra.mxu0 %v19247_v22  ;;  %v216_v6 = vand.u32 4294901760, %v215_v56  ;;  %v223_v7 = vand.u32 4294901760, %v222_v57  ;;  %v264_v8 = vsub.f32 %v19313_v58, %v23439_v1  ;;  %v19337_v9 = vand.u32 4294901760, %v19319_v63 }
  0x11   :  { %17198 = vmatprep.subr.bf16.mxu0 %v19268_v34  ;;  %v19322_v2 = vpack.c.bf16 %v251_v61, %v244_v60  ;;  %v258_v10 = vand.u32 4294901760, %v257_v3  ;;  %v23438_v11 = vand.u32 4294901760, %v19327_v4  ;;  %v23437_v13 = vand.u32 4294901760, %v19329_v5 }
  0x12   :  { %v265_v14 = vand.u32 4294901760, %v264_v8  ;;  %v19347_v18 = vsub.f32 %v73_v27, %v124_v38  ;;  %v19349_v20 = vsub.f32 %v74_v35, %v127_v44  ;;  %v17209_v21 = vpack.c.bf16 %v223_v7, %v216_v6 }
  0x13   :  { %v271_v15 = vsub.f32 %v19327_v4, %v23438_v11  ;;  %v278_v17 = vsub.f32 %v19329_v5, %v23437_v13  ;;  %v19370_v44 = vpack.c.bf16 %v19265_v33, %v19263_v32  ;;  %v19374_v47 = vpack.c.bf16 %v19260_v29, %v19258_v28 }
  0x14   :  { %17200 = vmatpush3.bf16.msra.mxu0 %v19268_v34  ;;  %v19352_v23 = vpack.c.bf16 %v265_v14, %v258_v10  ;;  %v23436_v26 = vand.u32 4294901760, %v19347_v18  ;;  %v23435_v30 = vand.u32 4294901760, %v19349_v20  ;;  %v19378_v48 = vpack.c.bf16 %v19283_v42, %v19281_v41 }
  0x15   :  { %17202 = vmatprep.subr.bf16.mxu0 %v19286_v43  ;;  %v272_v24 = vand.u32 4294901760, %v271_v15  ;;  %v279_v25 = vand.u32 4294901760, %v278_v17  ;;  %v19382_v51 = vpack.c.bf16 %v19313_v58, %v19304_v55  ;;  %v19386_v53 = vpack.c.bf16 %v19329_v5, %v19327_v4 }
  0x16   :  { %v285_v27 = vsub.f32 %v19347_v18, %v23436_v26  ;;  %v292_v35 = vsub.f32 %v19349_v20, %v23435_v30  ;;  %v19390_v54 = vpack.c.bf16 %v19349_v20, %v19347_v18  ;;  %v23432_v56 = vlaneseq }
  0x17   :  { %v19357_v31 = vpack.c.bf16 %v279_v25, %v272_v24  ;;  %v17289_v32 = vpack.c.bf16 %v249_v50, %v242_v49  ;;  %v23668_v28 = vand.u32 4294901760, %v19313_v58  ;;  %v23669_v33 = vand.u32 4294901760, %v19327_v4 }
  0x18   :  { %17204 = vmatpush3.bf16.msra.mxu0 %v19286_v43  ;;  %v286_v38 = vand.u32 4294901760, %v285_v27  ;;  %v293_v39 = vand.u32 4294901760, %v292_v35  ;;  %v42_v57 = vand.u32 127, %v23432_v56  ;;  %v23671_v41 = vand.u32 4294901760, %v19347_v18  ;;  %v834_v18 = vld [vmem:[%s23420_s2 + $0x50] sm:$0xff] }
  0x19   :  { %17206 = vmatprep.subr.bf16.mxu0 %v19316_v59  ;;  %v17293_v29 = vpack.c.bf16 %v23668_v28, %v256_v62  ;;  %v23672_v42 = vand.u32 4294901760, %v19349_v20  ;;  %v835_v62 = vld [vmem:[%s23420_s2 + $0x58] sm:$0xff] }
  0x1a   :  { %v19366_v40 = vpack.c.bf16 %v293_v39, %v286_v38 }
  0x1c   :  { %17208 = vmatpush3.bf16.msra.mxu0 %v19316_v59 }
  0x1d   :  { %15637 = vmatprep.subr.mxu0 %v19337_v9 }
  0x20   :  { %15638 = vmatpush3.msra.mxu0 %v19337_v9 }
  0x21   :  { %17210 = vmatprep.subr.bf16.mxu0 %v17209_v21 }
  0x81   :  { %v45_v60 = vpop.permute.xlu0 %44  ;;  %v51_v61 = vpop.permute.xlu1 %50 }
  0x82   :  { %vm55_vm2 = vcmp.eq.s32.totalorder %v42_v57, %v45_v60  ;;  %vm57_vm3 = vcmp.eq.s32.totalorder %v42_v57, %v51_v61 }
  0x83   :  { %v19394_v3 = vsel %vm55_vm2, 1.0, %v23433_v12  ;;  %v19397_v6 = vsel %vm57_vm3, 1.0, %v23433_v12 }
  0x84   :  { %v84_v7 = vsel %vm76_vm1, %v19397_v6, 0  ;;  %v78_v8 = vsel %vm76_vm1, %v19394_v3, 0 }
  0x85   :  { %v19403_v10 = vsub.f32 %v84_v7, %v84_v7  ;;  %v48_v14 = vpop.permute.xlu0 %47  ;;  %v54_v15 = vpop.permute.xlu1 %53  ;;  %v19405_v17 = vsub.f32 %v78_v8, %v78_v8 }
  0x86   :  { %vm56_vm4 = vcmp.eq.s32.totalorder %v42_v57, %v48_v14  ;;  %vm58_vm5 = vcmp.eq.s32.totalorder %v42_v57, %v54_v15 }
  0x87   :  { %v19408_v24 = vsel %vm56_vm4, 1.0, %v23433_v12  ;;  %v19411_v25 = vsel %vm58_vm5, 1.0, %v23433_v12  ;;  %v173_v27 = vand.u32 4294901760, %v19405_v17  ;;  %v193_v35 = vand.u32 4294901760, %v19403_v10 }
  0x88   :  { %v81_v38 = vsel %vm76_vm1, %v19408_v24, 0  ;;  %v87_v39 = vsel %vm76_vm1, %v19411_v25, 0 }
  0x89   :  { %v19419_v60 = vsub.f32 %v81_v38, %v81_v38  ;;  %v19421_v61 = vsub.f32 %v87_v39, %v87_v39  ;;  %v174_v57 = vsub.f32 %v19405_v17, %v173_v27  ;;  %v194_v7 = vsub.f32 %v19403_v10, %v193_v35 }
  0x8b   :  { %v175_v8 = vand.u32 4294901760, %v174_v57  ;;  %v183_v14 = vand.u32 4294901760, %v19419_v60  ;;  %v203_v15 = vand.u32 4294901760, %v19421_v61  ;;  %v195_v0 = vand.u32 4294901760, %v194_v7 }
  0x8c   :  { %v297_v57 = vsub.f32 %v19319_v63, %v19337_v9  ;;  %v826_v63 = vld [vmem:[%s23420_s2 + $0x10] sm:$0xff] }
  0x8d   :  { %15639 = vmatprep.mubr.f32.mxu0 %v175_v8  ;;  %v184_v38 = vsub.f32 %v19419_v60, %v183_v14  ;;  %v204_v39 = vsub.f32 %v19421_v61, %v203_v15 }
  0x8e   :  { %v19457_v8 = vand.u32 4294901760, %v297_v57 }
  0x8f   :  { %v185_v56 = vand.u32 4294901760, %v184_v38  ;;  %v205_v12 = vand.u32 4294901760, %v204_v39  ;;  %v871_v38 = vand.u32 4294901760, %v826_v63 }
  0x91   :  { %15640 = vmatmul.mubr.f32.vlgmr.msra.gmra.mrb[0].mxu0 %v185_v56  ;;  %v825_v56 = vld [vmem:[%s23420_s2 + $0x8] sm:$0xff]  ;;  %v19470_v1 = vsub.f32 %v826_v63, %v871_v38 }
  0x92   :  { %17212 = vmatpush3.bf16.msra.mxu0 %v17209_v21  ;;  %15642 = vmatprep.mubr.f32.mxu0 %v195_v0  ;;  %v827_v0 = vld [vmem:[%s23420_s2 + $0x18] sm:$0xff] }
  0x93   :  { %17214 = vmatprep.subr.bf16.mxu0 %v19296_v52  ;;  %v869_v21 = vand.u32 4294901760, %v827_v0 }
  0x95   :  { %15643 = vmatmul.mubr.f32.gmra.mrb[2].mxu0 %v205_v12  ;;  %v824_v12 = vld [vmem:[%s23420_s2] sm:$0xff]  ;;  %v19464_v26 = vsub.f32 %v827_v0, %v869_v21 }
  0x96   :  { %17216 = vmatpush3.bf16.msra.mxu0 %v19296_v52  ;;  %15671 = vmatprep.mubr.msk.f32.mxu0 %vm76_vm1, %v19394_v3  ;;  %v865_v52 = vand.u32 4294901760, %v825_v56  ;;  %v867_v7 = vand.u32 4294901760, %v824_v12 }
  0x97   :  { %17218 = vmatprep.subr.bf16.mxu0 %v19322_v2 }
  0x98   :  { %v19460_v39 = vpack.c.bf16 %v869_v21, %v865_v52  ;;  %v19462_v30 = vsub.f32 %v825_v56, %v865_v52  ;;  %v19466_v13 = vsub.f32 %v824_v12, %v867_v7  ;;  %v19468_v11 = vpack.c.bf16 %v871_v38, %v867_v7 }
  0x9a   :  { %17220 = vmatpush3.bf16.msra.mxu0 %v19322_v2  ;;  %17330 = vmatprep.subr.bf16.mxu1 %v19460_v39  ;;  %v299_v2 = vsub.f32 %v297_v57, %v19457_v8 }
  0x9b   :  { %17222 = vmatprep.subr.bf16.mxu0 %v19352_v23  ;;  %17332 = vmatpush1.bf16.msra.mxu1 %v19468_v11 }
  0x9c   :  { %v300_v56 = vand.u32 4294901760, %v299_v2 }
  0x9e   :  { %17224 = vmatpush3.bf16.msra.mxu0 %v19352_v23  ;;  %v17281_v23 = vpack.c.bf16 %v221_v46, %v214_v45  ;;  %v17301_v45 = vpack.c.bf16 %v23672_v42, %v23671_v41  ;;  %v830_v46 = vld [vmem:[%s23420_s2 + $0x30] sm:$0xff] }
  0x9f   :  { %17226 = vmatprep.subr.bf16.mxu0 %v19357_v31  ;;  %v879_v50 = vand.u32 4294901760, %v830_v46 }
  0xa2   :  { %17228 = vmatpush3.bf16.msra.mxu0 %v19357_v31  ;;  %v17285_v31 = vpack.c.bf16 %v235_v37, %v228_v36  ;;  %v23670_v36 = vand.u32 4294901760, %v19329_v5  ;;  %v885_v5 = vand.u32 4294901760, %v835_v62 }
  0xa3   :  { %17230 = vmatprep.subr.bf16.mxu0 %v19366_v40 }
  0xa4   :  { %v17297_v37 = vpack.c.bf16 %v23670_v36, %v23669_v33 }
  0xa6   :  { %17232 = vmatpush3.bf16.msra.mxu0 %v19366_v40  ;;  %v887_v40 = vand.u32 4294901760, %v834_v18 }
  0xa7   :  { %15669 = vmatprep.subr.mxu0 %v300_v56 }
  0xaa   :  { %15670 = vmatpush3.msra.mxu0 %v300_v56 }
  0xab   :  { %15672 = vmatmul.mubr.msk.f32.vlgmr.msra.gmra.mrb[0].mxu0 %vm76_vm1, %v19408_v24  ;;  %17234 = vmatprep.subr.bf16.mxu0 %v19370_v44 }
  0xac   :  { %15674 = vmatprep.mubr.msk.f32.mxu0 %vm76_vm1, %v19397_v6  ;;  %17236 = vmatpush3.bf16.msra.mxu0 %v19370_v44 }
  0xad   :  { %17238 = vmatprep.subr.bf16.mxu0 %v19374_v47 }
  0xaf   :  { %15675 = vmatmul.mubr.msk.f32.gmra.mrb[2].mxu0 %vm76_vm1, %v19411_v25 }
  0xb0   :  { %17240 = vmatpush3.bf16.msra.mxu0 %v19374_v47  ;;  %15703 = vmatprep.mubr.f32.mxu0 %v19405_v17  ;;  %v1004_v17 = vand.u32 4294901760, %v19464_v26 }
  0xb1   :  { %17242 = vmatprep.subr.bf16.mxu0 %v19378_v48 }
  0xb2   :  { %v1005_v52 = vsub.f32 %v19464_v26, %v1004_v17 }
  0xb4   :  { %17244 = vmatpush3.bf16.msra.mxu0 %v19378_v48  ;;  %v837_v48 = vld [vmem:[%s23420_s2 + $0x68] sm:$0xff]  ;;  %v1006_v2 = vand.u32 4294901760, %v1005_v52 }
  0xb5   :  { %17246 = vmatprep.subr.bf16.mxu0 %v19382_v51 }
  0xb8   :  { %17248 = vmatpush3.bf16.msra.mxu0 %v19382_v51  ;;  %v839_v51 = vld [vmem:[%s23420_s2 + $0x78] sm:$0xff] }
  0xb9   :  { %17250 = vmatprep.subr.bf16.mxu0 %v19386_v53 }
  0xbc   :  { %17252 = vmatpush3.bf16.msra.mxu0 %v19386_v53  ;;  %v889_v53 = vand.u32 4294901760, %v837_v48 }
  0xbd   :  { %17254 = vmatprep.subr.bf16.mxu0 %v19390_v54 }
  0xbe   :  { %v19670_v33 = vsub.f32 %v837_v48, %v889_v53 }
  0xc0   :  { %17256 = vmatpush3.bf16.msra.mxu0 %v19390_v54  ;;  %v893_v54 = vand.u32 4294901760, %v839_v51 }
  0xc1   :  { %15701 = vmatprep.subr.mxu0 %v297_v57 }
  0xc2   :  { %v19672_v36 = vsub.f32 %v839_v51, %v893_v54  ;;  %v1064_v51 = vand.u32 4294901760, %v19670_v33 }
  0xc4   :  { %15702 = vmatpush3.msra.mxu0 %v297_v57  ;;  %v19640_v57 = vpack.c.bf16 %v893_v54, %v889_v53  ;;  %v1065_v52 = vsub.f32 %v19670_v33, %v1064_v51 }
  0xc5   :  { %15704 = vmatmul.mubr.f32.vlgmr.msra.gmra.mrb[0].mxu0 %v19419_v60  ;;  %17258 = vmatprep.subr.bf16.mxu0 %v19234_v16 }
  0xc6   :  { %15706 = vmatprep.mubr.f32.mxu0 %v19403_v10  ;;  %17260 = vmatpush3.bf16.msra.mxu0 %v19234_v16  ;;  %v992_v10 = vand.u32 4294901760, %v19462_v30 }
  0xc7   :  { %17262 = vmatprep.subr.bf16.mxu0 %v19236_v19 }
  0xc8   :  { %v993_v12 = vsub.f32 %v19462_v30, %v992_v10 }
  0xc9   :  { %15707 = vmatmul.mubr.f32.gmra.mrb[2].mxu0 %v19421_v61 }
  0xca   :  { %17264 = vmatpush3.bf16.msra.mxu0 %v19236_v19  ;;  %15735 = vmatprep.mubr.f32.mxu0 %v173_v27  ;;  %v998_v27 = vand.u32 4294901760, %v19466_v13  ;;  %v994_v38 = vand.u32 4294901760, %v993_v12 }
  0xcb   :  { %17266 = vmatprep.subr.bf16.mxu0 %v19247_v22 }
  0xcc   :  { %v999_v21 = vsub.f32 %v19466_v13, %v998_v27  ;;  %v17345_v42 = vpack.c.bf16 %v1006_v2, %v994_v38 }
  0xce   :  { %17268 = vmatpush3.bf16.msra.mxu0 %v19247_v22 }
  0xcf   :  { %17270 = vmatprep.subr.bf16.mxu0 %v19268_v34 }
  0xd2   :  { %17272 = vmatpush3.bf16.msra.mxu0 %v19268_v34 }
  0xd3   :  { %17274 = vmatprep.subr.bf16.mxu0 %v19286_v43 }
  0xd6   :  { %17276 = vmatpush3.bf16.msra.mxu0 %v19286_v43 }
  0xd7   :  { %17278 = vmatprep.subr.bf16.mxu0 %v19316_v59 }
  0xda   :  { %17280 = vmatpush3.bf16.msra.mxu0 %v19316_v59 }
  0xdb   :  { %15733 = vmatprep.subr.mxu0 %v19337_v9 }
  0xde   :  { %15734 = vmatpush3.msra.mxu0 %v19337_v9 }
  0xdf   :  { %15736 = vmatmul.mubr.f32.vlgmr.msra.gmra.mrb[0].mxu0 %v183_v14  ;;  %17282 = vmatprep.subr.bf16.mxu0 %v17281_v23 }
  0xe0   :  { %15738 = vmatprep.mubr.f32.mxu0 %v193_v35  ;;  %17284 = vmatpush3.bf16.msra.mxu0 %v17281_v23  ;;  %v1010_v35 = vand.u32 4294901760, %v19470_v1 }
  0xe1   :  { %17286 = vmatprep.subr.bf16.mxu0 %v17285_v31 }
  0xe2   :  { %v1011_v63 = vsub.f32 %v19470_v1, %v1010_v35 }
  0xe3   :  { %15739 = vmatmul.mubr.f32.gmra.mrb[2].mxu0 %v203_v15  ;;  %v19638_v15 = vsub.f32 %v830_v46, %v879_v50 }
  0xe4   :  { %17288 = vmatpush3.bf16.msra.mxu0 %v17285_v31  ;;  %15767 = vmatprep.mubr.msk.f32.mxu0 %vm76_vm1, %v19394_v3 }
  0xe5   :  { %17290 = vmatprep.subr.bf16.mxu0 %v17289_v32  ;;  %v1034_v23 = vand.u32 4294901760, %v19638_v15 }
  0xe8   :  { %17292 = vmatpush3.bf16.msra.mxu0 %v17289_v32  ;;  %v19663_v32 = vsub.f32 %v835_v62, %v885_v5 }
  0xe9   :  { %17294 = vmatprep.subr.bf16.mxu0 %v17293_v29 }
  0xec   :  { %17296 = vmatpush3.bf16.msra.mxu0 %v17293_v29  ;;  %v19667_v29 = vsub.f32 %v834_v18, %v887_v40 }
  0xed   :  { %17298 = vmatprep.subr.bf16.mxu0 %v17297_v37 }
  0xee   :  { %v1058_v48 = vand.u32 4294901760, %v19667_v29 }
  0xf0   :  { %17300 = vmatpush3.bf16.msra.mxu0 %v17297_v37  ;;  %v1059_v12 = vsub.f32 %v19667_v29, %v1058_v48 }
  0xf1   :  { %17302 = vmatprep.subr.bf16.mxu0 %v17301_v45 }
  0xf4   :  { %17304 = vmatpush3.bf16.msra.mxu0 %v17301_v45  ;;  %v1000_v45 = vand.u32 4294901760, %v999_v21 }
  0xf5   :  { %15765 = vmatprep.subr.mxu0 %v19457_v8 }
  0xf8   :  { %15766 = vmatpush3.msra.mxu0 %v19457_v8 }
  0xf9   :  { %15768 = vmatmul.mubr.msk.f32.vlgmr.msra.gmra.mrb[0].mxu0 %vm76_vm1, %v19408_v24  ;;  %17306 = vmatprep.subr.bf16.mxu0 %v19234_v16 }
  0xfa   :  { %15770 = vmatprep.mubr.msk.f32.mxu0 %vm76_vm1, %v19397_v6  ;;  %17308 = vmatpush3.bf16.msra.mxu0 %v19234_v16  ;;  %v829_v16 = vld [vmem:[%s23420_s2 + $0x28] sm:$0xff] }
  0xfb   :  { %17310 = vmatprep.subr.bf16.mxu0 %v19236_v19 }
  0xfd   :  { %15771 = vmatmul.mubr.msk.f32.gmra.mrb[2].mxu0 %vm76_vm1, %v19411_v25 }
  0xfe   :  { %17312 = vmatpush3.bf16.msra.mxu0 %v19236_v19  ;;  %15799 = vmatprep.mubr.msk.f32.mxu0 %vm76_vm1, %v19394_v3  ;;  %v831_v19 = vld [vmem:[%s23420_s2 + $0x38] sm:$0xff]  ;;  %v836_v3 = vld [vmem:[%s23420_s2 + $0x60] sm:$0xff] }
  0xff   :  { %17314 = vmatprep.subr.bf16.mxu0 %v19247_v22 }
 0x102   :  { %17316 = vmatpush3.bf16.msra.mxu0 %v19247_v22  ;;  %v873_v22 = vand.u32 4294901760, %v829_v16 }
 0x103   :  { %17318 = vmatprep.subr.bf16.mxu0 %v19268_v34 }
 0x104   :  { %v19632_v60 = vsub.f32 %v829_v16, %v873_v22  ;;  %v1012_v16 = vand.u32 4294901760, %v1011_v63 }
 0x106   :  { %17320 = vmatpush3.bf16.msra.mxu0 %v19268_v34  ;;  %v877_v34 = vand.u32 4294901760, %v831_v19  ;;  %v1016_v7 = vand.u32 4294901760, %v19632_v60 }
 0x107   :  { %17322 = vmatprep.subr.bf16.mxu0 %v19286_v43 }
 0x108   :  { %v19592_v55 = vpack.c.bf16 %v877_v34, %v873_v22  ;;  %v19634_v61 = vsub.f32 %v831_v19, %v877_v34  ;;  %v1017_v19 = vsub.f32 %v19632_v60, %v1016_v7 }
 0x10a   :  { %17324 = vmatpush3.bf16.msra.mxu0 %v19286_v43  ;;  %v828_v43 = vld [vmem:[%s23420_s2 + $0x20] sm:$0xff]  ;;  %17334 = vmatprep.subr.bf16.mxu1 %v19592_v55  ;;  %v1028_v8 = vand.u32 4294901760, %v19634_v61 }
 0x10b   :  { %17326 = vmatprep.subr.bf16.mxu0 %v19316_v59  ;;  %v875_v49 = vand.u32 4294901760, %v828_v43 }
 0x10c   :  { %v1029_v22 = vsub.f32 %v19634_v61, %v1028_v8 }
 0x10d   :  { %v19594_v58 = vpack.c.bf16 %v879_v50, %v875_v49  ;;  %v19636_v14 = vsub.f32 %v828_v43, %v875_v49  ;;  %v1035_v43 = vsub.f32 %v19638_v15, %v1034_v23  ;;  %v19691_v49 = vpack.c.bf16 %v1012_v16, %v1000_v45 }
 0x10e   :  { %17328 = vmatpush3.bf16.msra.mxu0 %v19316_v59  ;;  %v833_v59 = vld [vmem:[%s23420_s2 + $0x48] sm:$0xff]  ;;  %v1018_v50 = vand.u32 4294901760, %v1017_v19  ;;  %v1066_v45 = vand.u32 4294901760, %v1065_v52  ;;  %v19740_v52 = vpack.c.bf16 %v1004_v17, %v992_v10 }
 0x10f   :  { %15797 = vmatprep.subr.mxu0 %v19337_v9  ;;  %v881_v4 = vand.u32 4294901760, %v833_v59  ;;  %17336 = vmatpush1.bf16.msra.mxu1 %v19594_v58  ;;  %v1022_v56 = vand.u32 4294901760, %v19636_v14 }
 0x111   :  { %v19610_v44 = vpack.c.bf16 %v885_v5, %v881_v4  ;;  %v19661_v31 = vsub.f32 %v833_v59, %v881_v4  ;;  %v1023_v34 = vsub.f32 %v19636_v14, %v1022_v56  ;;  %v1052_v59 = vand.u32 4294901760, %v19663_v32 }
 0x112   :  { %15798 = vmatpush3.msra.mxu0 %v19337_v9  ;;  %v832_v9 = vld [vmem:[%s23420_s2 + $0x40] sm:$0xff]  ;;  %v1030_v4 = vand.u32 4294901760, %v1029_v22 }
 0x113   :  { %15800 = vmatmul.mubr.msk.f32.vlgmr.msra.gmra.mrb[0].mxu0 %vm76_vm1, %v19408_v24  ;;  %v883_v20 = vand.u32 4294901760, %v832_v9  ;;  %17338 = vmatprep.subr.bf16.mxu1 %v19610_v44  ;;  %v891_v24 = vand.u32 4294901760, %v836_v3  ;;  %v1040_v46 = vand.u32 4294901760, %v19661_v31  ;;  %v1024_v5 = vand.u32 4294901760, %v1023_v34 }
 0x114   :  { %15802 = vmatprep.mubr.msk.f32.mxu0 %vm76_vm1, %v19397_v6  ;;  %v838_v6 = vld [vmem:[%s23420_s2 + $0x70] sm:$0xff]  ;;  %v19700_v53 = vpack.c.bf16 %v1030_v4, %v1018_v50 }
 0x115   :  { %v19612_v47 = vpack.c.bf16 %v887_v40, %v883_v20  ;;  %v19665_v28 = vsub.f32 %v832_v9, %v883_v20  ;;  %v19674_v37 = vsub.f32 %v836_v3, %v891_v24  ;;  %v1036_v9 = vand.u32 4294901760, %v1035_v43 }
 0x116   :  { %v1041_v18 = vsub.f32 %v19661_v31, %v1040_v46  ;;  %v1053_v20 = vsub.f32 %v19663_v32, %v1052_v59  ;;  %v19760_v10 = vpack.c.bf16 %v1052_v59, %v1040_v46 }
 0x117   :  { %15803 = vmatmul.mubr.msk.f32.gmra.mrb[2].mxu0 %vm76_vm1, %v19411_v25  ;;  %17340 = vmatpush1.bf16.msra.mxu1 %v19612_v47  ;;  %v895_v25 = vand.u32 4294901760, %v838_v6  ;;  %v1046_v62 = vand.u32 4294901760, %v19665_v28  ;;  %v19702_v54 = vpack.c.bf16 %v1036_v9, %v1024_v5  ;;  %v1070_v63 = vand.u32 4294901760, %v19674_v37 }
 0x118   :  { %17342 = vmatprep.subr.bf16.mxu1 %v19640_v57  ;;  %v1042_v3 = vand.u32 4294901760, %v1041_v18 }
 0x119   :  { %v19642_v0 = vpack.c.bf16 %v895_v25, %v891_v24  ;;  %v19676_v41 = vsub.f32 %v838_v6, %v895_v25  ;;  %v1047_v40 = vsub.f32 %v19665_v28, %v1046_v62  ;;  %v1076_v6 = vand.u32 4294901760, %v19672_v36 }
 0x11a   :  { %v1054_v24 = vand.u32 4294901760, %v1053_v20  ;;  %v1071_v19 = vsub.f32 %v19674_v37, %v1070_v63  ;;  %v19762_v17 = vpack.c.bf16 %v1058_v48, %v1046_v62  ;;  %v1661_v48 = vld [vmem:[%s23421_s4 + $0x10] sm:$0xff] }
 0x11b   :  { %17344 = vmatpush1.bf16.msra.mxu1 %v19642_v0  ;;  %v1048_v25 = vand.u32 4294901760, %v1047_v40  ;;  %v1077_v21 = vsub.f32 %v19672_v36, %v1076_v6  ;;  %v1082_v38 = vand.u32 4294901760, %v19676_v41 }
 0x11c   :  { %17346 = vmatprep.subr.bf16.mxu1 %v17345_v42  ;;  %v19710_v2 = vpack.c.bf16 %v1054_v24, %v1042_v3  ;;  %v1060_v42 = vand.u32 4294901760, %v1059_v12  ;;  %v1072_v50 = vand.u32 4294901760, %v1071_v19  ;;  %v23674_v24 = vmov 0.0  }
 0x11d   :  { %v1078_v16 = vand.u32 4294901760, %v1077_v21  ;;  %v1083_v22 = vsub.f32 %v19676_v41, %v1082_v38  ;;  %v19746_v21 = vpack.c.bf16 %v1010_v35, %v998_v27  ;;  %v19766_v27 = vpack.c.bf16 %v1082_v38, %v1070_v63  ;;  %v1659_v35 = vld [vmem:[%s23421_s4] sm:$0xff]  ;;  %15945 = vmatprep.mubr.msk.f32.mxu0 %vm19134_vm6, %v23674_v24 }
 0x11e   :  { %v19714_v34 = vpack.c.bf16 %v1060_v42, %v1048_v25  ;;  %v19752_v42 = vpack.c.bf16 %v1028_v8, %v1016_v7  ;;  %v1660_v7 = vld [vmem:[%s23421_s4 + $0x8] sm:$0xff]  ;;  %v23442_v8 = vmov 0.0|0.0  }
 0x11f   :  { %v19716_v43 = vpack.c.bf16 %v1078_v16, %v1066_v45  ;;  %v1084_v4 = vand.u32 4294901760, %v1083_v22  ;;  %v19758_v45 = vpack.c.bf16 %v1034_v23, %v1022_v56  ;;  %v19764_v16 = vpack.c.bf16 %v1076_v6, %v1064_v51  ;;  %17497 = vmatprep.subr.bf16.mxu0 %v23442_v8  ;;  %v1662_v51 = vld [vmem:[%s23421_s4 + $0x18] sm:$0xff] }
 0x120   :  { %v1672_v56 = vand.u32 4294901760, %v1659_v35  ;;  %v1675_v23 = vand.u32 4294901760, %v1660_v7  ;;  %v1678_v6 = vand.u32 4294901760, %v1661_v48  ;;  %v1681_v63 = vand.u32 4294901760, %v1662_v51 }
 0x121   :  { %v19718_v5 = vpack.c.bf16 %v1084_v4, %v1072_v50 }
 0x122   :  { %v19775_v46 = vpack.c.bf16 %v1675_v23, %v1672_v56  ;;  %v1752_v59 = vsub.f32 %v1659_v35, %v1672_v56  ;;  %v1759_v62 = vsub.f32 %v1660_v7, %v1675_v23  ;;  %v19785_v22 = vpack.c.bf16 %v1681_v63, %v1678_v6 }
 0x123   :  { %v1766_v35 = vsub.f32 %v1661_v48, %v1678_v6  ;;  %v1773_v7 = vsub.f32 %v1662_v51, %v1681_v63 }
 0x124   :  { %17499 = vmatpush3.bf16.msra.mxu0 %v19775_v46  ;;  %v1753_v38 = vand.u32 4294901760, %v1752_v59  ;;  %v1760_v19 = vand.u32 4294901760, %v1759_v62  ;;  %23673 = vst [vmem:[#allocation2_spill] sm:$0xff] %v19785_v22  ;;  %v19795_v51 = vpack.c.bf16 %v1759_v62, %v1752_v59 }
 0x125   :  { %17500 = vmatprep.subr.bf16.mxu0 %v23442_v8  ;;  %v1767_v12 = vand.u32 4294901760, %v1766_v35  ;;  %v1774_v25 = vand.u32 4294901760, %v1773_v7  ;;  %v19797_v6 = vpack.c.bf16 %v1773_v7, %v1766_v35 }
 0x126   :  { %v1754_v50 = vsub.f32 %v1752_v59, %v1753_v38  ;;  %v1761_v4 = vsub.f32 %v1759_v62, %v1760_v19 }
 0x127   :  { %v1768_v40 = vsub.f32 %v1766_v35, %v1767_v12  ;;  %v1775_v20 = vsub.f32 %v1773_v7, %v1774_v25 }
 0x128   :  { %v1755_v56 = vand.u32 4294901760, %v1754_v50  ;;  %v1762_v23 = vand.u32 4294901760, %v1761_v4  ;;  %17502 = vmatpush3.bf16.msra.mxu0 %v19785_v22 }
 0x129   :  { %17503 = vmatprep.subr.bf16.mxu0 %v23442_v8  ;;  %v1769_v18 = vand.u32 4294901760, %v1768_v40  ;;  %v1776_v9 = vand.u32 4294901760, %v1775_v20 }
 0x12a   :  { %v19791_v3 = vpack.c.bf16 %v1762_v23, %v1755_v56 }
 0x12b   :  { %v19793_v48 = vpack.c.bf16 %v1776_v9, %v1769_v18  ;;  %v19808_v18 = vpack.c.bf16 %v1760_v19, %v1753_v38 }
 0x12d   :  { %23675 = vst [vmem:[#allocation3_spill] sm:$0xff] %v19808_v18 }
 0x1e6   :  { %v15801_v63 = vpop.f32.mrb[0].mxu0 }
 0x1e7   :  { %v857_v50 = vsel %vm852_vm7, %v15801_v63, 0  ;;  %v802_v4 = vpop.f32.mrb[1].mxu0 }
 0x1e8   :  { %v19800_v22 = vand.u32 4294901760, %v857_v50  ;;  %v854_v56 = vsel %vm852_vm7, %v802_v4, 0 }
 0x1e9   :  { %v19803_v23 = vand.u32 4294901760, %v854_v56 }
 0x1ea   :  { %v19806_v40 = vsub.f32 %v857_v50, %v19800_v22  ;;  %v15804_v9 = vpop.f32.mrb[2].mxu0  ;;  %v19821_v50 = vpack.c.bf16 %v1774_v25, %v1767_v12 }
 0x1eb   :  { %v19811_v20 = vsub.f32 %v854_v56, %v19803_v23  ;;  %v863_v59 = vsel %vm852_vm7, %v15804_v9, 0  ;;  %v814_v62 = vpop.f32.mrb[3].mxu0 }
 0x1ec   :  { %v959_v35 = vand.u32 4294901760, %v19806_v40  ;;  %v860_v7 = vsel %vm852_vm7, %v814_v62, 0  ;;  %v19817_v4 = vand.u32 4294901760, %v863_v59 }
 0x1ed   :  { %v948_v63 = vand.u32 4294901760, %v19811_v20  ;;  %v19819_v8 = vand.u32 4294901760, %v860_v7 }
 0x1ee   :  { %v19830_v56 = vsub.f32 %v863_v59, %v19817_v4  ;;  %v960_v18 = vsub.f32 %v19806_v40, %v959_v35 }
 0x1ef   :  { %v19824_v38 = vsub.f32 %v860_v7, %v19819_v8  ;;  %v949_v19 = vsub.f32 %v19811_v20, %v948_v63 }
 0x1f0   :  { %v981_v25 = vand.u32 4294901760, %v19830_v56  ;;  %v961_v12 = vand.u32 4294901760, %v960_v18 }
 0x1f1   :  { %v970_v9 = vand.u32 4294901760, %v19824_v38  ;;  %v950_v62 = vand.u32 4294901760, %v949_v19 }
 0x1f3   :  { %951 = vmatmul.mubr.f32.vlgmr.msra.gmra.mrb[0].mxu1 %v950_v62  ;;  %v971_v59 = vsub.f32 %v19824_v38, %v970_v9 }
 0x1f4   :  { %17348 = vmatpush1.bf16.msra.mxu1 %v19691_v49  ;;  %956 = vmatprep.mubr.f32.mxu1 %v23674_v24  ;;  %v982_v49 = vsub.f32 %v19830_v56, %v981_v25 }
 0x1f5   :  { %17350 = vmatprep.subr.bf16.mxu1 %v19700_v53  ;;  %v972_v7 = vand.u32 4294901760, %v971_v59 }
 0x1f6   :  { %v983_v53 = vand.u32 4294901760, %v982_v49 }
 0x1f7   :  { %962 = vmatmul.mubr.f32.gmra.mrb[2].mxu1 %v961_v12 }
 0x1f8   :  { %17352 = vmatpush1.bf16.msra.mxu1 %v19702_v54  ;;  %967 = vmatprep.mubr.f32.mxu1 %v23674_v24  ;;  %v23676_v54 = vpack.c.bf16 %v19464_v26, %v19462_v30  ;;  %v23680_v26 = vpack.c.bf16 %v19663_v32, %v19661_v31  ;;  %v23683_v30 = vpack.c.bf16 %v19676_v41, %v19674_v37 }
 0x1f9   :  { %17354 = vmatprep.subr.bf16.mxu1 %v19710_v2  ;;  %v23677_v2 = vpack.c.bf16 %v19470_v1, %v19466_v13  ;;  %v23681_v1 = vpack.c.bf16 %v19667_v29, %v19665_v28  ;;  %v23682_v13 = vpack.c.bf16 %v19672_v36, %v19670_v33 }
 0x1fb   :  { %973 = vmatmul.mubr.f32.gmra.mrb[4].mxu1 %v972_v7 }
 0x1fc   :  { %17356 = vmatpush1.bf16.msra.mxu1 %v19714_v34  ;;  %978 = vmatprep.mubr.f32.mxu1 %v23674_v24  ;;  %v23678_v34 = vpack.c.bf16 %v19634_v61, %v19632_v60  ;;  %v1665_v61 = vld [vmem:[%s23422_s5 + $0x10] sm:$0xff] }
 0x1fd   :  { %17358 = vmatprep.subr.bf16.mxu1 %v19716_v43  ;;  %v23679_v43 = vpack.c.bf16 %v19638_v15, %v19636_v14  ;;  %v1666_v14 = vld [vmem:[%s23422_s5 + $0x18] sm:$0xff]  ;;  %v2188_v15 = vand.u32 4294901760, %v1665_v61 }
 0x1ff   :  { %984 = vmatmul.mubr.f32.gmra.mrb[6].mxu1 %v983_v53  ;;  %v2276_v29 = vsub.f32 %v1665_v61, %v2188_v15 }
 0x200   :  { %17360 = vmatpush1.bf16.msra.mxu1 %v19718_v5  ;;  %1134 = vmatprep.mubr.f32.mxu1 %v23674_v24 }
 0x201   :  { %17362 = vmatprep.subr.bf16.mxu1 %v23676_v54  ;;  %v2277_v5 = vand.u32 4294901760, %v2276_v29 }
 0x203   :  { %1136 = vmatmul.mubr.f32.vlgmr.msra.gmra.mrb[0].mxu1 %v19803_v23 }
 0x204   :  { %17364 = vmatpush1.bf16.msra.mxu1 %v23677_v2  ;;  %1141 = vmatprep.mubr.f32.mxu1 %v23674_v24 }
 0x205   :  { %17366 = vmatprep.subr.bf16.mxu1 %v23678_v34 }
 0x207   :  { %1143 = vmatmul.mubr.f32.gmra.mrb[2].mxu1 %v19800_v22 }
 0x208   :  { %17368 = vmatpush1.bf16.msra.mxu1 %v23679_v43  ;;  %1148 = vmatprep.mubr.f32.mxu1 %v23674_v24 }
 0x209   :  { %17370 = vmatprep.subr.bf16.mxu1 %v23680_v26 }
 0x20b   :  { %1150 = vmatmul.mubr.f32.gmra.mrb[4].mxu1 %v19819_v8 }
 0x20c   :  { %17372 = vmatpush1.bf16.msra.mxu1 %v23681_v1  ;;  %1155 = vmatprep.mubr.f32.mxu1 %v23674_v24 }
 0x20d   :  { %17374 = vmatprep.subr.bf16.mxu1 %v23682_v13 }
 0x20f   :  { %1157 = vmatmul.mubr.f32.gmra.mrb[6].mxu1 %v19817_v4 }
 0x210   :  { %17376 = vmatpush1.bf16.msra.mxu1 %v23683_v30  ;;  %1259 = vmatprep.mubr.f32.mxu1 %v23674_v24 }
 0x211   :  { %17378 = vmatprep.subr.bf16.mxu1 %v19460_v39 }
 0x213   :  { %1262 = vmatmul.mubr.f32.vlgmr.msra.gmra.mrb[0].mxu1 %v19811_v20 }
 0x214   :  { %17380 = vmatpush1.bf16.msra.mxu1 %v19468_v11  ;;  %1267 = vmatprep.mubr.f32.mxu1 %v23674_v24 }
 0x215   :  { %17382 = vmatprep.subr.bf16.mxu1 %v19592_v55 }
 0x217   :  { %1270 = vmatmul.mubr.f32.gmra.mrb[2].mxu1 %v19806_v40 }
 0x218   :  { %17384 = vmatpush1.bf16.msra.mxu1 %v19594_v58  ;;  %1275 = vmatprep.mubr.f32.mxu1 %v23674_v24 }
 0x219   :  { %17386 = vmatprep.subr.bf16.mxu1 %v19610_v44 }
 0x21b   :  { %1278 = vmatmul.mubr.f32.gmra.mrb[4].mxu1 %v19824_v38  ;;  %v840_v38 = vld [vmem:[%s23423_s3] sm:$0x3]  ;;  %s19135_s3 = smov 64  }
 0x21c   :  { %17388 = vmatpush1.bf16.msra.mxu1 %v19612_v47  ;;  %1283 = vmatprep.mubr.f32.mxu1 %v23674_v24 }
 0x21d   :  { %17390 = vmatprep.subr.bf16.mxu1 %v19640_v57 }
 0x21f   :  { %1286 = vmatmul.mubr.f32.gmra.mrb[6].mxu1 %v19830_v56 }
 0x220   :  { %17392 = vmatpush1.bf16.msra.mxu1 %v19642_v0  ;;  %1372 = vmatprep.mubr.f32.mxu1 %v23674_v24 }
 0x221   :  { %17394 = vmatprep.subr.bf16.mxu1 %v19740_v52 }
 0x223   :  { %1376 = vmatmul.mubr.f32.vlgmr.msra.gmra.mrb[0].mxu1 %v948_v63 }
 0x224   :  { %17396 = vmatpush1.bf16.msra.mxu1 %v19746_v21  ;;  %1381 = vmatprep.mubr.f32.mxu1 %v23674_v24 }
 0x225   :  { %17398 = vmatprep.subr.bf16.mxu1 %v19752_v42 }
 0x227   :  { %1385 = vmatmul.mubr.f32.gmra.mrb[2].mxu1 %v959_v35  ;;  %v23687_v35 = vlaneseq }
 0x228   :  { %17400 = vmatpush1.bf16.msra.mxu1 %v19758_v45  ;;  %1390 = vmatprep.mubr.f32.mxu1 %v23674_v24 }
 0x229   :  { %17402 = vmatprep.subr.bf16.mxu1 %v19760_v10  ;;  %v2278_v10 = vsub.f32 %v2276_v29, %v2277_v5  ;;  %v20061_v63 = vshrl.u32 %v23687_v35, 7 }
 0x22b   :  { %1394 = vmatmul.mubr.f32.gmra.mrb[4].mxu1 %v970_v9  ;;  %v23446_v56 = vsub.s32 0, %v20061_v63 }
 0x22c   :  { %17404 = vmatpush1.bf16.msra.mxu1 %v19762_v17  ;;  %1399 = vmatprep.mubr.f32.mxu1 %v23674_v24 }
 0x22d   :  { %17406 = vmatprep.subr.bf16.mxu1 %v19764_v16  ;;  %v845_v12 = vrot.slane %v840_v38, %v23446_v56 }
 0x22f   :  { %1403 = vmatmul.mubr.f32.gmra.mrb[6].mxu1 %v981_v25 }
 0x230   :  { %17408 = vmatpush1.bf16.msra.mxu1 %v19766_v27  ;;  %1521 = vmatprep.mubr.f32.mxu1 %v23674_v24  ;;  %v2279_v27 = vand.u32 4294901760, %v2278_v10 }
 0x231   :  { %17410 = vmatprep.subr.bf16.mxu1 %v19460_v39  ;;  %v23685_v39 = vld [vmem:[#allocation2_spill] sm:$0xff] }
 0x232   :  { %23688 = vst [vmem:[#allocation2_spill] sm:$0xff] %v20061_v63 }
 0x233   :  { %1523 = vmatmul.mubr.f32.vlgmr.msra.gmra.mrb[0].mxu1 %v19803_v23 }
 0x234   :  { %17412 = vmatpush1.bf16.msra.mxu1 %v19468_v11  ;;  %1528 = vmatprep.mubr.f32.mxu1 %v23674_v24  ;;  %v23684_v11 = vmov 0.0|0.0  }
 0x235   :  { %17414 = vmatprep.subr.bf16.mxu1 %v19592_v55  ;;  %v1663_v55 = vld [vmem:[%s23422_s5] sm:$0xff] }
 0x237   :  { %1530 = vmatmul.mubr.f32.gmra.mrb[2].mxu1 %v19800_v22 }
 0x238   :  { %17416 = vmatpush1.bf16.msra.mxu1 %v19594_v58  ;;  %1535 = vmatprep.mubr.f32.mxu1 %v23674_v24  ;;  %v1664_v58 = vld [vmem:[%s23422_s5 + $0x8] sm:$0xff] }
 0x239   :  { %17418 = vmatprep.subr.bf16.mxu1 %v19610_v44  ;;  %v23686_v44 = vld [vmem:[#allocation3_spill] sm:$0xff]  ;;  %v2185_v60 = vand.u32 4294901760, %v1664_v58 }
 0x23b   :  { %1537 = vmatmul.mubr.f32.gmra.mrb[4].mxu1 %v19819_v8  ;;  %v2269_v31 = vsub.f32 %v1664_v58, %v2185_v60 }
 0x23c   :  { %17420 = vmatpush1.bf16.msra.mxu1 %v19612_v47  ;;  %1542 = vmatprep.mubr.f32.mxu1 %v23674_v24  ;;  %v2182_v47 = vand.u32 4294901760, %v1663_v55 }
 0x23d   :  { %17422 = vmatprep.subr.bf16.mxu1 %v19640_v57  ;;  %v2191_v57 = vand.u32 4294901760, %v1666_v14  ;;  %v2270_v28 = vand.u32 4294901760, %v2269_v31 }
 0x23e   :  { %v19993_v36 = vpack.c.bf16 %v2185_v60, %v2182_v47 }
 0x23f   :  { %1544 = vmatmul.mubr.f32.gmra.mrb[6].mxu1 %v19817_v4  ;;  %v2283_v33 = vsub.f32 %v1666_v14, %v2191_v57  ;;  %v2271_v41 = vsub.f32 %v2269_v31, %v2270_v28  ;;  %v19998_v21 = vpack.c.bf16 %v2191_v57, %v2188_v15 }
 0x240   :  { %17424 = vmatpush1.bf16.msra.mxu1 %v19642_v0  ;;  %1630 = vmatprep.mubr.f32.mxu1 %v23674_v24  ;;  %v2262_v0 = vsub.f32 %v1663_v55, %v2182_v47 }
 0x241   :  { %17425 = vmatprep.subr.bf16.mxu1 %v23684_v11  ;;  %v2284_v52 = vand.u32 4294901760, %v2283_v33  ;;  %v2272_v45 = vand.u32 4294901760, %v2271_v41  ;;  %v20021_v40 = vpack.c.bf16 %v2283_v33, %v2276_v29 }
 0x242   :  { %v2263_v32 = vand.u32 4294901760, %v2262_v0 }
 0x243   :  { %1632 = vmatmul.mubr.f32.vlgmr.msra.gmra.mrb[0].mxu1 %v19803_v23  ;;  %v2285_v17 = vsub.f32 %v2283_v33, %v2284_v52  ;;  %v20016_v23 = vpack.c.bf16 %v2269_v31, %v2262_v0  ;;  %v20039_v20 = vpack.c.bf16 %v2284_v52, %v2277_v5 }
 0x244   :  { %17427 = vmatpush3.bf16.msra.mxu1 %v19775_v46  ;;  %1637 = vmatprep.mubr.f32.mxu1 %v23674_v24  ;;  %v2264_v37 = vsub.f32 %v2262_v0, %v2263_v32  ;;  %v20034_v18 = vpack.c.bf16 %v2270_v28, %v2263_v32 }
 0x245   :  { %17428 = vmatprep.subr.bf16.mxu1 %v23684_v11 }
 0x246   :  { %v2265_v42 = vand.u32 4294901760, %v2264_v37 }
 0x247   :  { %1639 = vmatmul.mubr.f32.gmra.mrb[2].mxu1 %v19800_v22 }
 0x248   :  { %1644 = vmatprep.mubr.f32.mxu1 %v23674_v24  ;;  %17430 = vmatpush3.bf16.msra.mxu1 %v23685_v39  ;;  %v20005_v16 = vpack.c.bf16 %v2272_v45, %v2265_v42 }
 0x249   :  { %17431 = vmatprep.subr.bf16.mxu1 %v23684_v11 }
 0x24b   :  { %1646 = vmatmul.mubr.f32.gmra.mrb[4].mxu1 %v19819_v8  ;;  %v2286_v8 = vand.u32 4294901760, %v2285_v17 }
 0x24c   :  { %1651 = vmatprep.mubr.f32.mxu1 %v23674_v24 }
 0x24d   :  { %v20010_v22 = vpack.c.bf16 %v2286_v8, %v2279_v27 }
 0x24f   :  { %1653 = vmatmul.mubr.f32.gmra.mrb[6].mxu1 %v19817_v4  ;;  %v23445_v4 = vsub.s32 1, %v20061_v63 }
 0x250   :  { %15813 = vmatprep.mubr.msk.f32.mxu1 %vm19134_vm6, %v23674_v24 }
 0x251   :  { %v849_v19 = vrot.slane %v840_v38, %v23445_v4 }
 0x253   :  { %15814 = vmatmul.mubr.f32.vlgmr.msra.gmra.mrb[8].mxu1 %v23674_v24 }
 0x254   :  { %17433 = vmatpush3.bf16.msra.mxu1 %v19791_v3  ;;  %15824 = vmatprep.mubr.msk.f32.mxu1 %vm19134_vm6, %v23674_v24 }
 0x255   :  { %17434 = vmatprep.subr.bf16.mxu1 %v23684_v11 }
 0x258   :  { %17436 = vmatpush3.bf16.msra.mxu1 %v19793_v48 }
 0x259   :  { %17437 = vmatprep.subr.bf16.mxu1 %v23684_v11 }
 0x25b   :  { %15825 = vmatmul.mubr.f32.vlgmr.msra.gmra.mrb[10].mxu1 %v23674_v24 }
 0x25c   :  { %17439 = vmatpush3.bf16.msra.mxu1 %v19795_v51  ;;  %15835 = vmatprep.mubr.msk.f32.mxu1 %vm19134_vm6, %v23674_v24 }
 0x25d   :  { %17440 = vmatprep.subr.bf16.mxu1 %v23684_v11 }
 0x260   :  { %17442 = vmatpush3.bf16.msra.mxu1 %v19797_v6 }
 0x261   :  { %17443 = vmatprep.subr.bf16.mxu1 %v23684_v11 }
 0x263   :  { %15836 = vmatmul.mubr.f32.vlgmr.msra.gmra.mrb[12].mxu1 %v23674_v24 }
 0x264   :  { %17445 = vmatpush3.bf16.msra.mxu1 %v19775_v46  ;;  %15846 = vmatprep.mubr.msk.f32.mxu1 %vm19134_vm6, %v23674_v24 }
 0x265   :  { %17446 = vmatprep.subr.bf16.mxu1 %v23684_v11 }
 0x268   :  { %17448 = vmatpush3.bf16.msra.mxu1 %v23685_v39 }
 0x269   :  { %17449 = vmatprep.subr.bf16.mxu1 %v23684_v11 }
 0x26b   :  { %15847 = vmatmul.mubr.f32.vlgmr.msra.gmra.mrb[14].mxu1 %v23674_v24 }
 0x26c   :  { %17451 = vmatpush3.bf16.msra.mxu1 %v23686_v44  ;;  %15857 = vmatprep.mubr.msk.f32.mxu1 %vm19134_vm6, %v23674_v24 }
 0x26d   :  { %17452 = vmatprep.subr.bf16.mxu1 %v23684_v11 }
 0x270   :  { %17454 = vmatpush3.bf16.msra.mxu1 %v19821_v50 }
 0x271   :  { %17455 = vmatprep.subr.bf16.mxu1 %v23684_v11 }
 0x273   :  { %15858 = vmatmul.mubr.f32.vlgmr.msra.gmra.mrb[16].mxu1 %v23674_v24 }
 0x274   :  { %17457 = vmatpush3.bf16.msra.mxu1 %v19775_v46  ;;  %15868 = vmatprep.mubr.msk.f32.mxu1 %vm19134_vm6, %v23674_v24 }
 0x275   :  { %17458 = vmatprep.subr.bf16.mxu1 %v23684_v11 }
 0x278   :  { %17460 = vmatpush3.bf16.msra.mxu1 %v23685_v39 }
 0x279   :  { %17461 = vmatprep.subr.bf16.mxu1 %v23684_v11 }
 0x27b   :  { %15869 = vmatmul.mubr.f32.vlgmr.msra.gmra.mrb[18].mxu1 %v23674_v24 }
 0x27c   :  { %17463 = vmatpush3.bf16.msra.mxu1 %v19993_v36  ;;  %15879 = vmatprep.mubr.msk.f32.mxu1 %vm19134_vm6, %v23674_v24 }
 0x27d   :  { %17464 = vmatprep.subr.bf16.mxu1 %v23684_v11 }
 0x280   :  { %17466 = vmatpush3.bf16.msra.mxu1 %v19998_v21 }
 0x281   :  { %17467 = vmatprep.subr.bf16.mxu1 %v23684_v11 }
 0x283   :  { %15880 = vmatmul.mubr.f32.vlgmr.msra.gmra.mrb[20].mxu1 %v23674_v24 }
 0x284   :  { %17469 = vmatpush3.bf16.msra.mxu1 %v20005_v16  ;;  %15890 = vmatprep.mubr.msk.f32.mxu1 %vm19134_vm6, %v23674_v24 }
 0x285   :  { %17470 = vmatprep.subr.bf16.mxu1 %v23684_v11 }
 0x288   :  { %17472 = vmatpush3.bf16.msra.mxu1 %v20010_v22 }
 0x289   :  { %17473 = vmatprep.subr.bf16.mxu1 %v23684_v11 }
 0x28b   :  { %15891 = vmatmul.mubr.f32.vlgmr.msra.gmra.mrb[20].mxu1 %v23674_v24 }
 0x28c   :  { %17475 = vmatpush3.bf16.msra.mxu1 %v20016_v23  ;;  %15901 = vmatprep.mubr.msk.f32.mxu1 %vm19134_vm6, %v23674_v24 }
 0x28d   :  { %17476 = vmatprep.subr.bf16.mxu1 %v23684_v11 }
 0x290   :  { %17478 = vmatpush3.bf16.msra.mxu1 %v20021_v40 }
 0x291   :  { %17479 = vmatprep.subr.bf16.mxu1 %v23684_v11 }
 0x293   :  { %15902 = vmatmul.mubr.f32.vlgmr.msra.gmra.mrb[20].mxu1 %v23674_v24 }
 0x294   :  { %17481 = vmatpush3.bf16.msra.mxu1 %v19993_v36  ;;  %15912 = vmatprep.mubr.msk.f32.mxu1 %vm19134_vm6, %v23674_v24 }
 0x295   :  { %17482 = vmatprep.subr.bf16.mxu1 %v23684_v11 }
 0x298   :  { %17484 = vmatpush3.bf16.msra.mxu1 %v19998_v21 }
 0x299   :  { %17485 = vmatprep.subr.bf16.mxu1 %v23684_v11 }
 0x29b   :  { %15913 = vmatmul.mubr.f32.vlgmr.msra.gmra.mrb[20].mxu1 %v23674_v24 }
 0x29c   :  { %17487 = vmatpush3.bf16.msra.mxu1 %v20034_v18  ;;  %15923 = vmatprep.mubr.msk.f32.mxu1 %vm19134_vm6, %v23674_v24 }
 0x29d   :  { %17488 = vmatprep.subr.bf16.mxu1 %v23684_v11 }
 0x2a0   :  { %17490 = vmatpush3.bf16.msra.mxu1 %v20039_v20 }
 0x2a1   :  { %17491 = vmatprep.subr.bf16.mxu1 %v23684_v11 }
 0x2a3   :  { %15924 = vmatmul.mubr.f32.vlgmr.msra.gmra.mrb[20].mxu1 %v23674_v24 }
 0x2a4   :  { %17493 = vmatpush3.bf16.msra.mxu1 %v19993_v36  ;;  %15934 = vmatprep.mubr.msk.f32.mxu1 %vm19134_vm6, %v23674_v24 }
 0x2a5   :  { %17494 = vmatprep.subr.bf16.mxu1 %v23684_v11 }
 0x2a8   :  { %17496 = vmatpush3.bf16.msra.mxu1 %v19998_v21 }
 0x2a9   :  { %17533 = vmatprep.subr.bf16.mxu1 %v23684_v11 }
 0x2ab   :  { %15935 = vmatmul.mubr.f32.vlgmr.msra.gmra.mrb[20].mxu1 %v23674_v24 }
 0x2ac   :  { %17535 = vmatpush3.bf16.msra.mxu1 %v19993_v36  ;;  %16011 = vmatprep.mubr.msk.f32.mxu1 %vm19134_vm6, %v23674_v24 }
 0x2ad   :  { %17536 = vmatprep.subr.bf16.mxu1 %v23684_v11 }
 0x2b0   :  { %17538 = vmatpush3.bf16.msra.mxu1 %v19998_v21 }
 0x2b1   :  { %17545 = vmatprep.subr.bf16.mxu1 %v23684_v11 }
 0x316   :  { %v1633_v9 = vpop.f32.mrb[0].mxu1 }
 0x317   :  { %v1635_v62 = vpop.f32.mrb[1].mxu1  ;;  %v20084_v37 = vadd.f32 %v1633_v9, %v845_v12 }
 0x318   :  { %v20070_v25 = vadd.f32 %v1635_v62, %v849_v19 }
 0x31a   :  { %v1640_v59 = vpop.f32.mrb[2].mxu1 }
 0x31b   :  { %v20074_v7 = vadd.f32 %v1640_v59, %v845_v12  ;;  %v1642_v49 = vpop.f32.mrb[3].mxu1 }
 0x31c   :  { %v20076_v53 = vadd.f32 %v1642_v49, %v849_v19 }
 0x31e   :  { %v1647_v54 = vpop.f32.mrb[4].mxu1 }
 0x31f   :  { %v20078_v2 = vadd.f32 %v1647_v54, %v845_v12  ;;  %v1649_v34 = vpop.f32.mrb[5].mxu1 }
 0x320   :  { %v20080_v43 = vadd.f32 %v1649_v34, %v849_v19 }
 0x322   :  { %v1654_v26 = vpop.f32.mrb[6].mxu1 }
 0x323   :  { %v20082_v1 = vadd.f32 %v1654_v26, %v845_v12  ;;  %v1656_v13 = vpop.f32.mrb[7].mxu1 }
 0x324   :  { %v20088_v10 = vadd.f32 %v1656_v13, %v849_v19 }
 0x326   :  { %v1746_v30 = vpop.f32.mrb[8].mxu1 }
 0x327   :  { %v15815_v55 = vpop.f32.mrb[9].mxu1 }
 0x32e   :  { %v1837_v58 = vpop.f32.mrb[10].mxu1 }
 0x32f   :  { %v1838_v47 = vadd.f32 %v1837_v58, %v1746_v30  ;;  %v15826_v60 = vpop.f32.mrb[11].mxu1 }
 0x336   :  { %v1917_v61 = vpop.f32.mrb[12].mxu1 }
 0x337   :  { %v1918_v14 = vadd.f32 %v1917_v61, %v1838_v47  ;;  %v15837_v15 = vpop.f32.mrb[13].mxu1 }
 0x33e   :  { %v1994_v57 = vpop.f32.mrb[14].mxu1 }
 0x33f   :  { %v1995_v0 = vadd.f32 %v1994_v57, %v1918_v14  ;;  %v15848_v31 = vpop.f32.mrb[15].mxu1 }
 0x346   :  { %v2077_v32 = vpop.f32.mrb[16].mxu1 }
 0x347   :  { %v2078_v28 = vadd.f32 %v2077_v32, %v1995_v0  ;;  %v15859_v29 = vpop.f32.mrb[17].mxu1 }
 0x34e   :  { %v2152_v33 = vpop.f32.mrb[18].mxu1 }
 0x34f   :  { %v2153_v41 = vadd.f32 %v2152_v33, %v2078_v28  ;;  %v15870_v5 = vpop.f32.mrb[19].mxu1 }
 0x351   :  { %v2156_v52 = vadd.f32 %v20084_v37, %v2153_v41 }
 0x353   :  { %18999 = vtanh.f32 %v2156_v52  ;;  %v14437_v38 = vmul.f32 -1.442695, %v2156_v52 }
 0x35d   :  { %v19000_v42 = vpop.eup %18999 }
 0x35e   :  { %2166 = vrot.lane.b32.xlu0 %v19000_v42, %s19135_s3 }
 0x37e   :  { %v2662_v45 = vpop.f32.mrb[20].mxu1 }
 0x37f   :  { %v2667_v17 = vrot.slane %v2662_v45, 4  ;;  %v15936_v27 = vpop.f32.mrb[21].mxu1 }
 0x381   :  { %v2669_v8 = vadd.f32 %v20088_v10, %v2667_v17 }
 0x383   :  { %19001 = vtanh.f32 %v2669_v8  ;;  %v14438_v19 = vmul.f32 -1.442695, %v2669_v8 }
 0x384   :  { %19003 = vpow2.f32 %v14437_v38 }
 0x38d   :  { %v19002_v35 = vpop.eup %19001 }
 0x38e   :  { %2679 = vrot.lane.b32.xlu1 %v19002_v35, %s19135_s3  ;;  %v19004_v9 = vpop.eup %19003 }
 0x38f   :  { %v2160_v62 = vadd.f32 1.0, %v19004_v9 }
 0x391   :  { %19005 = vrcp.f32 %v2160_v62 }
 0x392   :  { %19007 = vpow2.f32 %v14438_v19 }
 0x39b   :  { %v19006_v12 = vpop.eup %19005 }
 0x39c   :  { %v19008_v54 = vpop.eup %19007  ;;  %v2164_v55 = vmul.f32 0.0, %v19006_v12 }
 0x39d   :  { %v2673_v34 = vadd.f32 1.0, %v19008_v54 }
 0x39f   :  { %19009 = vrcp.f32 %v2673_v34 }
 0x3a9   :  { %v19010_v26 = vpop.eup %19009 }
 0x3aa   :  { %v2677_v61 = vmul.f32 0.0, %v19010_v26 }
 0x3d0   :  { %v2167_v59 = vpop.permute.xlu0 %2166 }
 0x3d1   :  { %v2169_v49 = vmul.f32 %v19006_v12, %v2167_v59 }
 0x3d3   :  { %2171 = vrot.lane.b32.xlu0 %v2169_v49, %s19136_s15 }
 0x400   :  { %v2680_v13 = vpop.permute.xlu1 %2679 }
 0x401   :  { %v2682_v30 = vmul.f32 %v19010_v26, %v2680_v13 }
 0x403   :  { %2684 = vrot.lane.b32.xlu1 %v2682_v30, %s19136_s15 }
 0x445   :  { %v2172_v58 = vpop.permute.xlu0 %2171 }
 0x446   :  { %v20094_v47 = vadd.f32 %v2172_v58, %v2164_v55 }
 0x448   :  { %19011 = vtanh.f32 %v20094_v47 }
 0x452   :  { %v19012_v60 = vpop.eup %19011 }
 0x453   :  { %2177 = vrot.lane.b32.xlu0 %v19012_v60, %s19135_s3 }
 0x475   :  { %v2685_v14 = vpop.permute.xlu1 %2684 }
 0x476   :  { %v20098_v15 = vadd.f32 %v2685_v14, %v2677_v61 }
 0x478   :  { %19013 = vtanh.f32 %v20098_v15 }
 0x482   :  { %v19014_v57 = vpop.eup %19013 }
 0x483   :  { %2690 = vrot.lane.b32.xlu1 %v19014_v57, %s19135_s3 }
 0x4c5   :  { %v2178_v0 = vpop.permute.xlu0 %2177 }
 0x4c6   :  { %v20102_v31 = vmul.f32 %v19006_v12, %v2178_v0 }
 0x4c8   :  { %2697 = vrot.lane.b32.xlu0 %v20102_v31, %s19136_s15 }
 0x4f5   :  { %v2691_v32 = vpop.permute.xlu1 %2690 }
 0x4f6   :  { %v20106_v28 = vmul.f32 %v19010_v26, %v2691_v32 }
 0x4f8   :  { %v3218_v29 = vrot.slane %v20106_v28, 4 }
 0x4fa   :  { %3219 = vrot.lane.b32.xlu1 %v3218_v29, %s19136_s15 }
 0x53a   :  { %v2698_v33 = vpop.permute.xlu0 %2697 }
 0x53b   :  { %v2699_v41 = vsel %vm1667_vm8, %v2698_v33, 0 }
 0x53c   :  { %v2770_v5 = vand.u32 4294901760, %v2699_v41 }
 0x53e   :  { %v2771_v52 = vsub.f32 %v2699_v41, %v2770_v5 }
 0x540   :  { %v2772_v42 = vand.u32 4294901760, %v2771_v52 }
 0x542   :  { %v2773_v45 = vsub.f32 %v2771_v52, %v2772_v42 }
 0x544   :  { %v2774_v17 = vand.u32 4294901760, %v2773_v45 }
 0x546   :  { %15946 = vmatmul.mubr.f32.vlgmr.msra.gmra.mrb[4].mxu0 %v2774_v17 }
 0x547   :  { %17505 = vmatpush3.bf16.msra.mxu0 %v19791_v3  ;;  %15956 = vmatprep.mubr.msk.f32.mxu0 %vm19134_vm6, %v23674_v24 }
 0x548   :  { %17506 = vmatprep.subr.bf16.mxu0 %v23684_v11 }
 0x54b   :  { %17508 = vmatpush3.bf16.msra.mxu0 %v19793_v48 }
 0x54c   :  { %17509 = vmatprep.subr.bf16.mxu0 %v23684_v11 }
 0x54e   :  { %15957 = vmatmul.mubr.f32.vlgmr.msra.gmra.mrb[4].mxu0 %v2770_v5 }
 0x54f   :  { %17511 = vmatpush3.bf16.msra.mxu0 %v19795_v51  ;;  %15967 = vmatprep.mubr.msk.f32.mxu0 %vm19134_vm6, %v23674_v24 }
 0x550   :  { %17512 = vmatprep.subr.bf16.mxu0 %v23684_v11 }
 0x553   :  { %17514 = vmatpush3.bf16.msra.mxu0 %v19797_v6 }
 0x554   :  { %17515 = vmatprep.subr.bf16.mxu0 %v23684_v11 }
 0x556   :  { %15968 = vmatmul.mubr.f32.vlgmr.msra.gmra.mrb[4].mxu0 %v2771_v52 }
 0x557   :  { %17517 = vmatpush3.bf16.msra.mxu0 %v19775_v46  ;;  %15978 = vmatprep.mubr.msk.f32.mxu0 %vm19134_vm6, %v23674_v24 }
 0x558   :  { %17518 = vmatprep.subr.bf16.mxu0 %v23684_v11 }
 0x55b   :  { %17520 = vmatpush3.bf16.msra.mxu0 %v23685_v39 }
 0x55c   :  { %17521 = vmatprep.subr.bf16.mxu0 %v23684_v11 }
 0x55e   :  { %15979 = vmatmul.mubr.f32.vlgmr.msra.gmra.mrb[4].mxu0 %v2772_v42 }
 0x55f   :  { %17523 = vmatpush3.bf16.msra.mxu0 %v23686_v44  ;;  %15989 = vmatprep.mubr.msk.f32.mxu0 %vm19134_vm6, %v23674_v24 }
 0x560   :  { %17524 = vmatprep.subr.bf16.mxu0 %v23684_v11 }
 0x563   :  { %17526 = vmatpush3.bf16.msra.mxu0 %v19821_v50 }
 0x564   :  { %17527 = vmatprep.subr.bf16.mxu0 %v23684_v11 }
 0x566   :  { %15990 = vmatmul.mubr.f32.vlgmr.msra.gmra.mrb[4].mxu0 %v2770_v5 }
 0x567   :  { %17529 = vmatpush3.bf16.msra.mxu0 %v19775_v46  ;;  %16000 = vmatprep.mubr.msk.f32.mxu0 %vm19134_vm6, %v23674_v24 }
 0x568   :  { %17530 = vmatprep.subr.bf16.mxu0 %v23684_v11 }
 0x56b   :  { %17532 = vmatpush3.bf16.msra.mxu0 %v23685_v39 }
 0x56c   :  { %v3220_v27 = vpop.permute.xlu1 %3219  ;;  %17539 = vmatprep.subr.bf16.mxu0 %v23684_v11 }
 0x56d   :  { %v3221_v8 = vsel %vm1667_vm8, %v3220_v27, 0 }
 0x56e   :  { %v3292_v35 = vand.u32 4294901760, %v3221_v8  ;;  %16001 = vmatmul.mubr.f32.vlgmr.msra.gmra.mrb[4].mxu0 %v2770_v5 }
 0x56f   :  { %17541 = vmatpush3.bf16.msra.mxu0 %v20005_v16  ;;  %16022 = vmatprep.mubr.msk.f32.mxu0 %vm19134_vm6, %v23674_v24 }
 0x570   :  { %v3293_v38 = vsub.f32 %v3221_v8, %v3292_v35  ;;  %17542 = vmatprep.subr.bf16.mxu0 %v23684_v11 }
 0x572   :  { %v3294_v9 = vand.u32 4294901760, %v3293_v38 }
 0x573   :  { %17544 = vmatpush3.bf16.msra.mxu0 %v20010_v22 }
 0x574   :  { %v3295_v62 = vsub.f32 %v3293_v38, %v3294_v9  ;;  %17551 = vmatprep.subr.bf16.mxu0 %v23684_v11 }
 0x576   :  { %v3296_v12 = vand.u32 4294901760, %v3295_v62  ;;  %16023 = vmatmul.mubr.f32.vlgmr.msra.gmra.mrb[6].mxu0 %v3292_v35 }
 0x577   :  { %17553 = vmatpush3.bf16.msra.mxu0 %v19993_v36  ;;  %16044 = vmatprep.mubr.msk.f32.mxu0 %vm19134_vm6, %v23674_v24 }
 0x578   :  { %16012 = vmatmul.mubr.f32.vlgmr.msra.gmra.mrb[22].mxu1 %v3296_v12  ;;  %17554 = vmatprep.subr.bf16.mxu0 %v23684_v11 }
 0x579   :  { %17547 = vmatpush3.bf16.msra.mxu1 %v20016_v23  ;;  %16033 = vmatprep.mubr.msk.f32.mxu1 %vm19134_vm6, %v23674_v24 }
 0x57a   :  { %17548 = vmatprep.subr.bf16.mxu1 %v23684_v11 }
 0x57b   :  { %17556 = vmatpush3.bf16.msra.mxu0 %v19998_v21 }
 0x57c   :  { %17563 = vmatprep.subr.bf16.mxu0 %v23684_v11 }
 0x57d   :  { %17550 = vmatpush3.bf16.msra.mxu1 %v20021_v40 }
 0x57e   :  { %16045 = vmatmul.mubr.f32.vlgmr.msra.gmra.mrb[8].mxu0 %v3294_v9  ;;  %17557 = vmatprep.subr.bf16.mxu1 %v23684_v11 }
 0x57f   :  { %17565 = vmatpush3.bf16.msra.mxu0 %v19993_v36  ;;  %16066 = vmatprep.mubr.msk.f32.mxu0 %vm19134_vm6, %v23674_v24 }
 0x580   :  { %16034 = vmatmul.mubr.f32.vlgmr.msra.gmra.mrb[24].mxu1 %v3293_v38  ;;  %17566 = vmatprep.subr.bf16.mxu0 %v23684_v11 }
 0x581   :  { %17559 = vmatpush3.bf16.msra.mxu1 %v20034_v18  ;;  %16055 = vmatprep.mubr.msk.f32.mxu1 %vm19134_vm6, %v23674_v24 }
 0x582   :  { %17560 = vmatprep.subr.bf16.mxu1 %v23684_v11 }
 0x583   :  { %17568 = vmatpush3.bf16.msra.mxu0 %v19998_v21 }
 0x584   :  { %17575 = vmatprep.subr.bf16.mxu0 %v23684_v11 }
 0x585   :  { %17562 = vmatpush3.bf16.msra.mxu1 %v20039_v20 }
 0x586   :  { %16067 = vmatmul.mubr.f32.vlgmr.msra.gmra.mrb[10].mxu0 %v3292_v35  ;;  %17569 = vmatprep.subr.bf16.mxu1 %v23684_v11 }
 0x587   :  { %17577 = vmatpush3.bf16.msra.mxu0 %v19791_v3  ;;  %16088 = vmatprep.mubr.msk.f32.mxu0 %vm19134_vm6, %v23674_v24 }
 0x588   :  { %16056 = vmatmul.mubr.f32.vlgmr.msra.gmra.mrb[26].mxu1 %v3292_v35  ;;  %17578 = vmatprep.subr.bf16.mxu0 %v23684_v11 }
 0x589   :  { %17571 = vmatpush3.bf16.msra.mxu1 %v19775_v46  ;;  %16077 = vmatprep.mubr.msk.f32.mxu1 %vm19134_vm6, %v23674_v24 }
 0x58a   :  { %17572 = vmatprep.subr.bf16.mxu1 %v23684_v11 }
 0x58b   :  { %17580 = vmatpush3.bf16.msra.mxu0 %v19793_v48 }
 0x58c   :  { %17587 = vmatprep.subr.bf16.mxu0 %v23684_v11 }
 0x58d   :  { %17574 = vmatpush3.bf16.msra.mxu1 %v23685_v39 }
 0x58e   :  { %17581 = vmatprep.subr.bf16.mxu1 %v23684_v11 }
 0x641   :  { %v3182_v59 = vpop.f32.mrb[4].mxu0 }
 0x642   :  { %v3187_v49 = vrot.slane %v3182_v59, 4  ;;  %v16002_v19 = vpop.f32.mrb[5].mxu0 }
 0x644   :  { %v3189_v54 = vadd.f32 %v20084_v37, %v3187_v49 }
 0x646   :  { %19015 = vtanh.f32 %v3189_v54  ;;  %v14439_v17 = vmul.f32 -1.442695, %v3189_v54  ;;  %v3198_v54 = vrot.slane %v20094_v47, 4 }
 0x649   :  { %v3389_v34 = vpop.f32.mrb[6].mxu0 }
 0x64a   :  { %v16024_v26 = vpop.f32.mrb[7].mxu0 }
 0x64b   :  { %v3298_v13 = vpop.f32.mrb[22].mxu1 }
 0x64c   :  { %v3390_v30 = vadd.f32 %v3389_v34, %v3298_v13  ;;  %v16013_v55 = vpop.f32.mrb[23].mxu1 }
 0x64d   :  { %v3717_v55 = vrot.slane %v20098_v15, 4 }
 0x650   :  { %v19016_v58 = vpop.eup %19015 }
 0x651   :  { %v3546_v60 = vpop.f32.mrb[8].mxu0  ;;  %3202 = vrot.lane.b32.xlu0 %v19016_v58, %s19135_s3 }
 0x652   :  { %v16046_v61 = vpop.f32.mrb[9].mxu0 }
 0x653   :  { %v3469_v14 = vpop.f32.mrb[24].mxu1 }
 0x654   :  { %v3470_v57 = vadd.f32 %v3469_v14, %v3390_v30  ;;  %v16035_v0 = vpop.f32.mrb[25].mxu1 }
 0x656   :  { %v3547_v32 = vadd.f32 %v3546_v60, %v3470_v57 }
 0x659   :  { %v3704_v29 = vpop.f32.mrb[10].mxu0 }
 0x65a   :  { %v16068_v33 = vpop.f32.mrb[11].mxu0 }
 0x65b   :  { %v3629_v41 = vpop.f32.mrb[26].mxu1 }
 0x65c   :  { %v3630_v5 = vadd.f32 %v3629_v41, %v3547_v32  ;;  %v16057_v37 = vpop.f32.mrb[27].mxu1 }
 0x65e   :  { %v3705_v52 = vadd.f32 %v3704_v29, %v3630_v5 }
 0x660   :  { %v3708_v42 = vadd.f32 %v20088_v10, %v3705_v52 }
 0x662   :  { %19017 = vtanh.f32 %v3708_v42  ;;  %v14440_v35 = vmul.f32 -1.442695, %v3708_v42 }
 0x663   :  { %19019 = vpow2.f32 %v14439_v17 }
 0x66c   :  { %v19018_v45 = vpop.eup %19017 }
 0x66d   :  { %3721 = vrot.lane.b32.xlu1 %v19018_v45, %s19135_s3  ;;  %v19020_v27 = vpop.eup %19019 }
 0x66e   :  { %v3193_v8 = vadd.f32 1.0, %v19020_v27 }
 0x670   :  { %19021 = vrcp.f32 %v3193_v8 }
 0x671   :  { %19023 = vpow2.f32 %v14440_v35 }
 0x67a   :  { %v19022_v38 = vpop.eup %19021 }
 0x67b   :  { %v19024_v12 = vpop.eup %19023  ;;  %v3200_v34 = vmul.f32 %v19022_v38, %v3198_v54 }
 0x67c   :  { %v3712_v59 = vadd.f32 1.0, %v19024_v12 }
 0x67e   :  { %19025 = vrcp.f32 %v3712_v59 }
 0x688   :  { %v19026_v10 = vpop.eup %19025 }
 0x689   :  { %v3719_v58 = vmul.f32 %v19026_v10, %v3717_v55 }
 0x6c3   :  { %v3203_v9 = vpop.permute.xlu0 %3202 }
 0x6c4   :  { %v3205_v62 = vmul.f32 %v19022_v38, %v3203_v9 }
 0x6c6   :  { %3207 = vrot.lane.b32.xlu0 %v3205_v62, %s19136_s15 }
 0x6df   :  { %v3722_v49 = vpop.permute.xlu1 %3721 }
 0x6e0   :  { %v3724_v19 = vmul.f32 %v19026_v10, %v3722_v49 }
 0x6e2   :  { %3726 = vrot.lane.b32.xlu1 %v3724_v19, %s19136_s15 }
 0x738   :  { %v3208_v26 = vpop.permute.xlu0 %3207 }
 0x739   :  { %v20191_v13 = vadd.f32 %v3208_v26, %v3200_v34 }
 0x73b   :  { %19027 = vtanh.f32 %v20191_v13 }
 0x745   :  { %v19028_v30 = vpop.eup %19027 }
 0x746   :  { %3213 = vrot.lane.b32.xlu0 %v19028_v30, %s19135_s3 }
 0x754   :  { %v3727_v60 = vpop.permute.xlu1 %3726 }
 0x755   :  { %v20196_v61 = vadd.f32 %v3727_v60, %v3719_v58 }
 0x757   :  { %19029 = vtanh.f32 %v20196_v61 }
 0x761   :  { %v19030_v14 = vpop.eup %19029 }
 0x762   :  { %3732 = vrot.lane.b32.xlu1 %v19030_v14, %s19135_s3 }
 0x7b8   :  { %v3214_v47 = vpop.permute.xlu0 %3213 }
 0x7b9   :  { %v20200_v57 = vmul.f32 %v19022_v38, %v3214_v47 }
 0x7bb   :  { %v3737_v0 = vrot.slane %v20200_v57, 4 }
 0x7bd   :  { %3744 = vrot.lane.b32.xlu0 %v3737_v0, %s19136_s15 }
 0x7d4   :  { %v3733_v32 = vpop.permute.xlu1 %3732 }
 0x7d5   :  { %v20206_v15 = vmul.f32 %v19026_v10, %v3733_v32 }
 0x7d7   :  { %4261 = vrot.lane.b32.xlu1 %v20206_v15, %s19136_s15 }
 0x82f   :  { %v3745_v29 = vpop.permute.xlu0 %3744 }
 0x830   :  { %v3746_v33 = vsel %vm1667_vm8, %v3745_v29, 0 }
 0x831   :  { %v3817_v41 = vand.u32 4294901760, %v3746_v33 }
 0x833   :  { %v3818_v5 = vsub.f32 %v3746_v33, %v3817_v41  ;;  %16089 = vmatmul.mubr.f32.vlgmr.msra.gmra.mrb[12].mxu0 %v3817_v41 }
 0x834   :  { %17589 = vmatpush3.bf16.msra.mxu0 %v19775_v46  ;;  %16110 = vmatprep.mubr.msk.f32.mxu0 %vm19134_vm6, %v23674_v24 }
 0x835   :  { %v3819_v37 = vand.u32 4294901760, %v3818_v5  ;;  %17590 = vmatprep.subr.bf16.mxu0 %v23684_v11 }
 0x837   :  { %v3820_v52 = vsub.f32 %v3818_v5, %v3819_v37 }
 0x838   :  { %17592 = vmatpush3.bf16.msra.mxu0 %v23685_v39 }
 0x839   :  { %v3821_v42 = vand.u32 4294901760, %v3820_v52  ;;  %17599 = vmatprep.subr.bf16.mxu0 %v23684_v11 }
 0x83b   :  { %16111 = vmatmul.mubr.f32.vlgmr.msra.gmra.mrb[14].mxu0 %v3819_v37  ;;  %16078 = vmatmul.mubr.f32.vlgmr.msra.gmra.mrb[28].mxu1 %v3821_v42 }
 0x83c   :  { %17583 = vmatpush3.bf16.msra.mxu1 %v19795_v51  ;;  %17601 = vmatpush3.bf16.msra.mxu0 %v19775_v46 }
 0x83d   :  { %17584 = vmatprep.subr.bf16.mxu1 %v23684_v11  ;;  %17602 = vmatprep.subr.bf16.mxu0 %v23684_v11 }
 0x83e   :  { %16099 = vmatprep.mubr.msk.f32.mxu1 %vm19134_vm6, %v23674_v24  ;;  %16132 = vmatprep.mubr.msk.f32.mxu0 %vm19134_vm6, %v23674_v24 }
 0x840   :  { %17586 = vmatpush3.bf16.msra.mxu1 %v19797_v6  ;;  %17604 = vmatpush3.bf16.msra.mxu0 %v23685_v39 }
 0x841   :  { %17593 = vmatprep.subr.bf16.mxu1 %v23684_v11  ;;  %17641 = vmatprep.subr.bf16.mxu0 %v23684_v11 }
 0x843   :  { %16100 = vmatmul.mubr.f32.vlgmr.msra.gmra.mrb[30].mxu1 %v3818_v5  ;;  %16133 = vmatmul.mubr.f32.vlgmr.msra.gmra.mrb[16].mxu0 %v3817_v41 }
 0x844   :  { %17595 = vmatpush3.bf16.msra.mxu1 %v23686_v44  ;;  %16121 = vmatprep.mubr.msk.f32.mxu1 %vm19134_vm6, %v23674_v24 }
 0x845   :  { %17596 = vmatprep.subr.bf16.mxu1 %v23684_v11  ;;  %17643 = vmatpush3.bf16.msra.mxu0 %v19775_v46 }
 0x846   :  { %17644 = vmatprep.subr.bf16.mxu0 %v23684_v11  ;;  %16209 = vmatprep.mubr.msk.f32.mxu0 %vm19134_vm6, %v23674_v24 }
 0x848   :  { %17598 = vmatpush3.bf16.msra.mxu1 %v19821_v50 }
 0x849   :  { %v4262_v45 = vpop.permute.xlu1 %4261  ;;  %17605 = vmatprep.subr.bf16.mxu1 %v23684_v11  ;;  %17646 = vmatpush3.bf16.msra.mxu0 %v23685_v39 }
 0x84a   :  { %v4263_v17 = vsel %vm1667_vm8, %v4262_v45, 0  ;;  %17647 = vmatprep.subr.bf16.mxu0 %v23684_v11 }
 0x84b   :  { %v4334_v27 = vand.u32 4294901760, %v4263_v17  ;;  %16122 = vmatmul.mubr.f32.vlgmr.msra.gmra.mrb[32].mxu1 %v3817_v41 }
 0x84c   :  { %17607 = vmatpush3.bf16.msra.mxu1 %v19993_v36  ;;  %16143 = vmatprep.mubr.msk.f32.mxu1 %vm19134_vm6, %v23674_v24 }
 0x84d   :  { %v4335_v8 = vsub.f32 %v4263_v17, %v4334_v27  ;;  %17608 = vmatprep.subr.bf16.mxu1 %v23684_v11 }
 0x84f   :  { %v4336_v35 = vand.u32 4294901760, %v4335_v8 }
 0x850   :  { %17610 = vmatpush3.bf16.msra.mxu1 %v19998_v21 }
 0x851   :  { %v4337_v38 = vsub.f32 %v4335_v8, %v4336_v35  ;;  %17611 = vmatprep.subr.bf16.mxu1 %v23684_v11 }
 0x853   :  { %v4338_v9 = vand.u32 4294901760, %v4337_v38 }
 0x855   :  { %16144 = vmatmul.mubr.f32.vlgmr.msra.gmra.mrb[34].mxu1 %v4338_v9 }
 0x856   :  { %17613 = vmatpush3.bf16.msra.mxu1 %v20005_v16  ;;  %16154 = vmatprep.mubr.msk.f32.mxu1 %vm19134_vm6, %v23674_v24 }
 0x857   :  { %17614 = vmatprep.subr.bf16.mxu1 %v23684_v11 }
 0x85a   :  { %17616 = vmatpush3.bf16.msra.mxu1 %v20010_v22 }
 0x85b   :  { %17617 = vmatprep.subr.bf16.mxu1 %v23684_v11 }
 0x85d   :  { %16155 = vmatmul.mubr.f32.vlgmr.msra.gmra.mrb[34].mxu1 %v4334_v27 }
 0x85e   :  { %17619 = vmatpush3.bf16.msra.mxu1 %v20016_v23  ;;  %16165 = vmatprep.mubr.msk.f32.mxu1 %vm19134_vm6, %v23674_v24 }
 0x85f   :  { %17620 = vmatprep.subr.bf16.mxu1 %v23684_v11 }
 0x862   :  { %17622 = vmatpush3.bf16.msra.mxu1 %v20021_v40 }
 0x863   :  { %17623 = vmatprep.subr.bf16.mxu1 %v23684_v11 }
 0x865   :  { %16166 = vmatmul.mubr.f32.vlgmr.msra.gmra.mrb[34].mxu1 %v4335_v8 }
 0x866   :  { %17625 = vmatpush3.bf16.msra.mxu1 %v19993_v36  ;;  %16176 = vmatprep.mubr.msk.f32.mxu1 %vm19134_vm6, %v23674_v24 }
 0x867   :  { %17626 = vmatprep.subr.bf16.mxu1 %v23684_v11 }
 0x86a   :  { %17628 = vmatpush3.bf16.msra.mxu1 %v19998_v21 }
 0x86b   :  { %17629 = vmatprep.subr.bf16.mxu1 %v23684_v11 }
 0x86d   :  { %16177 = vmatmul.mubr.f32.vlgmr.msra.gmra.mrb[34].mxu1 %v4336_v35 }
 0x86e   :  { %17631 = vmatpush3.bf16.msra.mxu1 %v20034_v18  ;;  %16187 = vmatprep.mubr.msk.f32.mxu1 %vm19134_vm6, %v23674_v24 }
 0x86f   :  { %17632 = vmatprep.subr.bf16.mxu1 %v23684_v11 }
 0x872   :  { %17634 = vmatpush3.bf16.msra.mxu1 %v20039_v20 }
 0x873   :  { %17635 = vmatprep.subr.bf16.mxu1 %v23684_v11 }
 0x875   :  { %16188 = vmatmul.mubr.f32.vlgmr.msra.gmra.mrb[34].mxu1 %v4334_v27 }
 0x876   :  { %17637 = vmatpush3.bf16.msra.mxu1 %v19993_v36  ;;  %16198 = vmatprep.mubr.msk.f32.mxu1 %vm19134_vm6, %v23674_v24 }
 0x877   :  { %17638 = vmatprep.subr.bf16.mxu1 %v23684_v11 }
 0x87a   :  { %17640 = vmatpush3.bf16.msra.mxu1 %v19998_v21 }
 0x87b   :  { %17677 = vmatprep.subr.bf16.mxu1 %v23684_v11 }
 0x87d   :  { %16199 = vmatmul.mubr.f32.vlgmr.msra.gmra.mrb[34].mxu1 %v4334_v27 }
 0x87e   :  { %17679 = vmatpush3.bf16.msra.mxu1 %v19993_v36  ;;  %16275 = vmatprep.mubr.msk.f32.mxu1 %vm19134_vm6, %v23674_v24 }
 0x87f   :  { %17680 = vmatprep.subr.bf16.mxu1 %v23684_v11 }
 0x882   :  { %17682 = vmatpush3.bf16.msra.mxu1 %v19998_v21 }
 0x883   :  { %17689 = vmatprep.subr.bf16.mxu1 %v23684_v11 }
 0x906   :  { %v3914_v62 = vpop.f32.mrb[12].mxu0 }
 0x907   :  { %v16090_v12 = vpop.f32.mrb[13].mxu0 }
 0x90e   :  { %v4071_v59 = vpop.f32.mrb[14].mxu0  ;;  %v3823_v10 = vpop.f32.mrb[28].mxu1 }
 0x90f   :  { %v3915_v49 = vadd.f32 %v3914_v62, %v3823_v10  ;;  %v16112_v19 = vpop.f32.mrb[15].mxu0  ;;  %v16079_v54 = vpop.f32.mrb[29].mxu1 }
 0x910   :  { %v4242_v54 = vrot.slane %v20191_v13, 4 }
 0x916   :  { %v3994_v34 = vpop.f32.mrb[30].mxu1  ;;  %v4229_v26 = vpop.f32.mrb[16].mxu0 }
 0x917   :  { %v3995_v30 = vadd.f32 %v3994_v34, %v3915_v49  ;;  %v16101_v55 = vpop.f32.mrb[31].mxu1  ;;  %v16134_v58 = vpop.f32.mrb[17].mxu0 }
 0x918   :  { %v4762_v58 = vrot.slane %v20196_v61, 4  ;;  %v3741_v61 = vrot.slane %v20206_v15, 4 }
 0x919   :  { %v4072_v60 = vadd.f32 %v4071_v59, %v3995_v30 }
 0x91e   :  { %v4154_v14 = vpop.f32.mrb[32].mxu1 }
 0x91f   :  { %v4155_v47 = vadd.f32 %v4154_v14, %v4072_v60  ;;  %v16123_v32 = vpop.f32.mrb[33].mxu1 }
 0x921   :  { %v4230_v29 = vadd.f32 %v4229_v26, %v4155_v47 }
 0x923   :  { %v4233_v33 = vadd.f32 %v20074_v7, %v4230_v29  ;;  %v3739_v29 = vadd.f32 %v3737_v0, %v20102_v31 }
 0x925   :  { %19031 = vtanh.f32 %v4233_v33  ;;  %v14441_v17 = vmul.f32 -1.442695, %v4233_v33 }
 0x92f   :  { %v19032_v41 = vpop.eup %19031 }
 0x930   :  { %4246 = vrot.lane.b32.xlu0 %v19032_v41, %s19135_s3 }
 0x950   :  { %v4746_v5 = vpop.f32.mrb[34].mxu1 }
 0x951   :  { %v4751_v37 = vrot.slane %v4746_v5, 4  ;;  %v16200_v52 = vpop.f32.mrb[35].mxu1 }
 0x953   :  { %v4753_v42 = vadd.f32 %v20080_v43, %v4751_v37  ;;  %v3743_v37 = vadd.f32 %v3741_v61, %v20106_v28 }
 0x955   :  { %19033 = vtanh.f32 %v4753_v42  ;;  %v14442_v62 = vmul.f32 -1.442695, %v4753_v42 }
 0x956   :  { %19035 = vpow2.f32 %v14441_v17 }
 0x95f   :  { %v19034_v45 = vpop.eup %19033 }
 0x960   :  { %4766 = vrot.lane.b32.xlu1 %v19034_v45, %s19135_s3  ;;  %v19036_v27 = vpop.eup %19035 }
 0x961   :  { %v4237_v8 = vadd.f32 1.0, %v19036_v27 }
 0x963   :  { %19037 = vrcp.f32 %v4237_v8 }
 0x964   :  { %19039 = vpow2.f32 %v14442_v62 }
 0x96d   :  { %v19038_v35 = vpop.eup %19037 }
 0x96e   :  { %v19040_v12 = vpop.eup %19039  ;;  %v4244_v34 = vmul.f32 %v19038_v35, %v4242_v54 }
 0x96f   :  { %v4757_v59 = vadd.f32 1.0, %v19040_v12 }
 0x971   :  { %19041 = vrcp.f32 %v4757_v59 }
 0x97b   :  { %v19042_v10 = vpop.eup %19041 }
 0x97c   :  { %v4764_v60 = vmul.f32 %v19042_v10, %v4762_v58 }
 0x9a2   :  { %v4247_v38 = vpop.permute.xlu0 %4246 }
 0x9a3   :  { %v4249_v9 = vmul.f32 %v19038_v35, %v4247_v38 }
 0x9a5   :  { %4251 = vrot.lane.b32.xlu0 %v4249_v9, %s19136_s15 }
 0x9d2   :  { %v4767_v49 = vpop.permute.xlu1 %4766 }
 0x9d3   :  { %v4769_v19 = vmul.f32 %v19042_v10, %v4767_v49 }
 0x9d5   :  { %4771 = vrot.lane.b32.xlu1 %v4769_v19, %s19136_s15 }
 0xa17   :  { %v4252_v26 = vpop.permute.xlu0 %4251 }
 0xa18   :  { %v20291_v30 = vadd.f32 %v4252_v26, %v4244_v34 }
 0xa1a   :  { %19043 = vtanh.f32 %v20291_v30 }
 0xa24   :  { %v19044_v55 = vpop.eup %19043 }
 0xa25   :  { %4257 = vrot.lane.b32.xlu0 %v19044_v55, %s19135_s3 }
 0xa47   :  { %v4772_v14 = vpop.permute.xlu1 %4771 }
 0xa48   :  { %v20296_v47 = vadd.f32 %v4772_v14, %v4764_v60 }
 0xa4a   :  { %19045 = vtanh.f32 %v20296_v47 }
 0xa54   :  { %v19046_v32 = vpop.eup %19045 }
 0xa55   :  { %4777 = vrot.lane.b32.xlu1 %v19046_v32, %s19135_s3 }
 0xa97   :  { %v4258_v13 = vpop.permute.xlu0 %4257 }
 0xa98   :  { %v4260_v33 = vmul.f32 %v19038_v35, %v4258_v13 }
 0xa9a   :  { %v20303_v41 = vadd.f32 %v4260_v33, %v3739_v29  ;;  %4784 = vrot.lane.b32.xlu0 %v4260_v33, %s19136_s15 }
 0xac7   :  { %v4778_v5 = vpop.permute.xlu1 %4777 }
 0xac8   :  { %v4780_v52 = vmul.f32 %v19042_v10, %v4778_v5 }
 0xaca   :  { %v20308_v42 = vadd.f32 %v4780_v52, %v3743_v37  ;;  %v5305_v45 = vrot.slane %v4780_v52, 4 }
 0xacc   :  { %5306 = vrot.lane.b32.xlu1 %v5305_v45, %s19136_s15 }
 0xb0c   :  { %v4785_v17 = vpop.permute.xlu0 %4784 }
 0xb0d   :  { %v4786_v57 = vsel %vm1667_vm8, %v4785_v17, 0 }
 0xb0e   :  { %v4857_v31 = vand.u32 4294901760, %v4786_v57 }
 0xb10   :  { %v4858_v0 = vsub.f32 %v4786_v57, %v4857_v31 }
 0xb12   :  { %v4859_v27 = vand.u32 4294901760, %v4858_v0 }
 0xb14   :  { %v4860_v8 = vsub.f32 %v4858_v0, %v4859_v27 }
 0xb16   :  { %v4861_v35 = vand.u32 4294901760, %v4860_v8 }
 0xb18   :  { %16210 = vmatmul.mubr.f32.vlgmr.msra.gmra.mrb[18].mxu0 %v4861_v35 }
 0xb19   :  { %17649 = vmatpush3.bf16.msra.mxu0 %v19791_v3  ;;  %16220 = vmatprep.mubr.msk.f32.mxu0 %vm19134_vm6, %v23674_v24 }
 0xb1a   :  { %17650 = vmatprep.subr.bf16.mxu0 %v23684_v11 }
 0xb1d   :  { %17652 = vmatpush3.bf16.msra.mxu0 %v19793_v48 }
 0xb1e   :  { %17653 = vmatprep.subr.bf16.mxu0 %v23684_v11 }
 0xb20   :  { %16221 = vmatmul.mubr.f32.vlgmr.msra.gmra.mrb[18].mxu0 %v4857_v31 }
 0xb21   :  { %17655 = vmatpush3.bf16.msra.mxu0 %v19795_v51  ;;  %16231 = vmatprep.mubr.msk.f32.mxu0 %vm19134_vm6, %v23674_v24 }
 0xb22   :  { %17656 = vmatprep.subr.bf16.mxu0 %v23684_v11 }
 0xb25   :  { %17658 = vmatpush3.bf16.msra.mxu0 %v19797_v6 }
 0xb26   :  { %17659 = vmatprep.subr.bf16.mxu0 %v23684_v11 }
 0xb28   :  { %16232 = vmatmul.mubr.f32.vlgmr.msra.gmra.mrb[18].mxu0 %v4858_v0 }
 0xb29   :  { %17661 = vmatpush3.bf16.msra.mxu0 %v19775_v46  ;;  %16242 = vmatprep.mubr.msk.f32.mxu0 %vm19134_vm6, %v23674_v24 }
 0xb2a   :  { %17662 = vmatprep.subr.bf16.mxu0 %v23684_v11 }
 0xb2d   :  { %17664 = vmatpush3.bf16.msra.mxu0 %v23685_v39 }
 0xb2e   :  { %17665 = vmatprep.subr.bf16.mxu0 %v23684_v11 }
 0xb30   :  { %16243 = vmatmul.mubr.f32.vlgmr.msra.gmra.mrb[18].mxu0 %v4859_v27 }
 0xb31   :  { %17667 = vmatpush3.bf16.msra.mxu0 %v23686_v44  ;;  %16253 = vmatprep.mubr.msk.f32.mxu0 %vm19134_vm6, %v23674_v24 }
 0xb32   :  { %17668 = vmatprep.subr.bf16.mxu0 %v23684_v11 }
 0xb35   :  { %17670 = vmatpush3.bf16.msra.mxu0 %v19821_v50 }
 0xb36   :  { %17671 = vmatprep.subr.bf16.mxu0 %v23684_v11 }
 0xb38   :  { %16254 = vmatmul.mubr.f32.vlgmr.msra.gmra.mrb[18].mxu0 %v4857_v31 }
 0xb39   :  { %17673 = vmatpush3.bf16.msra.mxu0 %v19775_v46  ;;  %16264 = vmatprep.mubr.msk.f32.mxu0 %vm19134_vm6, %v23674_v24 }
 0xb3a   :  { %17674 = vmatprep.subr.bf16.mxu0 %v23684_v11 }
 0xb3d   :  { %17676 = vmatpush3.bf16.msra.mxu0 %v23685_v39 }
 0xb3e   :  { %v5307_v28 = vpop.permute.xlu1 %5306  ;;  %17683 = vmatprep.subr.bf16.mxu0 %v23684_v11 }
 0xb3f   :  { %v5308_v15 = vsel %vm1667_vm8, %v5307_v28, 0 }
 0xb40   :  { %v5379_v38 = vand.u32 4294901760, %v5308_v15  ;;  %16265 = vmatmul.mubr.f32.vlgmr.msra.gmra.mrb[18].mxu0 %v4857_v31 }
 0xb41   :  { %17685 = vmatpush3.bf16.msra.mxu0 %v20005_v16  ;;  %16286 = vmatprep.mubr.msk.f32.mxu0 %vm19134_vm6, %v23674_v24 }
 0xb42   :  { %v5380_v9 = vsub.f32 %v5308_v15, %v5379_v38  ;;  %17686 = vmatprep.subr.bf16.mxu0 %v23684_v11 }
 0xb44   :  { %v5381_v62 = vand.u32 4294901760, %v5380_v9 }
 0xb45   :  { %17688 = vmatpush3.bf16.msra.mxu0 %v20010_v22 }
 0xb46   :  { %v5382_v12 = vsub.f32 %v5380_v9, %v5381_v62  ;;  %17695 = vmatprep.subr.bf16.mxu0 %v23684_v11 }
 0xb48   :  { %v5383_v59 = vand.u32 4294901760, %v5382_v12  ;;  %16287 = vmatmul.mubr.f32.vlgmr.msra.gmra.mrb[20].mxu0 %v5379_v38 }
 0xb49   :  { %17697 = vmatpush3.bf16.msra.mxu0 %v19993_v36  ;;  %16308 = vmatprep.mubr.msk.f32.mxu0 %vm19134_vm6, %v23674_v24 }
 0xb4a   :  { %16276 = vmatmul.mubr.f32.vlgmr.msra.gmra.mrb[36].mxu1 %v5383_v59  ;;  %17698 = vmatprep.subr.bf16.mxu0 %v23684_v11 }
 0xb4b   :  { %17691 = vmatpush3.bf16.msra.mxu1 %v20016_v23  ;;  %16297 = vmatprep.mubr.msk.f32.mxu1 %vm19134_vm6, %v23674_v24 }
 0xb4c   :  { %17692 = vmatprep.subr.bf16.mxu1 %v23684_v11 }
 0xb4d   :  { %17700 = vmatpush3.bf16.msra.mxu0 %v19998_v21 }
 0xb4e   :  { %17707 = vmatprep.subr.bf16.mxu0 %v23684_v11 }
 0xb4f   :  { %17694 = vmatpush3.bf16.msra.mxu1 %v20021_v40 }
 0xb50   :  { %16309 = vmatmul.mubr.f32.vlgmr.msra.gmra.mrb[22].mxu0 %v5381_v62  ;;  %17701 = vmatprep.subr.bf16.mxu1 %v23684_v11 }
 0xb51   :  { %17709 = vmatpush3.bf16.msra.mxu0 %v19993_v36  ;;  %16330 = vmatprep.mubr.msk.f32.mxu0 %vm19134_vm6, %v23674_v24 }
 0xb52   :  { %16298 = vmatmul.mubr.f32.vlgmr.msra.gmra.mrb[38].mxu1 %v5380_v9  ;;  %17710 = vmatprep.subr.bf16.mxu0 %v23684_v11 }
 0xb53   :  { %17703 = vmatpush3.bf16.msra.mxu1 %v20034_v18  ;;  %16319 = vmatprep.mubr.msk.f32.mxu1 %vm19134_vm6, %v23674_v24 }
 0xb54   :  { %17704 = vmatprep.subr.bf16.mxu1 %v23684_v11 }
 0xb55   :  { %17712 = vmatpush3.bf16.msra.mxu0 %v19998_v21 }
 0xb56   :  { %17719 = vmatprep.subr.bf16.mxu0 %v23684_v11 }
 0xb57   :  { %17706 = vmatpush3.bf16.msra.mxu1 %v20039_v20 }
 0xb58   :  { %16331 = vmatmul.mubr.f32.vlgmr.msra.gmra.mrb[24].mxu0 %v5379_v38  ;;  %17713 = vmatprep.subr.bf16.mxu1 %v23684_v11 }
 0xb59   :  { %17721 = vmatpush3.bf16.msra.mxu0 %v19791_v3  ;;  %16352 = vmatprep.mubr.msk.f32.mxu0 %vm19134_vm6, %v23674_v24 }
 0xb5a   :  { %16320 = vmatmul.mubr.f32.vlgmr.msra.gmra.mrb[40].mxu1 %v5379_v38  ;;  %17722 = vmatprep.subr.bf16.mxu0 %v23684_v11 }
 0xb5b   :  { %17715 = vmatpush3.bf16.msra.mxu1 %v19775_v46  ;;  %16341 = vmatprep.mubr.msk.f32.mxu1 %vm19134_vm6, %v23674_v24 }
 0xb5c   :  { %17716 = vmatprep.subr.bf16.mxu1 %v23684_v11 }
 0xb5d   :  { %17724 = vmatpush3.bf16.msra.mxu0 %v19793_v48 }
 0xb5e   :  { %17731 = vmatprep.subr.bf16.mxu0 %v23684_v11 }
 0xb5f   :  { %17718 = vmatpush3.bf16.msra.mxu1 %v23685_v39 }
 0xb60   :  { %17725 = vmatprep.subr.bf16.mxu1 %v23684_v11 }
 0xc13   :  { %v5269_v10 = vpop.f32.mrb[18].mxu0 }
 0xc14   :  { %v5274_v49 = vrot.slane %v5269_v10, 4  ;;  %v16266_v19 = vpop.f32.mrb[19].mxu0 }
 0xc16   :  { %v5276_v54 = vadd.f32 %v20074_v7, %v5274_v49  ;;  %v5285_v49 = vrot.slane %v20291_v30, 4 }
 0xc18   :  { %19047 = vtanh.f32 %v5276_v54  ;;  %v14443_v27 = vmul.f32 -1.442695, %v5276_v54 }
 0xc1b   :  { %v5476_v34 = vpop.f32.mrb[20].mxu0 }
 0xc1c   :  { %v16288_v26 = vpop.f32.mrb[21].mxu0 }
 0xc1d   :  { %v5385_v55 = vpop.f32.mrb[36].mxu1 }
 0xc1e   :  { %v5477_v58 = vadd.f32 %v5476_v34, %v5385_v55  ;;  %v16277_v60 = vpop.f32.mrb[37].mxu1  ;;  %v5804_v55 = vrot.slane %v20296_v47, 4 }
 0xc22   :  { %v19048_v14 = vpop.eup %19047 }
 0xc23   :  { %v5633_v32 = vpop.f32.mrb[22].mxu0  ;;  %5289 = vrot.lane.b32.xlu0 %v19048_v14, %s19135_s3 }
 0xc24   :  { %v16310_v13 = vpop.f32.mrb[23].mxu0 }
 0xc25   :  { %v5556_v29 = vpop.f32.mrb[38].mxu1 }
 0xc26   :  { %v5557_v33 = vadd.f32 %v5556_v29, %v5477_v58  ;;  %v16299_v61 = vpop.f32.mrb[39].mxu1 }
 0xc28   :  { %v5634_v5 = vadd.f32 %v5633_v32, %v5557_v33 }
 0xc2b   :  { %v5791_v37 = vpop.f32.mrb[24].mxu0 }
 0xc2c   :  { %v16332_v52 = vpop.f32.mrb[25].mxu0 }
 0xc2d   :  { %v5716_v45 = vpop.f32.mrb[40].mxu1 }
 0xc2e   :  { %v5717_v17 = vadd.f32 %v5716_v45, %v5634_v5  ;;  %v16321_v7 = vpop.f32.mrb[41].mxu1 }
 0xc30   :  { %v5792_v57 = vadd.f32 %v5791_v37, %v5717_v17 }
 0xc32   :  { %v5795_v31 = vadd.f32 %v20080_v43, %v5792_v57 }
 0xc34   :  { %19049 = vtanh.f32 %v5795_v31  ;;  %v14444_v28 = vmul.f32 -1.442695, %v5795_v31 }
 0xc35   :  { %19051 = vpow2.f32 %v14443_v27 }
 0xc3e   :  { %v19050_v0 = vpop.eup %19049 }
 0xc3f   :  { %5808 = vrot.lane.b32.xlu1 %v19050_v0, %s19135_s3  ;;  %v19052_v8 = vpop.eup %19051 }
 0xc40   :  { %v5280_v35 = vadd.f32 1.0, %v19052_v8 }
 0xc42   :  { %19053 = vrcp.f32 %v5280_v35 }
 0xc43   :  { %19055 = vpow2.f32 %v14444_v28 }
 0xc4c   :  { %v19054_v15 = vpop.eup %19053 }
 0xc4d   :  { %v19056_v62 = vpop.eup %19055  ;;  %v5287_v19 = vmul.f32 %v19054_v15, %v5285_v49 }
 0xc4e   :  { %v5799_v12 = vadd.f32 1.0, %v19056_v62 }
 0xc50   :  { %19057 = vrcp.f32 %v5799_v12 }
 0xc5a   :  { %v19058_v43 = vpop.eup %19057 }
 0xc5b   :  { %v5806_v58 = vmul.f32 %v19058_v43, %v5804_v55 }
 0xc95   :  { %v5290_v38 = vpop.permute.xlu0 %5289 }
 0xc96   :  { %v5292_v9 = vmul.f32 %v19054_v15, %v5290_v38 }
 0xc98   :  { %5294 = vrot.lane.b32.xlu0 %v5292_v9, %s19136_s15 }
 0xcb1   :  { %v5809_v59 = vpop.permute.xlu1 %5808 }
 0xcb2   :  { %v5811_v10 = vmul.f32 %v19058_v43, %v5809_v59 }
 0xcb4   :  { %5813 = vrot.lane.b32.xlu1 %v5811_v10, %s19136_s15 }
 0xd0a   :  { %v5295_v54 = vpop.permute.xlu0 %5294 }
 0xd0b   :  { %v20392_v34 = vadd.f32 %v5295_v54, %v5287_v19 }
 0xd0d   :  { %19059 = vtanh.f32 %v20392_v34 }
 0xd17   :  { %v19060_v26 = vpop.eup %19059 }
 0xd18   :  { %5300 = vrot.lane.b32.xlu0 %v19060_v26, %s19135_s3 }
 0xd26   :  { %v5814_v60 = vpop.permute.xlu1 %5813 }
 0xd27   :  { %v20397_v14 = vadd.f32 %v5814_v60, %v5806_v58 }
 0xd29   :  { %19061 = vtanh.f32 %v20397_v14 }
 0xd33   :  { %v19062_v32 = vpop.eup %19061 }
 0xd34   :  { %5819 = vrot.lane.b32.xlu1 %v19062_v32, %s19135_s3 }
 0xd8a   :  { %v5301_v30 = vpop.permute.xlu0 %5300 }
 0xd8b   :  { %v5303_v13 = vmul.f32 %v19054_v15, %v5301_v30 }
 0xd8d   :  { %v5824_v29 = vrot.slane %v5303_v13, 4 }
 0xd8f   :  { %v20402_v33 = vadd.f32 %v5824_v29, %v20303_v41  ;;  %5831 = vrot.lane.b32.xlu0 %v5824_v29, %s19136_s15 }
 0xda6   :  { %v5820_v61 = vpop.permute.xlu1 %5819 }
 0xda7   :  { %v5822_v5 = vmul.f32 %v19058_v43, %v5820_v61 }
 0xda9   :  { %v5828_v47 = vrot.slane %v5822_v5, 4  ;;  %6348 = vrot.lane.b32.xlu1 %v5822_v5, %s19136_s15 }
 0xdab   :  { %v20407_v37 = vadd.f32 %v5828_v47, %v20308_v42 }
 0xe01   :  { %v5832_v52 = vpop.permute.xlu0 %5831 }
 0xe02   :  { %v5833_v45 = vsel %vm1667_vm8, %v5832_v52, 0 }
 0xe03   :  { %v5904_v17 = vand.u32 4294901760, %v5833_v45 }
 0xe05   :  { %v5905_v7 = vsub.f32 %v5833_v45, %v5904_v17  ;;  %16353 = vmatmul.mubr.f32.vlgmr.msra.gmra.mrb[26].mxu0 %v5904_v17 }
 0xe06   :  { %17733 = vmatpush3.bf16.msra.mxu0 %v19775_v46  ;;  %16374 = vmatprep.mubr.msk.f32.mxu0 %vm19134_vm6, %v23674_v24 }
 0xe07   :  { %v5906_v41 = vand.u32 4294901760, %v5905_v7  ;;  %17734 = vmatprep.subr.bf16.mxu0 %v23684_v11 }
 0xe09   :  { %v5907_v57 = vsub.f32 %v5905_v7, %v5906_v41 }
 0xe0a   :  { %17736 = vmatpush3.bf16.msra.mxu0 %v23685_v39 }
 0xe0b   :  { %v5908_v31 = vand.u32 4294901760, %v5907_v57  ;;  %17743 = vmatprep.subr.bf16.mxu0 %v23684_v11 }
 0xe0d   :  { %16375 = vmatmul.mubr.f32.vlgmr.msra.gmra.mrb[28].mxu0 %v5906_v41  ;;  %16342 = vmatmul.mubr.f32.vlgmr.msra.gmra.mrb[42].mxu1 %v5908_v31 }
 0xe0e   :  { %17727 = vmatpush3.bf16.msra.mxu1 %v19795_v51  ;;  %17745 = vmatpush3.bf16.msra.mxu0 %v19775_v46 }
 0xe0f   :  { %17728 = vmatprep.subr.bf16.mxu1 %v23684_v11  ;;  %17746 = vmatprep.subr.bf16.mxu0 %v23684_v11 }
 0xe10   :  { %16363 = vmatprep.mubr.msk.f32.mxu1 %vm19134_vm6, %v23674_v24  ;;  %16396 = vmatprep.mubr.msk.f32.mxu0 %vm19134_vm6, %v23674_v24 }
 0xe12   :  { %17730 = vmatpush3.bf16.msra.mxu1 %v19797_v6  ;;  %17748 = vmatpush3.bf16.msra.mxu0 %v23685_v39 }
 0xe13   :  { %17737 = vmatprep.subr.bf16.mxu1 %v23684_v11  ;;  %17785 = vmatprep.subr.bf16.mxu0 %v23684_v11 }
 0xe15   :  { %16364 = vmatmul.mubr.f32.vlgmr.msra.gmra.mrb[44].mxu1 %v5905_v7  ;;  %16397 = vmatmul.mubr.f32.vlgmr.msra.gmra.mrb[30].mxu0 %v5904_v17 }
 0xe16   :  { %17739 = vmatpush3.bf16.msra.mxu1 %v23686_v44  ;;  %16385 = vmatprep.mubr.msk.f32.mxu1 %vm19134_vm6, %v23674_v24 }
 0xe17   :  { %17740 = vmatprep.subr.bf16.mxu1 %v23684_v11  ;;  %17787 = vmatpush3.bf16.msra.mxu0 %v19775_v46 }
 0xe18   :  { %17788 = vmatprep.subr.bf16.mxu0 %v23684_v11  ;;  %16473 = vmatprep.mubr.msk.f32.mxu0 %vm19134_vm6, %v23674_v24 }
 0xe1a   :  { %17742 = vmatpush3.bf16.msra.mxu1 %v19821_v50 }
 0xe1b   :  { %v6349_v42 = vpop.permute.xlu1 %6348  ;;  %17749 = vmatprep.subr.bf16.mxu1 %v23684_v11  ;;  %17790 = vmatpush3.bf16.msra.mxu0 %v23685_v39 }
 0xe1c   :  { %v6350_v0 = vsel %vm1667_vm8, %v6349_v42, 0  ;;  %17791 = vmatprep.subr.bf16.mxu0 %v23684_v11 }
 0xe1d   :  { %v6421_v27 = vand.u32 4294901760, %v6350_v0  ;;  %16386 = vmatmul.mubr.f32.vlgmr.msra.gmra.mrb[46].mxu1 %v5904_v17 }
 0xe1e   :  { %17751 = vmatpush3.bf16.msra.mxu1 %v19993_v36  ;;  %16407 = vmatprep.mubr.msk.f32.mxu1 %vm19134_vm6, %v23674_v24 }
 0xe1f   :  { %v6422_v8 = vsub.f32 %v6350_v0, %v6421_v27  ;;  %17752 = vmatprep.subr.bf16.mxu1 %v23684_v11 }
 0xe21   :  { %v6423_v35 = vand.u32 4294901760, %v6422_v8 }
 0xe22   :  { %17754 = vmatpush3.bf16.msra.mxu1 %v19998_v21 }
 0xe23   :  { %v6424_v28 = vsub.f32 %v6422_v8, %v6423_v35  ;;  %17755 = vmatprep.subr.bf16.mxu1 %v23684_v11 }
 0xe25   :  { %v6425_v15 = vand.u32 4294901760, %v6424_v28 }
 0xe27   :  { %16408 = vmatmul.mubr.f32.vlgmr.msra.gmra.mrb[48].mxu1 %v6425_v15 }
 0xe28   :  { %17757 = vmatpush3.bf16.msra.mxu1 %v20005_v16  ;;  %16418 = vmatprep.mubr.msk.f32.mxu1 %vm19134_vm6, %v23674_v24 }
 0xe29   :  { %17758 = vmatprep.subr.bf16.mxu1 %v23684_v11 }
 0xe2c   :  { %17760 = vmatpush3.bf16.msra.mxu1 %v20010_v22 }
 0xe2d   :  { %17761 = vmatprep.subr.bf16.mxu1 %v23684_v11 }
 0xe2f   :  { %16419 = vmatmul.mubr.f32.vlgmr.msra.gmra.mrb[48].mxu1 %v6421_v27 }
 0xe30   :  { %17763 = vmatpush3.bf16.msra.mxu1 %v20016_v23  ;;  %16429 = vmatprep.mubr.msk.f32.mxu1 %vm19134_vm6, %v23674_v24 }
 0xe31   :  { %17764 = vmatprep.subr.bf16.mxu1 %v23684_v11 }
 0xe34   :  { %17766 = vmatpush3.bf16.msra.mxu1 %v20021_v40 }
 0xe35   :  { %17767 = vmatprep.subr.bf16.mxu1 %v23684_v11 }
 0xe37   :  { %16430 = vmatmul.mubr.f32.vlgmr.msra.gmra.mrb[48].mxu1 %v6422_v8 }
 0xe38   :  { %17769 = vmatpush3.bf16.msra.mxu1 %v19993_v36  ;;  %16440 = vmatprep.mubr.msk.f32.mxu1 %vm19134_vm6, %v23674_v24 }
 0xe39   :  { %17770 = vmatprep.subr.bf16.mxu1 %v23684_v11 }
 0xe3c   :  { %17772 = vmatpush3.bf16.msra.mxu1 %v19998_v21 }
 0xe3d   :  { %17773 = vmatprep.subr.bf16.mxu1 %v23684_v11 }
 0xe3f   :  { %16441 = vmatmul.mubr.f32.vlgmr.msra.gmra.mrb[48].mxu1 %v6423_v35 }
 0xe40   :  { %17775 = vmatpush3.bf16.msra.mxu1 %v20034_v18  ;;  %16451 = vmatprep.mubr.msk.f32.mxu1 %vm19134_vm6, %v23674_v24 }
 0xe41   :  { %17776 = vmatprep.subr.bf16.mxu1 %v23684_v11 }
 0xe44   :  { %17778 = vmatpush3.bf16.msra.mxu1 %v20039_v20 }
 0xe45   :  { %17779 = vmatprep.subr.bf16.mxu1 %v23684_v11 }
 0xe47   :  { %16452 = vmatmul.mubr.f32.vlgmr.msra.gmra.mrb[48].mxu1 %v6421_v27 }
 0xe48   :  { %17781 = vmatpush3.bf16.msra.mxu1 %v19993_v36  ;;  %16462 = vmatprep.mubr.msk.f32.mxu1 %vm19134_vm6, %v23674_v24 }
 0xe49   :  { %17782 = vmatprep.subr.bf16.mxu1 %v23684_v11 }
 0xe4c   :  { %17784 = vmatpush3.bf16.msra.mxu1 %v19998_v21 }
 0xe4d   :  { %17821 = vmatprep.subr.bf16.mxu1 %v23684_v11 }
 0xe4f   :  { %16463 = vmatmul.mubr.f32.vlgmr.msra.gmra.mrb[48].mxu1 %v6421_v27 }
 0xe50   :  { %17823 = vmatpush3.bf16.msra.mxu1 %v19993_v36  ;;  %16539 = vmatprep.mubr.msk.f32.mxu1 %vm19134_vm6, %v23674_v24 }
 0xe51   :  { %17824 = vmatprep.subr.bf16.mxu1 %v23684_v11 }
 0xe54   :  { %17826 = vmatpush3.bf16.msra.mxu1 %v19998_v21 }
 0xe55   :  { %17833 = vmatprep.subr.bf16.mxu1 %v23684_v11 }
 0xed8   :  { %v6001_v38 = vpop.f32.mrb[26].mxu0 }
 0xed9   :  { %v16354_v9 = vpop.f32.mrb[27].mxu0 }
 0xeda   :  { %v6329_v9 = vrot.slane %v20392_v34, 4 }
 0xee0   :  { %v6158_v62 = vpop.f32.mrb[28].mxu0  ;;  %v5910_v12 = vpop.f32.mrb[42].mxu1 }
 0xee1   :  { %v6002_v43 = vadd.f32 %v6001_v38, %v5910_v12  ;;  %v16376_v59 = vpop.f32.mrb[29].mxu0  ;;  %v16343_v10 = vpop.f32.mrb[43].mxu1 }
 0xee2   :  { %v6849_v10 = vrot.slane %v20397_v14, 4 }
 0xee8   :  { %v6081_v49 = vpop.f32.mrb[44].mxu1  ;;  %v6316_v19 = vpop.f32.mrb[30].mxu0 }
 0xee9   :  { %v6082_v54 = vadd.f32 %v6081_v49, %v6002_v43  ;;  %v16365_v26 = vpop.f32.mrb[45].mxu1  ;;  %v16398_v55 = vpop.f32.mrb[31].mxu0 }
 0xeeb   :  { %v6159_v58 = vadd.f32 %v6158_v62, %v6082_v54 }
 0xef0   :  { %v6241_v60 = vpop.f32.mrb[46].mxu1 }
 0xef1   :  { %v6242_v32 = vadd.f32 %v6241_v60, %v6159_v58  ;;  %v16387_v30 = vpop.f32.mrb[47].mxu1 }
 0xef3   :  { %v6317_v13 = vadd.f32 %v6316_v19, %v6242_v32 }
 0xef5   :  { %v6320_v29 = vadd.f32 %v20078_v2, %v6317_v13 }
 0xef7   :  { %19063 = vtanh.f32 %v6320_v29  ;;  %v14445_v7 = vmul.f32 -1.442695, %v6320_v29 }
 0xf01   :  { %v19064_v61 = vpop.eup %19063 }
 0xf02   :  { %6333 = vrot.lane.b32.xlu0 %v19064_v61, %s19135_s3 }
 0xf22   :  { %v6833_v5 = vpop.f32.mrb[48].mxu1 }
 0xf23   :  { %v6838_v47 = vrot.slane %v6833_v5, 4  ;;  %v16464_v52 = vpop.f32.mrb[49].mxu1 }
 0xf25   :  { %v6840_v45 = vadd.f32 %v20076_v53, %v6838_v47 }
 0xf27   :  { %19065 = vtanh.f32 %v6840_v45  ;;  %v14446_v27 = vmul.f32 -1.442695, %v6840_v45 }
 0xf28   :  { %19067 = vpow2.f32 %v14445_v7 }
 0xf31   :  { %v19066_v17 = vpop.eup %19065 }
 0xf32   :  { %6853 = vrot.lane.b32.xlu1 %v19066_v17, %s19135_s3  ;;  %v19068_v41 = vpop.eup %19067 }
 0xf33   :  { %v6324_v57 = vadd.f32 1.0, %v19068_v41 }
 0xf35   :  { %19069 = vrcp.f32 %v6324_v57 }
 0xf36   :  { %19071 = vpow2.f32 %v14446_v27 }
 0xf3f   :  { %v19070_v31 = vpop.eup %19069 }
 0xf40   :  { %v19072_v8 = vpop.eup %19071  ;;  %v6331_v62 = vmul.f32 %v19070_v31, %v6329_v9 }
 0xf41   :  { %v6844_v35 = vadd.f32 1.0, %v19072_v8 }
 0xf43   :  { %19073 = vrcp.f32 %v6844_v35 }
 0xf4d   :  { %v19074_v28 = vpop.eup %19073 }
 0xf4e   :  { %v6851_v49 = vmul.f32 %v19074_v28, %v6849_v10 }
 0xf74   :  { %v6334_v42 = vpop.permute.xlu0 %6333 }
 0xf75   :  { %v6336_v0 = vmul.f32 %v19070_v31, %v6334_v42 }
 0xf77   :  { %6338 = vrot.lane.b32.xlu0 %v6336_v0, %s19136_s15 }
 0xfa4   :  { %v6854_v15 = vpop.permute.xlu1 %6853 }
 0xfa5   :  { %v6856_v38 = vmul.f32 %v19074_v28, %v6854_v15 }
 0xfa7   :  { %6858 = vrot.lane.b32.xlu1 %v6856_v38, %s19136_s15 }
 0xfe9   :  { %v6339_v12 = vpop.permute.xlu0 %6338 }
 0xfea   :  { %v20490_v43 = vadd.f32 %v6339_v12, %v6331_v62 }
 0xfec   :  { %19075 = vtanh.f32 %v20490_v43 }
 0xff6   :  { %v19076_v59 = vpop.eup %19075 }
 0xff7   :  { %6344 = vrot.lane.b32.xlu0 %v19076_v59, %s19135_s3 }
0x1019   :  { %v6859_v19 = vpop.permute.xlu1 %6858 }
0x101a   :  { %v20495_v54 = vadd.f32 %v6859_v19, %v6851_v49 }
0x101c   :  { %19077 = vtanh.f32 %v20495_v54 }
0x1026   :  { %v19078_v26 = vpop.eup %19077 }
0x1027   :  { %6864 = vrot.lane.b32.xlu1 %v19078_v26, %s19135_s3 }
0x1069   :  { %v6345_v34 = vpop.permute.xlu0 %6344 }
0x106a   :  { %v6347_v55 = vmul.f32 %v19070_v31, %v6345_v34 }
0x106c   :  { %v20500_v58 = vadd.f32 %v6347_v55, %v20402_v33  ;;  %6871 = vrot.lane.b32.xlu0 %v6347_v55, %s19136_s15 }
0x1099   :  { %v6865_v60 = vpop.permute.xlu1 %6864 }
0x109a   :  { %v6867_v32 = vmul.f32 %v19074_v28, %v6865_v60 }
0x109c   :  { %v20504_v14 = vadd.f32 %v6867_v32, %v20407_v37  ;;  %v7392_v30 = vrot.slane %v6867_v32, 4 }
0x109e   :  { %7393 = vrot.lane.b32.xlu1 %v7392_v30, %s19136_s15 }
0x10de   :  { %v6872_v13 = vpop.permute.xlu0 %6871 }
0x10df   :  { %v6873_v29 = vsel %vm1667_vm8, %v6872_v13, 0 }
0x10e0   :  { %v6944_v61 = vand.u32 4294901760, %v6873_v29 }
0x10e2   :  { %v6945_v5 = vsub.f32 %v6873_v29, %v6944_v61 }
0x10e4   :  { %v6946_v47 = vand.u32 4294901760, %v6945_v5 }
0x10e6   :  { %v6947_v52 = vsub.f32 %v6945_v5, %v6946_v47 }
0x10e8   :  { %v6948_v45 = vand.u32 4294901760, %v6947_v52 }
0x10ea   :  { %16474 = vmatmul.mubr.f32.vlgmr.msra.gmra.mrb[32].mxu0 %v6948_v45 }
0x10eb   :  { %17793 = vmatpush3.bf16.msra.mxu0 %v19791_v3  ;;  %16484 = vmatprep.mubr.msk.f32.mxu0 %vm19134_vm6, %v23674_v24 }
0x10ec   :  { %17794 = vmatprep.subr.bf16.mxu0 %v23684_v11 }
0x10ef   :  { %17796 = vmatpush3.bf16.msra.mxu0 %v19793_v48 }
0x10f0   :  { %17797 = vmatprep.subr.bf16.mxu0 %v23684_v11 }
0x10f2   :  { %16485 = vmatmul.mubr.f32.vlgmr.msra.gmra.mrb[32].mxu0 %v6944_v61 }
0x10f3   :  { %17799 = vmatpush3.bf16.msra.mxu0 %v19795_v51  ;;  %16495 = vmatprep.mubr.msk.f32.mxu0 %vm19134_vm6, %v23674_v24 }
0x10f4   :  { %17800 = vmatprep.subr.bf16.mxu0 %v23684_v11 }
0x10f7   :  { %17802 = vmatpush3.bf16.msra.mxu0 %v19797_v6 }
0x10f8   :  { %17803 = vmatprep.subr.bf16.mxu0 %v23684_v11 }
0x10fa   :  { %16496 = vmatmul.mubr.f32.vlgmr.msra.gmra.mrb[32].mxu0 %v6945_v5 }
0x10fb   :  { %17805 = vmatpush3.bf16.msra.mxu0 %v19775_v46  ;;  %16506 = vmatprep.mubr.msk.f32.mxu0 %vm19134_vm6, %v23674_v24 }
0x10fc   :  { %17806 = vmatprep.subr.bf16.mxu0 %v23684_v11 }
0x10ff   :  { %17808 = vmatpush3.bf16.msra.mxu0 %v23685_v39 }
0x1100   :  { %17809 = vmatprep.subr.bf16.mxu0 %v23684_v11 }
0x1102   :  { %16507 = vmatmul.mubr.f32.vlgmr.msra.gmra.mrb[32].mxu0 %v6946_v47 }
0x1103   :  { %17811 = vmatpush3.bf16.msra.mxu0 %v23686_v44  ;;  %16517 = vmatprep.mubr.msk.f32.mxu0 %vm19134_vm6, %v23674_v24 }
0x1104   :  { %17812 = vmatprep.subr.bf16.mxu0 %v23684_v11 }
0x1107   :  { %17814 = vmatpush3.bf16.msra.mxu0 %v19821_v50 }
0x1108   :  { %17815 = vmatprep.subr.bf16.mxu0 %v23684_v11 }
0x110a   :  { %16518 = vmatmul.mubr.f32.vlgmr.msra.gmra.mrb[32].mxu0 %v6944_v61 }
0x110b   :  { %17817 = vmatpush3.bf16.msra.mxu0 %v19775_v46  ;;  %16528 = vmatprep.mubr.msk.f32.mxu0 %vm19134_vm6, %v23674_v24 }
0x110c   :  { %17818 = vmatprep.subr.bf16.mxu0 %v23684_v11 }
0x110f   :  { %17820 = vmatpush3.bf16.msra.mxu0 %v23685_v39 }
0x1110   :  { %v7394_v33 = vpop.permute.xlu1 %7393  ;;  %17827 = vmatprep.subr.bf16.mxu0 %v23684_v11 }
0x1111   :  { %v7395_v37 = vsel %vm1667_vm8, %v7394_v33, 0 }
0x1112   :  { %v7466_v17 = vand.u32 4294901760, %v7395_v37  ;;  %16529 = vmatmul.mubr.f32.vlgmr.msra.gmra.mrb[32].mxu0 %v6944_v61 }
0x1113   :  { %17829 = vmatpush3.bf16.msra.mxu0 %v20005_v16  ;;  %16550 = vmatprep.mubr.msk.f32.mxu0 %vm19134_vm6, %v23674_v24 }
0x1114   :  { %v7467_v7 = vsub.f32 %v7395_v37, %v7466_v17  ;;  %17830 = vmatprep.subr.bf16.mxu0 %v23684_v11 }
0x1116   :  { %v7468_v41 = vand.u32 4294901760, %v7467_v7 }
0x1117   :  { %17832 = vmatpush3.bf16.msra.mxu0 %v20010_v22 }
0x1118   :  { %v7469_v57 = vsub.f32 %v7467_v7, %v7468_v41  ;;  %17839 = vmatprep.subr.bf16.mxu0 %v23684_v11 }
0x111a   :  { %v7470_v31 = vand.u32 4294901760, %v7469_v57  ;;  %16551 = vmatmul.mubr.f32.vlgmr.msra.gmra.mrb[34].mxu0 %v7466_v17 }
0x111b   :  { %17841 = vmatpush3.bf16.msra.mxu0 %v19993_v36  ;;  %16572 = vmatprep.mubr.msk.f32.mxu0 %vm19134_vm6, %v23674_v24 }
0x111c   :  { %16540 = vmatmul.mubr.f32.vlgmr.msra.gmra.mrb[50].mxu1 %v7470_v31  ;;  %17842 = vmatprep.subr.bf16.mxu0 %v23684_v11  ;;  %v7372_v31 = vrot.slane %v20490_v43, 4 }
0x111d   :  { %17835 = vmatpush3.bf16.msra.mxu1 %v20016_v23  ;;  %16561 = vmatprep.mubr.msk.f32.mxu1 %vm19134_vm6, %v23674_v24 }
0x111e   :  { %17836 = vmatprep.subr.bf16.mxu1 %v23684_v11 }
0x111f   :  { %17844 = vmatpush3.bf16.msra.mxu0 %v19998_v21 }
0x1120   :  { %17851 = vmatprep.subr.bf16.mxu0 %v23684_v11 }
0x1121   :  { %17838 = vmatpush3.bf16.msra.mxu1 %v20021_v40 }
0x1122   :  { %16573 = vmatmul.mubr.f32.vlgmr.msra.gmra.mrb[36].mxu0 %v7468_v41  ;;  %17845 = vmatprep.subr.bf16.mxu1 %v23684_v11 }
0x1123   :  { %17853 = vmatpush3.bf16.msra.mxu0 %v19993_v36  ;;  %16594 = vmatprep.mubr.msk.f32.mxu0 %vm19134_vm6, %v23674_v24 }
0x1124   :  { %16562 = vmatmul.mubr.f32.vlgmr.msra.gmra.mrb[52].mxu1 %v7467_v7  ;;  %17854 = vmatprep.subr.bf16.mxu0 %v23684_v11 }
0x1125   :  { %17847 = vmatpush3.bf16.msra.mxu1 %v20034_v18  ;;  %16583 = vmatprep.mubr.msk.f32.mxu1 %vm19134_vm6, %v23674_v24 }
0x1126   :  { %17848 = vmatprep.subr.bf16.mxu1 %v23684_v11 }
0x1127   :  { %17856 = vmatpush3.bf16.msra.mxu0 %v19998_v21 }
0x1128   :  { %17863 = vmatprep.subr.bf16.mxu0 %v23684_v11 }
0x1129   :  { %17850 = vmatpush3.bf16.msra.mxu1 %v20039_v20 }
0x112a   :  { %16595 = vmatmul.mubr.f32.vlgmr.msra.gmra.mrb[38].mxu0 %v7466_v17  ;;  %17857 = vmatprep.subr.bf16.mxu1 %v23684_v11 }
0x112b   :  { %17865 = vmatpush3.bf16.msra.mxu0 %v19791_v3  ;;  %16616 = vmatprep.mubr.msk.f32.mxu0 %vm19134_vm6, %v23674_v24 }
0x112c   :  { %16584 = vmatmul.mubr.f32.vlgmr.msra.gmra.mrb[54].mxu1 %v7466_v17  ;;  %17866 = vmatprep.subr.bf16.mxu0 %v23684_v11 }
0x112d   :  { %17859 = vmatpush3.bf16.msra.mxu1 %v19775_v46  ;;  %16605 = vmatprep.mubr.msk.f32.mxu1 %vm19134_vm6, %v23674_v24 }
0x112e   :  { %17860 = vmatprep.subr.bf16.mxu1 %v23684_v11 }
0x112f   :  { %17868 = vmatpush3.bf16.msra.mxu0 %v19793_v48 }
0x1130   :  { %17875 = vmatprep.subr.bf16.mxu0 %v23684_v11 }
0x1131   :  { %17862 = vmatpush3.bf16.msra.mxu1 %v23685_v39 }
0x1132   :  { %17869 = vmatprep.subr.bf16.mxu1 %v23684_v11 }
0x11e5   :  { %v7356_v42 = vpop.f32.mrb[32].mxu0 }
0x11e6   :  { %v7361_v0 = vrot.slane %v7356_v42, 4  ;;  %v16530_v27 = vpop.f32.mrb[33].mxu0 }
0x11e8   :  { %v7363_v8 = vadd.f32 %v20078_v2, %v7361_v0 }
0x11ea   :  { %19079 = vtanh.f32 %v7363_v8  ;;  %v14447_v61 = vmul.f32 -1.442695, %v7363_v8 }
0x11ed   :  { %v7563_v35 = vpop.f32.mrb[34].mxu0 }
0x11ee   :  { %v16552_v28 = vpop.f32.mrb[35].mxu0 }
0x11ef   :  { %v7472_v15 = vpop.f32.mrb[50].mxu1 }
0x11f0   :  { %v7564_v38 = vadd.f32 %v7563_v35, %v7472_v15  ;;  %v16541_v9 = vpop.f32.mrb[51].mxu1  ;;  %v7891_v35 = vrot.slane %v20495_v54, 4 }
0x11f4   :  { %v19080_v62 = vpop.eup %19079 }
0x11f5   :  { %v7720_v12 = vpop.f32.mrb[36].mxu0  ;;  %7376 = vrot.lane.b32.xlu0 %v19080_v62, %s19135_s3 }
0x11f6   :  { %v16574_v59 = vpop.f32.mrb[37].mxu0 }
0x11f7   :  { %v7643_v10 = vpop.f32.mrb[52].mxu1 }
0x11f8   :  { %v7644_v49 = vadd.f32 %v7643_v10, %v7564_v38  ;;  %v16563_v19 = vpop.f32.mrb[53].mxu1 }
0x11fa   :  { %v7721_v26 = vadd.f32 %v7720_v12, %v7644_v49 }
0x11fd   :  { %v7878_v34 = vpop.f32.mrb[38].mxu0 }
0x11fe   :  { %v16596_v55 = vpop.f32.mrb[39].mxu0 }
0x11ff   :  { %v7803_v60 = vpop.f32.mrb[54].mxu1 }
0x1200   :  { %v7804_v32 = vadd.f32 %v7803_v60, %v7721_v26  ;;  %v16585_v2 = vpop.f32.mrb[55].mxu1 }
0x1202   :  { %v7879_v30 = vadd.f32 %v7878_v34, %v7804_v32 }
0x1204   :  { %v7882_v13 = vadd.f32 %v20076_v53, %v7879_v30 }
0x1206   :  { %19081 = vtanh.f32 %v7882_v13  ;;  %v14448_v52 = vmul.f32 -1.442695, %v7882_v13 }
0x1207   :  { %19083 = vpow2.f32 %v14447_v61 }
0x1210   :  { %v19082_v29 = vpop.eup %19081 }
0x1211   :  { %7895 = vrot.lane.b32.xlu1 %v19082_v29, %s19135_s3  ;;  %v19084_v5 = vpop.eup %19083 }
0x1212   :  { %v7367_v47 = vadd.f32 1.0, %v19084_v5 }
0x1214   :  { %19085 = vrcp.f32 %v7367_v47 }
0x1215   :  { %19087 = vpow2.f32 %v14448_v52 }
0x121e   :  { %v19086_v45 = vpop.eup %19085 }
0x121f   :  { %v19088_v17 = vpop.eup %19087  ;;  %v7374_v42 = vmul.f32 %v19086_v45, %v7372_v31 }
0x1220   :  { %v7886_v7 = vadd.f32 1.0, %v19088_v17 }
0x1222   :  { %19089 = vrcp.f32 %v7886_v7 }
0x122c   :  { %v19090_v53 = vpop.eup %19089 }
0x122d   :  { %v7893_v28 = vmul.f32 %v19090_v53, %v7891_v35 }
0x1267   :  { %v7377_v33 = vpop.permute.xlu0 %7376 }
0x1268   :  { %v7379_v37 = vmul.f32 %v19086_v45, %v7377_v33 }
0x126a   :  { %7381 = vrot.lane.b32.xlu0 %v7379_v37, %s19136_s15 }
0x1283   :  { %v7896_v41 = vpop.permute.xlu1 %7895 }
0x1284   :  { %v7898_v57 = vmul.f32 %v19090_v53, %v7896_v41 }
0x1286   :  { %7900 = vrot.lane.b32.xlu1 %v7898_v57, %s19136_s15 }
0x12dc   :  { %v7382_v0 = vpop.permute.xlu0 %7381 }
0x12dd   :  { %v20588_v27 = vadd.f32 %v7382_v0, %v7374_v42 }
0x12df   :  { %19091 = vtanh.f32 %v20588_v27 }
0x12e9   :  { %v19092_v8 = vpop.eup %19091 }
0x12ea   :  { %7387 = vrot.lane.b32.xlu0 %v19092_v8, %s19135_s3 }
0x12f8   :  { %v7901_v15 = vpop.permute.xlu1 %7900 }
0x12f9   :  { %v20593_v38 = vadd.f32 %v7901_v15, %v7893_v28 }
0x12fb   :  { %19093 = vtanh.f32 %v20593_v38 }
0x1305   :  { %v19094_v9 = vpop.eup %19093 }
0x1306   :  { %7906 = vrot.lane.b32.xlu1 %v19094_v9, %s19135_s3 }
0x135c   :  { %v7388_v43 = vpop.permute.xlu0 %7387 }
0x135d   :  { %v7390_v62 = vmul.f32 %v19086_v45, %v7388_v43 }
0x135f   :  { %v7911_v12 = vrot.slane %v7390_v62, 4 }
0x1361   :  { %v20598_v59 = vadd.f32 %v7911_v12, %v20500_v58  ;;  %7918 = vrot.lane.b32.xlu0 %v7911_v12, %s19136_s15 }
0x1378   :  { %v7907_v10 = vpop.permute.xlu1 %7906 }
0x1379   :  { %v7909_v49 = vmul.f32 %v19090_v53, %v7907_v10 }
0x137b   :  { %v7915_v54 = vrot.slane %v7909_v49, 4  ;;  %8435 = vrot.lane.b32.xlu1 %v7909_v49, %s19136_s15 }
0x137d   :  { %v20603_v19 = vadd.f32 %v7915_v54, %v20504_v14 }
0x13d3   :  { %v7919_v26 = vpop.permute.xlu0 %7918 }
0x13d4   :  { %v7920_v34 = vsel %vm1667_vm8, %v7919_v26, 0 }
0x13d5   :  { %v7991_v55 = vand.u32 4294901760, %v7920_v34 }
0x13d7   :  { %v7992_v60 = vsub.f32 %v7920_v34, %v7991_v55  ;;  %16617 = vmatmul.mubr.f32.vlgmr.msra.gmra.mrb[40].mxu0 %v7991_v55 }
0x13d8   :  { %17877 = vmatpush3.bf16.msra.mxu0 %v19775_v46  ;;  %16638 = vmatprep.mubr.msk.f32.mxu0 %vm19134_vm6, %v23674_v24 }
0x13d9   :  { %v7993_v58 = vand.u32 4294901760, %v7992_v60  ;;  %17878 = vmatprep.subr.bf16.mxu0 %v23684_v11 }
0x13db   :  { %v7994_v32 = vsub.f32 %v7992_v60, %v7993_v58 }
0x13dc   :  { %17880 = vmatpush3.bf16.msra.mxu0 %v23685_v39 }
0x13dd   :  { %v7995_v2 = vand.u32 4294901760, %v7994_v32  ;;  %17887 = vmatprep.subr.bf16.mxu0 %v23684_v11 }
0x13df   :  { %16639 = vmatmul.mubr.f32.vlgmr.msra.gmra.mrb[42].mxu0 %v7993_v58  ;;  %16606 = vmatmul.mubr.f32.vlgmr.msra.gmra.mrb[56].mxu1 %v7995_v2 }
0x13e0   :  { %17871 = vmatpush3.bf16.msra.mxu1 %v19795_v51  ;;  %17889 = vmatpush3.bf16.msra.mxu0 %v19775_v46 }
0x13e1   :  { %17872 = vmatprep.subr.bf16.mxu1 %v23684_v11  ;;  %17890 = vmatprep.subr.bf16.mxu0 %v23684_v11 }
0x13e2   :  { %16627 = vmatprep.mubr.msk.f32.mxu1 %vm19134_vm6, %v23674_v24  ;;  %16660 = vmatprep.mubr.msk.f32.mxu0 %vm19134_vm6, %v23674_v24 }
0x13e4   :  { %17874 = vmatpush3.bf16.msra.mxu1 %v19797_v6  ;;  %17892 = vmatpush3.bf16.msra.mxu0 %v23685_v39 }
0x13e5   :  { %17881 = vmatprep.subr.bf16.mxu1 %v23684_v11  ;;  %17929 = vmatprep.subr.bf16.mxu0 %v23684_v11 }
0x13e7   :  { %16628 = vmatmul.mubr.f32.vlgmr.msra.gmra.mrb[58].mxu1 %v7992_v60  ;;  %16661 = vmatmul.mubr.f32.vlgmr.msra.gmra.mrb[44].mxu0 %v7991_v55 }
0x13e8   :  { %17883 = vmatpush3.bf16.msra.mxu1 %v23686_v44  ;;  %16649 = vmatprep.mubr.msk.f32.mxu1 %vm19134_vm6, %v23674_v24 }
0x13e9   :  { %17884 = vmatprep.subr.bf16.mxu1 %v23684_v11  ;;  %17931 = vmatpush3.bf16.msra.mxu0 %v19775_v46 }
0x13ea   :  { %17932 = vmatprep.subr.bf16.mxu0 %v23684_v11  ;;  %16737 = vmatprep.mubr.msk.f32.mxu0 %vm19134_vm6, %v23674_v24 }
0x13ec   :  { %17886 = vmatpush3.bf16.msra.mxu1 %v19821_v50 }
0x13ed   :  { %v8436_v14 = vpop.permute.xlu1 %8435  ;;  %17893 = vmatprep.subr.bf16.mxu1 %v23684_v11  ;;  %17934 = vmatpush3.bf16.msra.mxu0 %v23685_v39 }
0x13ee   :  { %v8437_v30 = vsel %vm1667_vm8, %v8436_v14, 0  ;;  %17935 = vmatprep.subr.bf16.mxu0 %v23684_v11 }
0x13ef   :  { %v8508_v13 = vand.u32 4294901760, %v8437_v30  ;;  %16650 = vmatmul.mubr.f32.vlgmr.msra.gmra.mrb[60].mxu1 %v7991_v55 }
0x13f0   :  { %17895 = vmatpush3.bf16.msra.mxu1 %v19993_v36  ;;  %16671 = vmatprep.mubr.msk.f32.mxu1 %vm19134_vm6, %v23674_v24 }
0x13f1   :  { %v8509_v29 = vsub.f32 %v8437_v30, %v8508_v13  ;;  %17896 = vmatprep.subr.bf16.mxu1 %v23684_v11 }
0x13f3   :  { %v8510_v61 = vand.u32 4294901760, %v8509_v29 }
0x13f4   :  { %17898 = vmatpush3.bf16.msra.mxu1 %v19998_v21 }
0x13f5   :  { %v8511_v5 = vsub.f32 %v8509_v29, %v8510_v61  ;;  %17899 = vmatprep.subr.bf16.mxu1 %v23684_v11 }
0x13f7   :  { %v8512_v47 = vand.u32 4294901760, %v8511_v5 }
0x13f9   :  { %16672 = vmatmul.mubr.f32.vlgmr.msra.gmra.mrb[62].mxu1 %v8512_v47  ;;  %v8416_v47 = vrot.slane %v20588_v27, 4 }
0x13fa   :  { %17901 = vmatpush3.bf16.msra.mxu1 %v20005_v16  ;;  %16682 = vmatprep.mubr.msk.f32.mxu1 %vm19134_vm6, %v23674_v24 }
0x13fb   :  { %17902 = vmatprep.subr.bf16.mxu1 %v23684_v11 }
0x13fe   :  { %17904 = vmatpush3.bf16.msra.mxu1 %v20010_v22 }
0x13ff   :  { %17905 = vmatprep.subr.bf16.mxu1 %v23684_v11 }
0x1401   :  { %16683 = vmatmul.mubr.f32.vlgmr.msra.gmra.mrb[62].mxu1 %v8508_v13 }
0x1402   :  { %17907 = vmatpush3.bf16.msra.mxu1 %v20016_v23  ;;  %16693 = vmatprep.mubr.msk.f32.mxu1 %vm19134_vm6, %v23674_v24 }
0x1403   :  { %17908 = vmatprep.subr.bf16.mxu1 %v23684_v11 }
0x1406   :  { %17910 = vmatpush3.bf16.msra.mxu1 %v20021_v40 }
0x1407   :  { %17911 = vmatprep.subr.bf16.mxu1 %v23684_v11 }
0x1409   :  { %16694 = vmatmul.mubr.f32.vlgmr.msra.gmra.mrb[62].mxu1 %v8509_v29 }
0x140a   :  { %17913 = vmatpush3.bf16.msra.mxu1 %v19993_v36  ;;  %16704 = vmatprep.mubr.msk.f32.mxu1 %vm19134_vm6, %v23674_v24 }
0x140b   :  { %17914 = vmatprep.subr.bf16.mxu1 %v23684_v11 }
0x140e   :  { %17916 = vmatpush3.bf16.msra.mxu1 %v19998_v21 }
0x140f   :  { %17917 = vmatprep.subr.bf16.mxu1 %v23684_v11 }
0x1411   :  { %16705 = vmatmul.mubr.f32.vlgmr.msra.gmra.mrb[62].mxu1 %v8510_v61 }
0x1412   :  { %17919 = vmatpush3.bf16.msra.mxu1 %v20034_v18  ;;  %16715 = vmatprep.mubr.msk.f32.mxu1 %vm19134_vm6, %v23674_v24 }
0x1413   :  { %17920 = vmatprep.subr.bf16.mxu1 %v23684_v11 }
0x1416   :  { %17922 = vmatpush3.bf16.msra.mxu1 %v20039_v20 }
0x1417   :  { %17923 = vmatprep.subr.bf16.mxu1 %v23684_v11 }
0x1419   :  { %16716 = vmatmul.mubr.f32.vlgmr.msra.gmra.mrb[62].mxu1 %v8508_v13 }
0x141a   :  { %17925 = vmatpush3.bf16.msra.mxu1 %v19993_v36  ;;  %16726 = vmatprep.mubr.msk.f32.mxu1 %vm19134_vm6, %v23674_v24 }
0x141b   :  { %17926 = vmatprep.subr.bf16.mxu1 %v23684_v11 }
0x141e   :  { %17928 = vmatpush3.bf16.msra.mxu1 %v19998_v21 }
0x141f   :  { %17965 = vmatprep.subr.bf16.mxu1 %v23684_v11 }
0x1421   :  { %16727 = vmatmul.mubr.f32.vlgmr.msra.gmra.mrb[62].mxu1 %v8508_v13 }
0x1422   :  { %17967 = vmatpush3.bf16.msra.mxu1 %v19993_v36  ;;  %16803 = vmatprep.mubr.msk.f32.mxu1 %vm19134_vm6, %v23674_v24 }
0x1423   :  { %17968 = vmatprep.subr.bf16.mxu1 %v23684_v11 }
0x1426   :  { %17970 = vmatpush3.bf16.msra.mxu1 %v19998_v21 }
0x1427   :  { %17977 = vmatprep.subr.bf16.mxu1 %v23684_v11 }
0x14aa   :  { %v8088_v52 = vpop.f32.mrb[40].mxu0 }
0x14ab   :  { %v16618_v45 = vpop.f32.mrb[41].mxu0 }
0x14b2   :  { %v8245_v33 = vpop.f32.mrb[42].mxu0  ;;  %v7997_v37 = vpop.f32.mrb[56].mxu1 }
0x14b3   :  { %v8089_v17 = vadd.f32 %v8088_v52, %v7997_v37  ;;  %v16640_v7 = vpop.f32.mrb[43].mxu0  ;;  %v16607_v53 = vpop.f32.mrb[57].mxu1 }
0x14ba   :  { %v8168_v41 = vpop.f32.mrb[58].mxu1  ;;  %v8403_v57 = vpop.f32.mrb[44].mxu0 }
0x14bb   :  { %v8169_v31 = vadd.f32 %v8168_v41, %v8089_v17  ;;  %v16629_v42 = vpop.f32.mrb[59].mxu1  ;;  %v16662_v0 = vpop.f32.mrb[45].mxu0  ;;  %v8936_v17 = vrot.slane %v20593_v38, 4 }
0x14bd   :  { %v8246_v8 = vadd.f32 %v8245_v33, %v8169_v31 }
0x14c2   :  { %v8328_v35 = vpop.f32.mrb[60].mxu1 }
0x14c3   :  { %v8329_v28 = vadd.f32 %v8328_v35, %v8246_v8  ;;  %v16651_v15 = vpop.f32.mrb[61].mxu1 }
0x14c5   :  { %v8404_v9 = vadd.f32 %v8403_v57, %v8329_v28 }
0x14c7   :  { %v8407_v43 = vadd.f32 %v20082_v1, %v8404_v9 }
0x14c9   :  { %19095 = vtanh.f32 %v8407_v43  ;;  %v14449_v34 = vmul.f32 -1.442695, %v8407_v43 }
0x14d3   :  { %v19096_v62 = vpop.eup %19095 }
0x14d4   :  { %8420 = vrot.lane.b32.xlu0 %v19096_v62, %s19135_s3 }
0x14f4   :  { %v8920_v12 = vpop.f32.mrb[62].mxu1 }
0x14f5   :  { %v8925_v10 = vrot.slane %v8920_v12, 4  ;;  %v16728_v49 = vpop.f32.mrb[63].mxu1 }
0x14f7   :  { %v8927_v54 = vadd.f32 %v20070_v25, %v8925_v10 }
0x14f9   :  { %19097 = vtanh.f32 %v8927_v54  ;;  %v14450_v14 = vmul.f32 -1.442695, %v8927_v54 }
0x14fa   :  { %19099 = vpow2.f32 %v14449_v34 }
0x1503   :  { %v19098_v26 = vpop.eup %19097 }
0x1504   :  { %8940 = vrot.lane.b32.xlu1 %v19098_v26, %s19135_s3  ;;  %v19100_v55 = vpop.eup %19099 }
0x1505   :  { %v8411_v60 = vadd.f32 1.0, %v19100_v55 }
0x1507   :  { %19101 = vrcp.f32 %v8411_v60 }
0x1508   :  { %19103 = vpow2.f32 %v14450_v14 }
0x1511   :  { %v19102_v58 = vpop.eup %19101 }
0x1512   :  { %v19104_v30 = vpop.eup %19103  ;;  %v8418_v52 = vmul.f32 %v19102_v58, %v8416_v47 }
0x1513   :  { %v8931_v13 = vadd.f32 1.0, %v19104_v30 }
0x1515   :  { %19105 = vrcp.f32 %v8931_v13 }
0x151f   :  { %v19106_v29 = vpop.eup %19105 }
0x1520   :  { %v8938_v7 = vmul.f32 %v19106_v29, %v8936_v17 }
0x1546   :  { %v8421_v32 = vpop.permute.xlu0 %8420 }
0x1547   :  { %v8423_v2 = vmul.f32 %v19102_v58, %v8421_v32 }
0x1549   :  { %8425 = vrot.lane.b32.xlu0 %v8423_v2, %s19136_s15 }
0x1576   :  { %v8941_v61 = vpop.permute.xlu1 %8940 }
0x1577   :  { %v8943_v5 = vmul.f32 %v19106_v29, %v8941_v61 }
0x1579   :  { %8945 = vrot.lane.b32.xlu1 %v8943_v5, %s19136_s15 }
0x15bb   :  { %v8426_v45 = vpop.permute.xlu0 %8425 }
0x15bc   :  { %v20686_v33 = vadd.f32 %v8426_v45, %v8418_v52 }
0x15be   :  { %19107 = vtanh.f32 %v20686_v33 }
0x15c8   :  { %v19108_v37 = vpop.eup %19107 }
0x15c9   :  { %8431 = vrot.lane.b32.xlu0 %v19108_v37, %s19135_s3 }
0x15eb   :  { %v8946_v53 = vpop.permute.xlu1 %8945 }
0x15ec   :  { %v20691_v41 = vadd.f32 %v8946_v53, %v8938_v7 }
0x15ee   :  { %19109 = vtanh.f32 %v20691_v41 }
0x15f8   :  { %v19110_v57 = vpop.eup %19109 }
0x15f9   :  { %8951 = vrot.lane.b32.xlu1 %v19110_v57, %s19135_s3 }
0x163b   :  { %v8432_v27 = vpop.permute.xlu0 %8431 }
0x163c   :  { %v8434_v31 = vmul.f32 %v19102_v58, %v8432_v27  ;;  %v9459_v27 = vrot.slane %v20686_v33, 4  ;;  %v20782_v33 = vld [vmem:[%s23424_s6 + $0x18] sm:$0xff] }
0x163e   :  { %v20696_v42 = vadd.f32 %v8434_v31, %v20598_v59  ;;  %8958 = vrot.lane.b32.xlu0 %v8434_v31, %s19136_s15 }
0x166b   :  { %v8952_v0 = vpop.permute.xlu1 %8951 }
0x166c   :  { %v8954_v8 = vmul.f32 %v19106_v29, %v8952_v0 }
0x166e   :  { %v20700_v38 = vadd.f32 %v8954_v8, %v20603_v19  ;;  %v9479_v35 = vrot.slane %v8954_v8, 4 }
0x1670   :  { %9480 = vrot.lane.b32.xlu1 %v9479_v35, %s19136_s15 }
0x16b0   :  { %v8959_v28 = vpop.permute.xlu0 %8958 }
0x16b1   :  { %v8960_v15 = vsel %vm1667_vm8, %v8959_v28, 0  ;;  %v9978_v28 = vrot.slane %v20691_v41, 4  ;;  %v20792_v41 = vld [vmem:[%s23424_s6 + $0x10] sm:$0xff] }
0x16b2   :  { %v9031_v9 = vand.u32 4294901760, %v8960_v15 }
0x16b4   :  { %v9032_v43 = vsub.f32 %v8960_v15, %v9031_v9 }
0x16b6   :  { %v9033_v62 = vand.u32 4294901760, %v9032_v43 }
0x16b8   :  { %v9034_v12 = vsub.f32 %v9032_v43, %v9033_v62 }
0x16ba   :  { %v9035_v10 = vand.u32 4294901760, %v9034_v12  ;;  %v20787_v12 = vld [vmem:[%s23424_s6 + $0x40] sm:$0xff] }
0x16bc   :  { %16738 = vmatmul.mubr.f32.vlgmr.msra.gmra.mrb[46].mxu0 %v9035_v10  ;;  %v23477_v10 = vand.u32 4294901760, %v20782_v33 }
0x16bd   :  { %17937 = vmatpush3.bf16.msra.mxu0 %v19791_v3  ;;  %16748 = vmatprep.mubr.msk.f32.mxu0 %vm19134_vm6, %v23674_v24 }
0x16be   :  { %17938 = vmatprep.subr.bf16.mxu0 %v23684_v11 }
0x16c1   :  { %17940 = vmatpush3.bf16.msra.mxu0 %v19793_v48 }
0x16c2   :  { %17941 = vmatprep.subr.bf16.mxu0 %v23684_v11 }
0x16c4   :  { %16749 = vmatmul.mubr.f32.vlgmr.msra.gmra.mrb[46].mxu0 %v9031_v9 }
0x16c5   :  { %17943 = vmatpush3.bf16.msra.mxu0 %v19795_v51  ;;  %16759 = vmatprep.mubr.msk.f32.mxu0 %vm19134_vm6, %v23674_v24 }
0x16c6   :  { %17944 = vmatprep.subr.bf16.mxu0 %v23684_v11 }
0x16c9   :  { %17946 = vmatpush3.bf16.msra.mxu0 %v19797_v6 }
0x16ca   :  { %17947 = vmatprep.subr.bf16.mxu0 %v23684_v11 }
0x16cc   :  { %16760 = vmatmul.mubr.f32.vlgmr.msra.gmra.mrb[46].mxu0 %v9032_v43 }
0x16cd   :  { %17949 = vmatpush3.bf16.msra.mxu0 %v19775_v46  ;;  %16770 = vmatprep.mubr.msk.f32.mxu0 %vm19134_vm6, %v23674_v24 }
0x16ce   :  { %17950 = vmatprep.subr.bf16.mxu0 %v23684_v11 }
0x16d1   :  { %17952 = vmatpush3.bf16.msra.mxu0 %v23685_v39 }
0x16d2   :  { %17953 = vmatprep.subr.bf16.mxu0 %v23684_v11 }
0x16d4   :  { %16771 = vmatmul.mubr.f32.vlgmr.msra.gmra.mrb[46].mxu0 %v9033_v62 }
0x16d5   :  { %17955 = vmatpush3.bf16.msra.mxu0 %v23686_v44  ;;  %16781 = vmatprep.mubr.msk.f32.mxu0 %vm19134_vm6, %v23674_v24 }
0x16d6   :  { %17956 = vmatprep.subr.bf16.mxu0 %v23684_v11 }
0x16d9   :  { %17958 = vmatpush3.bf16.msra.mxu0 %v19821_v50 }
0x16da   :  { %17959 = vmatprep.subr.bf16.mxu0 %v23684_v11 }
0x16dc   :  { %16782 = vmatmul.mubr.f32.vlgmr.msra.gmra.mrb[46].mxu0 %v9031_v9 }
0x16dd   :  { %17961 = vmatpush3.bf16.msra.mxu0 %v19775_v46  ;;  %16792 = vmatprep.mubr.msk.f32.mxu0 %vm19134_vm6, %v23674_v24 }
0x16de   :  { %17962 = vmatprep.subr.bf16.mxu0 %v23684_v11 }
0x16e1   :  { %17964 = vmatpush3.bf16.msra.mxu0 %v23685_v39 }
0x16e2   :  { %v9481_v3 = vpop.permute.xlu1 %9480  ;;  %17971 = vmatprep.subr.bf16.mxu0 %v23684_v11 }
0x16e3   :  { %v9482_v48 = vsel %vm1667_vm8, %v9481_v3, 0  ;;  %v23476_v3 = vand.u32 4294901760, %v20787_v12 }
0x16e4   :  { %v9553_v51 = vand.u32 4294901760, %v9482_v48  ;;  %16793 = vmatmul.mubr.f32.vlgmr.msra.gmra.mrb[46].mxu0 %v9031_v9 }
0x16e5   :  { %17973 = vmatpush3.bf16.msra.mxu0 %v20005_v16  ;;  %16814 = vmatprep.mubr.msk.f32.mxu0 %vm19134_vm6, %v23674_v24 }
0x16e6   :  { %v9554_v46 = vsub.f32 %v9482_v48, %v9553_v51  ;;  %17974 = vmatprep.subr.bf16.mxu0 %v23684_v11  ;;  %v20799_v48 = vld [vmem:[%s23424_s6 + $0x38] sm:$0xff] }
0x16e8   :  { %v9555_v6 = vand.u32 4294901760, %v9554_v46 }
0x16e9   :  { %17976 = vmatpush3.bf16.msra.mxu0 %v20010_v22 }
0x16ea   :  { %v9556_v50 = vsub.f32 %v9554_v46, %v9555_v6  ;;  %17983 = vmatprep.subr.bf16.mxu0 %v23684_v11 }
0x16ec   :  { %v9557_v39 = vand.u32 4294901760, %v9556_v50  ;;  %16815 = vmatmul.mubr.f32.vlgmr.msra.gmra.mrb[48].mxu0 %v9553_v51  ;;  %v23473_v50 = vand.u32 4294901760, %v20799_v48 }
0x16ed   :  { %17985 = vmatpush3.bf16.msra.mxu0 %v19993_v36  ;;  %16836 = vmatprep.mubr.msk.f32.mxu0 %vm19134_vm6, %v23674_v24 }
0x16ee   :  { %16804 = vmatmul.mubr.f32.vlgmr.msra.gmra.mrb[64].mxu1 %v9557_v39  ;;  %17986 = vmatprep.subr.bf16.mxu0 %v23684_v11 }
0x16ef   :  { %17979 = vmatpush3.bf16.msra.mxu1 %v20016_v23  ;;  %16825 = vmatprep.mubr.msk.f32.mxu1 %vm19134_vm6, %v23674_v24 }
0x16f0   :  { %17980 = vmatprep.subr.bf16.mxu1 %v23684_v11 }
0x16f1   :  { %17988 = vmatpush3.bf16.msra.mxu0 %v19998_v21 }
0x16f2   :  { %17995 = vmatprep.subr.bf16.mxu0 %v23684_v11 }
0x16f3   :  { %17982 = vmatpush3.bf16.msra.mxu1 %v20021_v40 }
0x16f4   :  { %16837 = vmatmul.mubr.f32.vlgmr.msra.gmra.mrb[50].mxu0 %v9555_v6  ;;  %17989 = vmatprep.subr.bf16.mxu1 %v23684_v11  ;;  %v20810_v6 = vld [vmem:[%s23424_s6 + $0x90] sm:$0xff] }
0x16f5   :  { %17997 = vmatpush3.bf16.msra.mxu0 %v19993_v36  ;;  %16858 = vmatprep.mubr.msk.f32.mxu0 %vm19134_vm6, %v23674_v24 }
0x16f6   :  { %16826 = vmatmul.mubr.f32.vlgmr.msra.gmra.mrb[66].mxu1 %v9554_v46  ;;  %17998 = vmatprep.subr.bf16.mxu0 %v23684_v11  ;;  %v20805_v46 = vld [vmem:[%s23424_s6 + $0x68] sm:$0xff] }
0x16f7   :  { %17991 = vmatpush3.bf16.msra.mxu1 %v20034_v18  ;;  %16847 = vmatprep.mubr.msk.f32.mxu1 %vm19134_vm6, %v23674_v24  ;;  %v23471_v39 = vand.u32 4294901760, %v20805_v46 }
0x16f8   :  { %17992 = vmatprep.subr.bf16.mxu1 %v23684_v11 }
0x16f9   :  { %18000 = vmatpush3.bf16.msra.mxu0 %v19998_v21 }
0x16fb   :  { %17994 = vmatpush3.bf16.msra.mxu1 %v20039_v20 }
0x16fc   :  { %16859 = vmatmul.mubr.f32.vlgmr.msra.gmra.mrb[52].mxu0 %v9553_v51 }
0x16fd   :  { %10969 = vmatprep.mubr.f32.mxu0 %v23674_v24 }
0x16fe   :  { %16848 = vmatmul.mubr.f32.vlgmr.msra.gmra.mrb[68].mxu1 %v9553_v51  ;;  %v23474_v51 = vand.u32 4294901760, %v20792_v41 }
0x16ff   :  { %10166 = vmatprep.mubr.f32.mxu1 %v23674_v24 }
0x17b7   :  { %v9443_v44 = vpop.f32.mrb[46].mxu0 }
0x17b8   :  { %v9448_v36 = vrot.slane %v9443_v44, 4  ;;  %v16794_v16 = vpop.f32.mrb[47].mxu0  ;;  %v23468_v44 = vand.u32 4294901760, %v20810_v6 }
0x17b9   :  { %v20823_v16 = vld [vmem:[%s23424_s6 + $0x88] sm:$0xff] }
0x17ba   :  { %v9450_v22 = vadd.f32 %v20082_v1, %v9448_v36  ;;  %v20818_v36 = vld [vmem:[%s23424_s6 + $0x60] sm:$0xff] }
0x17bc   :  { %19111 = vtanh.f32 %v9450_v22  ;;  %v14451_v29 = vmul.f32 -1.442695, %v9450_v22  ;;  %v20828_v22 = vsub.f32 %v20782_v33, %v23477_v10 }
0x17bf   :  { %v9650_v23 = vpop.f32.mrb[48].mxu0 }
0x17c0   :  { %v16816_v40 = vpop.f32.mrb[49].mxu0 }
0x17c1   :  { %v9559_v18 = vpop.f32.mrb[64].mxu1  ;;  %v20838_v40 = vsub.f32 %v20792_v41, %v23474_v51 }
0x17c2   :  { %v9651_v59 = vadd.f32 %v9650_v23, %v9559_v18  ;;  %v16805_v19 = vpop.f32.mrb[65].mxu1  ;;  %v20833_v23 = vsub.f32 %v20787_v12, %v23476_v3  ;;  %v23466_v18 = vand.u32 4294901760, %v20818_v36 }
0x17c3   :  { %v20849_v19 = vsub.f32 %v20805_v46, %v23471_v39  ;;  %v10031_v39 = vld [vmem:[%s23424_s6 + $0x78] sm:$0xff] }
0x17c4   :  { %23689 = vst [vmem:[#allocation3_spill] sm:$0xff] %v20833_v23  ;;  %v10100_v51 = vand.u32 4294901760, %v10031_v39 }
0x17c6   :  { %v19112_v21 = vpop.eup %19111 }
0x17c7   :  { %v9807_v49 = vpop.f32.mrb[50].mxu0  ;;  %9463 = vrot.lane.b32.xlu1 %v19112_v21, %s19135_s3  ;;  %v20854_v21 = vsub.f32 %v20810_v6, %v23468_v44 }
0x17c8   :  { %v16838_v20 = vpop.f32.mrb[51].mxu0 }
0x17c9   :  { %v9730_v54 = vpop.f32.mrb[66].mxu1  ;;  %v23456_v20 = vand.u32 4294901760, %v20828_v22 }
0x17ca   :  { %v9731_v26 = vadd.f32 %v9730_v54, %v9651_v59  ;;  %v16827_v34 = vpop.f32.mrb[67].mxu1  ;;  %v20844_v59 = vsub.f32 %v20799_v48, %v23473_v50  ;;  %v23455_v54 = vand.u32 4294901760, %v20833_v23 }
0x17cb   :  { %v20863_v34 = vsub.f32 %v20818_v36, %v23466_v18 }
0x17cc   :  { %v9808_v55 = vadd.f32 %v9807_v49, %v9731_v26  ;;  %v23464_v49 = vand.u32 4294901760, %v20823_v16  ;;  %v23454_v26 = vand.u32 4294901760, %v20838_v40 }
0x17cf   :  { %v9965_v60 = vpop.f32.mrb[52].mxu0 }
0x17d0   :  { %v16860_v58 = vpop.f32.mrb[53].mxu0 }
0x17d1   :  { %v9890_v32 = vpop.f32.mrb[68].mxu1  ;;  %v23451_v58 = vand.u32 4294901760, %v20849_v19 }
0x17d2   :  { %v9891_v2 = vadd.f32 %v9890_v32, %v9808_v55  ;;  %v16849_v1 = vpop.f32.mrb[69].mxu1  ;;  %v23449_v32 = vand.u32 4294901760, %v20854_v21 }
0x17d4   :  { %v9966_v14 = vadd.f32 %v9965_v60, %v9891_v2  ;;  %v23453_v60 = vand.u32 4294901760, %v20844_v59  ;;  %v20871_v2 = vsub.f32 %v20823_v16, %v23464_v49 }
0x17d6   :  { %v9969_v30 = vadd.f32 %v20070_v25, %v9966_v14  ;;  %v10828_v14 = vsub.f32 %v20828_v22, %v23456_v20 }
0x17d8   :  { %19113 = vtanh.f32 %v9969_v30  ;;  %v14452_v47 = vmul.f32 -1.442695, %v9969_v30  ;;  %v10840_v30 = vsub.f32 %v20833_v23, %v23455_v54 }
0x17d9   :  { %19115 = vpow2.f32 %v14451_v29  ;;  %v10846_v29 = vsub.f32 %v20844_v59, %v23453_v60 }
0x17e2   :  { %v19114_v13 = vpop.eup %19113 }
0x17e3   :  { %9982 = vrot.lane.b32.xlu0 %v19114_v13, %s19135_s3  ;;  %v19116_v61 = vpop.eup %19115  ;;  %v10834_v13 = vsub.f32 %v20838_v40, %v23454_v26 }
0x17e4   :  { %v9454_v5 = vadd.f32 1.0, %v19116_v61  ;;  %v10852_v61 = vsub.f32 %v20849_v19, %v23451_v58 }
0x17e6   :  { %19117 = vrcp.f32 %v9454_v5  ;;  %v10864_v5 = vsub.f32 %v20854_v21, %v23449_v32  ;;  %v21000_v32 = vld [vmem:[%s23424_s6 + $0x100] sm:$0xff] }
0x17e7   :  { %19119 = vpow2.f32 %v14452_v47  ;;  %v23448_v47 = vand.u32 4294901760, %v20863_v34 }
0x17f0   :  { %v19118_v52 = vpop.eup %19117 }
0x17f1   :  { %v19120_v17 = vpop.eup %19119  ;;  %v9461_v31 = vmul.f32 %v19118_v52, %v9459_v27  ;;  %v10853_v27 = vand.u32 4294901760, %v10852_v61 }
0x17f2   :  { %v9973_v7 = vadd.f32 1.0, %v19120_v17  ;;  %v10841_v17 = vand.u32 4294901760, %v10840_v30 }
0x17f4   :  { %19121 = vrcp.f32 %v9973_v7  ;;  %v10835_v7 = vand.u32 4294901760, %v10834_v13 }
0x17fe   :  { %v20770_v25 = vpop.eup %19121 }
0x17ff   :  { %v9980_v15 = vmul.f32 %v20770_v25, %v9978_v28 }
0x1839   :  { %v9464_v45 = vpop.permute.xlu1 %9463 }
0x183a   :  { %v9466_v37 = vmul.f32 %v19118_v52, %v9464_v45 }
0x183c   :  { %9468 = vrot.lane.b32.xlu1 %v9466_v37, %s19136_s15  ;;  %v10829_v37 = vand.u32 4294901760, %v10828_v14 }
0x1855   :  { %v9983_v53 = vpop.permute.xlu0 %9982 }
0x1856   :  { %v9985_v57 = vmul.f32 %v20770_v25, %v9983_v53  ;;  %v20900_v53 = vld [vmem:[%s23424_s6 + $0x30] sm:$0xff] }
0x1857   :  { %v23479_v30 = vand.u32 4294901760, %v20900_v53 }
0x1858   :  { %9987 = vrot.lane.b32.xlu0 %v9985_v57, %s19136_s15  ;;  %v10847_v57 = vand.u32 4294901760, %v10846_v29 }
0x18ae   :  { %v9469_v0 = vpop.permute.xlu1 %9468 }
0x18af   :  { %v9471_v8 = vadd.f32 %v9469_v0, %v9461_v31  ;;  %v10865_v31 = vand.u32 4294901760, %v10864_v5  ;;  %v10858_v0 = vsub.f32 %v20863_v34, %v23448_v47 }
0x18b1   :  { %19123 = vtanh.f32 %v9471_v8  ;;  %v20908_v8 = vld [vmem:[%s23424_s6 + $0xb8] sm:$0xff]  ;;  %v18117_v14 = vpack.c.bf16 %v10865_v31, %v10853_v27  ;;  %v10859_v13 = vand.u32 4294901760, %v10858_v0 }
0x18b2   :  { %v23462_v61 = vand.u32 4294901760, %v20908_v8 }
0x18b4   :  { %v20950_v27 = vsub.f32 %v20908_v8, %v23462_v61 }
0x18b6   :  { %v23450_v4 = vand.u32 4294901760, %v20950_v27 }
0x18bb   :  { %v19124_v35 = vpop.eup %19123 }
0x18bc   :  { %9474 = vrot.lane.b32.xlu1 %v19124_v35, %s19135_s3  ;;  %v20913_v35 = vld [vmem:[%s23424_s6 + $0xe0] sm:$0xff] }
0x18bd   :  { %v23459_v5 = vand.u32 4294901760, %v20913_v35 }
0x18bf   :  { %v20955_v31 = vsub.f32 %v20913_v35, %v23459_v5 }
0x18c1   :  { %23691 = vst [vmem:[#allocation5_spill] sm:$0xff] %v20955_v31  ;;  %v23452_v56 = vand.u32 4294901760, %v20955_v31 }
0x18ca   :  { %v9988_v9 = vpop.permute.xlu0 %9987 }
0x18cb   :  { %v9990_v43 = vadd.f32 %v9988_v9, %v9980_v15  ;;  %v18113_v15 = vpack.c.bf16 %v10841_v17, %v10829_v37  ;;  %v23447_v9 = vand.u32 4294901760, %v20871_v2 }
0x18cd   :  { %19125 = vtanh.f32 %v9990_v43  ;;  %18114 = vmatprep.subr.bf16.mxu0 %v18113_v15  ;;  %v10870_v29 = vsub.f32 %v20871_v2, %v23447_v9 }
0x18d7   :  { %v19126_v62 = vpop.eup %19125 }
0x18d8   :  { %9993 = vrot.lane.b32.xlu0 %v19126_v62, %s19135_s3  ;;  %v10016_v62 = vld [vmem:[%s23424_s6] sm:$0xff] }
0x18d9   :  { %v10088_v17 = vand.u32 4294901760, %v10016_v62 }
0x18db   :  { %v20961_v15 = vsub.f32 %v10016_v62, %v10088_v17 }
0x192e   :  { %v9475_v55 = vpop.permute.xlu1 %9474 }
0x192f   :  { %v9477_v1 = vmul.f32 %v19118_v52, %v9475_v55  ;;  %v20895_v52 = vld [vmem:[%s23424_s6 + $0x8] sm:$0xff] }
0x1930   :  { %v23480_v43 = vand.u32 4294901760, %v20895_v52  ;;  %v10021_v55 = vld [vmem:[%s23424_s6 + $0x28] sm:$0xff] }
0x1931   :  { %v9998_v45 = vrot.slane %v9477_v1, 4  ;;  %v18115_v1 = vpack.c.bf16 %v10847_v57, %v10835_v7  ;;  %v10092_v7 = vand.u32 4294901760, %v10021_v55  ;;  %v10871_v57 = vand.u32 4294901760, %v10870_v29 }
0x1932   :  { %v20945_v37 = vpack.c.bf16 %v23479_v30, %v23480_v43  ;;  %v10042_v43 = vld [vmem:[%s23424_s6 + $0xd0] sm:$0xff] }
0x1933   :  { %v10000_v28 = vadd.f32 %v9998_v45, %v20696_v42  ;;  %v20928_v42 = vld [vmem:[%s23424_s6 + $0xb0] sm:$0xff]  ;;  %v20939_v45 = vld [vmem:[%s23424_s6 + $0xd8] sm:$0xff]  ;;  %18116 = vmatpush1.bf16.msra.mxu0 %v18115_v1  ;;  %v20963_v1 = vsub.f32 %v10021_v55, %v10092_v7  ;;  %v18119_v29 = vpack.c.bf16 %v10871_v57, %v10859_v13  ;;  %v20982_v55 = vld [vmem:[%s23424_s6 + $0x108] sm:$0xff]  ;;  %v10106_v63 = vand.u32 4294901760, %v10042_v43 }
0x1934   :  { %23690 = vst [vmem:[#allocation4_spill] sm:$0xff] %v20945_v37  ;;  %18118 = vmatprep.subr.bf16.mxu0 %v18117_v14  ;;  %v23458_v0 = vand.u32 4294901760, %v20928_v42  ;;  %18002 = vmatprep.subr.bf16.mxu1 %v20945_v37  ;;  %v23457_v14 = vand.u32 4294901760, %v20939_v45  ;;  %v20987_v13 = vld [vmem:[%s23424_s6 + $0x130] sm:$0xff]  ;;  %v23461_v47 = vand.u32 4294901760, %v20982_v55 }
0x1935   :  { %10006 = vrot.lane.b32.xlu0 %v10000_v28, %s19136_s15  ;;  %v20959_v28 = vpack.c.bf16 %v10092_v7, %v10088_v17  ;;  %v10876_v17 = vsub.f32 %v20950_v27, %v23450_v4  ;;  %v10888_v7 = vsub.f32 %v20955_v31, %v23452_v56  ;;  %v23465_v58 = vand.u32 4294901760, %v20987_v13 }
0x1936   :  { %v20971_v9 = vsub.f32 %v20928_v42, %v23458_v0  ;;  %v20977_v62 = vsub.f32 %v20939_v45, %v23457_v14  ;;  %v23467_v56 = vand.u32 4294901760, %v21000_v32  ;;  %v21017_v14 = vsub.f32 %v20982_v55, %v23461_v47 }
0x1937   :  { %23692 = vst [vmem:[#allocation6_spill] sm:$0xff] %v20959_v28  ;;  %18004 = vmatpush1.bf16.msra.mxu1 %v20959_v28  ;;  %18120 = vmatpush1.bf16.msra.mxu0 %v18119_v29  ;;  %v21005_v29 = vld [vmem:[%s23424_s6 + $0x128] sm:$0xff]  ;;  %v10877_v26 = vand.u32 4294901760, %v10876_v17  ;;  %v10889_v54 = vand.u32 4294901760, %v10888_v7  ;;  %v21025_v5 = vsub.f32 %v20987_v13, %v23465_v58  ;;  %v21115_v28 = vsub.f32 %v10031_v39, %v10100_v51 }
0x1938   :  { %23693 = vst [vmem:[#allocation7_spill] sm:$0xff] %v20971_v9  ;;  %23694 = vst [vmem:[#allocation8_spill] sm:$0xff] %v20977_v62  ;;  %v23460_v57 = vand.u32 4294901760, %v20971_v9  ;;  %v23463_v4 = vand.u32 4294901760, %v20977_v62  ;;  %v23470_v60 = vand.u32 4294901760, %v21005_v29  ;;  %v21030_v17 = vsub.f32 %v21000_v32, %v23467_v56 }
0x1939   :  { %23695 = vst [vmem:[#allocation9_spill] sm:$0xff] %v21017_v14  ;;  %23696 = vst [vmem:[#allocation10_spill] sm:$0xff] %v21025_v5  ;;  %v23469_v61 = vand.u32 4294901760, %v21017_v14  ;;  %v23472_v49 = vand.u32 4294901760, %v21025_v5 }
0x193a   :  { %v10882_v20 = vsub.f32 %v20971_v9, %v23460_v57  ;;  %v10894_v0 = vsub.f32 %v20977_v62, %v23463_v4  ;;  %23697 = vst [vmem:[#allocation11_spill] sm:$0xff] %v21030_v17  ;;  %v21035_v7 = vsub.f32 %v21005_v29, %v23470_v60  ;;  %v18121_v57 = vpack.c.bf16 %v10889_v54, %v10877_v26  ;;  %v10027_v54 = vld [vmem:[%s23424_s6 + $0x58] sm:$0xff]  ;;  %v10026_v60 = vld [vmem:[%s23424_s6 + $0x50] sm:$0xff] }
0x193b   :  { %v23475_v58 = vand.u32 4294901760, %v21030_v17  ;;  %v10900_v56 = vsub.f32 %v21017_v14, %v23469_v61  ;;  %v10912_v26 = vsub.f32 %v21025_v5, %v23472_v49  ;;  %v10096_v50 = vand.u32 4294901760, %v10026_v60 }
0x193c   :  { %23698 = vst [vmem:[#allocation12_spill] sm:$0xff] %v21035_v7  ;;  %v10883_v47 = vand.u32 4294901760, %v10882_v20  ;;  %v10895_v4 = vand.u32 4294901760, %v10894_v0  ;;  %v23478_v18 = vand.u32 4294901760, %v21035_v7  ;;  %18122 = vmatprep.subr.bf16.mxu0 %v18121_v57  ;;  %v10032_v20 = vld [vmem:[%s23424_s6 + $0x80] sm:$0xff] }
0x193d   :  { %v10906_v0 = vsub.f32 %v21030_v17, %v23475_v58  ;;  %v10098_v57 = vand.u32 4294901760, %v10032_v20  ;;  %v10901_v61 = vand.u32 4294901760, %v10900_v56  ;;  %v10913_v49 = vand.u32 4294901760, %v10912_v26  ;;  %v10037_v56 = vld [vmem:[%s23424_s6 + $0xa8] sm:$0xff] }
0x193e   :  { %v18123_v44 = vpack.c.bf16 %v10895_v4, %v10883_v47  ;;  %v10918_v4 = vsub.f32 %v21035_v7, %v23478_v18  ;;  %v10094_v47 = vand.u32 4294901760, %v10027_v54  ;;  %v21067_v30 = vpack.c.bf16 %v10100_v51, %v10096_v50 }
0x193f   :  { %v10907_v58 = vand.u32 4294901760, %v10906_v0  ;;  %v18125_v18 = vpack.c.bf16 %v10913_v49, %v10901_v61  ;;  %v10102_v26 = vand.u32 4294901760, %v10037_v56  ;;  %v10036_v0 = vld [vmem:[%s23424_s6 + $0xa0] sm:$0xff]  ;;  %v10041_v49 = vld [vmem:[%s23424_s6 + $0xc8] sm:$0xff]  ;;  %v23720_v17 = vand.u32 4294901760, %v20818_v36 }
0x1940   :  { %18124 = vmatpush1.bf16.msra.mxu0 %v18123_v44  ;;  %v21065_v3 = vpack.c.bf16 %v10098_v57, %v10094_v47  ;;  %v10919_v10 = vand.u32 4294901760, %v10918_v4  ;;  %23700 = vst [vmem:[#allocation14_spill] sm:$0xff] %v21067_v30  ;;  %v10104_v61 = vand.u32 4294901760, %v10036_v0  ;;  %v10108_v4 = vand.u32 4294901760, %v10041_v49 }
0x1941   :  { %18126 = vmatprep.subr.bf16.mxu0 %v18125_v18  ;;  %v21083_v11 = vpack.c.bf16 %v10106_v63, %v10102_v26  ;;  %v23703_v18 = vand.u32 4294901760, %v20895_v52  ;;  %v18035_v36 = vpack.c.bf16 %v20963_v1, %v20961_v15 }
0x1942   :  { %23699 = vst [vmem:[#allocation13_spill] sm:$0xff] %v21065_v3  ;;  %18006 = vmatprep.subr.bf16.mxu1 %v21065_v3  ;;  %v18127_v44 = vpack.c.bf16 %v10919_v10, %v10907_v58  ;;  %v18129_v10 = vpack.c.bf16 %v20833_v23, %v20828_v22  ;;  %v21087_v3 = vpack.c.bf16 %v10108_v4, %v10104_v61  ;;  %v10047_v23 = vld [vmem:[%s23424_s6 + $0xf8] sm:$0xff] }
0x1943   :  { %18008 = vmatpush1.bf16.msra.mxu1 %v21067_v30  ;;  %23701 = vst [vmem:[#allocation15_spill] sm:$0xff] %v21083_v11  ;;  %v21095_v30 = vsub.f32 %v20895_v52, %v23703_v18  ;;  %v21111_v52 = vsub.f32 %v10032_v20, %v10098_v57  ;;  %v21113_v18 = vsub.f32 %v10026_v60, %v10096_v50  ;;  %v10110_v51 = vand.u32 4294901760, %v10047_v23 }
0x1944   :  { %18128 = vmatpush1.bf16.msra.mxu0 %v18127_v44  ;;  %23702 = vst [vmem:[#allocation16_spill] sm:$0xff] %v21087_v3  ;;  %v23704_v44 = vand.u32 4294901760, %v20900_v53  ;;  %18010 = vmatprep.subr.bf16.mxu1 %v21083_v11  ;;  %v21124_v11 = vsub.f32 %v10037_v56, %v10102_v26  ;;  %v21128_v20 = vsub.f32 %v10036_v0, %v10104_v61 }
0x1945   :  { %18130 = vmatprep.subr.bf16.mxu0 %v18129_v10  ;;  %v10051_v10 = vld [vmem:[%s23424_s6 + $0x118] sm:$0xff]  ;;  %v21130_v50 = vsub.f32 %v10041_v49, %v10108_v4  ;;  %v23500_v26 = vand.u32 4294901760, %v21095_v30 }
0x1946   :  { %v21100_v24 = vsub.f32 %v20900_v53, %v23704_v44  ;;  %v10046_v53 = vld [vmem:[%s23424_s6 + $0xf0] sm:$0xff] }
0x1947   :  { %18012 = vmatpush1.bf16.msra.mxu1 %v21087_v3  ;;  %v10112_v57 = vand.u32 4294901760, %v10046_v53  ;;  %v10116_v3 = vand.u32 4294901760, %v10051_v10 }
0x1949   :  { %v21144_v49 = vpack.c.bf16 %v10116_v3, %v10112_v57  ;;  %v21146_v61 = vsub.f32 %v10046_v53, %v10112_v57  ;;  %v21148_v4 = vsub.f32 %v10051_v10, %v10116_v3  ;;  %v23501_v3 = vand.u32 4294901760, %v20963_v1 }
0x194a   :  { %v9994_v58 = vpop.permute.xlu0 %9993 }
0x194b   :  { %v9996_v37 = vmul.f32 %v20770_v25, %v9994_v58  ;;  %v10052_v25 = vld [vmem:[%s23424_s6 + $0x120] sm:$0xff]  ;;  %v21109_v58 = vsub.f32 %v10027_v54, %v10094_v47  ;;  %v21126_v54 = vsub.f32 %v10042_v43, %v10106_v63  ;;  %v21139_v63 = vsub.f32 %v10047_v23, %v10110_v51  ;;  %23706 = vst [vmem:[#allocation18_spill] sm:$0xff] %v21144_v49 }
0x194c   :  { %v10114_v39 = vand.u32 4294901760, %v10052_v25  ;;  %23707 = vst [vmem:[#allocation19_spill] sm:$0xff] %v21146_v61  ;;  %23708 = vst [vmem:[#allocation20_spill] sm:$0xff] %v21148_v4  ;;  %v23498_v23 = vand.u32 4294901760, %v21100_v24 }
0x194d   :  { %v10002_v44 = vrot.slane %v9996_v37, 4  ;;  %v23506_v10 = vand.u32 4294901760, %v21109_v58  ;;  %v23514_v37 = vand.u32 4294901760, %v21115_v28 }
0x194e   :  { %v21137_v56 = vpack.c.bf16 %v10114_v39, %v10110_v51  ;;  %v21141_v43 = vsub.f32 %v10052_v25, %v10114_v39  ;;  %v23509_v51 = vand.u32 4294901760, %v21111_v52  ;;  %v10199_v25 = vsub.f32 %v20963_v1, %v23501_v3 }
0x194f   :  { %v10004_v47 = vadd.f32 %v10002_v44, %v20700_v38  ;;  %v10181_v38 = vsub.f32 %v21095_v30, %v23500_v26  ;;  %v23499_v44 = vand.u32 4294901760, %v20961_v15  ;;  %v10205_v53 = vsub.f32 %v21109_v58, %v23506_v10 }
0x1950   :  { %23705 = vst [vmem:[#allocation17_spill] sm:$0xff] %v21137_v56  ;;  %18014 = vmatprep.subr.bf16.mxu1 %v21137_v56  ;;  %v10200_v3 = vand.u32 4294901760, %v10199_v25  ;;  %v10223_v10 = vsub.f32 %v21115_v28, %v23514_v37  ;;  %v10240_v25 = vand.u32 4294901760, %v21126_v54 }
0x1951   :  { %v10010_v0 = vrot.slane %v10004_v47, 4  ;;  %18016 = vmatpush1.bf16.msra.mxu1 %v21144_v49  ;;  %v10182_v39 = vand.u32 4294901760, %v10181_v38  ;;  %v10193_v47 = vsub.f32 %v21100_v24, %v23498_v23  ;;  %v10187_v57 = vsub.f32 %v20961_v15, %v23499_v44 }
0x1952   :  { %v10217_v38 = vsub.f32 %v21111_v52, %v23509_v51  ;;  %v10206_v49 = vand.u32 4294901760, %v10205_v53  ;;  %v10224_v5 = vand.u32 4294901760, %v10223_v10 }
0x1953   :  { %10011 = vrot.lane.b32.xlu1 %v10010_v0, %s19135_s3  ;;  %v23515_v0 = vand.u32 4294901760, %v21113_v18  ;;  %v10194_v60 = vand.u32 4294901760, %v10193_v47  ;;  %v10188_v23 = vand.u32 4294901760, %v10187_v57  ;;  %v10228_v57 = vand.u32 4294901760, %v21124_v11 }
0x1954   :  { %v10218_v56 = vand.u32 4294901760, %v10217_v38  ;;  %v23711_v38 = vand.u32 4294901760, %v20782_v33  ;;  %v10246_v47 = vand.u32 4294901760, %v21130_v50  ;;  %v10252_v33 = vand.u32 4294901760, %v21139_v63 }
0x1955   :  { %v10211_v26 = vsub.f32 %v21113_v18, %v23515_v0  ;;  %v18017_v62 = vpack.c.bf16 %v10194_v60, %v10182_v39  ;;  %v21193_v9 = vpack.c.bf16 %v10200_v3, %v10188_v23  ;;  %v10229_v53 = vsub.f32 %v21124_v11, %v10228_v57 }
0x1956   :  { %v21195_v44 = vpack.c.bf16 %v10218_v56, %v10206_v49  ;;  %v23712_v60 = vand.u32 4294901760, %v20787_v12  ;;  %v10234_v39 = vand.u32 4294901760, %v21128_v20  ;;  %v10241_v56 = vsub.f32 %v21126_v54, %v10240_v25 }
0x1957   :  { %v10212_v51 = vand.u32 4294901760, %v10211_v26  ;;  %23709 = vst [vmem:[#allocation21_spill] sm:$0xff] %v21193_v9  ;;  %18018 = vmatprep.subr.bf16.mxu1 %v18017_v62  ;;  %v23715_v49 = vand.u32 4294901760, %v20792_v41  ;;  %v23716_v62 = vand.u32 4294901760, %v20799_v48  ;;  %v10230_v10 = vand.u32 4294901760, %v10229_v53 }
0x1958   :  { %23710 = vst [vmem:[#allocation22_spill] sm:$0xff] %v21195_v44  ;;  %v21203_v26 = vpack.c.bf16 %v23712_v60, %v23711_v38  ;;  %v10235_v12 = vsub.f32 %v21128_v20, %v10234_v39  ;;  %v10247_v38 = vsub.f32 %v21130_v50, %v10246_v47  ;;  %v10264_v60 = vand.u32 4294901760, %v21141_v43 }
0x1959   :  { %v21207_v23 = vpack.c.bf16 %v10224_v5, %v10212_v51  ;;  %v21214_v3 = vpack.c.bf16 %v23716_v62, %v23715_v49  ;;  %v10242_v37 = vand.u32 4294901760, %v10241_v56  ;;  %v10253_v5 = vsub.f32 %v21139_v63, %v10252_v33 }
0x195a   :  { %23713 = vst [vmem:[#allocation23_spill] sm:$0xff] %v21203_v26  ;;  %v10258_v51 = vand.u32 4294901760, %v21146_v61  ;;  %v10270_v41 = vand.u32 4294901760, %v21148_v4  ;;  %v10236_v0 = vand.u32 4294901760, %v10235_v12  ;;  %v10248_v48 = vand.u32 4294901760, %v10247_v38 }
0x195b   :  { %23714 = vst [vmem:[#allocation24_spill] sm:$0xff] %v21207_v23  ;;  %23717 = vst [vmem:[#allocation25_spill] sm:$0xff] %v21214_v3  ;;  %v10265_v49 = vsub.f32 %v21141_v43, %v10264_v60  ;;  %v23718_v62 = vand.u32 4294901760, %v20805_v46  ;;  %v23719_v53 = vand.u32 4294901760, %v20810_v6  ;;  %v18025_v26 = vpack.c.bf16 %v10242_v37, %v10230_v10 }
0x195c   :  { %v10254_v23 = vand.u32 4294901760, %v10253_v5  ;;  %v10259_v56 = vsub.f32 %v21146_v61, %v10258_v51  ;;  %v10271_v44 = vsub.f32 %v21148_v4, %v10270_v41  ;;  %v18027_v9 = vpack.c.bf16 %v10248_v48, %v10236_v0 }
0x195d   :  { %v21228_v3 = vpack.c.bf16 %v23719_v53, %v23718_v62  ;;  %v10266_v7 = vand.u32 4294901760, %v10265_v49  ;;  %v23721_v12 = vand.u32 4294901760, %v20823_v16  ;;  %v18033_v6 = vpack.c.bf16 %v21100_v24, %v21095_v30  ;;  %v23731_v53 = vld [vmem:[#allocation3_spill] sm:$0xff] }
0x195e   :  { %v10260_v14 = vand.u32 4294901760, %v10259_v56  ;;  %v10272_v46 = vand.u32 4294901760, %v10271_v44  ;;  %v23722_v37 = vand.u32 4294901760, %v20908_v8  ;;  %v23723_v10 = vand.u32 4294901760, %v20913_v35 }
0x195f   :  { %v21236_v38 = vpack.c.bf16 %v23721_v12, %v23720_v17  ;;  %v18029_v31 = vpack.c.bf16 %v10266_v7, %v10254_v23  ;;  %v23724_v16 = vand.u32 4294901760, %v20928_v42  ;;  %v23725_v17 = vand.u32 4294901760, %v20939_v45 }
0x1960   :  { %v21244_v5 = vpack.c.bf16 %v23723_v10, %v23722_v37  ;;  %v18031_v0 = vpack.c.bf16 %v10272_v46, %v10260_v14  ;;  %v18037_v7 = vpack.c.bf16 %v21111_v52, %v21109_v58  ;;  %v23726_v44 = vand.u32 4294901760, %v20982_v55 }
0x1961   :  { %v21252_v48 = vpack.c.bf16 %v23725_v17, %v23724_v16  ;;  %v23727_v8 = vand.u32 4294901760, %v20987_v13  ;;  %v23728_v23 = vand.u32 4294901760, %v21000_v32  ;;  %v23729_v42 = vand.u32 4294901760, %v21005_v29  ;;  %v23749_v29 = vld [vmem:[#allocation9_spill] sm:$0xff]  ;;  %v23751_v13 = vld [vmem:[#allocation10_spill] sm:$0xff] }
0x1962   :  { %v23730_v62 = vand.u32 4294901760, %v20828_v22  ;;  %v23732_v55 = vand.u32 4294901760, %v23731_v53  ;;  %v23733_v12 = vand.u32 4294901760, %v20838_v40  ;;  %v23734_v32 = vand.u32 4294901760, %v20844_v59 }
0x1963   :  { %v21260_v35 = vpack.c.bf16 %v23727_v8, %v23726_v44  ;;  %v21268_v49 = vpack.c.bf16 %v23729_v42, %v23728_v23  ;;  %v23735_v37 = vand.u32 4294901760, %v20849_v19  ;;  %v23736_v22 = vand.u32 4294901760, %v20854_v21  ;;  %v23741_v42 = vld [vmem:[#allocation5_spill] sm:$0xff] }
0x1964   :  { %v21276_v56 = vpack.c.bf16 %v23732_v55, %v23730_v62  ;;  %v21284_v46 = vpack.c.bf16 %v23734_v32, %v23733_v12  ;;  %v23737_v17 = vand.u32 4294901760, %v20863_v34  ;;  %v23738_v44 = vand.u32 4294901760, %v20871_v2  ;;  %v23744_v55 = vld [vmem:[#allocation7_spill] sm:$0xff]  ;;  %v23746_v32 = vld [vmem:[#allocation8_spill] sm:$0xff] }
0x1965   :  { %v21292_v10 = vpack.c.bf16 %v23736_v22, %v23735_v37  ;;  %v23740_v23 = vand.u32 4294901760, %v20950_v27  ;;  %v23742_v62 = vand.u32 4294901760, %v23741_v42  ;;  %v23745_v12 = vand.u32 4294901760, %v23744_v55 }
0x1966   :  { %v21300_v8 = vpack.c.bf16 %v23738_v44, %v23737_v17  ;;  %v23747_v37 = vand.u32 4294901760, %v23746_v32  ;;  %v23750_v16 = vand.u32 4294901760, %v23749_v29  ;;  %v23752_v45 = vand.u32 4294901760, %v23751_v13  ;;  %v23754_v17 = vld [vmem:[#allocation11_spill] sm:$0xff] }
0x1967   :  { %v21306_v53 = vpack.c.bf16 %v23742_v62, %v23740_v23  ;;  %v23755_v44 = vand.u32 4294901760, %v23754_v17  ;;  %v23758_v23 = vand.u32 4294901760, %v21095_v30  ;;  %v23759_v62 = vand.u32 4294901760, %v21100_v24 }
0x1968   :  { %23739 = vst [vmem:[#allocation3_spill] sm:$0xff] %v21300_v8  ;;  %v21312_v22 = vpack.c.bf16 %v23747_v37, %v23745_v12  ;;  %v21318_v14 = vpack.c.bf16 %v23752_v45, %v23750_v16  ;;  %v23756_v8 = vld [vmem:[#allocation12_spill] sm:$0xff]  ;;  %v23760_v12 = vand.u32 4294901760, %v20961_v15  ;;  %v23761_v37 = vand.u32 4294901760, %v20963_v1 }
0x1969   :  { %23743 = vst [vmem:[#allocation5_spill] sm:$0xff] %v21306_v53  ;;  %v23757_v61 = vand.u32 4294901760, %v23756_v8  ;;  %v21330_v53 = vpack.c.bf16 %v23759_v62, %v23758_v23  ;;  %v23762_v45 = vand.u32 4294901760, %v21109_v58  ;;  %v23763_v16 = vand.u32 4294901760, %v21111_v52 }
0x196a   :  { %23748 = vst [vmem:[#allocation7_spill] sm:$0xff] %v21312_v22  ;;  %23753 = vst [vmem:[#allocation8_spill] sm:$0xff] %v21318_v14  ;;  %v21336_v22 = vpack.c.bf16 %v23761_v37, %v23760_v12  ;;  %v23765_v30 = vand.u32 4294901760, %v21115_v28  ;;  %v21350_v24 = vpack.c.bf16 %v10240_v25, %v10228_v57  ;;  %v21352_v23 = vpack.c.bf16 %v10246_v47, %v10234_v39 }
0x196b   :  { %v21324_v4 = vpack.c.bf16 %v23757_v61, %v23755_v44  ;;  %v21342_v14 = vpack.c.bf16 %v23763_v16, %v23762_v45  ;;  %v23764_v61 = vand.u32 4294901760, %v21113_v18  ;;  %v21354_v15 = vpack.c.bf16 %v10264_v60, %v10252_v33  ;;  %v10045_v16 = vld [vmem:[%s23424_s6 + $0xe8] sm:$0xff] }
0x196c   :  { %v21356_v1 = vpack.c.bf16 %v10270_v41, %v10258_v51  ;;  %v23767_v47 = vpack.c.bf16 %v20844_v59, %v20838_v40  ;;  %v23768_v25 = vmov 0.0   ;;  %v23769_v39 = vpack.c.bf16 %v20854_v21, %v20849_v19  ;;  %v23772_v19 = vld [vmem:[#allocation21_spill] sm:$0xff]  ;;  %v23774_v41 = vld [vmem:[#allocation22_spill] sm:$0xff] }
0x196d   :  { %v21348_v44 = vpack.c.bf16 %v23765_v30, %v23764_v61  ;;  %v23770_v51 = vpack.c.bf16 %v20871_v2, %v20863_v34  ;;  %v23771_v40 = vpack.c.bf16 %v23741_v42, %v20950_v27  ;;  %v23773_v21 = vpack.c.bf16 %v23746_v32, %v23744_v55  ;;  %v23776_v2 = vld [vmem:[#allocation24_spill] sm:$0xff]  ;;  %v23778_v42 = vld [vmem:[#allocation23_spill] sm:$0xff]  ;;  %v23779_v55 = vld [vmem:[#allocation25_spill] sm:$0xff] }
0x196e   :  { %v23775_v34 = vpack.c.bf16 %v23751_v13, %v23749_v29  ;;  %v23777_v27 = vpack.c.bf16 %v23756_v8, %v23754_v17  ;;  %v23796_v13 = vld [vmem:[#allocation16_spill] sm:$0xff]  ;;  %v23798_v29 = vld [vmem:[#allocation18_spill] sm:$0xff]  ;;  %v23799_v17 = vmov 0.0|0.0  }
0x19a7   :  { %v10007_v62 = vpop.permute.xlu0 %10006 }
0x19c5   :  { %v10012_v58 = vpop.permute.xlu1 %10011 }
0x19c6   :  { %v10014_v52 = vsel %vm1667_vm8, %v10007_v62, %v10012_v58  ;;  %v11396_v62 = vand.u32 4294901760, %v10045_v16 }
0x19c7   :  { %v21359_v12 = vmul.f32 0.125, %v10014_v52 }
0x19c9   :  { %23766 = vst [vmem:[#allocation9_spill] sm:$0xff] %v21359_v12  ;;  %v10084_v37 = vsel %vm852_vm7, %v21359_v12, 0 }
0x19ca   :  { %v21363_v45 = vand.u32 4294901760, %v10084_v37 }
0x19cc   :  { %v21366_v57 = vsub.f32 %v10084_v37, %v21363_v45  ;;  %10971 = vmatmul.mubr.f32.vlgmr.msra.gmra.mrb[54].mxu0 %v21363_v45 }
0x19cd   :  { %18132 = vmatpush1.bf16.msra.mxu0 %v23767_v47  ;;  %11073 = vmatprep.mubr.f32.mxu0 %v23768_v25 }
0x19ce   :  { %18134 = vmatprep.subr.bf16.mxu0 %v23769_v39  ;;  %v21377_v33 = vand.u32 4294901760, %v21366_v57 }
0x19d0   :  { %v10170_v60 = vsub.f32 %v21366_v57, %v21377_v33 }
0x19d1   :  { %18136 = vmatpush1.bf16.msra.mxu0 %v23770_v51 }
0x19d2   :  { %18138 = vmatprep.subr.bf16.mxu0 %v23771_v40  ;;  %v21387_v59 = vand.u32 4294901760, %v10170_v60 }
0x19d4   :  { %10172 = vmatmul.mubr.f32.vlgmr.msra.gmra.mrb[70].mxu1 %v21387_v59 }
0x19d5   :  { %18020 = vmatpush1.bf16.msra.mxu1 %v23772_v19  ;;  %18140 = vmatpush1.bf16.msra.mxu0 %v23773_v21  ;;  %v21548_v19 = vsub.f32 %v10045_v16, %v11396_v62 }
0x19d6   :  { %18022 = vmatprep.subr.bf16.mxu1 %v23774_v41  ;;  %18142 = vmatprep.subr.bf16.mxu0 %v23775_v34 }
0x19d7   :  { %10322 = vmatprep.mubr.f32.mxu1 %v23768_v25 }
0x19d9   :  { %18024 = vmatpush1.bf16.msra.mxu1 %v23776_v2  ;;  %18144 = vmatpush1.bf16.msra.mxu0 %v23777_v27 }
0x19da   :  { %18026 = vmatprep.subr.bf16.mxu1 %v18025_v26  ;;  %18146 = vmatprep.subr.bf16.mxu0 %v23778_v42  ;;  %v23782_v26 = vpack.c.bf16 %v21130_v50, %v21128_v20  ;;  %v23789_v20 = vld [vmem:[#allocation5_spill] sm:$0xff]  ;;  %v23790_v50 = vld [vmem:[#allocation6_spill] sm:$0xff] }
0x19dc   :  { %11076 = vmatmul.mubr.f32.vlgmr.msra.gmra.mrb[54].mxu0 %v21366_v57 }
0x19dd   :  { %18028 = vmatpush1.bf16.msra.mxu1 %v18027_v9  ;;  %18148 = vmatpush1.bf16.msra.mxu0 %v23779_v55  ;;  %v23780_v9 = vpack.c.bf16 %v21115_v28, %v21113_v18  ;;  %v23783_v28 = vpack.c.bf16 %v21141_v43, %v21139_v63  ;;  %v23785_v18 = vld [vmem:[#allocation19_spill] sm:$0xff]  ;;  %v23792_v43 = vld [vmem:[#allocation13_spill] sm:$0xff] }
0x19de   :  { %18030 = vmatprep.subr.bf16.mxu1 %v18029_v31  ;;  %18150 = vmatprep.subr.bf16.mxu0 %v21228_v3  ;;  %v23781_v31 = vpack.c.bf16 %v21126_v54, %v21124_v11  ;;  %v23784_v11 = vld [vmem:[#allocation20_spill] sm:$0xff]  ;;  %v23791_v63 = vld [vmem:[#allocation7_spill] sm:$0xff] }
0x19df   :  { %11162 = vmatprep.mubr.f32.mxu0 %v23768_v25  ;;  %v23786_v54 = vpack.c.bf16 %v23784_v11, %v23785_v18 }
0x19e1   :  { %18032 = vmatpush1.bf16.msra.mxu1 %v18031_v0  ;;  %18152 = vmatpush1.bf16.msra.mxu0 %v21236_v38  ;;  %v23788_v0 = vld [vmem:[#allocation4_spill] sm:$0xff] }
0x19e2   :  { %18034 = vmatprep.subr.bf16.mxu1 %v18033_v6  ;;  %18154 = vmatprep.subr.bf16.mxu0 %v21244_v5  ;;  %v23787_v6 = vld [vmem:[#allocation3_spill] sm:$0xff] }
0x19e4   :  { %10324 = vmatmul.mubr.f32.vlgmr.msra.gmra.mrb[70].mxu1 %v21363_v45 }
0x19e5   :  { %18036 = vmatpush1.bf16.msra.mxu1 %v18035_v36  ;;  %18156 = vmatpush1.bf16.msra.mxu0 %v21252_v48  ;;  %v23793_v36 = vld [vmem:[#allocation8_spill] sm:$0xff] }
0x19e6   :  { %18038 = vmatprep.subr.bf16.mxu1 %v18037_v7  ;;  %18158 = vmatprep.subr.bf16.mxu0 %v21260_v35  ;;  %v23794_v7 = vld [vmem:[#allocation14_spill] sm:$0xff] }
0x19e7   :  { %10426 = vmatprep.mubr.f32.mxu1 %v23768_v25 }
0x19e9   :  { %18040 = vmatpush1.bf16.msra.mxu1 %v23780_v9  ;;  %18160 = vmatpush1.bf16.msra.mxu0 %v21268_v49 }
0x19ea   :  { %18042 = vmatprep.subr.bf16.mxu1 %v23781_v31  ;;  %18162 = vmatprep.subr.bf16.mxu0 %v21276_v56  ;;  %v23795_v56 = vld [vmem:[#allocation15_spill] sm:$0xff]  ;;  %v23542_v31 = vand.u32 4294901760, %v21548_v19 }
0x19ec   :  { %11166 = vmatmul.mubr.f32.vlgmr.msra.gmra.mrb[54].mxu0 %v21377_v33 }
0x19ed   :  { %18044 = vmatpush1.bf16.msra.mxu1 %v23782_v26  ;;  %18164 = vmatpush1.bf16.msra.mxu0 %v21284_v46  ;;  %v23797_v46 = vld [vmem:[#allocation17_spill] sm:$0xff] }
0x19ee   :  { %18046 = vmatprep.subr.bf16.mxu1 %v23783_v28  ;;  %18166 = vmatprep.subr.bf16.mxu0 %v21292_v10 }
0x19ef   :  { %11284 = vmatprep.mubr.f32.mxu0 %v23768_v25 }
0x19f1   :  { %18048 = vmatpush1.bf16.msra.mxu1 %v23786_v54  ;;  %18168 = vmatpush1.bf16.msra.mxu0 %v23787_v6  ;;  %v11502_v54 = vsub.f32 %v21548_v19, %v23542_v31 }
0x19f2   :  { %18050 = vmatprep.subr.bf16.mxu1 %v23788_v0  ;;  %18170 = vmatprep.subr.bf16.mxu0 %v23789_v20 }
0x19f4   :  { %10429 = vmatmul.mubr.f32.vlgmr.msra.gmra.mrb[70].mxu1 %v21366_v57 }
0x19f5   :  { %18052 = vmatpush1.bf16.msra.mxu1 %v23790_v50  ;;  %18172 = vmatpush1.bf16.msra.mxu0 %v23791_v63  ;;  %v11503_v63 = vand.u32 4294901760, %v11502_v54  ;;  %v21689_v54 = vld [vmem:[%s23425_s8 + $0x20] sm:$0xff] }
0x19f6   :  { %18054 = vmatprep.subr.bf16.mxu1 %v23792_v43  ;;  %18174 = vmatprep.subr.bf16.mxu0 %v23793_v36 }
0x19f7   :  { %10515 = vmatprep.mubr.f32.mxu1 %v23768_v25 }
0x19f9   :  { %18056 = vmatpush1.bf16.msra.mxu1 %v23794_v7  ;;  %18176 = vmatpush1.bf16.msra.mxu0 %v21324_v4  ;;  %v10020_v4 = vld [vmem:[%s23424_s6 + $0x20] sm:$0xff] }
0x19fa   :  { %18058 = vmatprep.subr.bf16.mxu1 %v23795_v56  ;;  %18178 = vmatprep.subr.bf16.mxu0 %v23778_v42  ;;  %v11381_v10 = vand.u32 4294901760, %v10020_v4 }
0x19fc   :  { %11286 = vmatmul.mubr.f32.vlgmr.msra.gmra.mrb[54].mxu0 %v21363_v45 }
0x19fd   :  { %18060 = vmatpush1.bf16.msra.mxu1 %v23796_v13  ;;  %18180 = vmatpush1.bf16.msra.mxu0 %v23779_v55 }
0x19fe   :  { %18062 = vmatprep.subr.bf16.mxu1 %v23797_v46  ;;  %18182 = vmatprep.subr.bf16.mxu0 %v21228_v3 }
0x19ff   :  { %11372 = vmatprep.mubr.f32.mxu0 %v23768_v25 }
0x1a01   :  { %18064 = vmatpush1.bf16.msra.mxu1 %v23798_v29  ;;  %18184 = vmatpush1.bf16.msra.mxu0 %v21236_v38 }
0x1a02   :  { %18066 = vmatprep.subr.bf16.mxu1 %v21330_v53  ;;  %18186 = vmatprep.subr.bf16.mxu0 %v21244_v5 }
0x1a04   :  { %10519 = vmatmul.mubr.f32.vlgmr.msra.gmra.mrb[70].mxu1 %v21377_v33 }
0x1a05   :  { %18068 = vmatpush1.bf16.msra.mxu1 %v21336_v22  ;;  %18188 = vmatpush1.bf16.msra.mxu0 %v21252_v48 }
0x1a06   :  { %18070 = vmatprep.subr.bf16.mxu1 %v21342_v14  ;;  %18190 = vmatprep.subr.bf16.mxu0 %v21260_v35  ;;  %v10025_v14 = vld [vmem:[%s23424_s6 + $0x48] sm:$0xff] }
0x1a07   :  { %10637 = vmatprep.mubr.f32.mxu1 %v23768_v25  ;;  %v11384_v8 = vand.u32 4294901760, %v10025_v14 }
0x1a09   :  { %18072 = vmatpush1.bf16.msra.mxu1 %v21348_v44  ;;  %18192 = vmatpush1.bf16.msra.mxu0 %v21268_v49  ;;  %v21504_v53 = vsub.f32 %v10025_v14, %v11384_v8  ;;  %v21507_v32 = vpack.c.bf16 %v11384_v8, %v11381_v10  ;;  %v10055_v44 = vld [vmem:[%s23424_s6 + $0x138] sm:$0xff]  ;;  %v21604_v14 = vld [vmem:[%s23425_s8 + $0x80] sm:$0xff] }
0x1a0a   :  { %18074 = vmatprep.subr.bf16.mxu1 %v21350_v24  ;;  %v11402_v52 = vand.u32 4294901760, %v10055_v44  ;;  %v23539_v8 = vand.u32 4294901760, %v21604_v14 }
0x1a0c   :  { %11374 = vmatmul.mubr.f32.vlgmr.msra.gmra.mrb[54].mxu0 %v21363_v45 }
0x1a0d   :  { %18076 = vmatpush1.bf16.msra.mxu1 %v21352_v23  ;;  %v23550_v23 = vand.u32 4294901760, %v21504_v53 }
0x1a0e   :  { %18078 = vmatprep.subr.bf16.mxu1 %v21354_v15 }
0x1a0f   :  { %v11474_v47 = vsub.f32 %v21504_v53, %v23550_v23  ;;  %v21843_v23 = vld [vmem:[%s23425_s8 + $0x58] sm:$0xff] }
0x1a10   :  { %23811 = vst [vmem:[#allocation4_spill] sm:$0xff] %v21843_v23 }
0x1a11   :  { %18080 = vmatpush1.bf16.msra.mxu1 %v21356_v1  ;;  %v11475_v34 = vand.u32 4294901760, %v11474_v47 }
0x1a12   :  { %18082 = vmatprep.subr.bf16.mxu1 %v23788_v0 }
0x1a14   :  { %10639 = vmatmul.mubr.f32.vlgmr.msra.gmra.mrb[70].mxu1 %v21363_v45 }
0x1a15   :  { %18084 = vmatpush1.bf16.msra.mxu1 %v23790_v50  ;;  %10725 = vmatprep.mubr.f32.mxu1 %v23768_v25 }
0x1a16   :  { %18086 = vmatprep.subr.bf16.mxu1 %v23792_v43 }
0x1a19   :  { %18088 = vmatpush1.bf16.msra.mxu1 %v23794_v7 }
0x1a1a   :  { %18090 = vmatprep.subr.bf16.mxu1 %v23795_v56 }
0x1a1d   :  { %18092 = vmatpush1.bf16.msra.mxu1 %v23796_v13 }
0x1a1e   :  { %18094 = vmatprep.subr.bf16.mxu1 %v23797_v46 }
0x1a21   :  { %18096 = vmatpush1.bf16.msra.mxu1 %v23798_v29 }
0x1a22   :  { %18098 = vmatprep.subr.bf16.mxu1 %v23778_v42 }
0x1a24   :  { %10727 = vmatmul.mubr.f32.vlgmr.msra.gmra.mrb[70].mxu1 %v21363_v45 }
0x1a25   :  { %18100 = vmatpush1.bf16.msra.mxu1 %v23779_v55  ;;  %10813 = vmatprep.mubr.f32.mxu1 %v23768_v25  ;;  %v21562_v55 = vsub.f32 %v10055_v44, %v11402_v52 }
0x1a26   :  { %18102 = vmatprep.subr.bf16.mxu1 %v21228_v3  ;;  %v10030_v3 = vld [vmem:[%s23424_s6 + $0x70] sm:$0xff] }
0x1a27   :  { %v23540_v0 = vand.u32 4294901760, %v21562_v55 }
0x1a29   :  { %18104 = vmatpush1.bf16.msra.mxu1 %v21236_v38  ;;  %v10035_v38 = vld [vmem:[%s23424_s6 + $0x98] sm:$0xff]  ;;  %v11516_v36 = vsub.f32 %v21562_v55, %v23540_v0 }
0x1a2a   :  { %18106 = vmatprep.subr.bf16.mxu1 %v21244_v5  ;;  %v21502_v5 = vsub.f32 %v10020_v4, %v11381_v10  ;;  %v11390_v22 = vand.u32 4294901760, %v10035_v38  ;;  %v21609_v10 = vld [vmem:[%s23425_s8 + $0x88] sm:$0xff] }
0x1a2b   :  { %v11517_v56 = vand.u32 4294901760, %v11516_v36 }
0x1a2c   :  { %v21519_v30 = vsub.f32 %v10035_v38, %v11390_v22  ;;  %v23551_v24 = vand.u32 4294901760, %v21502_v5  ;;  %v18218_v46 = vpack.c.bf16 %v21504_v53, %v21502_v5  ;;  %v21616_v38 = vld [vmem:[%s23425_s8] sm:$0xff] }
0x1a2d   :  { %18108 = vmatpush1.bf16.msra.mxu1 %v21252_v48  ;;  %v11387_v48 = vand.u32 4294901760, %v10030_v3 }
0x1a2e   :  { %18110 = vmatprep.subr.bf16.mxu1 %v21260_v35  ;;  %v10040_v35 = vld [vmem:[%s23424_s6 + $0xc0] sm:$0xff]  ;;  %v11467_v37 = vsub.f32 %v21502_v5, %v23551_v24  ;;  %v23545_v60 = vand.u32 4294901760, %v21519_v30 }
0x1a2f   :  { %v21517_v61 = vsub.f32 %v10030_v3, %v11387_v48  ;;  %v21530_v15 = vpack.c.bf16 %v11390_v22, %v11387_v48  ;;  %v11393_v1 = vand.u32 4294901760, %v10040_v35  ;;  %v23538_v3 = vand.u32 4294901760, %v21609_v10  ;;  %v21621_v48 = vld [vmem:[%s23425_s8 + $0x8] sm:$0xff] }
0x1a30   :  { %v11468_v41 = vand.u32 4294901760, %v11467_v37  ;;  %v11488_v27 = vsub.f32 %v21519_v30, %v23545_v60  ;;  %v23537_v22 = vand.u32 4294901760, %v21616_v38 }
0x1a31   :  { %18112 = vmatpush1.bf16.msra.mxu1 %v21268_v49  ;;  %v10050_v49 = vld [vmem:[%s23424_s6 + $0x110] sm:$0xff]  ;;  %v23549_v39 = vand.u32 4294901760, %v21517_v61  ;;  %v21544_v51 = vpack.c.bf16 %v11396_v62, %v11393_v1  ;;  %v21546_v40 = vsub.f32 %v10040_v35, %v11393_v1  ;;  %v18221_v29 = vpack.c.bf16 %v21519_v30, %v21517_v61 }
0x1a32   :  { %18193 = vmatprep.subr.bf16.mxu1 %v23799_v17  ;;  %v11399_v58 = vand.u32 4294901760, %v10050_v49  ;;  %v18206_v26 = vpack.c.bf16 %v11475_v34, %v11468_v41  ;;  %v11489_v11 = vand.u32 4294901760, %v11488_v27  ;;  %v23535_v35 = vand.u32 4294901760, %v21621_v48  ;;  %v21665_v34 = vld [vmem:[%s23425_s8 + $0x10] sm:$0xff] }
0x1a33   :  { %v11481_v2 = vsub.f32 %v21517_v61, %v23549_v39  ;;  %v23543_v9 = vand.u32 4294901760, %v21546_v40  ;;  %v18224_v4 = vpack.c.bf16 %v21548_v19, %v21546_v40  ;;  %v21635_v44 = vsub.f32 %v21609_v10, %v23538_v3 }
0x1a34   :  { %10819 = vmatmul.mubr.f32.vlgmr.msra.gmra.mrb[72].mxu1 %v21387_v59  ;;  %v21551_v21 = vpack.c.bf16 %v11402_v52, %v11399_v58  ;;  %v21560_v42 = vsub.f32 %v10050_v49, %v11399_v58  ;;  %v21630_v49 = vsub.f32 %v21604_v14, %v23539_v8  ;;  %v21641_v1 = vsub.f32 %v21616_v38, %v23537_v22  ;;  %v21651_v58 = vld [vmem:[%s23425_s8 + $0x90] sm:$0xff]  ;;  %v21656_v52 = vld [vmem:[%s23425_s8 + $0x98] sm:$0xff]  ;;  %v21794_v8 = vld [vmem:[%s23425_s8 + $0x48] sm:$0xff] }
0x1a35   :  { %18195 = vmatpush3.bf16.msra.mxu1 %v21507_v32  ;;  %16877 = vmatprep.mubr.msk.f32.mxu1 %vm19134_vm6, %v23768_v25  ;;  %v11482_v28 = vand.u32 4294901760, %v11481_v2  ;;  %v11495_v18 = vsub.f32 %v21546_v40, %v23543_v9  ;;  %v21646_v62 = vsub.f32 %v21621_v48, %v23535_v35  ;;  %v23533_v47 = vand.u32 4294901760, %v21651_v58  ;;  %v21670_v2 = vld [vmem:[%s23425_s8 + $0x18] sm:$0xff]  ;;  %v21780_v35 = vld [vmem:[%s23425_s8 + $0xc8] sm:$0xff]  ;;  %23803 = vst [vmem:[#allocation21_spill] sm:$0xff] %v21794_v8 }
0x1a36   :  { %18196 = vmatprep.subr.bf16.mxu1 %v23799_v17  ;;  %v23541_v6 = vand.u32 4294901760, %v21560_v42  ;;  %v18227_v16 = vpack.c.bf16 %v21562_v55, %v21560_v42  ;;  %v18329_v37 = vpack.c.bf16 %v21635_v44, %v21630_v49  ;;  %v23531_v41 = vand.u32 4294901760, %v21656_v52  ;;  %23801 = vst [vmem:[#allocation11_spill] sm:$0xff] %v21780_v35 }
0x1a37   :  { %v18209_v20 = vpack.c.bf16 %v11489_v11, %v11482_v28  ;;  %v11496_v50 = vand.u32 4294901760, %v11495_v18  ;;  %v18331_v27 = vpack.c.bf16 %v21646_v62, %v21641_v1  ;;  %v23528_v28 = vand.u32 4294901760, %v21670_v2  ;;  %v21679_v11 = vld [vmem:[%s23425_s8 + $0xa0] sm:$0xff]  ;;  %v21684_v18 = vld [vmem:[%s23425_s8 + $0xa8] sm:$0xff] }
0x1a38   :  { %v11509_v43 = vsub.f32 %v21560_v42, %v23541_v6  ;;  %18330 = vmatprep.subr.bf16.mxu0 %v18329_v37 }
0x1a39   :  { %18198 = vmatpush3.bf16.msra.mxu1 %v21530_v15  ;;  %v18212_v7 = vpack.c.bf16 %v11503_v63, %v11496_v50  ;;  %v21699_v50 = vsub.f32 %v21656_v52, %v23531_v41  ;;  %v23530_v63 = vand.u32 4294901760, %v21679_v11  ;;  %18332 = vmatpush3.bf16.msra.mxu0 %v18331_v27  ;;  %v21746_v27 = vld [vmem:[%s23425_s8 + $0x38] sm:$0xff] }
0x1a3a   :  { %18199 = vmatprep.subr.bf16.mxu1 %v23799_v17  ;;  %v23547_v3 = vand.u32 4294901760, %v21746_v27 }
0x1a3d   :  { %18201 = vmatpush3.bf16.msra.mxu1 %v21544_v51 }
0x1a3e   :  { %18202 = vmatprep.subr.bf16.mxu1 %v23799_v17 }
0x1a41   :  { %18204 = vmatpush3.bf16.msra.mxu1 %v21551_v21 }
0x1a42   :  { %18205 = vmatprep.subr.bf16.mxu1 %v23799_v17 }
0x1a44   :  { %16878 = vmatmul.mubr.f32.vlgmr.msra.gmra.mrb[74].mxu1 %v21387_v59  ;;  %v11510_v59 = vand.u32 4294901760, %v11509_v43  ;;  %v21705_v43 = vld [vmem:[%s23425_s8 + $0x28] sm:$0xff] }
0x1a45   :  { %18207 = vmatpush3.bf16.msra.mxu1 %v18206_v26  ;;  %16896 = vmatprep.mubr.msk.f32.mxu1 %vm19134_vm6, %v23768_v25  ;;  %v23529_v26 = vand.u32 4294901760, %v21665_v34  ;;  %v23536_v37 = vand.u32 4294901760, %v21705_v43 }
0x1a46   :  { %18208 = vmatprep.subr.bf16.mxu1 %v23799_v17  ;;  %v18215_v13 = vpack.c.bf16 %v11517_v56, %v11510_v59  ;;  %v23532_v59 = vand.u32 4294901760, %v21684_v18  ;;  %v23534_v56 = vand.u32 4294901760, %v21689_v54 }
0x1a47   :  { %v21711_v36 = vsub.f32 %v21665_v34, %v23529_v26 }
0x1a48   :  { %v21754_v26 = vsub.f32 %v21684_v18, %v23532_v59 }
0x1a49   :  { %18210 = vmatpush3.bf16.msra.mxu1 %v18209_v20  ;;  %v21694_v20 = vsub.f32 %v21651_v58, %v23533_v47 }
0x1a4a   :  { %18211 = vmatprep.subr.bf16.mxu1 %v23799_v17 }
0x1a4d   :  { %18213 = vmatpush3.bf16.msra.mxu1 %v18212_v7  ;;  %v21716_v7 = vsub.f32 %v21670_v2, %v23528_v28 }
0x1a4e   :  { %18214 = vmatprep.subr.bf16.mxu1 %v23799_v17 }
0x1a4f   :  { %v18335_v28 = vpack.c.bf16 %v21716_v7, %v21711_v36 }
0x1a51   :  { %18216 = vmatpush3.bf16.msra.mxu1 %v18215_v13  ;;  %v21723_v13 = vld [vmem:[%s23425_s8 + $0xb0] sm:$0xff] }
0x1a52   :  { %18217 = vmatprep.subr.bf16.mxu1 %v23799_v17  ;;  %v23544_v41 = vand.u32 4294901760, %v21723_v13 }
0x1a54   :  { %16897 = vmatmul.mubr.f32.vlgmr.msra.gmra.mrb[74].mxu1 %v21363_v45  ;;  %v21801_v6 = vsub.f32 %v21723_v13, %v23544_v41  ;;  %v23563_v41 = vand.u32 4294901760, %v21780_v35 }
0x1a55   :  { %18219 = vmatpush3.bf16.msra.mxu1 %v18218_v46  ;;  %16915 = vmatprep.mubr.msk.f32.mxu1 %vm19134_vm6, %v23768_v25  ;;  %v21728_v46 = vld [vmem:[%s23425_s8 + $0xb8] sm:$0xff] }
0x1a56   :  { %18220 = vmatprep.subr.bf16.mxu1 %v23799_v17  ;;  %v23546_v59 = vand.u32 4294901760, %v21728_v46  ;;  %23804 = vst [vmem:[#allocation22_spill] sm:$0xff] %v21801_v6  ;;  %v21856_v12 = vsub.f32 %v21780_v35, %v23563_v41  ;;  %v23570_v35 = vand.u32 4294901760, %v21843_v23 }
0x1a59   :  { %18222 = vmatpush3.bf16.msra.mxu1 %v18221_v29  ;;  %v21733_v29 = vld [vmem:[%s23425_s8 + $0x30] sm:$0xff] }
0x1a5a   :  { %18223 = vmatprep.subr.bf16.mxu1 %v23799_v17  ;;  %v23548_v47 = vand.u32 4294901760, %v21733_v29 }
0x1a5c   :  { %v21811_v31 = vsub.f32 %v21733_v29, %v23548_v47 }
0x1a5d   :  { %18225 = vmatpush3.bf16.msra.mxu1 %v18224_v4  ;;  %v18333_v4 = vpack.c.bf16 %v21699_v50, %v21694_v20 }
0x1a5e   :  { %18226 = vmatprep.subr.bf16.mxu1 %v23799_v17  ;;  %23806 = vst [vmem:[#allocation23_spill] sm:$0xff] %v21811_v31 }
0x1a5f   :  { %18334 = vmatprep.subr.bf16.mxu0 %v18333_v4  ;;  %v21806_v4 = vsub.f32 %v21728_v46, %v23546_v59  ;;  %v21824_v59 = vld [vmem:[%s23425_s8 + $0xd0] sm:$0xff] }
0x1a60   :  { %18336 = vmatpush3.bf16.msra.mxu0 %v18335_v28  ;;  %v21816_v28 = vsub.f32 %v21746_v27, %v23547_v3  ;;  %23808 = vst [vmem:[#allocation20_spill] sm:$0xff] %v21824_v59  ;;  %v21834_v3 = vld [vmem:[%s23425_s8 + $0x50] sm:$0xff] }
0x1a61   :  { %18228 = vmatpush3.bf16.msra.mxu1 %v18227_v16  ;;  %v21740_v16 = vsub.f32 %v21679_v11, %v23530_v63  ;;  %v21759_v63 = vsub.f32 %v21689_v54, %v23534_v56  ;;  %v21775_v56 = vld [vmem:[%s23425_s8 + $0xc0] sm:$0xff]  ;;  %23805 = vst [vmem:[#allocation24_spill] sm:$0xff] %v21806_v4  ;;  %23810 = vst [vmem:[#allocation3_spill] sm:$0xff] %v21834_v3  ;;  %v18341_v47 = vpack.c.bf16 %v21806_v4, %v21801_v6 }
0x1a62   :  { %18229 = vmatprep.subr.bf16.mxu1 %v23799_v17  ;;  %23800 = vst [vmem:[#allocation10_spill] sm:$0xff] %v21775_v56  ;;  %23807 = vst [vmem:[#allocation25_spill] sm:$0xff] %v21816_v28  ;;  %v23561_v9 = vand.u32 4294901760, %v21775_v56  ;;  %v18343_v24 = vpack.c.bf16 %v21816_v28, %v21811_v31  ;;  %v23813_v6 = vand.u32 4294901760, %v21794_v8  ;;  %v23565_v31 = vand.u32 4294901760, %v21824_v59 }
0x1a63   :  { %v18337_v22 = vpack.c.bf16 %v21754_v26, %v21740_v16 }
0x1a64   :  { %16916 = vmatmul.mubr.f32.vlgmr.msra.gmra.mrb[74].mxu1 %v21366_v57  ;;  %v21767_v57 = vsub.f32 %v21705_v43, %v23536_v37  ;;  %v21785_v37 = vld [vmem:[%s23425_s8 + $0x40] sm:$0xff]  ;;  %v21851_v60 = vsub.f32 %v21775_v56, %v23561_v9  ;;  %v21866_v28 = vsub.f32 %v21794_v8, %v23813_v6  ;;  %v23569_v56 = vand.u32 4294901760, %v21834_v3 }
0x1a65   :  { %18231 = vmatpush3.bf16.msra.mxu1 %v21507_v32  ;;  %16934 = vmatprep.mubr.msk.f32.mxu1 %vm19134_vm6, %v23768_v25  ;;  %23802 = vst [vmem:[#allocation12_spill] sm:$0xff] %v21785_v37  ;;  %v23812_v39 = vand.u32 4294901760, %v21785_v37 }
0x1a66   :  { %18232 = vmatprep.subr.bf16.mxu1 %v23799_v17  ;;  %v18339_v0 = vpack.c.bf16 %v21767_v57, %v21759_v63  ;;  %18338 = vmatprep.subr.bf16.mxu0 %v18337_v22  ;;  %v21829_v22 = vld [vmem:[%s23425_s8 + $0xd8] sm:$0xff]  ;;  %v18345_v41 = vpack.c.bf16 %v21856_v12, %v21851_v60 }
0x1a67   :  { %23809 = vst [vmem:[#allocation19_spill] sm:$0xff] %v21829_v22  ;;  %v21861_v4 = vsub.f32 %v21785_v37, %v23812_v39  ;;  %v23566_v9 = vand.u32 4294901760, %v21829_v22  ;;  %v21878_v39 = vsub.f32 %v21824_v59, %v23565_v31  ;;  %v21896_v31 = vsub.f32 %v21843_v23, %v23570_v35 }
0x1a68   :  { %18340 = vmatpush3.bf16.msra.mxu0 %v18339_v0 }
0x1a69   :  { %18234 = vmatpush3.bf16.msra.mxu1 %v21530_v15  ;;  %18342 = vmatprep.subr.bf16.mxu0 %v18341_v47  ;;  %v21883_v6 = vsub.f32 %v21829_v22, %v23566_v9  ;;  %v18347_v0 = vpack.c.bf16 %v21866_v28, %v21861_v4  ;;  %v21891_v47 = vsub.f32 %v21834_v3, %v23569_v56  ;;  %v23815_v22 = vand.u32 4294901760, %v21504_v53  ;;  %v21909_v56 = vld [vmem:[%s23425_s8 + $0xe0] sm:$0xff] }
0x1a6a   :  { %18235 = vmatprep.subr.bf16.mxu1 %v23799_v17  ;;  %23816 = vst [vmem:[#allocation5_spill] sm:$0xff] %v21909_v56  ;;  %v23820_v53 = vand.u32 4294901760, %v21517_v61  ;;  %v23822_v8 = vand.u32 4294901760, %v21909_v56 }
0x1a6b   :  { %v18349_v9 = vpack.c.bf16 %v21883_v6, %v21878_v39  ;;  %v18351_v35 = vpack.c.bf16 %v21896_v31, %v21891_v47 }
0x1a6c   :  { %18344 = vmatpush3.bf16.msra.mxu0 %v18343_v24  ;;  %v23814_v24 = vand.u32 4294901760, %v21502_v5  ;;  %v23821_v5 = vand.u32 4294901760, %v21519_v30  ;;  %v21942_v37 = vsub.f32 %v21909_v56, %v23822_v8  ;;  %v21963_v8 = vld [vmem:[%s23425_s8 + $0xf0] sm:$0xff] }
0x1a6d   :  { %18237 = vmatpush3.bf16.msra.mxu1 %v21544_v51  ;;  %18346 = vmatprep.subr.bf16.mxu0 %v18345_v41  ;;  %v21914_v41 = vld [vmem:[%s23425_s8 + $0xe8] sm:$0xff]  ;;  %v23831_v56 = vand.u32 4294901760, %v21963_v8 }
0x1a6e   :  { %18238 = vmatprep.subr.bf16.mxu1 %v23799_v17  ;;  %v18242_v59 = vpack.c.bf16 %v23815_v22, %v23814_v24  ;;  %23817 = vst [vmem:[#allocation6_spill] sm:$0xff] %v21914_v41  ;;  %v21923_v22 = vld [vmem:[%s23425_s8 + $0x60] sm:$0xff]  ;;  %v21928_v24 = vld [vmem:[%s23425_s8 + $0x68] sm:$0xff]  ;;  %v18245_v3 = vpack.c.bf16 %v23821_v5, %v23820_v53  ;;  %23823 = vst [vmem:[#allocation8_spill] sm:$0xff] %v21942_v37  ;;  %v23830_v53 = vand.u32 4294901760, %v21548_v19 }
0x1a6f   :  { %23818 = vst [vmem:[#allocation7_spill] sm:$0xff] %v21923_v22  ;;  %23819 = vst [vmem:[#allocation13_spill] sm:$0xff] %v21928_v24  ;;  %v23575_v23 = vand.u32 4294901760, %v21928_v24 }
0x1a70   :  { %18348 = vmatpush3.bf16.msra.mxu0 %v18347_v0  ;;  %v23576_v0 = vand.u32 4294901760, %v21923_v22 }
0x1a71   :  { %18240 = vmatpush3.bf16.msra.mxu1 %v21551_v21  ;;  %18350 = vmatprep.subr.bf16.mxu0 %v18349_v9  ;;  %v21958_v30 = vsub.f32 %v21928_v24, %v23575_v23  ;;  %v21977_v23 = vld [vmem:[%s23425_s8 + $0x70] sm:$0xff] }
0x1a72   :  { %18241 = vmatprep.subr.bf16.mxu1 %v23799_v17  ;;  %v21953_v61 = vsub.f32 %v21923_v22, %v23576_v0  ;;  %23827 = vst [vmem:[#allocation16_spill] sm:$0xff] %v21977_v23  ;;  %v21982_v0 = vld [vmem:[%s23425_s8 + $0x78] sm:$0xff]  ;;  %v23587_v24 = vand.u32 4294901760, %v21977_v23 }
0x1a73   :  { %23826 = vst [vmem:[#allocation15_spill] sm:$0xff] %v21958_v30  ;;  %23828 = vst [vmem:[#allocation17_spill] sm:$0xff] %v21982_v0  ;;  %v23588_v22 = vand.u32 4294901760, %v21982_v0 }
0x1a74   :  { %16935 = vmatmul.mubr.f32.vlgmr.msra.gmra.mrb[74].mxu1 %v21377_v33  ;;  %v23824_v33 = vand.u32 4294901760, %v21914_v41  ;;  %18352 = vmatpush3.bf16.msra.mxu0 %v18351_v35  ;;  %v18355_v35 = vpack.c.bf16 %v21958_v30, %v21953_v61 }
0x1a75   :  { %18243 = vmatpush3.bf16.msra.mxu1 %v18242_v59  ;;  %16953 = vmatprep.mubr.msk.f32.mxu1 %vm19134_vm6, %v23768_v25  ;;  %v21968_v59 = vld [vmem:[%s23425_s8 + $0xf8] sm:$0xff]  ;;  %v22011_v19 = vsub.f32 %v21982_v0, %v23588_v22  ;;  %v12131_v22 = vand.u32 4294901760, %v21646_v62 }
0x1a76   :  { %v21947_v9 = vsub.f32 %v21914_v41, %v23824_v33  ;;  %18244 = vmatprep.subr.bf16.mxu1 %v23799_v17  ;;  %v23829_v33 = vand.u32 4294901760, %v21546_v40  ;;  %v22006_v40 = vsub.f32 %v21977_v23, %v23587_v24  ;;  %v12243_v24 = vand.u32 4294901760, %v21635_v44 }
0x1a78   :  { %23825 = vst [vmem:[#allocation14_spill] sm:$0xff] %v21947_v9  ;;  %v18353_v5 = vpack.c.bf16 %v21947_v9, %v21942_v37  ;;  %v18248_v41 = vpack.c.bf16 %v23830_v53, %v23829_v33  ;;  %v21995_v9 = vsub.f32 %v21963_v8, %v23831_v56  ;;  %v23832_v37 = vand.u32 4294901760, %v21968_v59 }
0x1a79   :  { %18246 = vmatpush3.bf16.msra.mxu1 %v18245_v3  ;;  %v18359_v56 = vpack.c.bf16 %v22011_v19, %v22006_v40  ;;  %v12236_v33 = vand.u32 4294901760, %v21630_v49 }
0x1a7a   :  { %18354 = vmatprep.subr.bf16.mxu0 %v18353_v5  ;;  %v22000_v30 = vsub.f32 %v21968_v59, %v23832_v37  ;;  %18247 = vmatprep.subr.bf16.mxu1 %v23799_v17  ;;  %v23833_v37 = vand.u32 4294901760, %v21560_v42  ;;  %v23834_v5 = vand.u32 4294901760, %v21562_v55  ;;  %v23836_v42 = vand.u32 4294901760, %v21604_v14 }
0x1a7b   :  { %18356 = vmatpush3.bf16.msra.mxu0 %v18355_v35  ;;  %v12124_v35 = vand.u32 4294901760, %v21641_v1  ;;  %v18393_v0 = vpack.c.bf16 %v12243_v24, %v12236_v33  ;;  %v23837_v55 = vand.u32 4294901760, %v21609_v10  ;;  %v23840_v14 = vand.u32 4294901760, %v21651_v58 }
0x1a7c   :  { %v18357_v3 = vpack.c.bf16 %v22000_v30, %v21995_v9  ;;  %v18251_v53 = vpack.c.bf16 %v23834_v5, %v23833_v37  ;;  %v23839_v37 = vand.u32 4294901760, %v21621_v48  ;;  %v23841_v10 = vand.u32 4294901760, %v21656_v52 }
0x1a7d   :  { %18249 = vmatpush3.bf16.msra.mxu1 %v18248_v41  ;;  %v22026_v23 = vpack.c.bf16 %v12131_v22, %v12124_v35  ;;  %v22032_v41 = vpack.c.bf16 %v23837_v55, %v23836_v42  ;;  %v12244_v48 = vsub.f32 %v21635_v44, %v12243_v24  ;;  %v23842_v58 = vand.u32 4294901760, %v21665_v34 }
0x1a7e   :  { %18358 = vmatprep.subr.bf16.mxu0 %v18357_v3  ;;  %18250 = vmatprep.subr.bf16.mxu1 %v23799_v17  ;;  %v23838_v3 = vand.u32 4294901760, %v21616_v38  ;;  %v22048_v42 = vpack.c.bf16 %v23841_v10, %v23840_v14  ;;  %v12145_v38 = vand.u32 4294901760, %v21716_v7  ;;  %v23843_v52 = vand.u32 4294901760, %v21670_v2 }
0x1a7f   :  { %18360 = vmatpush3.bf16.msra.mxu0 %v18359_v56  ;;  %23835 = vst [vmem:[#allocation18_spill] sm:$0xff] %v22026_v23  ;;  %v12250_v56 = vand.u32 4294901760, %v21694_v20  ;;  %v12257_v23 = vand.u32 4294901760, %v21699_v50  ;;  %v23844_v44 = vand.u32 4294901760, %v21679_v11  ;;  %v23845_v24 = vand.u32 4294901760, %v21684_v18 }
0x1a80   :  { %18394 = vmatprep.subr.bf16.mxu0 %v18393_v0  ;;  %v22039_v5 = vpack.c.bf16 %v23839_v37, %v23838_v3  ;;  %v12138_v0 = vand.u32 4294901760, %v21711_v36  ;;  %v12125_v37 = vsub.f32 %v21641_v1, %v12124_v35  ;;  %v12264_v14 = vand.u32 4294901760, %v21740_v16 }
0x1a81   :  { %18252 = vmatpush3.bf16.msra.mxu1 %v18251_v53  ;;  %v12237_v53 = vsub.f32 %v21630_v49, %v12236_v33  ;;  %v22054_v55 = vpack.c.bf16 %v12257_v23, %v12250_v56  ;;  %v12132_v49 = vsub.f32 %v21646_v62, %v12131_v22  ;;  %v22065_v33 = vpack.c.bf16 %v23843_v52, %v23842_v58 }
0x1a82   :  { %18253 = vmatprep.subr.bf16.mxu1 %v23799_v17  ;;  %v22073_v1 = vpack.c.bf16 %v12145_v38, %v12138_v0  ;;  %v12245_v62 = vand.u32 4294901760, %v12244_v48  ;;  %v23847_v22 = vand.u32 4294901760, %v21705_v43  ;;  %v12126_v2 = vand.u32 4294901760, %v12125_v37 }
0x1a83   :  { %v12238_v3 = vand.u32 4294901760, %v12237_v53  ;;  %v22071_v53 = vpack.c.bf16 %v23845_v24, %v23844_v44  ;;  %v12133_v35 = vand.u32 4294901760, %v12132_v49  ;;  %v23848_v11 = vand.u32 4294901760, %v21723_v13 }
0x1a84   :  { %16954 = vmatmul.mubr.f32.vlgmr.msra.gmra.mrb[74].mxu1 %v21363_v45  ;;  %v23849_v18 = vand.u32 4294901760, %v21728_v46  ;;  %v12271_v48 = vand.u32 4294901760, %v21754_v26  ;;  %v23850_v43 = vand.u32 4294901760, %v21733_v29  ;;  %v23851_v52 = vand.u32 4294901760, %v21746_v27 }
0x1a85   :  { %18255 = vmatpush3.bf16.msra.mxu1 %v21507_v32  ;;  %16972 = vmatprep.mubr.msk.f32.mxu1 %vm19134_vm6, %v23768_v25  ;;  %v23846_v32 = vand.u32 4294901760, %v21689_v54  ;;  %v22089_v58 = vpack.c.bf16 %v12245_v62, %v12238_v3  ;;  %v12152_v54 = vand.u32 4294901760, %v21759_v63  ;;  %v22099_v49 = vpack.c.bf16 %v12133_v35, %v12126_v2  ;;  %v23853_v2 = vld [vmem:[#allocation24_spill] sm:$0xff] }
0x1a86   :  { %18256 = vmatprep.subr.bf16.mxu1 %v23799_v17  ;;  %v22087_v10 = vpack.c.bf16 %v23849_v18, %v23848_v11  ;;  %v22097_v37 = vpack.c.bf16 %v23851_v52, %v23850_v43  ;;  %v12159_v13 = vand.u32 4294901760, %v21767_v57  ;;  %v12251_v46 = vsub.f32 %v21694_v20, %v12250_v56  ;;  %v23854_v11 = vld [vmem:[#allocation23_spill] sm:$0xff] }
0x1a87   :  { %v22080_v34 = vpack.c.bf16 %v23847_v22, %v23846_v32  ;;  %v22104_v3 = vpack.c.bf16 %v12271_v48, %v12264_v14  ;;  %v12258_v44 = vsub.f32 %v21699_v50, %v12257_v23  ;;  %v12139_v24 = vsub.f32 %v21711_v36, %v12138_v0  ;;  %v23852_v32 = vld [vmem:[#allocation22_spill] sm:$0xff]  ;;  %v23855_v23 = vld [vmem:[#allocation25_spill] sm:$0xff] }
0x1a88   :  { %v12146_v29 = vsub.f32 %v21716_v7, %v12145_v38  ;;  %v22110_v27 = vpack.c.bf16 %v12159_v13, %v12152_v54  ;;  %v12252_v62 = vand.u32 4294901760, %v12251_v46  ;;  %v12278_v22 = vand.u32 4294901760, %v23852_v32 }
0x1a89   :  { %18258 = vmatpush3.bf16.msra.mxu1 %v21530_v15  ;;  %v12285_v35 = vand.u32 4294901760, %v23853_v2  ;;  %v12259_v20 = vand.u32 4294901760, %v12258_v44  ;;  %v12140_v56 = vand.u32 4294901760, %v12139_v24  ;;  %v12166_v18 = vand.u32 4294901760, %v23854_v11 }
0x1a8a   :  { %18259 = vmatprep.subr.bf16.mxu1 %v23799_v17  ;;  %v12147_v15 = vand.u32 4294901760, %v12146_v29  ;;  %v12173_v50 = vand.u32 4294901760, %v23855_v23  ;;  %v12265_v36 = vsub.f32 %v21740_v16, %v12264_v14  ;;  %v12272_v7 = vsub.f32 %v21754_v26, %v12271_v48 }
0x1a8b   :  { %v22115_v43 = vpack.c.bf16 %v12285_v35, %v12278_v22  ;;  %v22121_v0 = vpack.c.bf16 %v12259_v20, %v12252_v62  ;;  %v12153_v52 = vsub.f32 %v21759_v63, %v12152_v54  ;;  %v12160_v46 = vsub.f32 %v21767_v57, %v12159_v13 }
0x1a8c   :  { %v22123_v38 = vpack.c.bf16 %v12147_v15, %v12140_v56  ;;  %v22128_v44 = vpack.c.bf16 %v12173_v50, %v12166_v18  ;;  %v12266_v24 = vand.u32 4294901760, %v12265_v36  ;;  %v12273_v29 = vand.u32 4294901760, %v12272_v7 }
0x1a8d   :  { %18261 = vmatpush3.bf16.msra.mxu1 %v21544_v51  ;;  %v12292_v16 = vand.u32 4294901760, %v21851_v60  ;;  %v12154_v14 = vand.u32 4294901760, %v12153_v52  ;;  %v12161_v26 = vand.u32 4294901760, %v12160_v46  ;;  %v12299_v51 = vand.u32 4294901760, %v21856_v12 }
0x1a8e   :  { %18262 = vmatprep.subr.bf16.mxu1 %v23799_v17  ;;  %v12180_v48 = vand.u32 4294901760, %v21861_v4  ;;  %v22133_v62 = vpack.c.bf16 %v12273_v29, %v12266_v24  ;;  %v12187_v63 = vand.u32 4294901760, %v21866_v28  ;;  %v12279_v57 = vsub.f32 %v23852_v32, %v12278_v22 }
0x1a8f   :  { %v12286_v54 = vsub.f32 %v23853_v2, %v12285_v35  ;;  %v22139_v13 = vpack.c.bf16 %v12161_v26, %v12154_v14  ;;  %v22141_v20 = vpack.c.bf16 %v12299_v51, %v12292_v16  ;;  %v12167_v56 = vsub.f32 %v23854_v11, %v12166_v18 }
0x1a90   :  { %v12174_v15 = vsub.f32 %v23855_v23, %v12173_v50  ;;  %v22146_v36 = vpack.c.bf16 %v12187_v63, %v12180_v48  ;;  %v12280_v7 = vand.u32 4294901760, %v12279_v57  ;;  %v12306_v32 = vand.u32 4294901760, %v21878_v39 }
0x1a91   :  { %18264 = vmatpush3.bf16.msra.mxu1 %v21551_v21  ;;  %v12287_v52 = vand.u32 4294901760, %v12286_v54  ;;  %v12168_v22 = vand.u32 4294901760, %v12167_v56  ;;  %v12313_v21 = vand.u32 4294901760, %v21883_v6  ;;  %v12194_v35 = vand.u32 4294901760, %v21891_v47  ;;  %v23856_v54 = vld [vmem:[#allocation8_spill] sm:$0xff] }
0x1a92   :  { %18266 = vmatprep.subr.bf16.mxu1 %v22032_v41  ;;  %v12175_v2 = vand.u32 4294901760, %v12174_v15  ;;  %v12201_v11 = vand.u32 4294901760, %v21896_v31  ;;  %v12293_v18 = vsub.f32 %v21851_v60, %v12292_v16  ;;  %v12300_v23 = vsub.f32 %v21856_v12, %v12299_v51  ;;  %v23857_v51 = vld [vmem:[#allocation14_spill] sm:$0xff] }
0x1a93   :  { %v22152_v46 = vpack.c.bf16 %v12287_v52, %v12280_v7  ;;  %v22160_v24 = vpack.c.bf16 %v12313_v21, %v12306_v32  ;;  %v12181_v29 = vsub.f32 %v21861_v4, %v12180_v48  ;;  %v12188_v14 = vsub.f32 %v21866_v28, %v12187_v63  ;;  %v23858_v52 = vld [vmem:[#allocation15_spill] sm:$0xff] }
0x1a94   :  { %16973 = vmatmul.mubr.f32.vlgmr.msra.gmra.mrb[74].mxu1 %v21363_v45  ;;  %v22158_v50 = vpack.c.bf16 %v12175_v2, %v12168_v22  ;;  %v22165_v45 = vpack.c.bf16 %v12201_v11, %v12194_v35  ;;  %v12294_v26 = vand.u32 4294901760, %v12293_v18  ;;  %v12301_v57 = vand.u32 4294901760, %v12300_v23 }
0x1a95   :  { %18268 = vmatpush3.bf16.msra.mxu1 %v22039_v5  ;;  %v12320_v60 = vand.u32 4294901760, %v23856_v54  ;;  %v12182_v16 = vand.u32 4294901760, %v12181_v29  ;;  %v12189_v12 = vand.u32 4294901760, %v12188_v14  ;;  %v12327_v56 = vand.u32 4294901760, %v23857_v51 }
0x1a96   :  { %18270 = vmatprep.subr.bf16.mxu1 %v22048_v42  ;;  %v12208_v15 = vand.u32 4294901760, %v21953_v61  ;;  %v22170_v7 = vpack.c.bf16 %v12301_v57, %v12294_v26  ;;  %v12215_v4 = vand.u32 4294901760, %v23858_v52  ;;  %v12307_v28 = vsub.f32 %v21878_v39, %v12306_v32 }
0x1a97   :  { %v12314_v48 = vsub.f32 %v21883_v6, %v12313_v21  ;;  %v22176_v63 = vpack.c.bf16 %v12189_v12, %v12182_v16  ;;  %v22178_v22 = vpack.c.bf16 %v12327_v56, %v12320_v60  ;;  %v12195_v2 = vsub.f32 %v21891_v47, %v12194_v35 }
0x1a98   :  { %v12202_v18 = vsub.f32 %v21896_v31, %v12201_v11  ;;  %v22183_v23 = vpack.c.bf16 %v12215_v4, %v12208_v15  ;;  %v12308_v29 = vand.u32 4294901760, %v12307_v28  ;;  %v12334_v39 = vand.u32 4294901760, %v21995_v9 }
0x1a99   :  { %18272 = vmatpush3.bf16.msra.mxu1 %v22065_v33  ;;  %v12315_v14 = vand.u32 4294901760, %v12314_v48  ;;  %v12196_v32 = vand.u32 4294901760, %v12195_v2  ;;  %v12341_v21 = vand.u32 4294901760, %v22000_v30  ;;  %v12222_v26 = vand.u32 4294901760, %v22006_v40  ;;  %v23859_v48 = vld [vmem:[#allocation10_spill] sm:$0xff] }
0x1a9a   :  { %18274 = vmatprep.subr.bf16.mxu1 %v22071_v53  ;;  %v12203_v6 = vand.u32 4294901760, %v12202_v18  ;;  %v12229_v47 = vand.u32 4294901760, %v22011_v19  ;;  %v12321_v31 = vsub.f32 %v23856_v54, %v12320_v60  ;;  %v12328_v35 = vsub.f32 %v23857_v51, %v12327_v56  ;;  %v23861_v18 = vld [vmem:[#allocation11_spill] sm:$0xff] }
0x1a9b   :  { %v22188_v57 = vpack.c.bf16 %v12315_v14, %v12308_v29  ;;  %v22196_v16 = vpack.c.bf16 %v12341_v21, %v12334_v39  ;;  %v12209_v12 = vsub.f32 %v21953_v61, %v12208_v15  ;;  %v12216_v28 = vsub.f32 %v23858_v52, %v12215_v4  ;;  %v23863_v52 = vld [vmem:[#allocation12_spill] sm:$0xff] }
0x1a9c   :  { %v22194_v11 = vpack.c.bf16 %v12203_v6, %v12196_v32  ;;  %v23860_v2 = vand.u32 4294901760, %v23859_v48  ;;  %v23862_v29 = vand.u32 4294901760, %v23861_v18  ;;  %v22207_v54 = vpack.c.bf16 %v12229_v47, %v12222_v26  ;;  %v23865_v48 = vld [vmem:[#allocation21_spill] sm:$0xff] }
0x1a9d   :  { %18276 = vmatpush3.bf16.msra.mxu1 %v22080_v34  ;;  %v12322_v60 = vand.u32 4294901760, %v12321_v31  ;;  %v12329_v51 = vand.u32 4294901760, %v12328_v35  ;;  %v12210_v56 = vand.u32 4294901760, %v12209_v12  ;;  %v12217_v32 = vand.u32 4294901760, %v12216_v28  ;;  %v23867_v12 = vld [vmem:[#allocation20_spill] sm:$0xff] }
0x1a9e   :  { %18278 = vmatprep.subr.bf16.mxu1 %v22087_v10  ;;  %v22205_v14 = vpack.c.bf16 %v23862_v29, %v23860_v2  ;;  %v12335_v61 = vsub.f32 %v21995_v9, %v12334_v39  ;;  %v12342_v15 = vsub.f32 %v22000_v30, %v12341_v21  ;;  %v23864_v4 = vand.u32 4294901760, %v23863_v52  ;;  %v23869_v39 = vld [vmem:[#allocation19_spill] sm:$0xff] }
0x1a9f   :  { %v22209_v6 = vpack.c.bf16 %v12329_v51, %v12322_v60  ;;  %v23866_v18 = vand.u32 4294901760, %v23865_v48  ;;  %v22220_v29 = vpack.c.bf16 %v12217_v32, %v12210_v56  ;;  %v12223_v31 = vsub.f32 %v22006_v40, %v12222_v26  ;;  %v23871_v56 = vld [vmem:[#allocation3_spill] sm:$0xff] }
0x1aa0   :  { %v12230_v35 = vsub.f32 %v22011_v19, %v12229_v47  ;;  %v23868_v9 = vand.u32 4294901760, %v23867_v12  ;;  %v23870_v30 = vand.u32 4294901760, %v23869_v39  ;;  %v12336_v28 = vand.u32 4294901760, %v12335_v61  ;;  %v23875_v47 = vld [vmem:[#allocation5_spill] sm:$0xff] }
0x1aa1   :  { %18280 = vmatpush3.bf16.msra.mxu1 %v22097_v37  ;;  %v22218_v2 = vpack.c.bf16 %v23866_v18, %v23864_v4  ;;  %v12343_v60 = vand.u32 4294901760, %v12342_v15  ;;  %v12224_v51 = vand.u32 4294901760, %v12223_v31  ;;  %v23872_v32 = vand.u32 4294901760, %v23871_v56  ;;  %v23873_v4 = vld [vmem:[#allocation4_spill] sm:$0xff]  ;;  %v23877_v18 = vld [vmem:[#allocation6_spill] sm:$0xff]  ;;  %v23879_v31 = vld [vmem:[#allocation7_spill] sm:$0xff] }
0x1aa2   :  { %18282 = vmatprep.subr.bf16.mxu1 %v22205_v14  ;;  %v22229_v21 = vpack.c.bf16 %v23870_v30, %v23868_v9  ;;  %v12231_v52 = vand.u32 4294901760, %v12230_v35  ;;  %v23874_v40 = vand.u32 4294901760, %v23873_v4  ;;  %v23876_v48 = vand.u32 4294901760, %v23875_v47  ;;  %v23881_v9 = vld [vmem:[#allocation13_spill] sm:$0xff] }
0x1aa3   :  { %v22238_v19 = vpack.c.bf16 %v12343_v60, %v12336_v28  ;;  %v23878_v12 = vand.u32 4294901760, %v23877_v18  ;;  %v23880_v35 = vand.u32 4294901760, %v23879_v31  ;;  %v23882_v39 = vand.u32 4294901760, %v23881_v9 }
0x1aa4   :  { %v22236_v26 = vpack.c.bf16 %v23874_v40, %v23872_v32  ;;  %v22247_v15 = vpack.c.bf16 %v12231_v52, %v12224_v51  ;;  %v23883_v28 = vand.u32 4294901760, %v21963_v8  ;;  %v23884_v60 = vand.u32 4294901760, %v21968_v59  ;;  %v23885_v51 = vld [vmem:[#allocation16_spill] sm:$0xff]  ;;  %v23887_v32 = vld [vmem:[#allocation17_spill] sm:$0xff]  ;;  %v22276_v59 = vld [vmem:[%s23426_s7] sm:$0x1f] }
0x1aa5   :  { %18284 = vmatpush3.bf16.msra.mxu1 %v22218_v2  ;;  %v22245_v61 = vpack.c.bf16 %v23878_v12, %v23876_v48  ;;  %v22254_v30 = vpack.c.bf16 %v23882_v39, %v23880_v35  ;;  %v23886_v52 = vand.u32 4294901760, %v23885_v51  ;;  %v23888_v4 = vand.u32 4294901760, %v23887_v32  ;;  %23889 = vst [vmem:[#allocation22_spill] sm:$0xff] %v22276_v59  ;;  %v23890_v48 = vld [vmem:[#allocation2_spill] sm:$0xff] }
0x1aa6   :  { %18286 = vmatprep.subr.bf16.mxu1 %v22229_v21  ;;  %v22261_v56 = vpack.c.bf16 %v23884_v60, %v23883_v28  ;;  %v23891_v18 = vsub.s32 0, %v23890_v48  ;;  %v23892_v31 = vsub.s32 1, %v23890_v48 }
0x1aa7   :  { %v22268_v40 = vpack.c.bf16 %v23888_v4, %v23886_v52 }
0x1aa8   :  { %v10061_v12 = vrot.slane %v22276_v59, %v23891_v18  ;;  %v10065_v35 = vrot.slane %v22276_v59, %v23892_v31  ;;  %v10068_v31 = vsub.s32 2, %v23890_v48 }
0x1aa9   :  { %18288 = vmatpush3.bf16.msra.mxu1 %v22236_v26 }
0x1aaa   :  { %18290 = vmatprep.subr.bf16.mxu1 %v22245_v61 }
0x1aad   :  { %18292 = vmatpush3.bf16.msra.mxu1 %v22254_v30 }
0x1aae   :  { %18294 = vmatprep.subr.bf16.mxu1 %v22261_v56 }
0x1ab1   :  { %18296 = vmatpush3.bf16.msra.mxu1 %v22268_v40 }
0x1ab2   :  { %18298 = vmatprep.subr.bf16.mxu1 %v22089_v58 }
0x1adf   :  { %v11375_v47 = vpop.f32.mrb[54].mxu0 }
0x1ae0   :  { %v11377_v8 = vpop.f32.mrb[55].mxu0 }
0x1af7   :  { %v10728_v9 = vpop.f32.mrb[70].mxu1 }
0x1af8   :  { %v18801_v39 = vadd.f32 %v10728_v9, %v10061_v12  ;;  %v10730_v28 = vpop.f32.mrb[71].mxu1 }
0x1af9   :  { %v18802_v60 = vadd.f32 %v10730_v28, %v10065_v35  ;;  %v10072_v35 = vsub.s32 3, %v23890_v48 }
0x1afa   :  { %v11917_v58 = vmax.f32 %v18801_v39, 0.0  ;;  %v23894_v39 = vld [vmem:[#allocation18_spill] sm:$0xff] }
0x1afb   :  { %v11918_v51 = vmax.f32 %v18802_v60, 0.0  ;;  %v10069_v60 = vrot.slane %v22276_v59, %v10068_v31 }
0x1afc   :  { %v22284_v52 = vand.u32 4294901760, %v11917_v58 }
0x1afd   :  { %v22286_v32 = vand.u32 4294901760, %v11918_v51 }
0x1afe   :  { %v22289_v4 = vsub.f32 %v11917_v58, %v22284_v52 }
0x1aff   :  { %v22292_v25 = vsub.f32 %v11918_v51, %v22286_v32  ;;  %v10073_v51 = vrot.slane %v22276_v59, %v10072_v35  ;;  %v22441_v35 = vld [vmem:[%s23425_s8 + $0x1b0] sm:$0xff] }
0x1b00   :  { %23893 = vst [vmem:[#allocation24_spill] sm:$0xff] %v22289_v4  ;;  %v23593_v18 = vand.u32 4294901760, %v22289_v4 }
0x1b01   :  { %12483 = vmatprep.mubr.f32.mxu0 %v22292_v25  ;;  %v12107_v12 = vand.u32 4294901760, %v22292_v25 }
0x1b02   :  { %v12114_v9 = vsub.f32 %v22289_v4, %v23593_v18  ;;  %12486 = vmatmul.mubr.f32.vlgmr.msra.gmra.mrb[56].mxu0 %v22289_v4 }
0x1b03   :  { %18396 = vmatpush3.bf16.msra.mxu0 %v23894_v39  ;;  %12760 = vmatprep.mubr.f32.mxu0 %v22286_v32  ;;  %v12108_v28 = vsub.f32 %v22292_v25, %v12107_v12 }
0x1b04   :  { %18398 = vmatprep.subr.bf16.mxu0 %v22054_v55  ;;  %v12115_v17 = vand.u32 4294901760, %v12114_v9  ;;  %v22446_v9 = vld [vmem:[%s23425_s8 + $0x1b8] sm:$0xff] }
0x1b05   :  { %v12109_v58 = vand.u32 4294901760, %v12108_v28 }
0x1b07   :  { %18400 = vmatpush3.bf16.msra.mxu0 %v22073_v1  ;;  %v10820_v18 = vpop.f32.mrb[72].mxu1  ;;  %12110 = vmatprep.mubr.f32.mxu1 %v12109_v58  ;;  %v23603_v58 = vand.u32 4294901760, %v22441_v35 }
0x1b08   :  { %v10821_v48 = vadd.f32 %v10820_v18, %v10069_v60  ;;  %v10822_v39 = vpop.f32.mrb[73].mxu1  ;;  %12116 = vmatmul.mubr.f32.vlgmr.msra.gmra.mrb[76].mxu1 %v12115_v17  ;;  %18402 = vmatprep.subr.bf16.mxu0 %v22104_v3  ;;  %v22337_v3 = vld [vmem:[%s23425_s8 + $0x180] sm:$0xff] }
0x1b09   :  { %v10823_v4 = vadd.f32 %v10822_v39, %v10073_v51  ;;  %18300 = vmatpush3.bf16.msra.mxu1 %v22099_v49  ;;  %12346 = vmatprep.mubr.f32.mxu1 %v22286_v32  ;;  %v23602_v51 = vand.u32 4294901760, %v22446_v9  ;;  %v22471_v39 = vld [vmem:[%s23425_s8 + $0x130] sm:$0xff] }
0x1b0a   :  { %v22315_v55 = vadd.f32 %v11375_v47, %v10821_v48  ;;  %18302 = vmatprep.subr.bf16.mxu1 %v22121_v0  ;;  %v22430_v48 = vld [vmem:[%s23425_s8 + $0x120] sm:$0xff] }
0x1b0b   :  { %v18806_v31 = vadd.f32 %v11377_v8, %v10823_v4  ;;  %18404 = vmatpush3.bf16.msra.mxu0 %v22110_v27  ;;  %v22342_v27 = vld [vmem:[%s23425_s8 + $0x188] sm:$0xff]  ;;  %v23601_v28 = vand.u32 4294901760, %v22430_v48 }
0x1b0c   :  { %18406 = vmatprep.subr.bf16.mxu0 %v22115_v43  ;;  %v23614_v43 = vand.u32 4294901760, %v22337_v3  ;;  %v23613_v0 = vand.u32 4294901760, %v22342_v27  ;;  %v22435_v4 = vld [vmem:[%s23425_s8 + $0x128] sm:$0xff] }
0x1b0d   :  { %v11920_v1 = vmax.f32 %v18806_v31, 0.0  ;;  %18304 = vmatpush3.bf16.msra.mxu1 %v22123_v38  ;;  %v22352_v38 = vld [vmem:[%s23425_s8 + $0x100] sm:$0xff]  ;;  %v23600_v60 = vand.u32 4294901760, %v22435_v4  ;;  %v22476_v31 = vld [vmem:[%s23425_s8 + $0x138] sm:$0xff] }
0x1b0e   :  { %18306 = vmatprep.subr.bf16.mxu1 %v22133_v62 }
0x1b0f   :  { %18408 = vmatpush3.bf16.msra.mxu0 %v22128_v44  ;;  %v22324_v17 = vand.u32 4294901760, %v11920_v1  ;;  %v22357_v44 = vld [vmem:[%s23425_s8 + $0x108] sm:$0xff] }
0x1b10   :  { %18410 = vmatprep.subr.bf16.mxu0 %v22141_v20  ;;  %v22369_v20 = vld [vmem:[%s23425_s8 + $0x198] sm:$0xff] }
0x1b11   :  { %18308 = vmatpush3.bf16.msra.mxu1 %v22139_v13  ;;  %v22331_v49 = vsub.f32 %v11920_v1, %v22324_v17  ;;  %v22364_v13 = vld [vmem:[%s23425_s8 + $0x190] sm:$0xff]  ;;  %v22482_v1 = vld [vmem:[%s23425_s8 + $0x1c0] sm:$0xff] }
0x1b12   :  { %18310 = vmatprep.subr.bf16.mxu1 %v22152_v46  ;;  %v23607_v46 = vand.u32 4294901760, %v22357_v44 }
0x1b13   :  { %18412 = vmatpush3.bf16.msra.mxu0 %v22146_v36  ;;  %v23596_v62 = vand.u32 4294901760, %v22331_v49  ;;  %v23608_v36 = vand.u32 4294901760, %v22352_v38 }
0x1b14   :  { %18414 = vmatprep.subr.bf16.mxu0 %v22160_v24  ;;  %v23606_v24 = vand.u32 4294901760, %v22364_v13 }
0x1b15   :  { %18312 = vmatpush3.bf16.msra.mxu1 %v22158_v50  ;;  %v22380_v50 = vpack.c.bf16 %v23613_v0, %v23614_v43 }
0x1b16   :  { %18314 = vmatprep.subr.bf16.mxu1 %v22170_v7  ;;  %v22387_v7 = vld [vmem:[%s23425_s8 + $0x110] sm:$0xff] }
0x1b17   :  { %18416 = vmatpush3.bf16.msra.mxu0 %v22165_v45  ;;  %23895 = vst [vmem:[#allocation23_spill] sm:$0xff] %v22380_v50  ;;  %v23605_v45 = vand.u32 4294901760, %v22369_v20 }
0x1b18   :  { %18418 = vmatprep.subr.bf16.mxu0 %v22178_v22  ;;  %v12970_v22 = vsub.f32 %v22331_v49, %v23596_v62  ;;  %v23609_v62 = vand.u32 4294901760, %v22476_v31 }
0x1b19   :  { %18316 = vmatpush3.bf16.msra.mxu1 %v22176_v63  ;;  %v22392_v63 = vld [vmem:[%s23425_s8 + $0x118] sm:$0xff]  ;;  %v22423_v8 = vpack.c.bf16 %v23605_v45, %v23606_v24  ;;  %v11919_v45 = vmax.f32 %v22315_v55, 0.0 }
0x1b1a   :  { %18318 = vmatprep.subr.bf16.mxu1 %v22188_v57  ;;  %v22406_v57 = vld [vmem:[%s23425_s8 + $0x1a8] sm:$0xff]  ;;  %v23599_v47 = vand.u32 4294901760, %v22392_v63  ;;  %v12971_v18 = vand.u32 4294901760, %v12970_v22  ;;  %v22560_v55 = vld [vmem:[%s23425_s8 + $0x158] sm:$0xff] }
0x1b1b   :  { %18420 = vmatpush3.bf16.msra.mxu0 %v22183_v23  ;;  %v22401_v23 = vld [vmem:[%s23425_s8 + $0x1a0] sm:$0xff]  ;;  %23897 = vst [vmem:[#allocation8_spill] sm:$0xff] %v22423_v8  ;;  %v22487_v22 = vld [vmem:[%s23425_s8 + $0x1c8] sm:$0xff]  ;;  %v23638_v43 = vand.u32 4294901760, %v22560_v55 }
0x1b1c   :  { %18422 = vmatprep.subr.bf16.mxu0 %v22196_v16  ;;  %v23604_v16 = vand.u32 4294901760, %v22387_v7 }
0x1b1d   :  { %18320 = vmatpush3.bf16.msra.mxu1 %v22194_v11  ;;  %v22414_v11 = vpack.c.bf16 %v23607_v46, %v23608_v36  ;;  %v22583_v36 = vand.u32 4294901760, %v11919_v45 }
0x1b1e   :  { %18322 = vmatprep.subr.bf16.mxu1 %v22209_v6  ;;  %v23597_v6 = vand.u32 4294901760, %v22406_v57 }
0x1b1f   :  { %18424 = vmatpush3.bf16.msra.mxu0 %v22207_v54  ;;  %23896 = vst [vmem:[#allocation25_spill] sm:$0xff] %v22414_v11  ;;  %v23598_v54 = vand.u32 4294901760, %v22401_v23  ;;  %23905 = vst [vmem:[#allocation19_spill] sm:$0xff] %v22583_v36 }
0x1b20   :  { %18458 = vmatprep.subr.bf16.mxu0 %v22380_v50 }
0x1b21   :  { %18324 = vmatpush3.bf16.msra.mxu1 %v22220_v29  ;;  %v22455_v29 = vpack.c.bf16 %v23599_v47, %v23604_v16  ;;  %v23610_v47 = vand.u32 4294901760, %v22487_v22 }
0x1b22   :  { %12762 = vmatmul.mubr.f32.vlgmr.msra.gmra.mrb[58].mxu0 %v22284_v52  ;;  %18326 = vmatprep.subr.bf16.mxu1 %v22238_v19  ;;  %v22464_v19 = vpack.c.bf16 %v23597_v6, %v23598_v54  ;;  %v22505_v6 = vpack.c.bf16 %v23602_v51, %v23603_v58  ;;  %v23611_v54 = vand.u32 4294901760, %v22482_v1  ;;  %v22525_v51 = vld [vmem:[%s23425_s8 + $0x1d0] sm:$0xff]  ;;  %v22530_v58 = vld [vmem:[%s23425_s8 + $0x1d8] sm:$0xff] }
0x1b23   :  { %18460 = vmatpush3.bf16.msra.mxu0 %v22414_v11  ;;  %12972 = vmatprep.mubr.f32.mxu0 %v12971_v18  ;;  %23898 = vst [vmem:[#allocation14_spill] sm:$0xff] %v22455_v29  ;;  %v22495_v18 = vpack.c.bf16 %v23600_v60, %v23601_v28  ;;  %v22512_v60 = vld [vmem:[%s23425_s8 + $0x140] sm:$0xff]  ;;  %v22517_v28 = vld [vmem:[%s23425_s8 + $0x148] sm:$0xff]  ;;  %v23625_v46 = vand.u32 4294901760, %v22525_v51 }
0x1b24   :  { %18462 = vmatprep.subr.bf16.mxu0 %v22423_v8  ;;  %23899 = vst [vmem:[#allocation15_spill] sm:$0xff] %v22464_v19  ;;  %23901 = vst [vmem:[#allocation11_spill] sm:$0xff] %v22505_v6  ;;  %v23623_v16 = vand.u32 4294901760, %v22517_v28  ;;  %v22548_v24 = vpack.c.bf16 %v23610_v47, %v23611_v54  ;;  %v22566_v47 = vld [vmem:[%s23425_s8 + $0x1e0] sm:$0xff]  ;;  %v22571_v54 = vld [vmem:[%s23425_s8 + $0x1e8] sm:$0xff] }
0x1b25   :  { %18328 = vmatpush3.bf16.msra.mxu1 %v22247_v15  ;;  %23900 = vst [vmem:[#allocation10_spill] sm:$0xff] %v22495_v18  ;;  %v23612_v15 = vand.u32 4294901760, %v22471_v39  ;;  %v23909_v8 = vand.u32 4294901760, %v22566_v47  ;;  %v23910_v11 = vand.u32 4294901760, %v22571_v54 }
0x1b26   :  { %18362 = vmatprep.subr.bf16.mxu1 %v22032_v41  ;;  %23903 = vst [vmem:[#allocation21_spill] sm:$0xff] %v22548_v24 }
0x1b27   :  { %18464 = vmatpush3.bf16.msra.mxu0 %v22455_v29  ;;  %v22538_v25 = vpack.c.bf16 %v23609_v62, %v23612_v15  ;;  %v22555_v62 = vld [vmem:[%s23425_s8 + $0x150] sm:$0xff]  ;;  %v22626_v29 = vsub.f32 %v11919_v45, %v22583_v36  ;;  %v22645_v45 = vld [vmem:[%s23425_s8 + $0x178] sm:$0xff]  ;;  %v23914_v36 = vand.u32 4294901760, %v22342_v27 }
0x1b28   :  { %12348 = vmatmul.mubr.f32.vlgmr.msra.gmra.mrb[78].mxu1 %v22284_v52  ;;  %18466 = vmatprep.subr.bf16.mxu0 %v22464_v19  ;;  %v23639_v0 = vand.u32 4294901760, %v22555_v62 }
0x1b29   :  { %18364 = vmatpush3.bf16.msra.mxu1 %v22039_v5  ;;  %12590 = vmatprep.mubr.f32.mxu1 %v12107_v12  ;;  %23902 = vst [vmem:[#allocation12_spill] sm:$0xff] %v22538_v25  ;;  %v23624_v12 = vand.u32 4294901760, %v22512_v60 }
0x1b2a   :  { %18366 = vmatprep.subr.bf16.mxu1 %v22048_v42  ;;  %v22621_v19 = vpack.c.bf16 %v23638_v43, %v23639_v0  ;;  %v22640_v0 = vld [vmem:[%s23425_s8 + $0x170] sm:$0xff]  ;;  %v23651_v43 = vand.u32 4294901760, %v22645_v45 }
0x1b2b   :  { %18468 = vmatpush3.bf16.msra.mxu0 %v22495_v18  ;;  %v22579_v15 = vpack.c.bf16 %v23623_v16, %v23624_v12  ;;  %v22597_v16 = vld [vmem:[%s23425_s8 + $0x160] sm:$0xff]  ;;  %v22602_v12 = vld [vmem:[%s23425_s8 + $0x168] sm:$0xff]  ;;  %v23920_v50 = vand.u32 4294901760, %v22640_v0 }
0x1b2c   :  { %18470 = vmatprep.subr.bf16.mxu0 %v22505_v6  ;;  %v23906_v6 = vand.u32 4294901760, %v22530_v58  ;;  %23908 = vst [vmem:[#allocation4_spill] sm:$0xff] %v22621_v19 }
0x1b2d   :  { %18368 = vmatpush3.bf16.msra.mxu1 %v22065_v33  ;;  %23904 = vst [vmem:[#allocation20_spill] sm:$0xff] %v22579_v15 }
0x1b2e   :  { %18370 = vmatprep.subr.bf16.mxu1 %v22071_v53  ;;  %v22590_v18 = vpack.c.bf16 %v23906_v6, %v23625_v46  ;;  %v22608_v6 = vld [vmem:[%s23425_s8 + $0x1f0] sm:$0xff]  ;;  %v22613_v46 = vld [vmem:[%s23425_s8 + $0x1f8] sm:$0xff] }
0x1b2f   :  { %18472 = vmatpush3.bf16.msra.mxu0 %v22538_v25  ;;  %v23648_v25 = vand.u32 4294901760, %v22597_v16 }
0x1b30   :  { %18474 = vmatprep.subr.bf16.mxu0 %v22548_v24  ;;  %23907 = vst [vmem:[#allocation3_spill] sm:$0xff] %v22590_v18  ;;  %v23647_v24 = vand.u32 4294901760, %v22602_v12 }
0x1b31   :  { %18372 = vmatpush3.bf16.msra.mxu1 %v22080_v34 }
0x1b32   :  { %18374 = vmatprep.subr.bf16.mxu1 %v22087_v10 }
0x1b33   :  { %18476 = vmatpush3.bf16.msra.mxu0 %v22579_v15  ;;  %v22633_v15 = vpack.c.bf16 %v23910_v11, %v23909_v8  ;;  %v22654_v11 = vpack.c.bf16 %v23647_v24, %v23648_v25  ;;  %v23915_v24 = vand.u32 4294901760, %v22608_v6  ;;  %v23916_v25 = vand.u32 4294901760, %v22613_v46 }
0x1b34   :  { %18478 = vmatprep.subr.bf16.mxu0 %v22590_v18  ;;  %v23913_v18 = vand.u32 4294901760, %v22337_v3 }
0x1b35   :  { %23911 = vst [vmem:[#allocation5_spill] sm:$0xff] %v22633_v15  ;;  %18376 = vmatpush3.bf16.msra.mxu1 %v22097_v37  ;;  %23912 = vst [vmem:[#allocation6_spill] sm:$0xff] %v22654_v11  ;;  %v22674_v8 = vpack.c.bf16 %v23916_v25, %v23915_v24  ;;  %v22693_v24 = vpack.c.bf16 %v23651_v43, %v23920_v50  ;;  %v23921_v25 = vand.u32 4294901760, %v22364_v13  ;;  %v23926_v43 = vand.u32 4294901760, %v22401_v23 }
0x1b36   :  { %18378 = vmatprep.subr.bf16.mxu1 %v22205_v14  ;;  %v22662_v59 = vsub.f32 %v22337_v3, %v23913_v18  ;;  %v23918_v3 = vand.u32 4294901760, %v22352_v38 }
0x1b37   :  { %18480 = vmatpush3.bf16.msra.mxu0 %v22621_v19  ;;  %v22667_v19 = vsub.f32 %v22342_v27, %v23914_v36  ;;  %23917 = vst [vmem:[#allocation7_spill] sm:$0xff] %v22674_v8  ;;  %v23919_v27 = vand.u32 4294901760, %v22357_v44 }
0x1b38   :  { %18482 = vmatprep.subr.bf16.mxu0 %v22633_v15  ;;  %v22681_v18 = vsub.f32 %v22352_v38, %v23918_v3  ;;  %v22698_v15 = vsub.f32 %v22364_v13, %v23921_v25  ;;  %v23922_v38 = vand.u32 4294901760, %v22369_v20  ;;  %v23924_v13 = vand.u32 4294901760, %v22387_v7 }
0x1b39   :  { %18380 = vmatpush3.bf16.msra.mxu1 %v22218_v2  ;;  %v22686_v36 = vsub.f32 %v22357_v44, %v23919_v27  ;;  %v23923_v44 = vand.u32 4294901760, %v22626_v29  ;;  %v18521_v50 = vpack.c.bf16 %v22667_v19, %v22662_v59 }
0x1b3a   :  { %18382 = vmatprep.subr.bf16.mxu1 %v22229_v21  ;;  %v22703_v3 = vsub.f32 %v22369_v20, %v23922_v38  ;;  %v22716_v25 = vsub.f32 %v22387_v7, %v23924_v13  ;;  %v23925_v20 = vand.u32 4294901760, %v22392_v63 }
0x1b3b   :  { %18484 = vmatpush3.bf16.msra.mxu0 %v22654_v11  ;;  %v12976_v27 = vsub.f32 %v22626_v29, %v23923_v44  ;;  %v18523_v44 = vpack.c.bf16 %v22686_v36, %v22681_v18  ;;  %v23927_v11 = vand.u32 4294901760, %v22406_v57 }
0x1b3c   :  { %18486 = vmatprep.subr.bf16.mxu0 %v22674_v8  ;;  %v22721_v38 = vsub.f32 %v22392_v63, %v23925_v20  ;;  %v22729_v8 = vsub.f32 %v22401_v23, %v23926_v43  ;;  %v18525_v63 = vpack.c.bf16 %v22703_v3, %v22698_v15  ;;  %v23928_v20 = vand.u32 4294901760, %v22430_v48 }
0x1b3d   :  { %18384 = vmatpush3.bf16.msra.mxu1 %v22236_v26  ;;  %v22734_v7 = vsub.f32 %v22406_v57, %v23927_v11  ;;  %v12977_v13 = vand.u32 4294901760, %v12976_v27  ;;  %v23929_v23 = vand.u32 4294901760, %v22435_v4  ;;  %v23930_v27 = vand.u32 4294901760, %v22441_v35 }
0x1b3e   :  { %18386 = vmatprep.subr.bf16.mxu1 %v22245_v61  ;;  %v22743_v43 = vsub.f32 %v22430_v48, %v23928_v20  ;;  %v18527_v11 = vpack.c.bf16 %v22721_v38, %v22716_v25 }
0x1b3f   :  { %18488 = vmatpush3.bf16.msra.mxu0 %v22693_v24  ;;  %v22748_v57 = vsub.f32 %v22435_v4, %v23929_v23  ;;  %v18529_v4 = vpack.c.bf16 %v22734_v7, %v22729_v8 }
0x1b40   :  { %18522 = vmatprep.subr.bf16.mxu0 %v18521_v50  ;;  %v22756_v50 = vsub.f32 %v22441_v35, %v23930_v27  ;;  %v23933_v35 = vand.u32 4294901760, %v22476_v31 }
0x1b41   :  { %18388 = vmatpush3.bf16.msra.mxu1 %v22254_v30 }
0x1b42   :  { %12978 = vmatmul.mubr.f32.vlgmr.msra.gmra.mrb[60].mxu0 %v12977_v13  ;;  %18390 = vmatprep.subr.bf16.mxu1 %v22261_v56  ;;  %v23931_v13 = vand.u32 4294901760, %v22446_v9  ;;  %v22775_v23 = vsub.f32 %v22476_v31, %v23933_v35 }
0x1b43   :  { %18524 = vmatpush3.bf16.msra.mxu0 %v18523_v44  ;;  %13345 = vmatprep.mubr.f32.mxu0 %v22331_v49  ;;  %v23932_v44 = vand.u32 4294901760, %v22471_v39 }
0x1b44   :  { %v22761_v48 = vsub.f32 %v22446_v9, %v23931_v13  ;;  %18526 = vmatprep.subr.bf16.mxu0 %v18525_v63  ;;  %v18531_v9 = vpack.c.bf16 %v22748_v57, %v22743_v43  ;;  %v23934_v63 = vand.u32 4294901760, %v22482_v1 }
0x1b45   :  { %18392 = vmatpush3.bf16.msra.mxu1 %v22268_v40  ;;  %v22770_v20 = vsub.f32 %v22471_v39, %v23932_v44  ;;  %v23936_v39 = vld [vmem:[#allocation24_spill] sm:$0xff] }
0x1b46   :  { %18426 = vmatprep.subr.bf16.mxu1 %v22032_v41  ;;  %v22782_v27 = vsub.f32 %v22482_v1, %v23934_v63  ;;  %v23935_v41 = vand.u32 4294901760, %v22487_v22  ;;  %v23937_v44 = vand.u32 4294901760, %v23936_v39  ;;  %v18533_v31 = vpack.c.bf16 %v22761_v48, %v22756_v50 }
0x1b47   :  { %18528 = vmatpush3.bf16.msra.mxu0 %v18527_v11  ;;  %v23938_v1 = vand.u32 4294901760, %v22512_v60  ;;  %v23944_v39 = vand.u32 4294901760, %v22566_v47 }
0x1b48   :  { %v22787_v13 = vsub.f32 %v22487_v22, %v23935_v41  ;;  %12594 = vmatmul.mubr.f32.vlgmr.msra.gmra.mrb[80].mxu1 %v23937_v44  ;;  %18530 = vmatprep.subr.bf16.mxu0 %v18529_v4  ;;  %v23939_v22 = vand.u32 4294901760, %v22517_v28  ;;  %v18535_v4 = vpack.c.bf16 %v22775_v23, %v22770_v20 }
0x1b49   :  { %18428 = vmatpush3.bf16.msra.mxu1 %v22039_v5  ;;  %12864 = vmatprep.mubr.f32.mxu1 %v22286_v32  ;;  %v22799_v11 = vsub.f32 %v22512_v60, %v23938_v1  ;;  %v23940_v5 = vand.u32 4294901760, %v22525_v51 }
0x1b4a   :  { %18430 = vmatprep.subr.bf16.mxu1 %v22048_v42  ;;  %v22804_v35 = vsub.f32 %v22517_v28, %v23939_v22  ;;  %v23941_v42 = vand.u32 4294901760, %v22530_v58  ;;  %v18537_v60 = vpack.c.bf16 %v22787_v13, %v22782_v27  ;;  %v23942_v28 = vand.u32 4294901760, %v22555_v62 }
0x1b4b   :  { %18532 = vmatpush3.bf16.msra.mxu0 %v18531_v9  ;;  %v22811_v32 = vsub.f32 %v22525_v51, %v23940_v5  ;;  %v23943_v51 = vand.u32 4294901760, %v22560_v55  ;;  %v23948_v22 = vand.u32 4294901760, %v22608_v6 }
0x1b4c   :  { %v22816_v63 = vsub.f32 %v22530_v58, %v23941_v42  ;;  %18534 = vmatprep.subr.bf16.mxu0 %v18533_v31  ;;  %v22825_v9 = vsub.f32 %v22555_v62, %v23942_v28  ;;  %v18539_v58 = vpack.c.bf16 %v22804_v35, %v22799_v11  ;;  %v12993_v28 = vand.u32 4294901760, %v22686_v36 }
0x1b4d   :  { %18432 = vmatpush3.bf16.msra.mxu1 %v22065_v33  ;;  %v22830_v41 = vsub.f32 %v22560_v55, %v23943_v51  ;;  %v22837_v33 = vsub.f32 %v22566_v47, %v23944_v39  ;;  %v23946_v55 = vand.u32 4294901760, %v22597_v16  ;;  %v23947_v47 = vand.u32 4294901760, %v22602_v12 }
0x1b4e   :  { %18434 = vmatprep.subr.bf16.mxu1 %v22071_v53  ;;  %v23945_v53 = vand.u32 4294901760, %v22571_v54  ;;  %v18541_v62 = vpack.c.bf16 %v22816_v63, %v22811_v32 }
0x1b4f   :  { %18536 = vmatpush3.bf16.msra.mxu0 %v18535_v4  ;;  %v22851_v31 = vsub.f32 %v22597_v16, %v23946_v55  ;;  %v22856_v1 = vsub.f32 %v22602_v12, %v23947_v47  ;;  %v23950_v12 = vand.u32 4294901760, %v22640_v0  ;;  %v13119_v55 = vand.u32 4294901760, %v22703_v3 }
0x1b50   :  { %v22842_v44 = vsub.f32 %v22571_v54, %v23945_v53  ;;  %18538 = vmatprep.subr.bf16.mxu0 %v18537_v60  ;;  %v18543_v54 = vpack.c.bf16 %v22830_v41, %v22825_v9  ;;  %v13098_v60 = vand.u32 4294901760, %v22662_v59  ;;  %v12994_v53 = vsub.f32 %v22686_v36, %v12993_v28 }
0x1b51   :  { %18436 = vmatpush3.bf16.msra.mxu1 %v22080_v34  ;;  %v22863_v34 = vsub.f32 %v22608_v6, %v23948_v22  ;;  %v22876_v5 = vsub.f32 %v22640_v0, %v23950_v12  ;;  %v23951_v6 = vand.u32 4294901760, %v22645_v45  ;;  %v13120_v36 = vsub.f32 %v22703_v3, %v13119_v55 }
0x1b52   :  { %18438 = vmatprep.subr.bf16.mxu1 %v22087_v10  ;;  %v23949_v10 = vand.u32 4294901760, %v22613_v46  ;;  %v18545_v16 = vpack.c.bf16 %v22842_v44, %v22837_v33 }
0x1b53   :  { %18540 = vmatpush3.bf16.msra.mxu0 %v18539_v58  ;;  %v22882_v42 = vsub.f32 %v22645_v45, %v23951_v6  ;;  %v13099_v45 = vsub.f32 %v22662_v59, %v13098_v60  ;;  %v13000_v59 = vand.u32 4294901760, %v22716_v25 }
0x1b54   :  { %v22868_v4 = vsub.f32 %v22613_v46, %v23949_v10  ;;  %18542 = vmatprep.subr.bf16.mxu0 %v18541_v62  ;;  %v18547_v46 = vpack.c.bf16 %v22856_v1, %v22851_v31  ;;  %v13112_v62 = vand.u32 4294901760, %v22698_v15  ;;  %v12995_v10 = vand.u32 4294901760, %v12994_v53 }
0x1b55   :  { %18440 = vmatpush3.bf16.msra.mxu1 %v22097_v37  ;;  %v13105_v37 = vand.u32 4294901760, %v22667_v19  ;;  %v18551_v58 = vpack.c.bf16 %v22882_v42, %v22876_v5  ;;  %v13001_v6 = vsub.f32 %v22716_v25, %v13000_v59  ;;  %v13121_v25 = vand.u32 4294901760, %v13120_v36 }
0x1b56   :  { %18442 = vmatprep.subr.bf16.mxu1 %v22205_v14  ;;  %v18549_v0 = vpack.c.bf16 %v22868_v4, %v22863_v34  ;;  %v12986_v14 = vand.u32 4294901760, %v22681_v18  ;;  %v18589_v12 = vpack.c.bf16 %v13119_v55, %v13112_v62 }
0x1b57   :  { %18544 = vmatpush3.bf16.msra.mxu0 %v18543_v54  ;;  %v13106_v51 = vsub.f32 %v22667_v19, %v13105_v37  ;;  %v13100_v19 = vand.u32 4294901760, %v13099_v45 }
0x1b58   :  { %18546 = vmatprep.subr.bf16.mxu0 %v18545_v16  ;;  %v12987_v39 = vsub.f32 %v22681_v18, %v12986_v14  ;;  %v18587_v54 = vpack.c.bf16 %v12993_v28, %v12986_v14  ;;  %v13113_v18 = vsub.f32 %v22698_v15, %v13112_v62  ;;  %v13126_v16 = vand.u32 4294901760, %v22729_v8 }
0x1b59   :  { %18444 = vmatpush3.bf16.msra.mxu1 %v22218_v2  ;;  %v18585_v2 = vpack.c.bf16 %v13105_v37, %v13098_v60  ;;  %v13107_v47 = vand.u32 4294901760, %v13106_v51  ;;  %v13014_v37 = vand.u32 4294901760, %v22743_v43  ;;  %v13140_v28 = vand.u32 4294901760, %v22756_v50 }
0x1b5a   :  { %18446 = vmatprep.subr.bf16.mxu1 %v22229_v21  ;;  %v13007_v21 = vand.u32 4294901760, %v22721_v38  ;;  %v12988_v22 = vand.u32 4294901760, %v12987_v39  ;;  %v13127_v15 = vsub.f32 %v22729_v8, %v13126_v16  ;;  %v13114_v14 = vand.u32 4294901760, %v13113_v18 }
0x1b5b   :  { %18548 = vmatpush3.bf16.msra.mxu0 %v18547_v46  ;;  %v18489_v60 = vpack.c.bf16 %v13107_v47, %v13100_v19  ;;  %v13147_v8 = vand.u32 4294901760, %v22761_v48  ;;  %v13035_v39 = vand.u32 4294901760, %v22775_v23  ;;  %v13141_v55 = vsub.f32 %v22756_v50, %v13140_v28 }
0x1b5c   :  { %18550 = vmatprep.subr.bf16.mxu0 %v18549_v0  ;;  %v13008_v46 = vsub.f32 %v22721_v38, %v13007_v21  ;;  %v13021_v0 = vand.u32 4294901760, %v22748_v57  ;;  %v13128_v53 = vand.u32 4294901760, %v13127_v15  ;;  %v18493_v62 = vpack.c.bf16 %v13121_v25, %v13114_v14 }
0x1b5d   :  { %18448 = vmatpush3.bf16.msra.mxu1 %v22236_v26  ;;  %v13133_v26 = vand.u32 4294901760, %v22734_v7  ;;  %v18597_v19 = vpack.c.bf16 %v13147_v8, %v13140_v28  ;;  %v13036_v50 = vsub.f32 %v22775_v23, %v13035_v39  ;;  %v13168_v23 = vand.u32 4294901760, %v22811_v32 }
0x1b5e   :  { %18450 = vmatprep.subr.bf16.mxu1 %v22245_v61  ;;  %v18591_v61 = vpack.c.bf16 %v13007_v21, %v13000_v59  ;;  %v13009_v45 = vand.u32 4294901760, %v13008_v46  ;;  %v13022_v51 = vsub.f32 %v22748_v57, %v13021_v0  ;;  %v13148_v59 = vsub.f32 %v22761_v48, %v13147_v8 }
0x1b5f   :  { %18552 = vmatpush3.bf16.msra.mxu0 %v18551_v58  ;;  %v13134_v3 = vsub.f32 %v22734_v7, %v13133_v26  ;;  %v18593_v38 = vpack.c.bf16 %v13133_v26, %v13126_v16  ;;  %v13002_v7 = vand.u32 4294901760, %v13001_v6  ;;  %v13028_v58 = vand.u32 4294901760, %v22770_v20 }
0x1b60   :  { %18586 = vmatprep.subr.bf16.mxu0 %v18585_v2  ;;  %v13154_v57 = vand.u32 4294901760, %v22782_v27  ;;  %v13023_v18 = vand.u32 4294901760, %v13022_v51  ;;  %v13042_v16 = vand.u32 4294901760, %v22799_v11  ;;  %v13142_v26 = vand.u32 4294901760, %v13141_v55 }
0x1b61   :  { %18452 = vmatpush3.bf16.msra.mxu1 %v22254_v30  ;;  %v18491_v30 = vpack.c.bf16 %v12995_v10, %v12988_v22  ;;  %v13135_v2 = vand.u32 4294901760, %v13134_v3  ;;  %v13029_v36 = vsub.f32 %v22770_v20, %v13028_v58  ;;  %v18495_v48 = vpack.c.bf16 %v13009_v45, %v13002_v7 }
0x1b62   :  { %13348 = vmatmul.mubr.f32.vlgmr.msra.gmra.mrb[62].mxu0 %v22626_v29  ;;  %18454 = vmatprep.subr.bf16.mxu1 %v22261_v56  ;;  %v13015_v56 = vsub.f32 %v22743_v43, %v13014_v37  ;;  %v18595_v43 = vpack.c.bf16 %v13021_v0, %v13014_v37  ;;  %v18599_v22 = vpack.c.bf16 %v13035_v39, %v13028_v58  ;;  %v13049_v20 = vand.u32 4294901760, %v22804_v35 }
0x1b63   :  { %18588 = vmatpush3.bf16.msra.mxu0 %v18587_v54  ;;  %13622 = vmatprep.mubr.f32.mxu0 %v22324_v17  ;;  %v18497_v10 = vpack.c.bf16 %v13135_v2, %v13128_v53  ;;  %v13030_v15 = vand.u32 4294901760, %v13029_v36  ;;  %v13037_v3 = vand.u32 4294901760, %v13036_v50  ;;  %v13056_v37 = vand.u32 4294901760, %v22825_v9 }
0x1b64   :  { %18590 = vmatprep.subr.bf16.mxu0 %v18589_v12  ;;  %v13016_v54 = vand.u32 4294901760, %v13015_v56  ;;  %v13149_v12 = vand.u32 4294901760, %v13148_v59  ;;  %v13043_v0 = vsub.f32 %v22799_v11, %v13042_v16  ;;  %v18603_v8 = vpack.c.bf16 %v13049_v20, %v13042_v16 }
0x1b65   :  { %18456 = vmatpush3.bf16.msra.mxu1 %v22268_v40  ;;  %v13161_v40 = vand.u32 4294901760, %v22787_v13  ;;  %v13182_v7 = vand.u32 4294901760, %v22837_v33  ;;  %v13189_v45 = vand.u32 4294901760, %v22842_v44  ;;  %v18503_v11 = vpack.c.bf16 %v13037_v3, %v13030_v15  ;;  %v22982_v3 = vld [vmem:[%s23425_s8 + $0x210] sm:$0xff] }
0x1b66   :  { %18490 = vmatprep.subr.bf16.mxu1 %v18489_v60  ;;  %v18499_v60 = vpack.c.bf16 %v13023_v18, %v13016_v54  ;;  %v18501_v25 = vpack.c.bf16 %v13149_v12, %v13142_v26  ;;  %v13091_v16 = vand.u32 4294901760, %v22882_v42 }
0x1b67   :  { %18592 = vmatpush3.bf16.msra.mxu0 %v18591_v61  ;;  %v22929_v21 = vpop.f32.mrb[74].mxu1  ;;  %v13162_v6 = vsub.f32 %v22787_v13, %v13161_v40  ;;  %v18601_v46 = vpack.c.bf16 %v13161_v40, %v13154_v57  ;;  %v13175_v61 = vand.u32 4294901760, %v22816_v63  ;;  %v13169_v13 = vsub.f32 %v22811_v32, %v13168_v23 }
0x1b68   :  { %12866 = vmatmul.mubr.f32.vlgmr.msra.gmra.mrb[82].mxu1 %v22284_v52  ;;  %v16974_v47 = vpop.f32.mrb[75].mxu1  ;;  %18594 = vmatprep.subr.bf16.mxu0 %v18593_v38  ;;  %v13155_v52 = vsub.f32 %v22782_v27, %v13154_v57  ;;  %v13050_v27 = vsub.f32 %v22804_v35, %v13049_v20  ;;  %v13057_v35 = vsub.f32 %v22825_v9, %v13056_v37  ;;  %v13077_v9 = vand.u32 4294901760, %v22856_v1 }
0x1b69   :  { %18492 = vmatpush3.bf16.msra.mxu1 %v18491_v30  ;;  %13208 = vmatprep.mubr.f32.mxu1 %v22324_v17  ;;  %v13176_v14 = vsub.f32 %v22816_v63, %v13175_v61  ;;  %v13063_v30 = vand.u32 4294901760, %v22830_v41  ;;  %v13163_v28 = vand.u32 4294901760, %v13162_v6  ;;  %v18605_v56 = vpack.c.bf16 %v13175_v61, %v13168_v23 }
0x1b6a   :  { %18494 = vmatprep.subr.bf16.mxu1 %v18493_v62  ;;  %v13156_v38 = vand.u32 4294901760, %v13155_v52  ;;  %v13044_v63 = vand.u32 4294901760, %v13043_v0  ;;  %v13051_v51 = vand.u32 4294901760, %v13050_v27  ;;  %v13170_v58 = vand.u32 4294901760, %v13169_v13 }
0x1b6b   :  { %18596 = vmatpush3.bf16.msra.mxu0 %v18595_v43  ;;  %v13064_v32 = vsub.f32 %v22830_v41, %v13063_v30  ;;  %v13177_v39 = vand.u32 4294901760, %v13176_v14  ;;  %v13183_v2 = vsub.f32 %v22837_v33, %v13182_v7  ;;  %v13190_v62 = vsub.f32 %v22842_v44, %v13189_v45 }
0x1b6c   :  { %18598 = vmatprep.subr.bf16.mxu0 %v18597_v19  ;;  %v18505_v53 = vpack.c.bf16 %v13163_v28, %v13156_v38  ;;  %v18607_v55 = vpack.c.bf16 %v13063_v30, %v13056_v37  ;;  %v18609_v59 = vpack.c.bf16 %v13189_v45, %v13182_v7  ;;  %v13070_v43 = vand.u32 4294901760, %v22851_v31  ;;  %v23952_v30 = vld [vmem:[#allocation2_spill] sm:$0xff]  ;;  %v23003_v7 = vld [vmem:[%s23425_s8 + $0x228] sm:$0xff] }
0x1b6d   :  { %18496 = vmatpush3.bf16.msra.mxu1 %v18495_v48  ;;  %v13058_v41 = vand.u32 4294901760, %v13057_v35  ;;  %v13065_v19 = vand.u32 4294901760, %v13064_v32  ;;  %v13196_v57 = vand.u32 4294901760, %v22863_v34  ;;  %v13203_v40 = vand.u32 4294901760, %v22868_v4 }
0x1b6e   :  { %18498 = vmatprep.subr.bf16.mxu1 %v18497_v10  ;;  %v18507_v47 = vpack.c.bf16 %v13051_v51, %v13044_v63  ;;  %v18509_v54 = vpack.c.bf16 %v13177_v39, %v13170_v58  ;;  %v13071_v33 = vsub.f32 %v22851_v31, %v13070_v43  ;;  %v13078_v44 = vsub.f32 %v22856_v1, %v13077_v9  ;;  %v22968_v31 = vld [vmem:[%s23425_s8 + $0x200] sm:$0xff]  ;;  %v22973_v1 = vld [vmem:[%s23425_s8 + $0x208] sm:$0xff]  ;;  %v23018_v39 = vld [vmem:[%s23425_s8 + $0x230] sm:$0xff] }
0x1b6f   :  { %18600 = vmatpush3.bf16.msra.mxu0 %v18599_v22  ;;  %v13184_v18 = vand.u32 4294901760, %v13183_v2  ;;  %v13191_v36 = vand.u32 4294901760, %v13190_v62  ;;  %v13197_v50 = vsub.f32 %v22863_v34, %v13196_v57  ;;  %v13204_v48 = vsub.f32 %v22868_v4, %v13203_v40  ;;  %v23956_v51 = vld [vmem:[#allocation22_spill] sm:$0xff]  ;;  %v23957_v2 = vld [vmem:[#allocation23_spill] sm:$0xff] }
0x1b70   :  { %18602 = vmatprep.subr.bf16.mxu0 %v18601_v46  ;;  %v18611_v22 = vpack.c.bf16 %v13077_v9, %v13070_v43  ;;  %v13084_v10 = vand.u32 4294901760, %v22876_v5  ;;  %v18511_v26 = vpack.c.bf16 %v13065_v19, %v13058_v41  ;;  %v18613_v12 = vpack.c.bf16 %v13203_v40, %v13196_v57  ;;  %v23037_v9 = vld [vmem:[%s23425_s8 + $0x240] sm:$0xff]  ;;  %v23042_v41 = vld [vmem:[%s23425_s8 + $0x248] sm:$0xff]  ;;  %v23958_v19 = vld [vmem:[#allocation25_spill] sm:$0xff] }
0x1b71   :  { %18500 = vmatpush3.bf16.msra.mxu1 %v18499_v60  ;;  %v13072_v34 = vand.u32 4294901760, %v13071_v33  ;;  %v13079_v4 = vand.u32 4294901760, %v13078_v44  ;;  %v13092_v6 = vsub.f32 %v22882_v42, %v13091_v16  ;;  %v18513_v46 = vpack.c.bf16 %v13191_v36, %v13184_v18  ;;  %v23064_v44 = vld [vmem:[%s23425_s8 + $0x258] sm:$0xff]  ;;  %v23961_v18 = vld [vmem:[#allocation14_spill] sm:$0xff] }
0x1b72   :  { %18502 = vmatprep.subr.bf16.mxu1 %v18501_v25  ;;  %v13085_v52 = vsub.f32 %v22876_v5, %v13084_v10  ;;  %v13198_v20 = vand.u32 4294901760, %v13197_v50  ;;  %v13205_v23 = vand.u32 4294901760, %v13204_v48  ;;  %v18615_v61 = vpack.c.bf16 %v13091_v16, %v13084_v10  ;;  %v22987_v5 = vld [vmem:[%s23425_s8 + $0x218] sm:$0xff]  ;;  %v23962_v48 = vld [vmem:[#allocation15_spill] sm:$0xff] }
0x1b73   :  { %18604 = vmatpush3.bf16.msra.mxu0 %v18603_v8  ;;  %v13734_v60 = vand.u32 4294901760, %v22968_v31  ;;  %v13737_v15 = vand.u32 4294901760, %v22973_v1  ;;  %v18515_v42 = vpack.c.bf16 %v13079_v4, %v13072_v34  ;;  %v13093_v0 = vand.u32 4294901760, %v13092_v6  ;;  %v22998_v8 = vld [vmem:[%s23425_s8 + $0x220] sm:$0xff] }
0x1b74   :  { %18606 = vmatprep.subr.bf16.mxu0 %v18605_v56  ;;  %v13086_v37 = vand.u32 4294901760, %v13085_v52  ;;  %v18517_v27 = vpack.c.bf16 %v13205_v23, %v13198_v20  ;;  %v13740_v14 = vand.u32 4294901760, %v22982_v3  ;;  %v13743_v25 = vand.u32 4294901760, %v22987_v5  ;;  %v23964_v52 = vld [vmem:[#allocation11_spill] sm:$0xff] }
0x1b75   :  { %18504 = vmatpush3.bf16.msra.mxu1 %v18503_v11  ;;  %v22989_v13 = vpack.c.bf16 %v13737_v15, %v13734_v60  ;;  %v10076_v38 = vsub.s32 4, %v23952_v30  ;;  %v23953_v28 = vmov 0.0|0.0   ;;  %v23954_v11 = vld [vmem:[#allocation19_spill] sm:$0xff]  ;;  %v13746_v35 = vand.u32 4294901760, %v22998_v8 }
0x1b76   :  { %18506 = vmatprep.subr.bf16.mxu1 %v18505_v53  ;;  %v18519_v45 = vpack.c.bf16 %v13093_v0, %v13086_v37  ;;  %v23007_v56 = vpack.c.bf16 %v13743_v25, %v13740_v14  ;;  %v13749_v32 = vand.u32 4294901760, %v23003_v7  ;;  %v23955_v63 = vmov 0.0   ;;  %v23023_v53 = vld [vmem:[%s23425_s8 + $0x238] sm:$0xff] }
0x1b77   :  { %18608 = vmatpush3.bf16.msra.mxu0 %v18607_v55  ;;  %v10077_v58 = vrot.slane %v23956_v51, %v10076_v38  ;;  %v13752_v55 = vand.u32 4294901760, %v23018_v39  ;;  %v23959_v57 = vand.u32 4294901760, %v22331_v49  ;;  %v23059_v49 = vld [vmem:[%s23425_s8 + $0x250] sm:$0xff]  ;;  %v23068_v36 = vsub.f32 %v22968_v31, %v13734_v60  ;;  %v23090_v31 = vld [vmem:[%s23425_s8 + $0x268] sm:$0xff]  ;;  %v23966_v37 = vld [vmem:[#allocation21_spill] sm:$0xff] }
0x1b78   :  { %18610 = vmatprep.subr.bf16.mxu0 %v18609_v59  ;;  %v23027_v62 = vpack.c.bf16 %v13749_v32, %v13746_v35  ;;  %v13755_v59 = vand.u32 4294901760, %v23023_v53  ;;  %v23071_v50 = vsub.f32 %v22973_v1, %v13737_v15  ;;  %v13764_v10 = vand.u32 4294901760, %v23059_v49  ;;  %v23963_v1 = vld [vmem:[#allocation10_spill] sm:$0xff]  ;;  %v23116_v15 = vld [vmem:[%s23425_s8 + $0x270] sm:$0xff] }
0x1b79   :  { %18508 = vmatpush3.bf16.msra.mxu1 %v18507_v47  ;;  %v18807_v43 = vadd.f32 %v22929_v21, %v10077_v58  ;;  %v23960_v21 = vld [vmem:[#allocation8_spill] sm:$0xff]  ;;  %v13758_v47 = vand.u32 4294901760, %v23037_v9  ;;  %v13767_v16 = vand.u32 4294901760, %v23064_v44  ;;  %v23094_v34 = vsub.f32 %v22982_v3, %v13740_v14  ;;  %v23121_v3 = vld [vmem:[%s23425_s8 + $0x278] sm:$0xff] }
0x1b7a   :  { %18510 = vmatprep.subr.bf16.mxu1 %v18509_v54  ;;  %v23051_v40 = vpack.c.bf16 %v13755_v59, %v13752_v55  ;;  %v13761_v54 = vand.u32 4294901760, %v23042_v41  ;;  %v23097_v4 = vsub.f32 %v22987_v5, %v13743_v25  ;;  %v23659_v6 = vand.u32 4294901760, %v23068_v36 }
0x1b7b   :  { %18612 = vmatpush3.bf16.msra.mxu0 %v18611_v22  ;;  %v11921_v33 = vmax.f32 %v18807_v43, 0.0  ;;  %v23105_v20 = vpack.c.bf16 %v13767_v16, %v13764_v10  ;;  %v23124_v5 = vsub.f32 %v22998_v8, %v13746_v35  ;;  %v23658_v14 = vand.u32 4294901760, %v23094_v34 }
0x1b7c   :  { %18614 = vmatprep.subr.bf16.mxu0 %v18613_v12  ;;  %v23075_v22 = vpack.c.bf16 %v13761_v54, %v13758_v47  ;;  %v23085_v12 = vld [vmem:[%s23425_s8 + $0x260] sm:$0xff]  ;;  %v13828_v0 = vsub.f32 %v23068_v36, %v23659_v6  ;;  %v23657_v25 = vand.u32 4294901760, %v23097_v4  ;;  %v23137_v30 = vsub.f32 %v23003_v7, %v13749_v32  ;;  %v23967_v7 = vld [vmem:[#allocation20_spill] sm:$0xff]  ;;  %v23968_v32 = vld [vmem:[#allocation3_spill] sm:$0xff] }
0x1b7d   :  { %18512 = vmatpush3.bf16.msra.mxu1 %v18511_v26  ;;  %v23079_v26 = vand.u32 4294901760, %v11921_v33  ;;  %v23665_v23 = vand.u32 4294901760, %v23085_v12  ;;  %v13776_v8 = vand.u32 4294901760, %v23116_v15  ;;  %v23151_v51 = vsub.f32 %v23018_v39, %v13752_v55 }
0x1b7e   :  { %18514 = vmatprep.subr.bf16.mxu1 %v18513_v46  ;;  %v23656_v46 = vand.u32 4294901760, %v23071_v50  ;;  %v13829_v58 = vand.u32 4294901760, %v13828_v0  ;;  %v23664_v55 = vand.u32 4294901760, %v23124_v5  ;;  %v23663_v0 = vand.u32 4294901760, %v23137_v30 }
0x1b7f   :  { %18616 = vmatpush3.bf16.msra.mxu0 %v18615_v61  ;;  %v23661_v61 = vand.u32 4294901760, %v23090_v31  ;;  %v23110_v60 = vsub.f32 %v11921_v33, %v23079_v26  ;;  %v13849_v33 = vsub.f32 %v23097_v4, %v23657_v25  ;;  %v23178_v25 = vsub.f32 %v23037_v9, %v13758_v47 }
0x1b80   :  { %18649 = vmatprep.subr.bf16.mxu0 %v23953_v28  ;;  %v13863_v9 = vsub.f32 %v23137_v30, %v23663_v0  ;;  %v23666_v47 = vand.u32 4294901760, %v23151_v51 }
0x1b81   :  { %18516 = vmatpush3.bf16.msra.mxu1 %v18515_v42  ;;  %v23965_v42 = vld [vmem:[#allocation12_spill] sm:$0xff]  ;;  %v23144_v38 = vpack.c.bf16 %v23661_v61, %v23665_v23  ;;  %v23662_v35 = vand.u32 4294901760, %v23110_v60  ;;  %v13850_v61 = vand.u32 4294901760, %v13849_v33  ;;  %v23972_v33 = vld [vmem:[#allocation7_spill] sm:$0xff] }
0x1b82   :  { %13624 = vmatmul.mubr.f32.vlgmr.msra.gmra.mrb[64].mxu0 %v23954_v11  ;;  %18518 = vmatprep.subr.bf16.mxu1 %v18517_v27  ;;  %v13835_v27 = vsub.f32 %v23071_v50, %v23656_v46  ;;  %v23164_v46 = vsub.f32 %v23023_v53, %v13755_v59  ;;  %v23969_v53 = vld [vmem:[#allocation4_spill] sm:$0xff]  ;;  %v23182_v59 = vsub.f32 %v23042_v41, %v13761_v54  ;;  %v13864_v41 = vand.u32 4294901760, %v13863_v9 }
0x1b83   :  { %18651 = vmatpush3.bf16.msra.mxu0 %v22989_v13  ;;  %17007 = vmatprep.mubr.msk.f32.mxu0 %vm19134_vm6, %v23955_v63 }
0x1b84   :  { %18652 = vmatprep.subr.bf16.mxu0 %v23953_v28  ;;  %v13836_v43 = vand.u32 4294901760, %v13835_v27  ;;  %v13817_v27 = vsub.f32 %v23110_v60, %v23662_v35  ;;  %v13856_v35 = vsub.f32 %v23124_v5, %v23664_v55  ;;  %v13883_v55 = vand.u32 4294901760, %v23178_v25 }
0x1b85   :  { %18520 = vmatpush3.bf16.msra.mxu1 %v18519_v45  ;;  %v23660_v45 = vand.u32 4294901760, %v23121_v3 }
0x1b86   :  { %18554 = vmatprep.subr.bf16.mxu1 %v23957_v2  ;;  %v18674_v6 = vpack.c.bf16 %v13836_v43, %v13829_v58  ;;  %v13818_v54 = vand.u32 4294901760, %v13817_v27  ;;  %v23196_v58 = vsub.f32 %v23059_v49, %v13764_v10  ;;  %v23971_v43 = vld [vmem:[#allocation6_spill] sm:$0xff]  ;;  %v23667_v27 = vand.u32 4294901760, %v23182_v59 }
0x1b87   :  { %18654 = vmatpush3.bf16.msra.mxu0 %v23007_v56  ;;  %v23169_v39 = vpack.c.bf16 %v23660_v45, %v13776_v8  ;;  %v13857_v23 = vand.u32 4294901760, %v13856_v35  ;;  %v13870_v49 = vsub.f32 %v23151_v51, %v23666_v47  ;;  %v23973_v10 = vand.u32 4294901760, %v23164_v46 }
0x1b88   :  { %13210 = vmatmul.mubr.f32.vlgmr.msra.gmra.mrb[84].mxu1 %v23954_v11  ;;  %18655 = vmatprep.subr.bf16.mxu0 %v23953_v28  ;;  %v13897_v35 = vand.u32 4294901760, %v23196_v58  ;;  %v23976_v47 = vand.u32 4294901760, %v22626_v29 }
0x1b89   :  { %18556 = vmatpush3.bf16.msra.mxu1 %v23958_v19  ;;  %13452 = vmatprep.mubr.f32.mxu1 %v23959_v57  ;;  %v13842_v57 = vsub.f32 %v23094_v34, %v23658_v14  ;;  %v23970_v14 = vld [vmem:[#allocation5_spill] sm:$0xff] }
0x1b8a   :  { %18558 = vmatprep.subr.bf16.mxu1 %v23960_v21 }
0x1b8b   :  { %18657 = vmatpush3.bf16.msra.mxu0 %v23027_v62  ;;  %v13843_v45 = vand.u32 4294901760, %v13842_v57  ;;  %v23202_v57 = vsub.f32 %v23064_v44, %v13767_v16  ;;  %v13877_v44 = vsub.f32 %v23164_v46, %v23973_v10  ;;  %v23974_v16 = vand.u32 4294901760, %v23085_v12 }
0x1b8c   :  { %18658 = vmatprep.subr.bf16.mxu0 %v23953_v28  ;;  %v18680_v10 = vpack.c.bf16 %v13864_v41, %v13857_v23  ;;  %v13898_v23 = vsub.f32 %v23196_v58, %v13897_v35 }
0x1b8d   :  { %18560 = vmatpush3.bf16.msra.mxu1 %v23961_v18  ;;  %v18677_v0 = vpack.c.bf16 %v13850_v61, %v13843_v45  ;;  %v23219_v61 = vsub.f32 %v23085_v12, %v23974_v16  ;;  %v13891_v45 = vsub.f32 %v23182_v59, %v23667_v27  ;;  %v13904_v9 = vand.u32 4294901760, %v23202_v57 }
0x1b8e   :  { %18562 = vmatprep.subr.bf16.mxu1 %v23962_v48  ;;  %v13878_v16 = vand.u32 4294901760, %v13877_v44  ;;  %v23240_v27 = vsub.f32 %v23116_v15, %v13776_v8 }
0x1b8f   :  { %18660 = vmatpush3.bf16.msra.mxu0 %v23051_v40  ;;  %v13905_v29 = vsub.f32 %v23202_v57, %v13904_v9 }
0x1b90   :  { %18661 = vmatprep.subr.bf16.mxu0 %v23953_v28  ;;  %v13925_v44 = vand.u32 4294901760, %v23240_v27 }
0x1b91   :  { %18564 = vmatpush3.bf16.msra.mxu1 %v23963_v1  ;;  %v13906_v41 = vand.u32 4294901760, %v13905_v29 }
0x1b92   :  { %18566 = vmatprep.subr.bf16.mxu1 %v23964_v52 }
0x1b93   :  { %18663 = vmatpush3.bf16.msra.mxu0 %v23075_v22 }
0x1b94   :  { %18664 = vmatprep.subr.bf16.mxu0 %v23953_v28 }
0x1b95   :  { %18568 = vmatpush3.bf16.msra.mxu1 %v23965_v42 }
0x1b96   :  { %18570 = vmatprep.subr.bf16.mxu1 %v23966_v37 }
0x1b97   :  { %18666 = vmatpush3.bf16.msra.mxu0 %v23105_v20 }
0x1b98   :  { %18667 = vmatprep.subr.bf16.mxu0 %v23953_v28 }
0x1b99   :  { %18572 = vmatpush3.bf16.msra.mxu1 %v23967_v7 }
0x1b9a   :  { %18574 = vmatprep.subr.bf16.mxu1 %v23968_v32 }
0x1b9b   :  { %18669 = vmatpush3.bf16.msra.mxu0 %v23144_v38 }
0x1b9c   :  { %18670 = vmatprep.subr.bf16.mxu0 %v23953_v28 }
0x1b9d   :  { %18576 = vmatpush3.bf16.msra.mxu1 %v23969_v53 }
0x1b9e   :  { %18578 = vmatprep.subr.bf16.mxu1 %v23970_v14 }
0x1b9f   :  { %18672 = vmatpush3.bf16.msra.mxu0 %v23169_v39 }
0x1ba0   :  { %18673 = vmatprep.subr.bf16.mxu0 %v23953_v28 }
0x1ba1   :  { %18580 = vmatpush3.bf16.msra.mxu1 %v23971_v43 }
0x1ba2   :  { %17008 = vmatmul.mubr.f32.vlgmr.msra.gmra.mrb[66].mxu0 %v13818_v54  ;;  %18582 = vmatprep.subr.bf16.mxu1 %v23972_v33  ;;  %v23975_v54 = vand.u32 4294901760, %v23090_v31 }
0x1ba3   :  { %18675 = vmatpush3.bf16.msra.mxu0 %v18674_v6  ;;  %17042 = vmatprep.mubr.msk.f32.mxu0 %vm19134_vm6, %v23955_v63  ;;  %v13884_v6 = vsub.f32 %v23178_v25, %v13883_v55 }
0x1ba4   :  { %18676 = vmatprep.subr.bf16.mxu0 %v23953_v28  ;;  %v23234_v12 = vsub.f32 %v23090_v31, %v23975_v54  ;;  %v13892_v54 = vand.u32 4294901760, %v13891_v45 }
0x1ba5   :  { %18584 = vmatpush3.bf16.msra.mxu1 %v22693_v24  ;;  %v13885_v31 = vand.u32 4294901760, %v13884_v6 }
0x1ba6   :  { %18618 = vmatprep.subr.bf16.mxu1 %v23957_v2  ;;  %v13871_v2 = vand.u32 4294901760, %v13870_v49 }
0x1ba7   :  { %18678 = vmatpush3.bf16.msra.mxu0 %v18677_v0  ;;  %v23977_v0 = vand.u32 4294901760, %v23121_v3  ;;  %v18686_v8 = vpack.c.bf16 %v13892_v54, %v13885_v31 }
0x1ba8   :  { %13456 = vmatmul.mubr.f32.vlgmr.msra.gmra.mrb[86].mxu1 %v23976_v47  ;;  %18679 = vmatprep.subr.bf16.mxu0 %v23953_v28  ;;  %v13899_v47 = vand.u32 4294901760, %v13898_v23 }
0x1ba9   :  { %18620 = vmatpush3.bf16.msra.mxu1 %v23958_v19  ;;  %13726 = vmatprep.mubr.f32.mxu1 %v22324_v17  ;;  %v23254_v15 = vsub.f32 %v23121_v3, %v23977_v0  ;;  %v18683_v19 = vpack.c.bf16 %v13878_v16, %v13871_v2  ;;  %v13911_v17 = vand.u32 4294901760, %v23219_v61 }
0x1baa   :  { %18622 = vmatprep.subr.bf16.mxu1 %v23960_v21  ;;  %v13918_v21 = vand.u32 4294901760, %v23234_v12 }
0x1bab   :  { %18681 = vmatpush3.bf16.msra.mxu0 %v18680_v10  ;;  %v13912_v3 = vsub.f32 %v23219_v61, %v13911_v17  ;;  %v13932_v6 = vand.u32 4294901760, %v23254_v15  ;;  %v13926_v10 = vsub.f32 %v23240_v27, %v13925_v44  ;;  %v18719_v23 = vpack.c.bf16 %v23254_v15, %v23240_v27 }
0x1bac   :  { %18682 = vmatprep.subr.bf16.mxu0 %v23953_v28  ;;  %v13919_v49 = vsub.f32 %v23234_v12, %v13918_v21 }
0x1bad   :  { %18624 = vmatpush3.bf16.msra.mxu1 %v23961_v18  ;;  %v18689_v18 = vpack.c.bf16 %v13906_v41, %v13899_v47  ;;  %v13933_v2 = vsub.f32 %v23254_v15, %v13932_v6  ;;  %v14453_v41 = vld [vmem:[%s23427_s9] ss:$0 sm:$0xff]  ;;  %s19137_s9 = smov 10  }
0x1bae   :  { %18626 = vmatprep.subr.bf16.mxu1 %v23962_v48  ;;  %v13913_v48 = vand.u32 4294901760, %v13912_v3  ;;  %v13920_v45 = vand.u32 4294901760, %v13919_v49 }
0x1baf   :  { %18684 = vmatpush3.bf16.msra.mxu0 %v18683_v19  ;;  %v13934_v16 = vand.u32 4294901760, %v13933_v2  ;;  %v23979_v2 = vand.u32 4294901760, %v23071_v50 }
0x1bb0   :  { %18685 = vmatprep.subr.bf16.mxu0 %v23953_v28 }
0x1bb1   :  { %18628 = vmatpush3.bf16.msra.mxu1 %v23963_v1  ;;  %v18692_v1 = vpack.c.bf16 %v13920_v45, %v13913_v48 }
0x1bb2   :  { %18630 = vmatprep.subr.bf16.mxu1 %v23964_v52  ;;  %v13927_v52 = vand.u32 4294901760, %v13926_v10  ;;  %v23978_v10 = vand.u32 4294901760, %v23068_v36 }
0x1bb3   :  { %18687 = vmatpush3.bf16.msra.mxu0 %v18686_v8 }
0x1bb4   :  { %18688 = vmatprep.subr.bf16.mxu0 %v23953_v28  ;;  %v18695_v31 = vpack.c.bf16 %v13934_v16, %v13927_v52  ;;  %v23980_v16 = vand.u32 4294901760, %v23110_v60 }
0x1bb5   :  { %18632 = vmatpush3.bf16.msra.mxu1 %v23965_v42  ;;  %v18698_v42 = vpack.c.bf16 %v23071_v50, %v23068_v36  ;;  %v23983_v36 = vand.u32 4294901760, %v23124_v5  ;;  %v23984_v50 = vand.u32 4294901760, %v23137_v30 }
0x1bb6   :  { %18634 = vmatprep.subr.bf16.mxu1 %v23966_v37  ;;  %v18701_v37 = vpack.c.bf16 %v23097_v4, %v23094_v34 }
0x1bb7   :  { %18690 = vmatpush3.bf16.msra.mxu0 %v18689_v18 }
0x1bb8   :  { %18691 = vmatprep.subr.bf16.mxu0 %v23953_v28 }
0x1bb9   :  { %18636 = vmatpush3.bf16.msra.mxu1 %v23967_v7  ;;  %v18707_v7 = vpack.c.bf16 %v23164_v46, %v23151_v51 }
0x1bba   :  { %18638 = vmatprep.subr.bf16.mxu1 %v23968_v32  ;;  %v18710_v32 = vpack.c.bf16 %v23182_v59, %v23178_v25  ;;  %v18764_v25 = vpack.c.bf16 %v13918_v21, %v13911_v17 }
0x1bbb   :  { %18693 = vmatpush3.bf16.msra.mxu0 %v18692_v1  ;;  %v18746_v1 = vpack.c.bf16 %v23979_v2, %v23978_v10  ;;  %v23989_v10 = vld [vmem:[#allocation9_spill] sm:$0xff] }
0x1bbc   :  { %18694 = vmatprep.subr.bf16.mxu0 %v23953_v28 }
0x1bbd   :  { %18640 = vmatpush3.bf16.msra.mxu1 %v23969_v53 }
0x1bbe   :  { %18642 = vmatprep.subr.bf16.mxu1 %v23970_v14  ;;  %v18704_v14 = vpack.c.bf16 %v23137_v30, %v23124_v5  ;;  %v18761_v5 = vpack.c.bf16 %v13904_v9, %v13897_v35 }
0x1bbf   :  { %18696 = vmatpush3.bf16.msra.mxu0 %v18695_v31  ;;  %v23981_v31 = vand.u32 4294901760, %v23094_v34  ;;  %v23986_v34 = vand.u32 4294901760, %v23164_v46 }
0x1bc0   :  { %18697 = vmatprep.subr.bf16.mxu0 %v23953_v28 }
0x1bc1   :  { %18644 = vmatpush3.bf16.msra.mxu1 %v23971_v43 }
0x1bc2   :  { %17043 = vmatmul.mubr.f32.vlgmr.msra.gmra.mrb[66].mxu0 %v23079_v26  ;;  %18646 = vmatprep.subr.bf16.mxu1 %v23972_v33  ;;  %v18716_v33 = vpack.c.bf16 %v23234_v12, %v23219_v61 }
0x1bc3   :  { %18699 = vmatpush3.bf16.msra.mxu0 %v18698_v42  ;;  %17077 = vmatprep.mubr.msk.f32.mxu0 %vm19134_vm6, %v23955_v63  ;;  %v23982_v42 = vand.u32 4294901760, %v23097_v4 }
0x1bc4   :  { %18700 = vmatprep.subr.bf16.mxu0 %v23953_v28 }
0x1bc5   :  { %18648 = vmatpush3.bf16.msra.mxu1 %v22693_v24  ;;  %v18713_v24 = vpack.c.bf16 %v23202_v57, %v23196_v58 }
0x1bc7   :  { %18702 = vmatpush3.bf16.msra.mxu0 %v18701_v37  ;;  %v18749_v37 = vpack.c.bf16 %v23982_v42, %v23981_v31 }
0x1bc8   :  { %13728 = vmatmul.mubr.f32.vlgmr.msra.gmra.mrb[88].mxu1 %v23954_v11  ;;  %18703 = vmatprep.subr.bf16.mxu0 %v23953_v28 }
0x1bcb   :  { %18705 = vmatpush3.bf16.msra.mxu0 %v18704_v14  ;;  %v18752_v14 = vpack.c.bf16 %v23984_v50, %v23983_v36 }
0x1bcc   :  { %18706 = vmatprep.subr.bf16.mxu0 %v23953_v28 }
0x1bcf   :  { %18708 = vmatpush3.bf16.msra.mxu0 %v18707_v7  ;;  %v23987_v7 = vand.u32 4294901760, %v23182_v59  ;;  %v18767_v59 = vpack.c.bf16 %v13932_v6, %v13925_v44 }
0x1bd0   :  { %18709 = vmatprep.subr.bf16.mxu0 %v23953_v28 }
0x1bd3   :  { %18711 = vmatpush3.bf16.msra.mxu0 %v18710_v32  ;;  %v18758_v32 = vpack.c.bf16 %v23987_v7, %v13883_v55 }
0x1bd4   :  { %18712 = vmatprep.subr.bf16.mxu0 %v23953_v28 }
0x1bd5   :  { %v15193_v11 = vpop.f32.mrb[56].mxu0 }
0x1bd6   :  { %v15194_v53 = vpop.f32.mrb[57].mxu0 }
0x1bd7   :  { %v15195_v43 = vadd.f32 %v15194_v53, %v15193_v11  ;;  %18714 = vmatpush3.bf16.msra.mxu0 %v18713_v24 }
0x1bd8   :  { %18715 = vmatprep.subr.bf16.mxu0 %v23953_v28 }
0x1bdb   :  { %18717 = vmatpush3.bf16.msra.mxu0 %v18716_v33  ;;  %v15123_v54 = vpop.f32.mrb[76].mxu1 }
0x1bdc   :  { %v15124_v29 = vpop.f32.mrb[77].mxu1  ;;  %18718 = vmatprep.subr.bf16.mxu0 %v23953_v28 }
0x1bdd   :  { %v15125_v0 = vadd.f32 %v15124_v29, %v15123_v54 }
0x1bdf   :  { %18720 = vmatpush3.bf16.msra.mxu0 %v18719_v23  ;;  %v12118_v18 = vadd.f32 %v15125_v0, %v14453_v41  ;;  %v23988_v41 = vmov 0  }
0x1be0   :  { %18721 = vmatprep.subr.bf16.mxu0 %v23953_v28 }
0x1be2   :  { %17078 = vmatmul.mubr.f32.vlgmr.msra.gmra.mrb[66].mxu0 %v23110_v60  ;;  %v23985_v60 = vand.u32 4294901760, %v23151_v51 }
0x1be3   :  { %18723 = vmatpush3.bf16.msra.mxu0 %v22989_v13  ;;  %17112 = vmatprep.mubr.msk.f32.mxu0 %vm19134_vm6, %v23955_v63 }
0x1be4   :  { %18724 = vmatprep.subr.bf16.mxu0 %v23953_v28  ;;  %v18755_v4 = vpack.c.bf16 %v23986_v34, %v23985_v60 }
0x1be7   :  { %18726 = vmatpush3.bf16.msra.mxu0 %v23007_v56 }
0x1be8   :  { %18727 = vmatprep.subr.bf16.mxu0 %v23953_v28 }
0x1beb   :  { %18729 = vmatpush3.bf16.msra.mxu0 %v23027_v62 }
0x1bec   :  { %18730 = vmatprep.subr.bf16.mxu0 %v23953_v28 }
0x1bef   :  { %18732 = vmatpush3.bf16.msra.mxu0 %v23051_v40 }
0x1bf0   :  { %18733 = vmatprep.subr.bf16.mxu0 %v23953_v28 }
0x1bf3   :  { %18735 = vmatpush3.bf16.msra.mxu0 %v23075_v22 }
0x1bf4   :  { %18736 = vmatprep.subr.bf16.mxu0 %v23953_v28 }
0x1bf5   :  { %v15263_v19 = vpop.f32.mrb[58].mxu0 }
0x1bf6   :  { %v15264_v8 = vpop.f32.mrb[59].mxu0 }
0x1bf7   :  { %v15265_v47 = vadd.f32 %v15264_v8, %v15263_v19  ;;  %18738 = vmatpush3.bf16.msra.mxu0 %v23105_v20 }
0x1bf8   :  { %18739 = vmatprep.subr.bf16.mxu0 %v23953_v28 }
0x1bfb   :  { %v15158_v3 = vpop.f32.mrb[78].mxu1  ;;  %18741 = vmatpush3.bf16.msra.mxu0 %v23144_v38 }
0x1bfc   :  { %v15159_v49 = vpop.f32.mrb[79].mxu1  ;;  %18742 = vmatprep.subr.bf16.mxu0 %v23953_v28 }
0x1bfd   :  { %v15160_v48 = vadd.f32 %v15159_v49, %v15158_v3 }
0x1bff   :  { %v12350_v45 = vadd.f32 %v15160_v48, %v12118_v18  ;;  %18744 = vmatpush3.bf16.msra.mxu0 %v23169_v39 }
0x1c00   :  { %18745 = vmatprep.subr.bf16.mxu0 %v23953_v28 }
0x1c01   :  { %v12488_v52 = vadd.f32 %v15195_v43, %v12350_v45 }
0x1c02   :  { %17113 = vmatmul.mubr.f32.vlgmr.msra.gmra.mrb[66].mxu0 %v23980_v16 }
0x1c03   :  { %18747 = vmatpush3.bf16.msra.mxu0 %v18746_v1  ;;  %17147 = vmatprep.mubr.msk.f32.mxu0 %vm19134_vm6, %v23955_v63 }
0x1c04   :  { %18748 = vmatprep.subr.bf16.mxu0 %v23953_v28 }
0x1c07   :  { %18750 = vmatpush3.bf16.msra.mxu0 %v18749_v37 }
0x1c08   :  { %18751 = vmatprep.subr.bf16.mxu0 %v23953_v28 }
0x1c0b   :  { %18753 = vmatpush3.bf16.msra.mxu0 %v18752_v14 }
0x1c0c   :  { %18754 = vmatprep.subr.bf16.mxu0 %v23953_v28 }
0x1c0f   :  { %18756 = vmatpush3.bf16.msra.mxu0 %v18755_v4 }
0x1c10   :  { %18757 = vmatprep.subr.bf16.mxu0 %v23953_v28 }
0x1c13   :  { %18759 = vmatpush3.bf16.msra.mxu0 %v18758_v32 }
0x1c14   :  { %18760 = vmatprep.subr.bf16.mxu0 %v23953_v28 }
0x1c15   :  { %v15333_v46 = vpop.f32.mrb[60].mxu0 }
0x1c16   :  { %v15334_v30 = vpop.f32.mrb[61].mxu0 }
0x1c17   :  { %v15335_v51 = vadd.f32 %v15334_v30, %v15333_v46  ;;  %18762 = vmatpush3.bf16.msra.mxu0 %v18761_v5 }
0x1c18   :  { %18763 = vmatprep.subr.bf16.mxu0 %v23953_v28 }
0x1c1b   :  { %v15228_v55 = vpop.f32.mrb[80].mxu1  ;;  %18765 = vmatpush3.bf16.msra.mxu0 %v18764_v25 }
0x1c1c   :  { %v15229_v58 = vpop.f32.mrb[81].mxu1  ;;  %18766 = vmatprep.subr.bf16.mxu0 %v23953_v28 }
0x1c1d   :  { %v15230_v57 = vadd.f32 %v15229_v58, %v15228_v55 }
0x1c1f   :  { %v12596_v35 = vadd.f32 %v15230_v57, %v12488_v52  ;;  %18768 = vmatpush3.bf16.msra.mxu0 %v18767_v59 }
0x1c20   :  { %18769 = vmatprep.subr.bf16.mxu0 %v23953_v28 }
0x1c21   :  { %v12764_v61 = vadd.f32 %v15265_v47, %v12596_v35 }
0x1c22   :  { %17148 = vmatmul.mubr.f32.vlgmr.msra.gmra.mrb[66].mxu0 %v23079_v26 }
0x1c23   :  { %18771 = vmatpush3.bf16.msra.mxu0 %v22989_v13  ;;  %17182 = vmatprep.mubr.msk.f32.mxu0 %vm19134_vm6, %v23955_v63 }
0x1c24   :  { %18772 = vmatprep.subr.bf16.mxu0 %v23953_v28 }
0x1c27   :  { %18774 = vmatpush3.bf16.msra.mxu0 %v23007_v56 }
0x1c28   :  { %18775 = vmatprep.subr.bf16.mxu0 %v23953_v28 }
0x1c2b   :  { %18777 = vmatpush3.bf16.msra.mxu0 %v23027_v62 }
0x1c2c   :  { %18778 = vmatprep.subr.bf16.mxu0 %v23953_v28 }
0x1c2f   :  { %18780 = vmatpush3.bf16.msra.mxu0 %v23051_v40 }
0x1c30   :  { %18781 = vmatprep.subr.bf16.mxu0 %v23953_v28 }
0x1c33   :  { %18783 = vmatpush3.bf16.msra.mxu0 %v23075_v22 }
0x1c34   :  { %18784 = vmatprep.subr.bf16.mxu0 %v23953_v28 }
0x1c35   :  { %v15403_v13 = vpop.f32.mrb[62].mxu0 }
0x1c36   :  { %v15404_v63 = vpop.f32.mrb[63].mxu0 }
0x1c37   :  { %v15405_v27 = vadd.f32 %v15404_v63, %v15403_v13  ;;  %18786 = vmatpush3.bf16.msra.mxu0 %v23105_v20 }
0x1c38   :  { %18787 = vmatprep.subr.bf16.mxu0 %v23953_v28 }
0x1c3b   :  { %v15298_v56 = vpop.f32.mrb[82].mxu1  ;;  %18789 = vmatpush3.bf16.msra.mxu0 %v23144_v38 }
0x1c3c   :  { %v15299_v62 = vpop.f32.mrb[83].mxu1  ;;  %18790 = vmatprep.subr.bf16.mxu0 %v23953_v28 }
0x1c3d   :  { %v15300_v40 = vadd.f32 %v15299_v62, %v15298_v56 }
0x1c3f   :  { %v12868_v9 = vadd.f32 %v15300_v40, %v12764_v61  ;;  %18792 = vmatpush3.bf16.msra.mxu0 %v23169_v39 }
0x1c41   :  { %v12980_v22 = vadd.f32 %v15335_v51, %v12868_v9 }
0x1c42   :  { %17183 = vmatmul.mubr.f32.vlgmr.msra.gmra.mrb[66].mxu0 %v23079_v26 }
0x1c55   :  { %v15473_v12 = vpop.f32.mrb[64].mxu0 }
0x1c56   :  { %v15474_v15 = vpop.f32.mrb[65].mxu0 }
0x1c57   :  { %v15475_v17 = vadd.f32 %v15474_v15, %v15473_v12 }
0x1c5b   :  { %v15368_v21 = vpop.f32.mrb[84].mxu1 }
0x1c5c   :  { %v15369_v20 = vpop.f32.mrb[85].mxu1 }
0x1c5d   :  { %v15370_v44 = vadd.f32 %v15369_v20, %v15368_v21 }
0x1c5f   :  { %v13212_v6 = vadd.f32 %v15370_v44, %v12980_v22 }
0x1c61   :  { %v13350_v24 = vadd.f32 %v15405_v27, %v13212_v6 }
0x1c7b   :  { %v15438_v11 = vpop.f32.mrb[86].mxu1 }
0x1c7c   :  { %v15439_v38 = vpop.f32.mrb[87].mxu1 }
0x1c7d   :  { %v15440_v53 = vadd.f32 %v15439_v38, %v15438_v11 }
0x1c7f   :  { %v13458_v43 = vadd.f32 %v15440_v53, %v13350_v24 }
0x1c81   :  { %v13626_v28 = vadd.f32 %v15475_v17, %v13458_v43 }
0x1c9b   :  { %v15508_v33 = vpop.f32.mrb[88].mxu1 }
0x1c9c   :  { %v15509_v54 = vpop.f32.mrb[89].mxu1 }
0x1c9d   :  { %v15510_v23 = vadd.f32 %v15509_v54, %v15508_v33 }
0x1c9f   :  { %v13730_v39 = vadd.f32 %v15510_v23, %v13626_v28 }
0x1d15   :  { %v14370_v29 = vpop.f32.mrb[66].mxu0 }
0x1d16   :  { %v18808_v0 = vadd.f32 %v14370_v29, %v13730_v39  ;;  %v17184_v26 = vpop.f32.mrb[67].mxu0 }
0x1d18   :  { %14383 = vrot.lane.b32.xlu1 %v18808_v0, %s19137_s9  ;;  %14388 = vrot.lane.b32.xlu0 %v18808_v0, %s19138_s30  ;;  %v14454_v52 = vmul.f32 -1.442695, %v18808_v0 }
0x1d1a   :  { %19127 = vpow2.f32 %v14454_v52 }
0x1d24   :  { %v19128_v16 = vpop.eup %19127 }
0x1d25   :  { %v14377_v31 = vadd.f32 1.0, %v19128_v16 }
0x1d27   :  { %19129 = vrcp.f32 %v14377_v31 }
0x1d31   :  { %v19130_v42 = vpop.eup %19129 }
0x1d32   :  { %vm14380_vm12 = vcmp.ge.f32.partialorder %v19130_v42, 0.4 }
0x1d33   :  { %v14381_v50 = vsel %vm14380_vm12, 1, %v23988_v41 }
0x1d8a   :  { %v14384_v19 = vpop.permute.xlu1 %14383  ;;  %v14389_v8 = vpop.permute.xlu0 %14388 }
0x1d8b   :  { %vm14386_vm9 = vcmp.gt.f32.partialorder %v18808_v0, %v14384_v19  ;;  %v14391_v47 = vmax.f32 %v18808_v0, %v14389_v8 }
0x1d8c   :  { %v14387_v3 = vsel %vm14386_vm9, 1, %v23988_v41 }
0x1d8d   :  { %14397 = vrot.lane.b32.xlu1 %v14387_v3, %s19137_s9  ;;  %14393 = vrot.lane.b32.xlu0 %v14391_v47, %s19139_s1 }
0x1d91   :  { %14403 = vrot.lane.b32.xlu1 %v18808_v0, %s19135_s3 }
0x1dff   :  { %v14398_v49 = vpop.permute.xlu1 %14397  ;;  %v14394_v18 = vpop.permute.xlu0 %14393 }
0x1e00   :  { %vm14396_vm10 = vcmp.gt.f32.partialorder %v18808_v0, %v14394_v18 }
0x1e01   :  { %v14399_v48 = vsel %vm14396_vm10, 2, %v14398_v49 }
0x1e02   :  { %14400 = vrot.lane.b32.xlu0 %v14399_v48, %s19140_s12 }
0x1e03   :  { %v14404_v45 = vpop.permute.xlu1 %14403 }
0x1e04   :  { %v14406_v2 = vsel %vm852_vm7, %v23989_v10, %v14404_v45 }
0x1e05   :  { %v14408_v1 = vsel %vm14407_vm11, %v14406_v2, 0.0 }
0x1e06   :  { %14409 = vst [vmem:[%s23428_s10] sm:$0xf] %v14408_v1 }
0x1e74   :  { %v14401_v37 = vpop.permute.xlu0 %14400 }
0x1e75   :  { %v14402_v36 = vsel %vm14380_vm12, %v14401_v37, 4294967295 }
0x1e76   :  { %14410 = vrot.lane.b32.xlu0 %v14402_v36, %s19137_s9 }
0x1ee8   :  { %v14411_v14 = vpop.permute.xlu0 %14410 }
0x1ee9   :  { %v14413_v60 = vsel %vm14412_vm13, %v14381_v50, %v14411_v14 }
0x1eea   :  { %v14415_v34 = vsel %vm14414_vm14, %v14413_v60, 0 }
0x1eeb   :  { %14416 = vst [vmem:[%s23429_s11] sm:$0xf] %v14415_v34 }

</bundles_post_ra>
